<compile_context>
chip_gen: v5e
topology: v5e:2x2
jax: 0.10.0
libtpu: 0.0.40
codegen_flags: <defaults>
</compile_context>

<pallas_src>
import functools

import jax
import jax.numpy as jnp
from jax import lax
from jax.experimental import pallas as pl
from jax.experimental.pallas import tpu as pltpu

HIDDEN = 128
NUM_LAYERS = 3


def _run_layer(gx_scr, whh_ref, seq_scr, write_seq, T, B, H, unroll):
    """One LSTM layer's recurrence.

    gx_scr : (T, B, 4H) bf16 VMEM scratch holding x_t @ W_ih + (b_ih + b_hh)
    whh_ref: (H, 4H)    bf16 pre-transposed recurrent weights (PyTorch order i,f,g,o)
    seq_scr: (T, B, H)  bf16 VMEM scratch receiving h_t (only if write_seq)
    Returns h_{T-1}: (B, H) f32.
    """

    def step(t, carry):
        h, c = carry
        # bf16 MXU matmul, f32 accumulation; gate math stays f32 (VPU/EUP).
        rec = jnp.dot(h.astype(jnp.bfloat16), whh_ref[...],
                      preferred_element_type=jnp.float32)
        gates = gx_scr[t].astype(jnp.float32) + rec            # (B, 4H)
        i_g = jax.nn.sigmoid(gates[:, 0 * H:1 * H])
        f_g = jax.nn.sigmoid(gates[:, 1 * H:2 * H])
        g_g = jnp.tanh(gates[:, 2 * H:3 * H])
        o_g = jax.nn.sigmoid(gates[:, 3 * H:4 * H])
        c_new = f_g * c + i_g * g_g
        h_new = o_g * jnp.tanh(c_new)
        if write_seq:
            seq_scr[t] = h_new.astype(jnp.bfloat16)
        return h_new, c_new

    h0 = jnp.zeros((B, H), jnp.float32)
    c0 = jnp.zeros((B, H), jnp.float32)
    h, _ = lax.fori_loop(0, T, step, (h0, c0), unroll=unroll)
    return h


def _lstm_fused_kernel(
    x_ref,
    wih0_ref, whh0_ref, b0_ref,
    wih1_ref, whh1_ref, b1_ref,
    wih2_ref, whh2_ref, b2_ref,
    wfc_ref, bfc_ref,
    out_ref,
    seq_scr, gx_scr,
    *, unroll,
):
    T, B, D = x_ref.shape
    H = HIDDEN

    # ---- Layer 0: hoisted input projection (one big MXU matmul), then recurrence ----
    x2d = x_ref[...].reshape(T * B, D).astype(jnp.bfloat16)
    gx_scr[...] = (
        jnp.dot(x2d, wih0_ref[...], preferred_element_type=jnp.float32) + b0_ref[...]
    ).astype(jnp.bfloat16).reshape(T, B, 4 * H)
    _run_layer(gx_scr, whh0_ref, seq_scr, True, T, B, H, unroll)

    # ---- Layer 1 (seq_scr fully consumed into gx_scr before being overwritten) ----
    s2d = seq_scr[...].reshape(T * B, H)
    gx_scr[...] = (
        jnp.dot(s2d, wih1_ref[...], preferred_element_type=jnp.float32) + b1_ref[...]
    ).astype(jnp.bfloat16).reshape(T, B, 4 * H)
    _run_layer(gx_scr, whh1_ref, seq_scr, True, T, B, H, unroll)

    # ---- Layer 2 (last): only h_{T-1} is needed ----
    s2d = seq_scr[...].reshape(T * B, H)
    gx_scr[...] = (
        jnp.dot(s2d, wih2_ref[...], preferred_element_type=jnp.float32) + b2_ref[...]
    ).astype(jnp.bfloat16).reshape(T, B, 4 * H)
    h_last = _run_layer(gx_scr, whh2_ref, seq_scr, False, T, B, H, unroll)

    # ---- FC head Linear(128 -> 1): VPU multiply + lane reduce (no degenerate MXU) ----
    out_ref[...] = (
        jnp.sum(h_last * wfc_ref[...], axis=-1, keepdims=True) + bfc_ref[...]
    ).astype(out_ref.dtype)


def _round_up(v, m):
    return (v + m - 1) // m * m


def _padded_bytes(shape, dtype):
    """VMEM footprint including lane (128) / sublane (8 per 32-bit) padding."""
    item = jnp.dtype(dtype).itemsize
    sub = {4: 8, 2: 16, 1: 32}.get(item, 8)
    if len(shape) < 2:
        n = shape[0] if shape else 1
        return _round_up(n * item, 512)
    lead = 1
    for d in shape[:-2]:
        lead *= int(d)
    return lead * _round_up(int(shape[-2]), sub) * _round_up(int(shape[-1]), 128) * item


def _const_index_map(ndim):
    return lambda i: (0,) * ndim


def _pick_b_tile(b_pad):
    # Prefer >=2 tiles so v7x's two TensorCores both get work; keep tiles 8-aligned.
    if b_pad >= 256 and b_pad % 256 == 0:
        return 128
    if b_pad >= 16 and b_pad % 16 == 0:
        return b_pad // 2
    return b_pad


def _fused_forward(x_tm, params, b_tile):
    """x_tm: (T, B_pad, D) time-major f32. Returns (B_pad, 1) f32."""
    T, B_pad, D = x_tm.shape
    n_tiles = B_pad // b_tile

    flat, flat_specs = [], []
    for layer in params["layers"]:
        for name in ("w_ih_t", "w_hh_t", "b"):
            a = layer[name]
            flat.append(a)
            flat_specs.append(pl.BlockSpec(a.shape, _const_index_map(a.ndim)))
    for name in ("fc_w_row", "fc_b"):
        a = params[name]
        flat.append(a)
        flat_specs.append(pl.BlockSpec(a.shape, _const_index_map(a.ndim)))

    # Unroll the serial time loop, scaled to the batch tile so per-step live
    # state (gates + h + c) does not spill the 64-vreg file.
    if T <= 8:
        unroll = True
    else:
        unroll = max(1, min(8, 256 // max(b_tile, 8)))

    # Padding-aware, generation-aware VMEM limit.
    est = 2 * _padded_bytes((T, b_tile, D), jnp.float32)            # x block (dbl-buf)
    est += sum(_padded_bytes(a.shape, a.dtype) for a in flat)       # weights (resident)
    est += _padded_bytes((T, b_tile, HIDDEN), jnp.bfloat16)         # seq scratch
    est += _padded_bytes((T, b_tile, 4 * HIDDEN), jnp.bfloat16)     # gx scratch
    est += 2 * _padded_bytes((b_tile, 1), jnp.float32)              # output block
    try:
        info = pltpu.get_tpu_info()
        cap = int(getattr(info, "vmem_capacity_bytes", 64 << 20))
    except Exception:
        cap = 64 << 20
    vmem_limit = int(min(max(int(est * 1.5) + (4 << 20), 32 << 20), int(cap * 0.9)))

    return pl.pallas_call(
        functools.partial(_lstm_fused_kernel, unroll=unroll),
        out_shape=jax.ShapeDtypeStruct((B_pad, 1), jnp.float32),
        grid=(n_tiles,),
        in_specs=[pl.BlockSpec((T, b_tile, D), lambda i: (0, i, 0))] + flat_specs,
        out_specs=pl.BlockSpec((b_tile, 1), lambda i: (i, 0)),
        scratch_shapes=[
            pltpu.VMEM((T, b_tile, HIDDEN), jnp.bfloat16),      # inter-layer hidden seq
            pltpu.VMEM((T, b_tile, 4 * HIDDEN), jnp.bfloat16),  # hoisted gate projections
        ],
        compiler_params=pltpu.CompilerParams(
            dimension_semantics=("parallel",),
            vmem_limit_bytes=vmem_limit,
        ),
    )(x_tm, *flat)


def init_params(key, input_size):
    """PyTorch-shaped init U(-1/sqrt(H), 1/sqrt(H)); matmul operands stored bf16."""
    bound = 1.0 / jnp.sqrt(jnp.float32(HIDDEN))
    params = {"layers": []}
    for layer in range(NUM_LAYERS):
        din = input_size if layer == 0 else HIDDEN
        key, k1, k2, k3, k4 = jax.random.split(key, 5)
        w_ih = jax.random.uniform(k1, (4 * HIDDEN, din), jnp.float32, -bound, bound)
        w_hh = jax.random.uniform(k2, (4 * HIDDEN, HIDDEN), jnp.float32, -bound, bound)
        b_ih = jax.random.uniform(k3, (4 * HIDDEN,), jnp.float32, -bound, bound)
        b_hh = jax.random.uniform(k4, (4 * HIDDEN,), jnp.float32, -bound, bound)
        params["layers"].append(
            {
                "w_ih_t": w_ih.T.astype(jnp.bfloat16),          # (Din, 4H) bf16 MXU operand
                "w_hh_t": w_hh.T.astype(jnp.bfloat16),          # (H, 4H)   bf16 MXU operand
                "b": (b_ih + b_hh).reshape(1, 4 * HIDDEN),      # (1, 4H)   f32
            }
        )
    key, k1, k2 = jax.random.split(key, 3)
    params["fc_w_row"] = jax.random.uniform(k1, (1, HIDDEN), jnp.float32, -bound, bound)
    params["fc_b"] = jax.random.uniform(k2, (1, 1), jnp.float32, -bound, bound)
    return params


@jax.jit
def lstm_model_forward(params, x):
    """x: (B, T, input_size) batch-first, like the PyTorch module. Returns (B, 1)."""
    B, T, D = x.shape
    B_pad = B + ((-B) % 8)  # sublane-align the batch so the recurrence is vreg-dense
    x_tm = jnp.transpose(x.astype(jnp.float32), (1, 0, 2))  # (T, B, D) time-major
    if B_pad != B:
        x_tm = jnp.pad(x_tm, ((0, 0), (0, B_pad - B), (0, 0)))
    b_tile = _pick_b_tile(B_pad)
    out = _fused_forward(x_tm, params, b_tile)
    return out[:B]


if __name__ == "__main__":
    key = jax.random.PRNGKey(0)
    k_params, k_x = jax.random.split(key)

    batch, seq, input_size = 2, 8, 8
    params = init_params(k_params, input_size)
    x = jax.random.normal(k_x, (batch, seq, input_size), jnp.float32)

    out = lstm_model_forward(params, x)
    jax.block_until_ready(out)
    assert out.shape == (batch, 1) and out.dtype == jnp.float32
    print("KERNEL_OK")
</pallas_src>

<mosaic_0001>
module attributes {stable_mosaic.version = 11 : i64} {
  func.func @_lstm_fused_kernel(%arg0: i32, %arg1: memref<8x8x8xf32, #tpu.memory_space<vmem>>, %arg2: memref<8x512xbf16, #tpu.memory_space<vmem>>, %arg3: memref<128x512xbf16, #tpu.memory_space<vmem>>, %arg4: memref<1x512xf32, #tpu.memory_space<vmem>>, %arg5: memref<128x512xbf16, #tpu.memory_space<vmem>>, %arg6: memref<128x512xbf16, #tpu.memory_space<vmem>>, %arg7: memref<1x512xf32, #tpu.memory_space<vmem>>, %arg8: memref<128x512xbf16, #tpu.memory_space<vmem>>, %arg9: memref<128x512xbf16, #tpu.memory_space<vmem>>, %arg10: memref<1x512xf32, #tpu.memory_space<vmem>>, %arg11: memref<1x128xf32, #tpu.memory_space<vmem>>, %arg12: memref<1x1xf32, #tpu.memory_space<vmem>>, %arg13: memref<8x1xf32, #tpu.memory_space<vmem>>, %arg14: memref<8x8x128xbf16, #tpu.memory_space<vmem>>, %arg15: memref<8x8x512xbf16, #tpu.memory_space<vmem>>) attributes {dimension_semantics = [#tpu.dimension_semantics<parallel>], iteration_bounds = array<i64: 1>, scalar_prefetch = 0 : i64, scratch_operands = 2 : i64, tpu.core_type = #tpu.core_type<tc>, window_params = [{transform_indices = @transform_0, window_bounds = array<i64: 8, 8, 8>}, {pipeline_mode = #tpu.pipeline_mode<synchronous>, transform_indices = @transform_1, window_bounds = array<i64: 8, 512>}, {pipeline_mode = #tpu.pipeline_mode<synchronous>, transform_indices = @transform_2, window_bounds = array<i64: 128, 512>}, {pipeline_mode = #tpu.pipeline_mode<synchronous>, transform_indices = @transform_3, window_bounds = array<i64: 1, 512>}, {pipeline_mode = #tpu.pipeline_mode<synchronous>, transform_indices = @transform_4, window_bounds = array<i64: 128, 512>}, {pipeline_mode = #tpu.pipeline_mode<synchronous>, transform_indices = @transform_5, window_bounds = array<i64: 128, 512>}, {pipeline_mode = #tpu.pipeline_mode<synchronous>, transform_indices = @transform_6, window_bounds = array<i64: 1, 512>}, {pipeline_mode = #tpu.pipeline_mode<synchronous>, transform_indices = @transform_7, window_bounds = array<i64: 128, 512>}, {pipeline_mode = #tpu.pipeline_mode<synchronous>, transform_indices = @transform_8, window_bounds = array<i64: 128, 512>}, {pipeline_mode = #tpu.pipeline_mode<synchronous>, transform_indices = @transform_9, window_bounds = array<i64: 1, 512>}, {pipeline_mode = #tpu.pipeline_mode<synchronous>, transform_indices = @transform_10, window_bounds = array<i64: 1, 128>}, {pipeline_mode = #tpu.pipeline_mode<synchronous>, transform_indices = @transform_11, window_bounds = array<i64: 1, 1>}, {transform_indices = @transform_12, window_bounds = array<i64: 8, 1>}]} {
    %c0 = arith.constant 0 : index
    %c0_0 = arith.constant 0 : index
    %c0_1 = arith.constant 0 : index
    %0 = vector.load %arg1[%c0, %c0_0, %c0_1] : memref<8x8x8xf32, #tpu.memory_space<vmem>>, vector<8x8x8xf32>
    %1 = vector.shape_cast %0 : vector<8x8x8xf32> to vector<64x8xf32>
    %2 = arith.truncf %1 : vector<64x8xf32> to vector<64x8xbf16>
    %c0_2 = arith.constant 0 : index
    %c0_3 = arith.constant 0 : index
    %3 = vector.load %arg2[%c0_2, %c0_3] : memref<8x512xbf16, #tpu.memory_space<vmem>>, vector<8x512xbf16>
    %cst = arith.constant dense<0.000000e+00> : vector<64x512xf32>
    %4 = tpu.matmul %2, %3, %cst {dimension_numbers = #tpu.dot_dimension_numbers<[1], [0], [0], [1], [0, 0, 1, 1], [], []>} : vector<64x8xbf16>, vector<8x512xbf16>, vector<64x512xf32> -> vector<64x512xf32>
    %c0_4 = arith.constant 0 : index
    %c0_5 = arith.constant 0 : index
    %5 = vector.load %arg4[%c0_4, %c0_5] : memref<1x512xf32, #tpu.memory_space<vmem>>, vector<1x512xf32>
    %6 = vector.broadcast %5 : vector<1x512xf32> to vector<64x512xf32>
    %7 = arith.addf %4, %6 : vector<64x512xf32>
    %8 = arith.truncf %7 : vector<64x512xf32> to vector<64x512xbf16>
    %9 = vector.shape_cast %8 : vector<64x512xbf16> to vector<8x8x512xbf16>
    %c0_6 = arith.constant 0 : index
    %c0_7 = arith.constant 0 : index
    %c0_8 = arith.constant 0 : index
    %10 = vector.load %arg15[%c0_6, %c0_7, %c0_8] : memref<8x8x512xbf16, #tpu.memory_space<vmem>>, vector<8x8x512xbf16>
    tpu.vector_store %arg15[%c0_6, %c0_7, %c0_8], %9 {strides = array<i32>} : memref<8x8x512xbf16, #tpu.memory_space<vmem>>, vector<8x8x512xbf16>,
    %cst_9 = arith.constant 0.000000e+00 : f32
    %11 = vector.broadcast %cst_9 : f32 to vector<8x128xf32>
    %cst_10 = arith.constant 0.000000e+00 : f32
    %12 = vector.broadcast %cst_10 : f32 to vector<8x128xf32>
    %c0_i32 = arith.constant 0 : i32
    %13 = arith.truncf %11 : vector<8x128xf32> to vector<8x128xbf16>
    %c0_11 = arith.constant 0 : index
    %c0_12 = arith.constant 0 : index
    %14 = vector.load %arg3[%c0_11, %c0_12] : memref<128x512xbf16, #tpu.memory_space<vmem>>, vector<128x512xbf16>
    %cst_13 = arith.constant dense<0.000000e+00> : vector<8x512xf32>
    %15 = tpu.matmul %13, %14, %cst_13 {dimension_numbers = #tpu.dot_dimension_numbers<[1], [0], [0], [1], [0, 0, 1, 1], [], []>} : vector<8x128xbf16>, vector<128x512xbf16>, vector<8x512xf32> -> vector<8x512xf32>
    %16 = arith.index_cast %c0_i32 : i32 to index
    %c0_14 = arith.constant 0 : index
    %c0_15 = arith.constant 0 : index
    %17 = vector.load %arg15[%16, %c0_14, %c0_15] : memref<8x8x512xbf16, #tpu.memory_space<vmem>>, vector<1x8x512xbf16>
    %18 = vector.shape_cast %17 : vector<1x8x512xbf16> to vector<8x512xbf16>
    %19 = arith.extf %18 : vector<8x512xbf16> to vector<8x512xf32>
    %20 = arith.addf %19, %15 : vector<8x512xf32>
    %21 = vector.extract_strided_slice %20 {offsets = [0, 0], sizes = [8, 128], strides = [1, 1]} : vector<8x512xf32> to vector<8x128xf32>
    %22 = arith.negf %21 : vector<8x128xf32>
    %23 = math.exp %22 : vector<8x128xf32>
    %cst_16 = arith.constant 1.000000e+00 : f32
    %24 = vector.broadcast %cst_16 : f32 to vector<8x128xf32>
    %25 = arith.addf %24, %23 : vector<8x128xf32>
    %26 = arith.divf %24, %25 : vector<8x128xf32>
    %27 = vector.extract_strided_slice %20 {offsets = [0, 128], sizes = [8, 128], strides = [1, 1]} : vector<8x512xf32> to vector<8x128xf32>
    %28 = arith.negf %27 : vector<8x128xf32>
    %29 = math.exp %28 : vector<8x128xf32>
    %cst_17 = arith.constant 1.000000e+00 : f32
    %30 = vector.broadcast %cst_17 : f32 to vector<8x128xf32>
    %31 = arith.addf %30, %29 : vector<8x128xf32>
    %32 = arith.divf %30, %31 : vector<8x128xf32>
    %33 = vector.extract_strided_slice %20 {offsets = [0, 256], sizes = [8, 128], strides = [1, 1]} : vector<8x512xf32> to vector<8x128xf32>
    %34 = math.tanh %33 : vector<8x128xf32>
    %35 = vector.extract_strided_slice %20 {offsets = [0, 384], sizes = [8, 128], strides = [1, 1]} : vector<8x512xf32> to vector<8x128xf32>
    %36 = arith.negf %35 : vector<8x128xf32>
    %37 = math.exp %36 : vector<8x128xf32>
    %cst_18 = arith.constant 1.000000e+00 : f32
    %38 = vector.broadcast %cst_18 : f32 to vector<8x128xf32>
    %39 = arith.addf %38, %37 : vector<8x128xf32>
    %40 = arith.divf %38, %39 : vector<8x128xf32>
    %41 = arith.mulf %32, %12 : vector<8x128xf32>
    %42 = arith.mulf %26, %34 : vector<8x128xf32>
    %43 = arith.addf %41, %42 : vector<8x128xf32>
    %44 = math.tanh %43 : vector<8x128xf32>
    %45 = arith.mulf %40, %44 : vector<8x128xf32>
    %46 = arith.truncf %45 : vector<8x128xf32> to vector<8x128xbf16>
    %47 = arith.index_cast %c0_i32 : i32 to index
    %c0_19 = arith.constant 0 : index
    %c0_20 = arith.constant 0 : index
    %48 = vector.load %arg14[%47, %c0_19, %c0_20] : memref<8x8x128xbf16, #tpu.memory_space<vmem>>, vector<1x8x128xbf16>
    %49 = vector.shape_cast %48 : vector<1x8x128xbf16> to vector<8x128xbf16>
    %50 = vector.shape_cast %46 : vector<8x128xbf16> to vector<1x8x128xbf16>
    tpu.vector_store %arg14[%47, %c0_19, %c0_20], %50 {strides = array<i32>} : memref<8x8x128xbf16, #tpu.memory_space<vmem>>, vector<1x8x128xbf16>,
    %c1_i32 = arith.constant 1 : i32
    %51 = arith.truncf %45 : vector<8x128xf32> to vector<8x128xbf16>
    %c0_21 = arith.constant 0 : index
    %c0_22 = arith.constant 0 : index
    %52 = vector.load %arg3[%c0_21, %c0_22] : memref<128x512xbf16, #tpu.memory_space<vmem>>, vector<128x512xbf16>
    %cst_23 = arith.constant dense<0.000000e+00> : vector<8x512xf32>
    %53 = tpu.matmul %51, %52, %cst_23 {dimension_numbers = #tpu.dot_dimension_numbers<[1], [0], [0], [1], [0, 0, 1, 1], [], []>} : vector<8x128xbf16>, vector<128x512xbf16>, vector<8x512xf32> -> vector<8x512xf32>
    %54 = arith.index_cast %c1_i32 : i32 to index
    %c0_24 = arith.constant 0 : index
    %c0_25 = arith.constant 0 : index
    %55 = vector.load %arg15[%54, %c0_24, %c0_25] : memref<8x8x512xbf16, #tpu.memory_space<vmem>>, vector<1x8x512xbf16>
    %56 = vector.shape_cast %55 : vector<1x8x512xbf16> to vector<8x512xbf16>
    %57 = arith.extf %56 : vector<8x512xbf16> to vector<8x512xf32>
    %58 = arith.addf %57, %53 : vector<8x512xf32>
    %59 = vector.extract_strided_slice %58 {offsets = [0, 0], sizes = [8, 128], strides = [1, 1]} : vector<8x512xf32> to vector<8x128xf32>
    %60 = arith.negf %59 : vector<8x128xf32>
    %61 = math.exp %60 : vector<8x128xf32>
    %cst_26 = arith.constant 1.000000e+00 : f32
    %62 = vector.broadcast %cst_26 : f32 to vector<8x128xf32>
    %63 = arith.addf %62, %61 : vector<8x128xf32>
    %64 = arith.divf %62, %63 : vector<8x128xf32>
    %65 = vector.extract_strided_slice %58 {offsets = [0, 128], sizes = [8, 128], strides = [1, 1]} : vector<8x512xf32> to vector<8x128xf32>
    %66 = arith.negf %65 : vector<8x128xf32>
    %67 = math.exp %66 : vector<8x128xf32>
    %cst_27 = arith.constant 1.000000e+00 : f32
    %68 = vector.broadcast %cst_27 : f32 to vector<8x128xf32>
    %69 = arith.addf %68, %67 : vector<8x128xf32>
    %70 = arith.divf %68, %69 : vector<8x128xf32>
    %71 = vector.extract_strided_slice %58 {offsets = [0, 256], sizes = [8, 128], strides = [1, 1]} : vector<8x512xf32> to vector<8x128xf32>
    %72 = math.tanh %71 : vector<8x128xf32>
    %73 = vector.extract_strided_slice %58 {offsets = [0, 384], sizes = [8, 128], strides = [1, 1]} : vector<8x512xf32> to vector<8x128xf32>
    %74 = arith.negf %73 : vector<8x128xf32>
    %75 = math.exp %74 : vector<8x128xf32>
    %cst_28 = arith.constant 1.000000e+00 : f32
    %76 = vector.broadcast %cst_28 : f32 to vector<8x128xf32>
    %77 = arith.addf %76, %75 : vector<8x128xf32>
    %78 = arith.divf %76, %77 : vector<8x128xf32>
    %79 = arith.mulf %70, %43 : vector<8x128xf32>
    %80 = arith.mulf %64, %72 : vector<8x128xf32>
    %81 = arith.addf %79, %80 : vector<8x128xf32>
    %82 = math.tanh %81 : vector<8x128xf32>
    %83 = arith.mulf %78, %82 : vector<8x128xf32>
    %84 = arith.truncf %83 : vector<8x128xf32> to vector<8x128xbf16>
    %85 = arith.index_cast %c1_i32 : i32 to index
    %c0_29 = arith.constant 0 : index
    %c0_30 = arith.constant 0 : index
    %86 = vector.load %arg14[%85, %c0_29, %c0_30] : memref<8x8x128xbf16, #tpu.memory_space<vmem>>, vector<1x8x128xbf16>
    %87 = vector.shape_cast %86 : vector<1x8x128xbf16> to vector<8x128xbf16>
    %88 = vector.shape_cast %84 : vector<8x128xbf16> to vector<1x8x128xbf16>
    tpu.vector_store %arg14[%85, %c0_29, %c0_30], %88 {strides = array<i32>} : memref<8x8x128xbf16, #tpu.memory_space<vmem>>, vector<1x8x128xbf16>,
    %c2_i32 = arith.constant 2 : i32
    %89 = arith.truncf %83 : vector<8x128xf32> to vector<8x128xbf16>
    %c0_31 = arith.constant 0 : index
    %c0_32 = arith.constant 0 : index
    %90 = vector.load %arg3[%c0_31, %c0_32] : memref<128x512xbf16, #tpu.memory_space<vmem>>, vector<128x512xbf16>
    %cst_33 = arith.constant dense<0.000000e+00> : vector<8x512xf32>
    %91 = tpu.matmul %89, %90, %cst_33 {dimension_numbers = #tpu.dot_dimension_numbers<[1], [0], [0], [1], [0, 0, 1, 1], [], []>} : vector<8x128xbf16>, vector<128x512xbf16>, vector<8x512xf32> -> vector<8x512xf32>
    %92 = arith.index_cast %c2_i32 : i32 to index
    %c0_34 = arith.constant 0 : index
    %c0_35 = arith.constant 0 : index
    %93 = vector.load %arg15[%92, %c0_34, %c0_35] : memref<8x8x512xbf16, #tpu.memory_space<vmem>>, vector<1x8x512xbf16>
    %94 = vector.shape_cast %93 : vector<1x8x512xbf16> to vector<8x512xbf16>
    %95 = arith.extf %94 : vector<8x512xbf16> to vector<8x512xf32>
    %96 = arith.addf %95, %91 : vector<8x512xf32>
    %97 = vector.extract_strided_slice %96 {offsets = [0, 0], sizes = [8, 128], strides = [1, 1]} : vector<8x512xf32> to vector<8x128xf32>
    %98 = arith.negf %97 : vector<8x128xf32>
    %99 = math.exp %98 : vector<8x128xf32>
    %cst_36 = arith.constant 1.000000e+00 : f32
    %100 = vector.broadcast %cst_36 : f32 to vector<8x128xf32>
    %101 = arith.addf %100, %99 : vector<8x128xf32>
    %102 = arith.divf %100, %101 : vector<8x128xf32>
    %103 = vector.extract_strided_slice %96 {offsets = [0, 128], sizes = [8, 128], strides = [1, 1]} : vector<8x512xf32> to vector<8x128xf32>
    %104 = arith.negf %103 : vector<8x128xf32>
    %105 = math.exp %104 : vector<8x128xf32>
    %cst_37 = arith.constant 1.000000e+00 : f32
    %106 = vector.broadcast %cst_37 : f32 to vector<8x128xf32>
    %107 = arith.addf %106, %105 : vector<8x128xf32>
    %108 = arith.divf %106, %107 : vector<8x128xf32>
    %109 = vector.extract_strided_slice %96 {offsets = [0, 256], sizes = [8, 128], strides = [1, 1]} : vector<8x512xf32> to vector<8x128xf32>
    %110 = math.tanh %109 : vector<8x128xf32>
    %111 = vector.extract_strided_slice %96 {offsets = [0, 384], sizes = [8, 128], strides = [1, 1]} : vector<8x512xf32> to vector<8x128xf32>
    %112 = arith.negf %111 : vector<8x128xf32>
    %113 = math.exp %112 : vector<8x128xf32>
    %cst_38 = arith.constant 1.000000e+00 : f32
    %114 = vector.broadcast %cst_38 : f32 to vector<8x128xf32>
    %115 = arith.addf %114, %113 : vector<8x128xf32>
    %116 = arith.divf %114, %115 : vector<8x128xf32>
    %117 = arith.mulf %108, %81 : vector<8x128xf32>
    %118 = arith.mulf %102, %110 : vector<8x128xf32>
    %119 = arith.addf %117, %118 : vector<8x128xf32>
    %120 = math.tanh %119 : vector<8x128xf32>
    %121 = arith.mulf %116, %120 : vector<8x128xf32>
    %122 = arith.truncf %121 : vector<8x128xf32> to vector<8x128xbf16>
    %123 = arith.index_cast %c2_i32 : i32 to index
    %c0_39 = arith.constant 0 : index
    %c0_40 = arith.constant 0 : index
    %124 = vector.load %arg14[%123, %c0_39, %c0_40] : memref<8x8x128xbf16, #tpu.memory_space<vmem>>, vector<1x8x128xbf16>
    %125 = vector.shape_cast %124 : vector<1x8x128xbf16> to vector<8x128xbf16>
    %126 = vector.shape_cast %122 : vector<8x128xbf16> to vector<1x8x128xbf16>
    tpu.vector_store %arg14[%123, %c0_39, %c0_40], %126 {strides = array<i32>} : memref<8x8x128xbf16, #tpu.memory_space<vmem>>, vector<1x8x128xbf16>,
    %c3_i32 = arith.constant 3 : i32
    %127 = arith.truncf %121 : vector<8x128xf32> to vector<8x128xbf16>
    %c0_41 = arith.constant 0 : index
    %c0_42 = arith.constant 0 : index
    %128 = vector.load %arg3[%c0_41, %c0_42] : memref<128x512xbf16, #tpu.memory_space<vmem>>, vector<128x512xbf16>
    %cst_43 = arith.constant dense<0.000000e+00> : vector<8x512xf32>
    %129 = tpu.matmul %127, %128, %cst_43 {dimension_numbers = #tpu.dot_dimension_numbers<[1], [0], [0], [1], [0, 0, 1, 1], [], []>} : vector<8x128xbf16>, vector<128x512xbf16>, vector<8x512xf32> -> vector<8x512xf32>
    %130 = arith.index_cast %c3_i32 : i32 to index
    %c0_44 = arith.constant 0 : index
    %c0_45 = arith.constant 0 : index
    %131 = vector.load %arg15[%130, %c0_44, %c0_45] : memref<8x8x512xbf16, #tpu.memory_space<vmem>>, vector<1x8x512xbf16>
    %132 = vector.shape_cast %131 : vector<1x8x512xbf16> to vector<8x512xbf16>
    %133 = arith.extf %132 : vector<8x512xbf16> to vector<8x512xf32>
    %134 = arith.addf %133, %129 : vector<8x512xf32>
    %135 = vector.extract_strided_slice %134 {offsets = [0, 0], sizes = [8, 128], strides = [1, 1]} : vector<8x512xf32> to vector<8x128xf32>
    %136 = arith.negf %135 : vector<8x128xf32>
    %137 = math.exp %136 : vector<8x128xf32>
    %cst_46 = arith.constant 1.000000e+00 : f32
    %138 = vector.broadcast %cst_46 : f32 to vector<8x128xf32>
    %139 = arith.addf %138, %137 : vector<8x128xf32>
    %140 = arith.divf %138, %139 : vector<8x128xf32>
    %141 = vector.extract_strided_slice %134 {offsets = [0, 128], sizes = [8, 128], strides = [1, 1]} : vector<8x512xf32> to vector<8x128xf32>
    %142 = arith.negf %141 : vector<8x128xf32>
    %143 = math.exp %142 : vector<8x128xf32>
    %cst_47 = arith.constant 1.000000e+00 : f32
    %144 = vector.broadcast %cst_47 : f32 to vector<8x128xf32>
    %145 = arith.addf %144, %143 : vector<8x128xf32>
    %146 = arith.divf %144, %145 : vector<8x128xf32>
    %147 = vector.extract_strided_slice %134 {offsets = [0, 256], sizes = [8, 128], strides = [1, 1]} : vector<8x512xf32> to vector<8x128xf32>
    %148 = math.tanh %147 : vector<8x128xf32>
    %149 = vector.extract_strided_slice %134 {offsets = [0, 384], sizes = [8, 128], strides = [1, 1]} : vector<8x512xf32> to vector<8x128xf32>
    %150 = arith.negf %149 : vector<8x128xf32>
    %151 = math.exp %150 : vector<8x128xf32>
    %cst_48 = arith.constant 1.000000e+00 : f32
    %152 = vector.broadcast %cst_48 : f32 to vector<8x128xf32>
    %153 = arith.addf %152, %151 : vector<8x128xf32>
    %154 = arith.divf %152, %153 : vector<8x128xf32>
    %155 = arith.mulf %146, %119 : vector<8x128xf32>
    %156 = arith.mulf %140, %148 : vector<8x128xf32>
    %157 = arith.addf %155, %156 : vector<8x128xf32>
    %158 = math.tanh %157 : vector<8x128xf32>
    %159 = arith.mulf %154, %158 : vector<8x128xf32>
    %160 = arith.truncf %159 : vector<8x128xf32> to vector<8x128xbf16>
    %161 = arith.index_cast %c3_i32 : i32 to index
    %c0_49 = arith.constant 0 : index
    %c0_50 = arith.constant 0 : index
    %162 = vector.load %arg14[%161, %c0_49, %c0_50] : memref<8x8x128xbf16, #tpu.memory_space<vmem>>, vector<1x8x128xbf16>
    %163 = vector.shape_cast %162 : vector<1x8x128xbf16> to vector<8x128xbf16>
    %164 = vector.shape_cast %160 : vector<8x128xbf16> to vector<1x8x128xbf16>
    tpu.vector_store %arg14[%161, %c0_49, %c0_50], %164 {strides = array<i32>} : memref<8x8x128xbf16, #tpu.memory_space<vmem>>, vector<1x8x128xbf16>,
    %c4_i32 = arith.constant 4 : i32
    %165 = arith.truncf %159 : vector<8x128xf32> to vector<8x128xbf16>
    %c0_51 = arith.constant 0 : index
    %c0_52 = arith.constant 0 : index
    %166 = vector.load %arg3[%c0_51, %c0_52] : memref<128x512xbf16, #tpu.memory_space<vmem>>, vector<128x512xbf16>
    %cst_53 = arith.constant dense<0.000000e+00> : vector<8x512xf32>
    %167 = tpu.matmul %165, %166, %cst_53 {dimension_numbers = #tpu.dot_dimension_numbers<[1], [0], [0], [1], [0, 0, 1, 1], [], []>} : vector<8x128xbf16>, vector<128x512xbf16>, vector<8x512xf32> -> vector<8x512xf32>
    %168 = arith.index_cast %c4_i32 : i32 to index
    %c0_54 = arith.constant 0 : index
    %c0_55 = arith.constant 0 : index
    %169 = vector.load %arg15[%168, %c0_54, %c0_55] : memref<8x8x512xbf16, #tpu.memory_space<vmem>>, vector<1x8x512xbf16>
    %170 = vector.shape_cast %169 : vector<1x8x512xbf16> to vector<8x512xbf16>
    %171 = arith.extf %170 : vector<8x512xbf16> to vector<8x512xf32>
    %172 = arith.addf %171, %167 : vector<8x512xf32>
    %173 = vector.extract_strided_slice %172 {offsets = [0, 0], sizes = [8, 128], strides = [1, 1]} : vector<8x512xf32> to vector<8x128xf32>
    %174 = arith.negf %173 : vector<8x128xf32>
    %175 = math.exp %174 : vector<8x128xf32>
    %cst_56 = arith.constant 1.000000e+00 : f32
    %176 = vector.broadcast %cst_56 : f32 to vector<8x128xf32>
    %177 = arith.addf %176, %175 : vector<8x128xf32>
    %178 = arith.divf %176, %177 : vector<8x128xf32>
    %179 = vector.extract_strided_slice %172 {offsets = [0, 128], sizes = [8, 128], strides = [1, 1]} : vector<8x512xf32> to vector<8x128xf32>
    %180 = arith.negf %179 : vector<8x128xf32>
    %181 = math.exp %180 : vector<8x128xf32>
    %cst_57 = arith.constant 1.000000e+00 : f32
    %182 = vector.broadcast %cst_57 : f32 to vector<8x128xf32>
    %183 = arith.addf %182, %181 : vector<8x128xf32>
    %184 = arith.divf %182, %183 : vector<8x128xf32>
    %185 = vector.extract_strided_slice %172 {offsets = [0, 256], sizes = [8, 128], strides = [1, 1]} : vector<8x512xf32> to vector<8x128xf32>
    %186 = math.tanh %185 : vector<8x128xf32>
    %187 = vector.extract_strided_slice %172 {offsets = [0, 384], sizes = [8, 128], strides = [1, 1]} : vector<8x512xf32> to vector<8x128xf32>
    %188 = arith.negf %187 : vector<8x128xf32>
    %189 = math.exp %188 : vector<8x128xf32>
    %cst_58 = arith.constant 1.000000e+00 : f32
    %190 = vector.broadcast %cst_58 : f32 to vector<8x128xf32>
    %191 = arith.addf %190, %189 : vector<8x128xf32>
    %192 = arith.divf %190, %191 : vector<8x128xf32>
    %193 = arith.mulf %184, %157 : vector<8x128xf32>
    %194 = arith.mulf %178, %186 : vector<8x128xf32>
    %195 = arith.addf %193, %194 : vector<8x128xf32>
    %196 = math.tanh %195 : vector<8x128xf32>
    %197 = arith.mulf %192, %196 : vector<8x128xf32>
    %198 = arith.truncf %197 : vector<8x128xf32> to vector<8x128xbf16>
    %199 = arith.index_cast %c4_i32 : i32 to index
    %c0_59 = arith.constant 0 : index
    %c0_60 = arith.constant 0 : index
    %200 = vector.load %arg14[%199, %c0_59, %c0_60] : memref<8x8x128xbf16, #tpu.memory_space<vmem>>, vector<1x8x128xbf16>
    %201 = vector.shape_cast %200 : vector<1x8x128xbf16> to vector<8x128xbf16>
    %202 = vector.shape_cast %198 : vector<8x128xbf16> to vector<1x8x128xbf16>
    tpu.vector_store %arg14[%199, %c0_59, %c0_60], %202 {strides = array<i32>} : memref<8x8x128xbf16, #tpu.memory_space<vmem>>, vector<1x8x128xbf16>,
    %c5_i32 = arith.constant 5 : i32
    %203 = arith.truncf %197 : vector<8x128xf32> to vector<8x128xbf16>
    %c0_61 = arith.constant 0 : index
    %c0_62 = arith.constant 0 : index
    %204 = vector.load %arg3[%c0_61, %c0_62] : memref<128x512xbf16, #tpu.memory_space<vmem>>, vector<128x512xbf16>
    %cst_63 = arith.constant dense<0.000000e+00> : vector<8x512xf32>
    %205 = tpu.matmul %203, %204, %cst_63 {dimension_numbers = #tpu.dot_dimension_numbers<[1], [0], [0], [1], [0, 0, 1, 1], [], []>} : vector<8x128xbf16>, vector<128x512xbf16>, vector<8x512xf32> -> vector<8x512xf32>
    %206 = arith.index_cast %c5_i32 : i32 to index
    %c0_64 = arith.constant 0 : index
    %c0_65 = arith.constant 0 : index
    %207 = vector.load %arg15[%206, %c0_64, %c0_65] : memref<8x8x512xbf16, #tpu.memory_space<vmem>>, vector<1x8x512xbf16>
    %208 = vector.shape_cast %207 : vector<1x8x512xbf16> to vector<8x512xbf16>
    %209 = arith.extf %208 : vector<8x512xbf16> to vector<8x512xf32>
    %210 = arith.addf %209, %205 : vector<8x512xf32>
    %211 = vector.extract_strided_slice %210 {offsets = [0, 0], sizes = [8, 128], strides = [1, 1]} : vector<8x512xf32> to vector<8x128xf32>
    %212 = arith.negf %211 : vector<8x128xf32>
    %213 = math.exp %212 : vector<8x128xf32>
    %cst_66 = arith.constant 1.000000e+00 : f32
    %214 = vector.broadcast %cst_66 : f32 to vector<8x128xf32>
    %215 = arith.addf %214, %213 : vector<8x128xf32>
    %216 = arith.divf %214, %215 : vector<8x128xf32>
    %217 = vector.extract_strided_slice %210 {offsets = [0, 128], sizes = [8, 128], strides = [1, 1]} : vector<8x512xf32> to vector<8x128xf32>
    %218 = arith.negf %217 : vector<8x128xf32>
    %219 = math.exp %218 : vector<8x128xf32>
    %cst_67 = arith.constant 1.000000e+00 : f32
    %220 = vector.broadcast %cst_67 : f32 to vector<8x128xf32>
    %221 = arith.addf %220, %219 : vector<8x128xf32>
    %222 = arith.divf %220, %221 : vector<8x128xf32>
    %223 = vector.extract_strided_slice %210 {offsets = [0, 256], sizes = [8, 128], strides = [1, 1]} : vector<8x512xf32> to vector<8x128xf32>
    %224 = math.tanh %223 : vector<8x128xf32>
    %225 = vector.extract_strided_slice %210 {offsets = [0, 384], sizes = [8, 128], strides = [1, 1]} : vector<8x512xf32> to vector<8x128xf32>
    %226 = arith.negf %225 : vector<8x128xf32>
    %227 = math.exp %226 : vector<8x128xf32>
    %cst_68 = arith.constant 1.000000e+00 : f32
    %228 = vector.broadcast %cst_68 : f32 to vector<8x128xf32>
    %229 = arith.addf %228, %227 : vector<8x128xf32>
    %230 = arith.divf %228, %229 : vector<8x128xf32>
    %231 = arith.mulf %222, %195 : vector<8x128xf32>
    %232 = arith.mulf %216, %224 : vector<8x128xf32>
    %233 = arith.addf %231, %232 : vector<8x128xf32>
    %234 = math.tanh %233 : vector<8x128xf32>
    %235 = arith.mulf %230, %234 : vector<8x128xf32>
    %236 = arith.truncf %235 : vector<8x128xf32> to vector<8x128xbf16>
    %237 = arith.index_cast %c5_i32 : i32 to index
    %c0_69 = arith.constant 0 : index
    %c0_70 = arith.constant 0 : index
    %238 = vector.load %arg14[%237, %c0_69, %c0_70] : memref<8x8x128xbf16, #tpu.memory_space<vmem>>, vector<1x8x128xbf16>
    %239 = vector.shape_cast %238 : vector<1x8x128xbf16> to vector<8x128xbf16>
    %240 = vector.shape_cast %236 : vector<8x128xbf16> to vector<1x8x128xbf16>
    tpu.vector_store %arg14[%237, %c0_69, %c0_70], %240 {strides = array<i32>} : memref<8x8x128xbf16, #tpu.memory_space<vmem>>, vector<1x8x128xbf16>,
    %c6_i32 = arith.constant 6 : i32
    %241 = arith.truncf %235 : vector<8x128xf32> to vector<8x128xbf16>
    %c0_71 = arith.constant 0 : index
    %c0_72 = arith.constant 0 : index
    %242 = vector.load %arg3[%c0_71, %c0_72] : memref<128x512xbf16, #tpu.memory_space<vmem>>, vector<128x512xbf16>
    %cst_73 = arith.constant dense<0.000000e+00> : vector<8x512xf32>
    %243 = tpu.matmul %241, %242, %cst_73 {dimension_numbers = #tpu.dot_dimension_numbers<[1], [0], [0], [1], [0, 0, 1, 1], [], []>} : vector<8x128xbf16>, vector<128x512xbf16>, vector<8x512xf32> -> vector<8x512xf32>
    %244 = arith.index_cast %c6_i32 : i32 to index
    %c0_74 = arith.constant 0 : index
    %c0_75 = arith.constant 0 : index
    %245 = vector.load %arg15[%244, %c0_74, %c0_75] : memref<8x8x512xbf16, #tpu.memory_space<vmem>>, vector<1x8x512xbf16>
    %246 = vector.shape_cast %245 : vector<1x8x512xbf16> to vector<8x512xbf16>
    %247 = arith.extf %246 : vector<8x512xbf16> to vector<8x512xf32>
    %248 = arith.addf %247, %243 : vector<8x512xf32>
    %249 = vector.extract_strided_slice %248 {offsets = [0, 0], sizes = [8, 128], strides = [1, 1]} : vector<8x512xf32> to vector<8x128xf32>
    %250 = arith.negf %249 : vector<8x128xf32>
    %251 = math.exp %250 : vector<8x128xf32>
    %cst_76 = arith.constant 1.000000e+00 : f32
    %252 = vector.broadcast %cst_76 : f32 to vector<8x128xf32>
    %253 = arith.addf %252, %251 : vector<8x128xf32>
    %254 = arith.divf %252, %253 : vector<8x128xf32>
    %255 = vector.extract_strided_slice %248 {offsets = [0, 128], sizes = [8, 128], strides = [1, 1]} : vector<8x512xf32> to vector<8x128xf32>
    %256 = arith.negf %255 : vector<8x128xf32>
    %257 = math.exp %256 : vector<8x128xf32>
    %cst_77 = arith.constant 1.000000e+00 : f32
    %258 = vector.broadcast %cst_77 : f32 to vector<8x128xf32>
    %259 = arith.addf %258, %257 : vector<8x128xf32>
    %260 = arith.divf %258, %259 : vector<8x128xf32>
    %261 = vector.extract_strided_slice %248 {offsets = [0, 256], sizes = [8, 128], strides = [1, 1]} : vector<8x512xf32> to vector<8x128xf32>
    %262 = math.tanh %261 : vector<8x128xf32>
    %263 = vector.extract_strided_slice %248 {offsets = [0, 384], sizes = [8, 128], strides = [1, 1]} : vector<8x512xf32> to vector<8x128xf32>
    %264 = arith.negf %263 : vector<8x128xf32>
    %265 = math.exp %264 : vector<8x128xf32>
    %cst_78 = arith.constant 1.000000e+00 : f32
    %266 = vector.broadcast %cst_78 : f32 to vector<8x128xf32>
    %267 = arith.addf %266, %265 : vector<8x128xf32>
    %268 = arith.divf %266, %267 : vector<8x128xf32>
    %269 = arith.mulf %260, %233 : vector<8x128xf32>
    %270 = arith.mulf %254, %262 : vector<8x128xf32>
    %271 = arith.addf %269, %270 : vector<8x128xf32>
    %272 = math.tanh %271 : vector<8x128xf32>
    %273 = arith.mulf %268, %272 : vector<8x128xf32>
    %274 = arith.truncf %273 : vector<8x128xf32> to vector<8x128xbf16>
    %275 = arith.index_cast %c6_i32 : i32 to index
    %c0_79 = arith.constant 0 : index
    %c0_80 = arith.constant 0 : index
    %276 = vector.load %arg14[%275, %c0_79, %c0_80] : memref<8x8x128xbf16, #tpu.memory_space<vmem>>, vector<1x8x128xbf16>
    %277 = vector.shape_cast %276 : vector<1x8x128xbf16> to vector<8x128xbf16>
    %278 = vector.shape_cast %274 : vector<8x128xbf16> to vector<1x8x128xbf16>
    tpu.vector_store %arg14[%275, %c0_79, %c0_80], %278 {strides = array<i32>} : memref<8x8x128xbf16, #tpu.memory_space<vmem>>, vector<1x8x128xbf16>,
    %c7_i32 = arith.constant 7 : i32
    %279 = arith.truncf %273 : vector<8x128xf32> to vector<8x128xbf16>
    %c0_81 = arith.constant 0 : index
    %c0_82 = arith.constant 0 : index
    %280 = vector.load %arg3[%c0_81, %c0_82] : memref<128x512xbf16, #tpu.memory_space<vmem>>, vector<128x512xbf16>
    %cst_83 = arith.constant dense<0.000000e+00> : vector<8x512xf32>
    %281 = tpu.matmul %279, %280, %cst_83 {dimension_numbers = #tpu.dot_dimension_numbers<[1], [0], [0], [1], [0, 0, 1, 1], [], []>} : vector<8x128xbf16>, vector<128x512xbf16>, vector<8x512xf32> -> vector<8x512xf32>
    %282 = arith.index_cast %c7_i32 : i32 to index
    %c0_84 = arith.constant 0 : index
    %c0_85 = arith.constant 0 : index
    %283 = vector.load %arg15[%282, %c0_84, %c0_85] : memref<8x8x512xbf16, #tpu.memory_space<vmem>>, vector<1x8x512xbf16>
    %284 = vector.shape_cast %283 : vector<1x8x512xbf16> to vector<8x512xbf16>
    %285 = arith.extf %284 : vector<8x512xbf16> to vector<8x512xf32>
    %286 = arith.addf %285, %281 : vector<8x512xf32>
    %287 = vector.extract_strided_slice %286 {offsets = [0, 0], sizes = [8, 128], strides = [1, 1]} : vector<8x512xf32> to vector<8x128xf32>
    %288 = arith.negf %287 : vector<8x128xf32>
    %289 = math.exp %288 : vector<8x128xf32>
    %cst_86 = arith.constant 1.000000e+00 : f32
    %290 = vector.broadcast %cst_86 : f32 to vector<8x128xf32>
    %291 = arith.addf %290, %289 : vector<8x128xf32>
    %292 = arith.divf %290, %291 : vector<8x128xf32>
    %293 = vector.extract_strided_slice %286 {offsets = [0, 128], sizes = [8, 128], strides = [1, 1]} : vector<8x512xf32> to vector<8x128xf32>
    %294 = arith.negf %293 : vector<8x128xf32>
    %295 = math.exp %294 : vector<8x128xf32>
    %cst_87 = arith.constant 1.000000e+00 : f32
    %296 = vector.broadcast %cst_87 : f32 to vector<8x128xf32>
    %297 = arith.addf %296, %295 : vector<8x128xf32>
    %298 = arith.divf %296, %297 : vector<8x128xf32>
    %299 = vector.extract_strided_slice %286 {offsets = [0, 256], sizes = [8, 128], strides = [1, 1]} : vector<8x512xf32> to vector<8x128xf32>
    %300 = math.tanh %299 : vector<8x128xf32>
    %301 = vector.extract_strided_slice %286 {offsets = [0, 384], sizes = [8, 128], strides = [1, 1]} : vector<8x512xf32> to vector<8x128xf32>
    %302 = arith.negf %301 : vector<8x128xf32>
    %303 = math.exp %302 : vector<8x128xf32>
    %cst_88 = arith.constant 1.000000e+00 : f32
    %304 = vector.broadcast %cst_88 : f32 to vector<8x128xf32>
    %305 = arith.addf %304, %303 : vector<8x128xf32>
    %306 = arith.divf %304, %305 : vector<8x128xf32>
    %307 = arith.mulf %298, %271 : vector<8x128xf32>
    %308 = arith.mulf %292, %300 : vector<8x128xf32>
    %309 = arith.addf %307, %308 : vector<8x128xf32>
    %310 = math.tanh %309 : vector<8x128xf32>
    %311 = arith.mulf %306, %310 : vector<8x128xf32>
    %312 = arith.truncf %311 : vector<8x128xf32> to vector<8x128xbf16>
    %313 = arith.index_cast %c7_i32 : i32 to index
    %c0_89 = arith.constant 0 : index
    %c0_90 = arith.constant 0 : index
    %314 = vector.load %arg14[%313, %c0_89, %c0_90] : memref<8x8x128xbf16, #tpu.memory_space<vmem>>, vector<1x8x128xbf16>
    %315 = vector.shape_cast %314 : vector<1x8x128xbf16> to vector<8x128xbf16>
    %316 = vector.shape_cast %312 : vector<8x128xbf16> to vector<1x8x128xbf16>
    tpu.vector_store %arg14[%313, %c0_89, %c0_90], %316 {strides = array<i32>} : memref<8x8x128xbf16, #tpu.memory_space<vmem>>, vector<1x8x128xbf16>,
    %c8_i32 = arith.constant 8 : i32
    %c0_91 = arith.constant 0 : index
    %c0_92 = arith.constant 0 : index
    %c0_93 = arith.constant 0 : index
    %317 = vector.load %arg14[%c0_91, %c0_92, %c0_93] : memref<8x8x128xbf16, #tpu.memory_space<vmem>>, vector<8x8x128xbf16>
    %318 = vector.shape_cast %317 : vector<8x8x128xbf16> to vector<64x128xbf16>
    %c0_94 = arith.constant 0 : index
    %c0_95 = arith.constant 0 : index
    %319 = vector.load %arg5[%c0_94, %c0_95] : memref<128x512xbf16, #tpu.memory_space<vmem>>, vector<128x512xbf16>
    %cst_96 = arith.constant dense<0.000000e+00> : vector<64x512xf32>
    %320 = tpu.matmul %318, %319, %cst_96 {dimension_numbers = #tpu.dot_dimension_numbers<[1], [0], [0], [1], [0, 0, 1, 1], [], []>} : vector<64x128xbf16>, vector<128x512xbf16>, vector<64x512xf32> -> vector<64x512xf32>
    %c0_97 = arith.constant 0 : index
    %c0_98 = arith.constant 0 : index
    %321 = vector.load %arg7[%c0_97, %c0_98] : memref<1x512xf32, #tpu.memory_space<vmem>>, vector<1x512xf32>
    %322 = vector.broadcast %321 : vector<1x512xf32> to vector<64x512xf32>
    %323 = arith.addf %320, %322 : vector<64x512xf32>
    %324 = arith.truncf %323 : vector<64x512xf32> to vector<64x512xbf16>
    %325 = vector.shape_cast %324 : vector<64x512xbf16> to vector<8x8x512xbf16>
    %c0_99 = arith.constant 0 : index
    %c0_100 = arith.constant 0 : index
    %c0_101 = arith.constant 0 : index
    %326 = vector.load %arg15[%c0_99, %c0_100, %c0_101] : memref<8x8x512xbf16, #tpu.memory_space<vmem>>, vector<8x8x512xbf16>
    tpu.vector_store %arg15[%c0_99, %c0_100, %c0_101], %325 {strides = array<i32>} : memref<8x8x512xbf16, #tpu.memory_space<vmem>>, vector<8x8x512xbf16>,
    %cst_102 = arith.constant 0.000000e+00 : f32
    %327 = vector.broadcast %cst_102 : f32 to vector<8x128xf32>
    %cst_103 = arith.constant 0.000000e+00 : f32
    %328 = vector.broadcast %cst_103 : f32 to vector<8x128xf32>
    %c0_i32_104 = arith.constant 0 : i32
    %329 = arith.truncf %327 : vector<8x128xf32> to vector<8x128xbf16>
    %c0_105 = arith.constant 0 : index
    %c0_106 = arith.constant 0 : index
    %330 = vector.load %arg6[%c0_105, %c0_106] : memref<128x512xbf16, #tpu.memory_space<vmem>>, vector<128x512xbf16>
    %cst_107 = arith.constant dense<0.000000e+00> : vector<8x512xf32>
    %331 = tpu.matmul %329, %330, %cst_107 {dimension_numbers = #tpu.dot_dimension_numbers<[1], [0], [0], [1], [0, 0, 1, 1], [], []>} : vector<8x128xbf16>, vector<128x512xbf16>, vector<8x512xf32> -> vector<8x512xf32>
    %332 = arith.index_cast %c0_i32_104 : i32 to index
    %c0_108 = arith.constant 0 : index
    %c0_109 = arith.constant 0 : index
    %333 = vector.load %arg15[%332, %c0_108, %c0_109] : memref<8x8x512xbf16, #tpu.memory_space<vmem>>, vector<1x8x512xbf16>
    %334 = vector.shape_cast %333 : vector<1x8x512xbf16> to vector<8x512xbf16>
    %335 = arith.extf %334 : vector<8x512xbf16> to vector<8x512xf32>
    %336 = arith.addf %335, %331 : vector<8x512xf32>
    %337 = vector.extract_strided_slice %336 {offsets = [0, 0], sizes = [8, 128], strides = [1, 1]} : vector<8x512xf32> to vector<8x128xf32>
    %338 = arith.negf %337 : vector<8x128xf32>
    %339 = math.exp %338 : vector<8x128xf32>
    %cst_110 = arith.constant 1.000000e+00 : f32
    %340 = vector.broadcast %cst_110 : f32 to vector<8x128xf32>
    %341 = arith.addf %340, %339 : vector<8x128xf32>
    %342 = arith.divf %340, %341 : vector<8x128xf32>
    %343 = vector.extract_strided_slice %336 {offsets = [0, 128], sizes = [8, 128], strides = [1, 1]} : vector<8x512xf32> to vector<8x128xf32>
    %344 = arith.negf %343 : vector<8x128xf32>
    %345 = math.exp %344 : vector<8x128xf32>
    %cst_111 = arith.constant 1.000000e+00 : f32
    %346 = vector.broadcast %cst_111 : f32 to vector<8x128xf32>
    %347 = arith.addf %346, %345 : vector<8x128xf32>
    %348 = arith.divf %346, %347 : vector<8x128xf32>
    %349 = vector.extract_strided_slice %336 {offsets = [0, 256], sizes = [8, 128], strides = [1, 1]} : vector<8x512xf32> to vector<8x128xf32>
    %350 = math.tanh %349 : vector<8x128xf32>
    %351 = vector.extract_strided_slice %336 {offsets = [0, 384], sizes = [8, 128], strides = [1, 1]} : vector<8x512xf32> to vector<8x128xf32>
    %352 = arith.negf %351 : vector<8x128xf32>
    %353 = math.exp %352 : vector<8x128xf32>
    %cst_112 = arith.constant 1.000000e+00 : f32
    %354 = vector.broadcast %cst_112 : f32 to vector<8x128xf32>
    %355 = arith.addf %354, %353 : vector<8x128xf32>
    %356 = arith.divf %354, %355 : vector<8x128xf32>
    %357 = arith.mulf %348, %328 : vector<8x128xf32>
    %358 = arith.mulf %342, %350 : vector<8x128xf32>
    %359 = arith.addf %357, %358 : vector<8x128xf32>
    %360 = math.tanh %359 : vector<8x128xf32>
    %361 = arith.mulf %356, %360 : vector<8x128xf32>
    %362 = arith.truncf %361 : vector<8x128xf32> to vector<8x128xbf16>
    %363 = arith.index_cast %c0_i32_104 : i32 to index
    %c0_113 = arith.constant 0 : index
    %c0_114 = arith.constant 0 : index
    %364 = vector.load %arg14[%363, %c0_113, %c0_114] : memref<8x8x128xbf16, #tpu.memory_space<vmem>>, vector<1x8x128xbf16>
    %365 = vector.shape_cast %364 : vector<1x8x128xbf16> to vector<8x128xbf16>
    %366 = vector.shape_cast %362 : vector<8x128xbf16> to vector<1x8x128xbf16>
    tpu.vector_store %arg14[%363, %c0_113, %c0_114], %366 {strides = array<i32>} : memref<8x8x128xbf16, #tpu.memory_space<vmem>>, vector<1x8x128xbf16>,
    %c1_i32_115 = arith.constant 1 : i32
    %367 = arith.truncf %361 : vector<8x128xf32> to vector<8x128xbf16>
    %c0_116 = arith.constant 0 : index
    %c0_117 = arith.constant 0 : index
    %368 = vector.load %arg6[%c0_116, %c0_117] : memref<128x512xbf16, #tpu.memory_space<vmem>>, vector<128x512xbf16>
    %cst_118 = arith.constant dense<0.000000e+00> : vector<8x512xf32>
    %369 = tpu.matmul %367, %368, %cst_118 {dimension_numbers = #tpu.dot_dimension_numbers<[1], [0], [0], [1], [0, 0, 1, 1], [], []>} : vector<8x128xbf16>, vector<128x512xbf16>, vector<8x512xf32> -> vector<8x512xf32>
    %370 = arith.index_cast %c1_i32_115 : i32 to index
    %c0_119 = arith.constant 0 : index
    %c0_120 = arith.constant 0 : index
    %371 = vector.load %arg15[%370, %c0_119, %c0_120] : memref<8x8x512xbf16, #tpu.memory_space<vmem>>, vector<1x8x512xbf16>
    %372 = vector.shape_cast %371 : vector<1x8x512xbf16> to vector<8x512xbf16>
    %373 = arith.extf %372 : vector<8x512xbf16> to vector<8x512xf32>
    %374 = arith.addf %373, %369 : vector<8x512xf32>
    %375 = vector.extract_strided_slice %374 {offsets = [0, 0], sizes = [8, 128], strides = [1, 1]} : vector<8x512xf32> to vector<8x128xf32>
    %376 = arith.negf %375 : vector<8x128xf32>
    %377 = math.exp %376 : vector<8x128xf32>
    %cst_121 = arith.constant 1.000000e+00 : f32
    %378 = vector.broadcast %cst_121 : f32 to vector<8x128xf32>
    %379 = arith.addf %378, %377 : vector<8x128xf32>
    %380 = arith.divf %378, %379 : vector<8x128xf32>
    %381 = vector.extract_strided_slice %374 {offsets = [0, 128], sizes = [8, 128], strides = [1, 1]} : vector<8x512xf32> to vector<8x128xf32>
    %382 = arith.negf %381 : vector<8x128xf32>
    %383 = math.exp %382 : vector<8x128xf32>
    %cst_122 = arith.constant 1.000000e+00 : f32
    %384 = vector.broadcast %cst_122 : f32 to vector<8x128xf32>
    %385 = arith.addf %384, %383 : vector<8x128xf32>
    %386 = arith.divf %384, %385 : vector<8x128xf32>
    %387 = vector.extract_strided_slice %374 {offsets = [0, 256], sizes = [8, 128], strides = [1, 1]} : vector<8x512xf32> to vector<8x128xf32>
    %388 = math.tanh %387 : vector<8x128xf32>
    %389 = vector.extract_strided_slice %374 {offsets = [0, 384], sizes = [8, 128], strides = [1, 1]} : vector<8x512xf32> to vector<8x128xf32>
    %390 = arith.negf %389 : vector<8x128xf32>
    %391 = math.exp %390 : vector<8x128xf32>
    %cst_123 = arith.constant 1.000000e+00 : f32
    %392 = vector.broadcast %cst_123 : f32 to vector<8x128xf32>
    %393 = arith.addf %392, %391 : vector<8x128xf32>
    %394 = arith.divf %392, %393 : vector<8x128xf32>
    %395 = arith.mulf %386, %359 : vector<8x128xf32>
    %396 = arith.mulf %380, %388 : vector<8x128xf32>
    %397 = arith.addf %395, %396 : vector<8x128xf32>
    %398 = math.tanh %397 : vector<8x128xf32>
    %399 = arith.mulf %394, %398 : vector<8x128xf32>
    %400 = arith.truncf %399 : vector<8x128xf32> to vector<8x128xbf16>
    %401 = arith.index_cast %c1_i32_115 : i32 to index
    %c0_124 = arith.constant 0 : index
    %c0_125 = arith.constant 0 : index
    %402 = vector.load %arg14[%401, %c0_124, %c0_125] : memref<8x8x128xbf16, #tpu.memory_space<vmem>>, vector<1x8x128xbf16>
    %403 = vector.shape_cast %402 : vector<1x8x128xbf16> to vector<8x128xbf16>
    %404 = vector.shape_cast %400 : vector<8x128xbf16> to vector<1x8x128xbf16>
    tpu.vector_store %arg14[%401, %c0_124, %c0_125], %404 {strides = array<i32>} : memref<8x8x128xbf16, #tpu.memory_space<vmem>>, vector<1x8x128xbf16>,
    %c2_i32_126 = arith.constant 2 : i32
    %405 = arith.truncf %399 : vector<8x128xf32> to vector<8x128xbf16>
    %c0_127 = arith.constant 0 : index
    %c0_128 = arith.constant 0 : index
    %406 = vector.load %arg6[%c0_127, %c0_128] : memref<128x512xbf16, #tpu.memory_space<vmem>>, vector<128x512xbf16>
    %cst_129 = arith.constant dense<0.000000e+00> : vector<8x512xf32>
    %407 = tpu.matmul %405, %406, %cst_129 {dimension_numbers = #tpu.dot_dimension_numbers<[1], [0], [0], [1], [0, 0, 1, 1], [], []>} : vector<8x128xbf16>, vector<128x512xbf16>, vector<8x512xf32> -> vector<8x512xf32>
    %408 = arith.index_cast %c2_i32_126 : i32 to index
    %c0_130 = arith.constant 0 : index
    %c0_131 = arith.constant 0 : index
    %409 = vector.load %arg15[%408, %c0_130, %c0_131] : memref<8x8x512xbf16, #tpu.memory_space<vmem>>, vector<1x8x512xbf16>
    %410 = vector.shape_cast %409 : vector<1x8x512xbf16> to vector<8x512xbf16>
    %411 = arith.extf %410 : vector<8x512xbf16> to vector<8x512xf32>
    %412 = arith.addf %411, %407 : vector<8x512xf32>
    %413 = vector.extract_strided_slice %412 {offsets = [0, 0], sizes = [8, 128], strides = [1, 1]} : vector<8x512xf32> to vector<8x128xf32>
    %414 = arith.negf %413 : vector<8x128xf32>
    %415 = math.exp %414 : vector<8x128xf32>
    %cst_132 = arith.constant 1.000000e+00 : f32
    %416 = vector.broadcast %cst_132 : f32 to vector<8x128xf32>
    %417 = arith.addf %416, %415 : vector<8x128xf32>
    %418 = arith.divf %416, %417 : vector<8x128xf32>
    %419 = vector.extract_strided_slice %412 {offsets = [0, 128], sizes = [8, 128], strides = [1, 1]} : vector<8x512xf32> to vector<8x128xf32>
    %420 = arith.negf %419 : vector<8x128xf32>
    %421 = math.exp %420 : vector<8x128xf32>
    %cst_133 = arith.constant 1.000000e+00 : f32
    %422 = vector.broadcast %cst_133 : f32 to vector<8x128xf32>
    %423 = arith.addf %422, %421 : vector<8x128xf32>
    %424 = arith.divf %422, %423 : vector<8x128xf32>
    %425 = vector.extract_strided_slice %412 {offsets = [0, 256], sizes = [8, 128], strides = [1, 1]} : vector<8x512xf32> to vector<8x128xf32>
    %426 = math.tanh %425 : vector<8x128xf32>
    %427 = vector.extract_strided_slice %412 {offsets = [0, 384], sizes = [8, 128], strides = [1, 1]} : vector<8x512xf32> to vector<8x128xf32>
    %428 = arith.negf %427 : vector<8x128xf32>
    %429 = math.exp %428 : vector<8x128xf32>
    %cst_134 = arith.constant 1.000000e+00 : f32
    %430 = vector.broadcast %cst_134 : f32 to vector<8x128xf32>
    %431 = arith.addf %430, %429 : vector<8x128xf32>
    %432 = arith.divf %430, %431 : vector<8x128xf32>
    %433 = arith.mulf %424, %397 : vector<8x128xf32>
    %434 = arith.mulf %418, %426 : vector<8x128xf32>
    %435 = arith.addf %433, %434 : vector<8x128xf32>
    %436 = math.tanh %435 : vector<8x128xf32>
    %437 = arith.mulf %432, %436 : vector<8x128xf32>
    %438 = arith.truncf %437 : vector<8x128xf32> to vector<8x128xbf16>
    %439 = arith.index_cast %c2_i32_126 : i32 to index
    %c0_135 = arith.constant 0 : index
    %c0_136 = arith.constant 0 : index
    %440 = vector.load %arg14[%439, %c0_135, %c0_136] : memref<8x8x128xbf16, #tpu.memory_space<vmem>>, vector<1x8x128xbf16>
    %441 = vector.shape_cast %440 : vector<1x8x128xbf16> to vector<8x128xbf16>
    %442 = vector.shape_cast %438 : vector<8x128xbf16> to vector<1x8x128xbf16>
    tpu.vector_store %arg14[%439, %c0_135, %c0_136], %442 {strides = array<i32>} : memref<8x8x128xbf16, #tpu.memory_space<vmem>>, vector<1x8x128xbf16>,
    %c3_i32_137 = arith.constant 3 : i32
    %443 = arith.truncf %437 : vector<8x128xf32> to vector<8x128xbf16>
    %c0_138 = arith.constant 0 : index
    %c0_139 = arith.constant 0 : index
    %444 = vector.load %arg6[%c0_138, %c0_139] : memref<128x512xbf16, #tpu.memory_space<vmem>>, vector<128x512xbf16>
    %cst_140 = arith.constant dense<0.000000e+00> : vector<8x512xf32>
    %445 = tpu.matmul %443, %444, %cst_140 {dimension_numbers = #tpu.dot_dimension_numbers<[1], [0], [0], [1], [0, 0, 1, 1], [], []>} : vector<8x128xbf16>, vector<128x512xbf16>, vector<8x512xf32> -> vector<8x512xf32>
    %446 = arith.index_cast %c3_i32_137 : i32 to index
    %c0_141 = arith.constant 0 : index
    %c0_142 = arith.constant 0 : index
    %447 = vector.load %arg15[%446, %c0_141, %c0_142] : memref<8x8x512xbf16, #tpu.memory_space<vmem>>, vector<1x8x512xbf16>
    %448 = vector.shape_cast %447 : vector<1x8x512xbf16> to vector<8x512xbf16>
    %449 = arith.extf %448 : vector<8x512xbf16> to vector<8x512xf32>
    %450 = arith.addf %449, %445 : vector<8x512xf32>
    %451 = vector.extract_strided_slice %450 {offsets = [0, 0], sizes = [8, 128], strides = [1, 1]} : vector<8x512xf32> to vector<8x128xf32>
    %452 = arith.negf %451 : vector<8x128xf32>
    %453 = math.exp %452 : vector<8x128xf32>
    %cst_143 = arith.constant 1.000000e+00 : f32
    %454 = vector.broadcast %cst_143 : f32 to vector<8x128xf32>
    %455 = arith.addf %454, %453 : vector<8x128xf32>
    %456 = arith.divf %454, %455 : vector<8x128xf32>
    %457 = vector.extract_strided_slice %450 {offsets = [0, 128], sizes = [8, 128], strides = [1, 1]} : vector<8x512xf32> to vector<8x128xf32>
    %458 = arith.negf %457 : vector<8x128xf32>
    %459 = math.exp %458 : vector<8x128xf32>
    %cst_144 = arith.constant 1.000000e+00 : f32
    %460 = vector.broadcast %cst_144 : f32 to vector<8x128xf32>
    %461 = arith.addf %460, %459 : vector<8x128xf32>
    %462 = arith.divf %460, %461 : vector<8x128xf32>
    %463 = vector.extract_strided_slice %450 {offsets = [0, 256], sizes = [8, 128], strides = [1, 1]} : vector<8x512xf32> to vector<8x128xf32>
    %464 = math.tanh %463 : vector<8x128xf32>
    %465 = vector.extract_strided_slice %450 {offsets = [0, 384], sizes = [8, 128], strides = [1, 1]} : vector<8x512xf32> to vector<8x128xf32>
    %466 = arith.negf %465 : vector<8x128xf32>
    %467 = math.exp %466 : vector<8x128xf32>
    %cst_145 = arith.constant 1.000000e+00 : f32
    %468 = vector.broadcast %cst_145 : f32 to vector<8x128xf32>
    %469 = arith.addf %468, %467 : vector<8x128xf32>
    %470 = arith.divf %468, %469 : vector<8x128xf32>
    %471 = arith.mulf %462, %435 : vector<8x128xf32>
    %472 = arith.mulf %456, %464 : vector<8x128xf32>
    %473 = arith.addf %471, %472 : vector<8x128xf32>
    %474 = math.tanh %473 : vector<8x128xf32>
    %475 = arith.mulf %470, %474 : vector<8x128xf32>
    %476 = arith.truncf %475 : vector<8x128xf32> to vector<8x128xbf16>
    %477 = arith.index_cast %c3_i32_137 : i32 to index
    %c0_146 = arith.constant 0 : index
    %c0_147 = arith.constant 0 : index
    %478 = vector.load %arg14[%477, %c0_146, %c0_147] : memref<8x8x128xbf16, #tpu.memory_space<vmem>>, vector<1x8x128xbf16>
    %479 = vector.shape_cast %478 : vector<1x8x128xbf16> to vector<8x128xbf16>
    %480 = vector.shape_cast %476 : vector<8x128xbf16> to vector<1x8x128xbf16>
    tpu.vector_store %arg14[%477, %c0_146, %c0_147], %480 {strides = array<i32>} : memref<8x8x128xbf16, #tpu.memory_space<vmem>>, vector<1x8x128xbf16>,
    %c4_i32_148 = arith.constant 4 : i32
    %481 = arith.truncf %475 : vector<8x128xf32> to vector<8x128xbf16>
    %c0_149 = arith.constant 0 : index
    %c0_150 = arith.constant 0 : index
    %482 = vector.load %arg6[%c0_149, %c0_150] : memref<128x512xbf16, #tpu.memory_space<vmem>>, vector<128x512xbf16>
    %cst_151 = arith.constant dense<0.000000e+00> : vector<8x512xf32>
    %483 = tpu.matmul %481, %482, %cst_151 {dimension_numbers = #tpu.dot_dimension_numbers<[1], [0], [0], [1], [0, 0, 1, 1], [], []>} : vector<8x128xbf16>, vector<128x512xbf16>, vector<8x512xf32> -> vector<8x512xf32>
    %484 = arith.index_cast %c4_i32_148 : i32 to index
    %c0_152 = arith.constant 0 : index
    %c0_153 = arith.constant 0 : index
    %485 = vector.load %arg15[%484, %c0_152, %c0_153] : memref<8x8x512xbf16, #tpu.memory_space<vmem>>, vector<1x8x512xbf16>
    %486 = vector.shape_cast %485 : vector<1x8x512xbf16> to vector<8x512xbf16>
    %487 = arith.extf %486 : vector<8x512xbf16> to vector<8x512xf32>
    %488 = arith.addf %487, %483 : vector<8x512xf32>
    %489 = vector.extract_strided_slice %488 {offsets = [0, 0], sizes = [8, 128], strides = [1, 1]} : vector<8x512xf32> to vector<8x128xf32>
    %490 = arith.negf %489 : vector<8x128xf32>
    %491 = math.exp %490 : vector<8x128xf32>
    %cst_154 = arith.constant 1.000000e+00 : f32
    %492 = vector.broadcast %cst_154 : f32 to vector<8x128xf32>
    %493 = arith.addf %492, %491 : vector<8x128xf32>
    %494 = arith.divf %492, %493 : vector<8x128xf32>
    %495 = vector.extract_strided_slice %488 {offsets = [0, 128], sizes = [8, 128], strides = [1, 1]} : vector<8x512xf32> to vector<8x128xf32>
    %496 = arith.negf %495 : vector<8x128xf32>
    %497 = math.exp %496 : vector<8x128xf32>
    %cst_155 = arith.constant 1.000000e+00 : f32
    %498 = vector.broadcast %cst_155 : f32 to vector<8x128xf32>
    %499 = arith.addf %498, %497 : vector<8x128xf32>
    %500 = arith.divf %498, %499 : vector<8x128xf32>
    %501 = vector.extract_strided_slice %488 {offsets = [0, 256], sizes = [8, 128], strides = [1, 1]} : vector<8x512xf32> to vector<8x128xf32>
    %502 = math.tanh %501 : vector<8x128xf32>
    %503 = vector.extract_strided_slice %488 {offsets = [0, 384], sizes = [8, 128], strides = [1, 1]} : vector<8x512xf32> to vector<8x128xf32>
    %504 = arith.negf %503 : vector<8x128xf32>
    %505 = math.exp %504 : vector<8x128xf32>
    %cst_156 = arith.constant 1.000000e+00 : f32
    %506 = vector.broadcast %cst_156 : f32 to vector<8x128xf32>
    %507 = arith.addf %506, %505 : vector<8x128xf32>
    %508 = arith.divf %506, %507 : vector<8x128xf32>
    %509 = arith.mulf %500, %473 : vector<8x128xf32>
    %510 = arith.mulf %494, %502 : vector<8x128xf32>
    %511 = arith.addf %509, %510 : vector<8x128xf32>
    %512 = math.tanh %511 : vector<8x128xf32>
    %513 = arith.mulf %508, %512 : vector<8x128xf32>
    %514 = arith.truncf %513 : vector<8x128xf32> to vector<8x128xbf16>
    %515 = arith.index_cast %c4_i32_148 : i32 to index
    %c0_157 = arith.constant 0 : index
    %c0_158 = arith.constant 0 : index
    %516 = vector.load %arg14[%515, %c0_157, %c0_158] : memref<8x8x128xbf16, #tpu.memory_space<vmem>>, vector<1x8x128xbf16>
    %517 = vector.shape_cast %516 : vector<1x8x128xbf16> to vector<8x128xbf16>
    %518 = vector.shape_cast %514 : vector<8x128xbf16> to vector<1x8x128xbf16>
    tpu.vector_store %arg14[%515, %c0_157, %c0_158], %518 {strides = array<i32>} : memref<8x8x128xbf16, #tpu.memory_space<vmem>>, vector<1x8x128xbf16>,
    %c5_i32_159 = arith.constant 5 : i32
    %519 = arith.truncf %513 : vector<8x128xf32> to vector<8x128xbf16>
    %c0_160 = arith.constant 0 : index
    %c0_161 = arith.constant 0 : index
    %520 = vector.load %arg6[%c0_160, %c0_161] : memref<128x512xbf16, #tpu.memory_space<vmem>>, vector<128x512xbf16>
    %cst_162 = arith.constant dense<0.000000e+00> : vector<8x512xf32>
    %521 = tpu.matmul %519, %520, %cst_162 {dimension_numbers = #tpu.dot_dimension_numbers<[1], [0], [0], [1], [0, 0, 1, 1], [], []>} : vector<8x128xbf16>, vector<128x512xbf16>, vector<8x512xf32> -> vector<8x512xf32>
    %522 = arith.index_cast %c5_i32_159 : i32 to index
    %c0_163 = arith.constant 0 : index
    %c0_164 = arith.constant 0 : index
    %523 = vector.load %arg15[%522, %c0_163, %c0_164] : memref<8x8x512xbf16, #tpu.memory_space<vmem>>, vector<1x8x512xbf16>
    %524 = vector.shape_cast %523 : vector<1x8x512xbf16> to vector<8x512xbf16>
    %525 = arith.extf %524 : vector<8x512xbf16> to vector<8x512xf32>
    %526 = arith.addf %525, %521 : vector<8x512xf32>
    %527 = vector.extract_strided_slice %526 {offsets = [0, 0], sizes = [8, 128], strides = [1, 1]} : vector<8x512xf32> to vector<8x128xf32>
    %528 = arith.negf %527 : vector<8x128xf32>
    %529 = math.exp %528 : vector<8x128xf32>
    %cst_165 = arith.constant 1.000000e+00 : f32
    %530 = vector.broadcast %cst_165 : f32 to vector<8x128xf32>
    %531 = arith.addf %530, %529 : vector<8x128xf32>
    %532 = arith.divf %530, %531 : vector<8x128xf32>
    %533 = vector.extract_strided_slice %526 {offsets = [0, 128], sizes = [8, 128], strides = [1, 1]} : vector<8x512xf32> to vector<8x128xf32>
    %534 = arith.negf %533 : vector<8x128xf32>
    %535 = math.exp %534 : vector<8x128xf32>
    %cst_166 = arith.constant 1.000000e+00 : f32
    %536 = vector.broadcast %cst_166 : f32 to vector<8x128xf32>
    %537 = arith.addf %536, %535 : vector<8x128xf32>
    %538 = arith.divf %536, %537 : vector<8x128xf32>
    %539 = vector.extract_strided_slice %526 {offsets = [0, 256], sizes = [8, 128], strides = [1, 1]} : vector<8x512xf32> to vector<8x128xf32>
    %540 = math.tanh %539 : vector<8x128xf32>
    %541 = vector.extract_strided_slice %526 {offsets = [0, 384], sizes = [8, 128], strides = [1, 1]} : vector<8x512xf32> to vector<8x128xf32>
    %542 = arith.negf %541 : vector<8x128xf32>
    %543 = math.exp %542 : vector<8x128xf32>
    %cst_167 = arith.constant 1.000000e+00 : f32
    %544 = vector.broadcast %cst_167 : f32 to vector<8x128xf32>
    %545 = arith.addf %544, %543 : vector<8x128xf32>
    %546 = arith.divf %544, %545 : vector<8x128xf32>
    %547 = arith.mulf %538, %511 : vector<8x128xf32>
    %548 = arith.mulf %532, %540 : vector<8x128xf32>
    %549 = arith.addf %547, %548 : vector<8x128xf32>
    %550 = math.tanh %549 : vector<8x128xf32>
    %551 = arith.mulf %546, %550 : vector<8x128xf32>
    %552 = arith.truncf %551 : vector<8x128xf32> to vector<8x128xbf16>
    %553 = arith.index_cast %c5_i32_159 : i32 to index
    %c0_168 = arith.constant 0 : index
    %c0_169 = arith.constant 0 : index
    %554 = vector.load %arg14[%553, %c0_168, %c0_169] : memref<8x8x128xbf16, #tpu.memory_space<vmem>>, vector<1x8x128xbf16>
    %555 = vector.shape_cast %554 : vector<1x8x128xbf16> to vector<8x128xbf16>
    %556 = vector.shape_cast %552 : vector<8x128xbf16> to vector<1x8x128xbf16>
    tpu.vector_store %arg14[%553, %c0_168, %c0_169], %556 {strides = array<i32>} : memref<8x8x128xbf16, #tpu.memory_space<vmem>>, vector<1x8x128xbf16>,
    %c6_i32_170 = arith.constant 6 : i32
    %557 = arith.truncf %551 : vector<8x128xf32> to vector<8x128xbf16>
    %c0_171 = arith.constant 0 : index
    %c0_172 = arith.constant 0 : index
    %558 = vector.load %arg6[%c0_171, %c0_172] : memref<128x512xbf16, #tpu.memory_space<vmem>>, vector<128x512xbf16>
    %cst_173 = arith.constant dense<0.000000e+00> : vector<8x512xf32>
    %559 = tpu.matmul %557, %558, %cst_173 {dimension_numbers = #tpu.dot_dimension_numbers<[1], [0], [0], [1], [0, 0, 1, 1], [], []>} : vector<8x128xbf16>, vector<128x512xbf16>, vector<8x512xf32> -> vector<8x512xf32>
    %560 = arith.index_cast %c6_i32_170 : i32 to index
    %c0_174 = arith.constant 0 : index
    %c0_175 = arith.constant 0 : index
    %561 = vector.load %arg15[%560, %c0_174, %c0_175] : memref<8x8x512xbf16, #tpu.memory_space<vmem>>, vector<1x8x512xbf16>
    %562 = vector.shape_cast %561 : vector<1x8x512xbf16> to vector<8x512xbf16>
    %563 = arith.extf %562 : vector<8x512xbf16> to vector<8x512xf32>
    %564 = arith.addf %563, %559 : vector<8x512xf32>
    %565 = vector.extract_strided_slice %564 {offsets = [0, 0], sizes = [8, 128], strides = [1, 1]} : vector<8x512xf32> to vector<8x128xf32>
    %566 = arith.negf %565 : vector<8x128xf32>
    %567 = math.exp %566 : vector<8x128xf32>
    %cst_176 = arith.constant 1.000000e+00 : f32
    %568 = vector.broadcast %cst_176 : f32 to vector<8x128xf32>
    %569 = arith.addf %568, %567 : vector<8x128xf32>
    %570 = arith.divf %568, %569 : vector<8x128xf32>
    %571 = vector.extract_strided_slice %564 {offsets = [0, 128], sizes = [8, 128], strides = [1, 1]} : vector<8x512xf32> to vector<8x128xf32>
    %572 = arith.negf %571 : vector<8x128xf32>
    %573 = math.exp %572 : vector<8x128xf32>
    %cst_177 = arith.constant 1.000000e+00 : f32
    %574 = vector.broadcast %cst_177 : f32 to vector<8x128xf32>
    %575 = arith.addf %574, %573 : vector<8x128xf32>
    %576 = arith.divf %574, %575 : vector<8x128xf32>
    %577 = vector.extract_strided_slice %564 {offsets = [0, 256], sizes = [8, 128], strides = [1, 1]} : vector<8x512xf32> to vector<8x128xf32>
    %578 = math.tanh %577 : vector<8x128xf32>
    %579 = vector.extract_strided_slice %564 {offsets = [0, 384], sizes = [8, 128], strides = [1, 1]} : vector<8x512xf32> to vector<8x128xf32>
    %580 = arith.negf %579 : vector<8x128xf32>
    %581 = math.exp %580 : vector<8x128xf32>
    %cst_178 = arith.constant 1.000000e+00 : f32
    %582 = vector.broadcast %cst_178 : f32 to vector<8x128xf32>
    %583 = arith.addf %582, %581 : vector<8x128xf32>
    %584 = arith.divf %582, %583 : vector<8x128xf32>
    %585 = arith.mulf %576, %549 : vector<8x128xf32>
    %586 = arith.mulf %570, %578 : vector<8x128xf32>
    %587 = arith.addf %585, %586 : vector<8x128xf32>
    %588 = math.tanh %587 : vector<8x128xf32>
    %589 = arith.mulf %584, %588 : vector<8x128xf32>
    %590 = arith.truncf %589 : vector<8x128xf32> to vector<8x128xbf16>
    %591 = arith.index_cast %c6_i32_170 : i32 to index
    %c0_179 = arith.constant 0 : index
    %c0_180 = arith.constant 0 : index
    %592 = vector.load %arg14[%591, %c0_179, %c0_180] : memref<8x8x128xbf16, #tpu.memory_space<vmem>>, vector<1x8x128xbf16>
    %593 = vector.shape_cast %592 : vector<1x8x128xbf16> to vector<8x128xbf16>
    %594 = vector.shape_cast %590 : vector<8x128xbf16> to vector<1x8x128xbf16>
    tpu.vector_store %arg14[%591, %c0_179, %c0_180], %594 {strides = array<i32>} : memref<8x8x128xbf16, #tpu.memory_space<vmem>>, vector<1x8x128xbf16>,
    %c7_i32_181 = arith.constant 7 : i32
    %595 = arith.truncf %589 : vector<8x128xf32> to vector<8x128xbf16>
    %c0_182 = arith.constant 0 : index
    %c0_183 = arith.constant 0 : index
    %596 = vector.load %arg6[%c0_182, %c0_183] : memref<128x512xbf16, #tpu.memory_space<vmem>>, vector<128x512xbf16>
    %cst_184 = arith.constant dense<0.000000e+00> : vector<8x512xf32>
    %597 = tpu.matmul %595, %596, %cst_184 {dimension_numbers = #tpu.dot_dimension_numbers<[1], [0], [0], [1], [0, 0, 1, 1], [], []>} : vector<8x128xbf16>, vector<128x512xbf16>, vector<8x512xf32> -> vector<8x512xf32>
    %598 = arith.index_cast %c7_i32_181 : i32 to index
    %c0_185 = arith.constant 0 : index
    %c0_186 = arith.constant 0 : index
    %599 = vector.load %arg15[%598, %c0_185, %c0_186] : memref<8x8x512xbf16, #tpu.memory_space<vmem>>, vector<1x8x512xbf16>
    %600 = vector.shape_cast %599 : vector<1x8x512xbf16> to vector<8x512xbf16>
    %601 = arith.extf %600 : vector<8x512xbf16> to vector<8x512xf32>
    %602 = arith.addf %601, %597 : vector<8x512xf32>
    %603 = vector.extract_strided_slice %602 {offsets = [0, 0], sizes = [8, 128], strides = [1, 1]} : vector<8x512xf32> to vector<8x128xf32>
    %604 = arith.negf %603 : vector<8x128xf32>
    %605 = math.exp %604 : vector<8x128xf32>
    %cst_187 = arith.constant 1.000000e+00 : f32
    %606 = vector.broadcast %cst_187 : f32 to vector<8x128xf32>
    %607 = arith.addf %606, %605 : vector<8x128xf32>
    %608 = arith.divf %606, %607 : vector<8x128xf32>
    %609 = vector.extract_strided_slice %602 {offsets = [0, 128], sizes = [8, 128], strides = [1, 1]} : vector<8x512xf32> to vector<8x128xf32>
    %610 = arith.negf %609 : vector<8x128xf32>
    %611 = math.exp %610 : vector<8x128xf32>
    %cst_188 = arith.constant 1.000000e+00 : f32
    %612 = vector.broadcast %cst_188 : f32 to vector<8x128xf32>
    %613 = arith.addf %612, %611 : vector<8x128xf32>
    %614 = arith.divf %612, %613 : vector<8x128xf32>
    %615 = vector.extract_strided_slice %602 {offsets = [0, 256], sizes = [8, 128], strides = [1, 1]} : vector<8x512xf32> to vector<8x128xf32>
    %616 = math.tanh %615 : vector<8x128xf32>
    %617 = vector.extract_strided_slice %602 {offsets = [0, 384], sizes = [8, 128], strides = [1, 1]} : vector<8x512xf32> to vector<8x128xf32>
    %618 = arith.negf %617 : vector<8x128xf32>
    %619 = math.exp %618 : vector<8x128xf32>
    %cst_189 = arith.constant 1.000000e+00 : f32
    %620 = vector.broadcast %cst_189 : f32 to vector<8x128xf32>
    %621 = arith.addf %620, %619 : vector<8x128xf32>
    %622 = arith.divf %620, %621 : vector<8x128xf32>
    %623 = arith.mulf %614, %587 : vector<8x128xf32>
    %624 = arith.mulf %608, %616 : vector<8x128xf32>
    %625 = arith.addf %623, %624 : vector<8x128xf32>
    %626 = math.tanh %625 : vector<8x128xf32>
    %627 = arith.mulf %622, %626 : vector<8x128xf32>
    %628 = arith.truncf %627 : vector<8x128xf32> to vector<8x128xbf16>
    %629 = arith.index_cast %c7_i32_181 : i32 to index
    %c0_190 = arith.constant 0 : index
    %c0_191 = arith.constant 0 : index
    %630 = vector.load %arg14[%629, %c0_190, %c0_191] : memref<8x8x128xbf16, #tpu.memory_space<vmem>>, vector<1x8x128xbf16>
    %631 = vector.shape_cast %630 : vector<1x8x128xbf16> to vector<8x128xbf16>
    %632 = vector.shape_cast %628 : vector<8x128xbf16> to vector<1x8x128xbf16>
    tpu.vector_store %arg14[%629, %c0_190, %c0_191], %632 {strides = array<i32>} : memref<8x8x128xbf16, #tpu.memory_space<vmem>>, vector<1x8x128xbf16>,
    %c8_i32_192 = arith.constant 8 : i32
    %c0_193 = arith.constant 0 : index
    %c0_194 = arith.constant 0 : index
    %c0_195 = arith.constant 0 : index
    %633 = vector.load %arg14[%c0_193, %c0_194, %c0_195] : memref<8x8x128xbf16, #tpu.memory_space<vmem>>, vector<8x8x128xbf16>
    %634 = vector.shape_cast %633 : vector<8x8x128xbf16> to vector<64x128xbf16>
    %c0_196 = arith.constant 0 : index
    %c0_197 = arith.constant 0 : index
    %635 = vector.load %arg8[%c0_196, %c0_197] : memref<128x512xbf16, #tpu.memory_space<vmem>>, vector<128x512xbf16>
    %cst_198 = arith.constant dense<0.000000e+00> : vector<64x512xf32>
    %636 = tpu.matmul %634, %635, %cst_198 {dimension_numbers = #tpu.dot_dimension_numbers<[1], [0], [0], [1], [0, 0, 1, 1], [], []>} : vector<64x128xbf16>, vector<128x512xbf16>, vector<64x512xf32> -> vector<64x512xf32>
    %c0_199 = arith.constant 0 : index
    %c0_200 = arith.constant 0 : index
    %637 = vector.load %arg10[%c0_199, %c0_200] : memref<1x512xf32, #tpu.memory_space<vmem>>, vector<1x512xf32>
    %638 = vector.broadcast %637 : vector<1x512xf32> to vector<64x512xf32>
    %639 = arith.addf %636, %638 : vector<64x512xf32>
    %640 = arith.truncf %639 : vector<64x512xf32> to vector<64x512xbf16>
    %641 = vector.shape_cast %640 : vector<64x512xbf16> to vector<8x8x512xbf16>
    %c0_201 = arith.constant 0 : index
    %c0_202 = arith.constant 0 : index
    %c0_203 = arith.constant 0 : index
    %642 = vector.load %arg15[%c0_201, %c0_202, %c0_203] : memref<8x8x512xbf16, #tpu.memory_space<vmem>>, vector<8x8x512xbf16>
    tpu.vector_store %arg15[%c0_201, %c0_202, %c0_203], %641 {strides = array<i32>} : memref<8x8x512xbf16, #tpu.memory_space<vmem>>, vector<8x8x512xbf16>,
    %cst_204 = arith.constant 0.000000e+00 : f32
    %643 = vector.broadcast %cst_204 : f32 to vector<8x128xf32>
    %cst_205 = arith.constant 0.000000e+00 : f32
    %644 = vector.broadcast %cst_205 : f32 to vector<8x128xf32>
    %c0_i32_206 = arith.constant 0 : i32
    %645 = arith.truncf %643 : vector<8x128xf32> to vector<8x128xbf16>
    %c0_207 = arith.constant 0 : index
    %c0_208 = arith.constant 0 : index
    %646 = vector.load %arg9[%c0_207, %c0_208] : memref<128x512xbf16, #tpu.memory_space<vmem>>, vector<128x512xbf16>
    %cst_209 = arith.constant dense<0.000000e+00> : vector<8x512xf32>
    %647 = tpu.matmul %645, %646, %cst_209 {dimension_numbers = #tpu.dot_dimension_numbers<[1], [0], [0], [1], [0, 0, 1, 1], [], []>} : vector<8x128xbf16>, vector<128x512xbf16>, vector<8x512xf32> -> vector<8x512xf32>
    %648 = arith.index_cast %c0_i32_206 : i32 to index
    %c0_210 = arith.constant 0 : index
    %c0_211 = arith.constant 0 : index
    %649 = vector.load %arg15[%648, %c0_210, %c0_211] : memref<8x8x512xbf16, #tpu.memory_space<vmem>>, vector<1x8x512xbf16>
    %650 = vector.shape_cast %649 : vector<1x8x512xbf16> to vector<8x512xbf16>
    %651 = arith.extf %650 : vector<8x512xbf16> to vector<8x512xf32>
    %652 = arith.addf %651, %647 : vector<8x512xf32>
    %653 = vector.extract_strided_slice %652 {offsets = [0, 0], sizes = [8, 128], strides = [1, 1]} : vector<8x512xf32> to vector<8x128xf32>
    %654 = arith.negf %653 : vector<8x128xf32>
    %655 = math.exp %654 : vector<8x128xf32>
    %cst_212 = arith.constant 1.000000e+00 : f32
    %656 = vector.broadcast %cst_212 : f32 to vector<8x128xf32>
    %657 = arith.addf %656, %655 : vector<8x128xf32>
    %658 = arith.divf %656, %657 : vector<8x128xf32>
    %659 = vector.extract_strided_slice %652 {offsets = [0, 128], sizes = [8, 128], strides = [1, 1]} : vector<8x512xf32> to vector<8x128xf32>
    %660 = arith.negf %659 : vector<8x128xf32>
    %661 = math.exp %660 : vector<8x128xf32>
    %cst_213 = arith.constant 1.000000e+00 : f32
    %662 = vector.broadcast %cst_213 : f32 to vector<8x128xf32>
    %663 = arith.addf %662, %661 : vector<8x128xf32>
    %664 = arith.divf %662, %663 : vector<8x128xf32>
    %665 = vector.extract_strided_slice %652 {offsets = [0, 256], sizes = [8, 128], strides = [1, 1]} : vector<8x512xf32> to vector<8x128xf32>
    %666 = math.tanh %665 : vector<8x128xf32>
    %667 = vector.extract_strided_slice %652 {offsets = [0, 384], sizes = [8, 128], strides = [1, 1]} : vector<8x512xf32> to vector<8x128xf32>
    %668 = arith.negf %667 : vector<8x128xf32>
    %669 = math.exp %668 : vector<8x128xf32>
    %cst_214 = arith.constant 1.000000e+00 : f32
    %670 = vector.broadcast %cst_214 : f32 to vector<8x128xf32>
    %671 = arith.addf %670, %669 : vector<8x128xf32>
    %672 = arith.divf %670, %671 : vector<8x128xf32>
    %673 = arith.mulf %664, %644 : vector<8x128xf32>
    %674 = arith.mulf %658, %666 : vector<8x128xf32>
    %675 = arith.addf %673, %674 : vector<8x128xf32>
    %676 = math.tanh %675 : vector<8x128xf32>
    %677 = arith.mulf %672, %676 : vector<8x128xf32>
    %c1_i32_215 = arith.constant 1 : i32
    %678 = arith.truncf %677 : vector<8x128xf32> to vector<8x128xbf16>
    %c0_216 = arith.constant 0 : index
    %c0_217 = arith.constant 0 : index
    %679 = vector.load %arg9[%c0_216, %c0_217] : memref<128x512xbf16, #tpu.memory_space<vmem>>, vector<128x512xbf16>
    %cst_218 = arith.constant dense<0.000000e+00> : vector<8x512xf32>
    %680 = tpu.matmul %678, %679, %cst_218 {dimension_numbers = #tpu.dot_dimension_numbers<[1], [0], [0], [1], [0, 0, 1, 1], [], []>} : vector<8x128xbf16>, vector<128x512xbf16>, vector<8x512xf32> -> vector<8x512xf32>
    %681 = arith.index_cast %c1_i32_215 : i32 to index
    %c0_219 = arith.constant 0 : index
    %c0_220 = arith.constant 0 : index
    %682 = vector.load %arg15[%681, %c0_219, %c0_220] : memref<8x8x512xbf16, #tpu.memory_space<vmem>>, vector<1x8x512xbf16>
    %683 = vector.shape_cast %682 : vector<1x8x512xbf16> to vector<8x512xbf16>
    %684 = arith.extf %683 : vector<8x512xbf16> to vector<8x512xf32>
    %685 = arith.addf %684, %680 : vector<8x512xf32>
    %686 = vector.extract_strided_slice %685 {offsets = [0, 0], sizes = [8, 128], strides = [1, 1]} : vector<8x512xf32> to vector<8x128xf32>
    %687 = arith.negf %686 : vector<8x128xf32>
    %688 = math.exp %687 : vector<8x128xf32>
    %cst_221 = arith.constant 1.000000e+00 : f32
    %689 = vector.broadcast %cst_221 : f32 to vector<8x128xf32>
    %690 = arith.addf %689, %688 : vector<8x128xf32>
    %691 = arith.divf %689, %690 : vector<8x128xf32>
    %692 = vector.extract_strided_slice %685 {offsets = [0, 128], sizes = [8, 128], strides = [1, 1]} : vector<8x512xf32> to vector<8x128xf32>
    %693 = arith.negf %692 : vector<8x128xf32>
    %694 = math.exp %693 : vector<8x128xf32>
    %cst_222 = arith.constant 1.000000e+00 : f32
    %695 = vector.broadcast %cst_222 : f32 to vector<8x128xf32>
    %696 = arith.addf %695, %694 : vector<8x128xf32>
    %697 = arith.divf %695, %696 : vector<8x128xf32>
    %698 = vector.extract_strided_slice %685 {offsets = [0, 256], sizes = [8, 128], strides = [1, 1]} : vector<8x512xf32> to vector<8x128xf32>
    %699 = math.tanh %698 : vector<8x128xf32>
    %700 = vector.extract_strided_slice %685 {offsets = [0, 384], sizes = [8, 128], strides = [1, 1]} : vector<8x512xf32> to vector<8x128xf32>
    %701 = arith.negf %700 : vector<8x128xf32>
    %702 = math.exp %701 : vector<8x128xf32>
    %cst_223 = arith.constant 1.000000e+00 : f32
    %703 = vector.broadcast %cst_223 : f32 to vector<8x128xf32>
    %704 = arith.addf %703, %702 : vector<8x128xf32>
    %705 = arith.divf %703, %704 : vector<8x128xf32>
    %706 = arith.mulf %697, %675 : vector<8x128xf32>
    %707 = arith.mulf %691, %699 : vector<8x128xf32>
    %708 = arith.addf %706, %707 : vector<8x128xf32>
    %709 = math.tanh %708 : vector<8x128xf32>
    %710 = arith.mulf %705, %709 : vector<8x128xf32>
    %c2_i32_224 = arith.constant 2 : i32
    %711 = arith.truncf %710 : vector<8x128xf32> to vector<8x128xbf16>
    %c0_225 = arith.constant 0 : index
    %c0_226 = arith.constant 0 : index
    %712 = vector.load %arg9[%c0_225, %c0_226] : memref<128x512xbf16, #tpu.memory_space<vmem>>, vector<128x512xbf16>
    %cst_227 = arith.constant dense<0.000000e+00> : vector<8x512xf32>
    %713 = tpu.matmul %711, %712, %cst_227 {dimension_numbers = #tpu.dot_dimension_numbers<[1], [0], [0], [1], [0, 0, 1, 1], [], []>} : vector<8x128xbf16>, vector<128x512xbf16>, vector<8x512xf32> -> vector<8x512xf32>
    %714 = arith.index_cast %c2_i32_224 : i32 to index
    %c0_228 = arith.constant 0 : index
    %c0_229 = arith.constant 0 : index
    %715 = vector.load %arg15[%714, %c0_228, %c0_229] : memref<8x8x512xbf16, #tpu.memory_space<vmem>>, vector<1x8x512xbf16>
    %716 = vector.shape_cast %715 : vector<1x8x512xbf16> to vector<8x512xbf16>
    %717 = arith.extf %716 : vector<8x512xbf16> to vector<8x512xf32>
    %718 = arith.addf %717, %713 : vector<8x512xf32>
    %719 = vector.extract_strided_slice %718 {offsets = [0, 0], sizes = [8, 128], strides = [1, 1]} : vector<8x512xf32> to vector<8x128xf32>
    %720 = arith.negf %719 : vector<8x128xf32>
    %721 = math.exp %720 : vector<8x128xf32>
    %cst_230 = arith.constant 1.000000e+00 : f32
    %722 = vector.broadcast %cst_230 : f32 to vector<8x128xf32>
    %723 = arith.addf %722, %721 : vector<8x128xf32>
    %724 = arith.divf %722, %723 : vector<8x128xf32>
    %725 = vector.extract_strided_slice %718 {offsets = [0, 128], sizes = [8, 128], strides = [1, 1]} : vector<8x512xf32> to vector<8x128xf32>
    %726 = arith.negf %725 : vector<8x128xf32>
    %727 = math.exp %726 : vector<8x128xf32>
    %cst_231 = arith.constant 1.000000e+00 : f32
    %728 = vector.broadcast %cst_231 : f32 to vector<8x128xf32>
    %729 = arith.addf %728, %727 : vector<8x128xf32>
    %730 = arith.divf %728, %729 : vector<8x128xf32>
    %731 = vector.extract_strided_slice %718 {offsets = [0, 256], sizes = [8, 128], strides = [1, 1]} : vector<8x512xf32> to vector<8x128xf32>
    %732 = math.tanh %731 : vector<8x128xf32>
    %733 = vector.extract_strided_slice %718 {offsets = [0, 384], sizes = [8, 128], strides = [1, 1]} : vector<8x512xf32> to vector<8x128xf32>
    %734 = arith.negf %733 : vector<8x128xf32>
    %735 = math.exp %734 : vector<8x128xf32>
    %cst_232 = arith.constant 1.000000e+00 : f32
    %736 = vector.broadcast %cst_232 : f32 to vector<8x128xf32>
    %737 = arith.addf %736, %735 : vector<8x128xf32>
    %738 = arith.divf %736, %737 : vector<8x128xf32>
    %739 = arith.mulf %730, %708 : vector<8x128xf32>
    %740 = arith.mulf %724, %732 : vector<8x128xf32>
    %741 = arith.addf %739, %740 : vector<8x128xf32>
    %742 = math.tanh %741 : vector<8x128xf32>
    %743 = arith.mulf %738, %742 : vector<8x128xf32>
    %c3_i32_233 = arith.constant 3 : i32
    %744 = arith.truncf %743 : vector<8x128xf32> to vector<8x128xbf16>
    %c0_234 = arith.constant 0 : index
    %c0_235 = arith.constant 0 : index
    %745 = vector.load %arg9[%c0_234, %c0_235] : memref<128x512xbf16, #tpu.memory_space<vmem>>, vector<128x512xbf16>
    %cst_236 = arith.constant dense<0.000000e+00> : vector<8x512xf32>
    %746 = tpu.matmul %744, %745, %cst_236 {dimension_numbers = #tpu.dot_dimension_numbers<[1], [0], [0], [1], [0, 0, 1, 1], [], []>} : vector<8x128xbf16>, vector<128x512xbf16>, vector<8x512xf32> -> vector<8x512xf32>
    %747 = arith.index_cast %c3_i32_233 : i32 to index
    %c0_237 = arith.constant 0 : index
    %c0_238 = arith.constant 0 : index
    %748 = vector.load %arg15[%747, %c0_237, %c0_238] : memref<8x8x512xbf16, #tpu.memory_space<vmem>>, vector<1x8x512xbf16>
    %749 = vector.shape_cast %748 : vector<1x8x512xbf16> to vector<8x512xbf16>
    %750 = arith.extf %749 : vector<8x512xbf16> to vector<8x512xf32>
    %751 = arith.addf %750, %746 : vector<8x512xf32>
    %752 = vector.extract_strided_slice %751 {offsets = [0, 0], sizes = [8, 128], strides = [1, 1]} : vector<8x512xf32> to vector<8x128xf32>
    %753 = arith.negf %752 : vector<8x128xf32>
    %754 = math.exp %753 : vector<8x128xf32>
    %cst_239 = arith.constant 1.000000e+00 : f32
    %755 = vector.broadcast %cst_239 : f32 to vector<8x128xf32>
    %756 = arith.addf %755, %754 : vector<8x128xf32>
    %757 = arith.divf %755, %756 : vector<8x128xf32>
    %758 = vector.extract_strided_slice %751 {offsets = [0, 128], sizes = [8, 128], strides = [1, 1]} : vector<8x512xf32> to vector<8x128xf32>
    %759 = arith.negf %758 : vector<8x128xf32>
    %760 = math.exp %759 : vector<8x128xf32>
    %cst_240 = arith.constant 1.000000e+00 : f32
    %761 = vector.broadcast %cst_240 : f32 to vector<8x128xf32>
    %762 = arith.addf %761, %760 : vector<8x128xf32>
    %763 = arith.divf %761, %762 : vector<8x128xf32>
    %764 = vector.extract_strided_slice %751 {offsets = [0, 256], sizes = [8, 128], strides = [1, 1]} : vector<8x512xf32> to vector<8x128xf32>
    %765 = math.tanh %764 : vector<8x128xf32>
    %766 = vector.extract_strided_slice %751 {offsets = [0, 384], sizes = [8, 128], strides = [1, 1]} : vector<8x512xf32> to vector<8x128xf32>
    %767 = arith.negf %766 : vector<8x128xf32>
    %768 = math.exp %767 : vector<8x128xf32>
    %cst_241 = arith.constant 1.000000e+00 : f32
    %769 = vector.broadcast %cst_241 : f32 to vector<8x128xf32>
    %770 = arith.addf %769, %768 : vector<8x128xf32>
    %771 = arith.divf %769, %770 : vector<8x128xf32>
    %772 = arith.mulf %763, %741 : vector<8x128xf32>
    %773 = arith.mulf %757, %765 : vector<8x128xf32>
    %774 = arith.addf %772, %773 : vector<8x128xf32>
    %775 = math.tanh %774 : vector<8x128xf32>
    %776 = arith.mulf %771, %775 : vector<8x128xf32>
    %c4_i32_242 = arith.constant 4 : i32
    %777 = arith.truncf %776 : vector<8x128xf32> to vector<8x128xbf16>
    %c0_243 = arith.constant 0 : index
    %c0_244 = arith.constant 0 : index
    %778 = vector.load %arg9[%c0_243, %c0_244] : memref<128x512xbf16, #tpu.memory_space<vmem>>, vector<128x512xbf16>
    %cst_245 = arith.constant dense<0.000000e+00> : vector<8x512xf32>
    %779 = tpu.matmul %777, %778, %cst_245 {dimension_numbers = #tpu.dot_dimension_numbers<[1], [0], [0], [1], [0, 0, 1, 1], [], []>} : vector<8x128xbf16>, vector<128x512xbf16>, vector<8x512xf32> -> vector<8x512xf32>
    %780 = arith.index_cast %c4_i32_242 : i32 to index
    %c0_246 = arith.constant 0 : index
    %c0_247 = arith.constant 0 : index
    %781 = vector.load %arg15[%780, %c0_246, %c0_247] : memref<8x8x512xbf16, #tpu.memory_space<vmem>>, vector<1x8x512xbf16>
    %782 = vector.shape_cast %781 : vector<1x8x512xbf16> to vector<8x512xbf16>
    %783 = arith.extf %782 : vector<8x512xbf16> to vector<8x512xf32>
    %784 = arith.addf %783, %779 : vector<8x512xf32>
    %785 = vector.extract_strided_slice %784 {offsets = [0, 0], sizes = [8, 128], strides = [1, 1]} : vector<8x512xf32> to vector<8x128xf32>
    %786 = arith.negf %785 : vector<8x128xf32>
    %787 = math.exp %786 : vector<8x128xf32>
    %cst_248 = arith.constant 1.000000e+00 : f32
    %788 = vector.broadcast %cst_248 : f32 to vector<8x128xf32>
    %789 = arith.addf %788, %787 : vector<8x128xf32>
    %790 = arith.divf %788, %789 : vector<8x128xf32>
    %791 = vector.extract_strided_slice %784 {offsets = [0, 128], sizes = [8, 128], strides = [1, 1]} : vector<8x512xf32> to vector<8x128xf32>
    %792 = arith.negf %791 : vector<8x128xf32>
    %793 = math.exp %792 : vector<8x128xf32>
    %cst_249 = arith.constant 1.000000e+00 : f32
    %794 = vector.broadcast %cst_249 : f32 to vector<8x128xf32>
    %795 = arith.addf %794, %793 : vector<8x128xf32>
    %796 = arith.divf %794, %795 : vector<8x128xf32>
    %797 = vector.extract_strided_slice %784 {offsets = [0, 256], sizes = [8, 128], strides = [1, 1]} : vector<8x512xf32> to vector<8x128xf32>
    %798 = math.tanh %797 : vector<8x128xf32>
    %799 = vector.extract_strided_slice %784 {offsets = [0, 384], sizes = [8, 128], strides = [1, 1]} : vector<8x512xf32> to vector<8x128xf32>
    %800 = arith.negf %799 : vector<8x128xf32>
    %801 = math.exp %800 : vector<8x128xf32>
    %cst_250 = arith.constant 1.000000e+00 : f32
    %802 = vector.broadcast %cst_250 : f32 to vector<8x128xf32>
    %803 = arith.addf %802, %801 : vector<8x128xf32>
    %804 = arith.divf %802, %803 : vector<8x128xf32>
    %805 = arith.mulf %796, %774 : vector<8x128xf32>
    %806 = arith.mulf %790, %798 : vector<8x128xf32>
    %807 = arith.addf %805, %806 : vector<8x128xf32>
    %808 = math.tanh %807 : vector<8x128xf32>
    %809 = arith.mulf %804, %808 : vector<8x128xf32>
    %c5_i32_251 = arith.constant 5 : i32
    %810 = arith.truncf %809 : vector<8x128xf32> to vector<8x128xbf16>
    %c0_252 = arith.constant 0 : index
    %c0_253 = arith.constant 0 : index
    %811 = vector.load %arg9[%c0_252, %c0_253] : memref<128x512xbf16, #tpu.memory_space<vmem>>, vector<128x512xbf16>
    %cst_254 = arith.constant dense<0.000000e+00> : vector<8x512xf32>
    %812 = tpu.matmul %810, %811, %cst_254 {dimension_numbers = #tpu.dot_dimension_numbers<[1], [0], [0], [1], [0, 0, 1, 1], [], []>} : vector<8x128xbf16>, vector<128x512xbf16>, vector<8x512xf32> -> vector<8x512xf32>
    %813 = arith.index_cast %c5_i32_251 : i32 to index
    %c0_255 = arith.constant 0 : index
    %c0_256 = arith.constant 0 : index
    %814 = vector.load %arg15[%813, %c0_255, %c0_256] : memref<8x8x512xbf16, #tpu.memory_space<vmem>>, vector<1x8x512xbf16>
    %815 = vector.shape_cast %814 : vector<1x8x512xbf16> to vector<8x512xbf16>
    %816 = arith.extf %815 : vector<8x512xbf16> to vector<8x512xf32>
    %817 = arith.addf %816, %812 : vector<8x512xf32>
    %818 = vector.extract_strided_slice %817 {offsets = [0, 0], sizes = [8, 128], strides = [1, 1]} : vector<8x512xf32> to vector<8x128xf32>
    %819 = arith.negf %818 : vector<8x128xf32>
    %820 = math.exp %819 : vector<8x128xf32>
    %cst_257 = arith.constant 1.000000e+00 : f32
    %821 = vector.broadcast %cst_257 : f32 to vector<8x128xf32>
    %822 = arith.addf %821, %820 : vector<8x128xf32>
    %823 = arith.divf %821, %822 : vector<8x128xf32>
    %824 = vector.extract_strided_slice %817 {offsets = [0, 128], sizes = [8, 128], strides = [1, 1]} : vector<8x512xf32> to vector<8x128xf32>
    %825 = arith.negf %824 : vector<8x128xf32>
    %826 = math.exp %825 : vector<8x128xf32>
    %cst_258 = arith.constant 1.000000e+00 : f32
    %827 = vector.broadcast %cst_258 : f32 to vector<8x128xf32>
    %828 = arith.addf %827, %826 : vector<8x128xf32>
    %829 = arith.divf %827, %828 : vector<8x128xf32>
    %830 = vector.extract_strided_slice %817 {offsets = [0, 256], sizes = [8, 128], strides = [1, 1]} : vector<8x512xf32> to vector<8x128xf32>
    %831 = math.tanh %830 : vector<8x128xf32>
    %832 = vector.extract_strided_slice %817 {offsets = [0, 384], sizes = [8, 128], strides = [1, 1]} : vector<8x512xf32> to vector<8x128xf32>
    %833 = arith.negf %832 : vector<8x128xf32>
    %834 = math.exp %833 : vector<8x128xf32>
    %cst_259 = arith.constant 1.000000e+00 : f32
    %835 = vector.broadcast %cst_259 : f32 to vector<8x128xf32>
    %836 = arith.addf %835, %834 : vector<8x128xf32>
    %837 = arith.divf %835, %836 : vector<8x128xf32>
    %838 = arith.mulf %829, %807 : vector<8x128xf32>
    %839 = arith.mulf %823, %831 : vector<8x128xf32>
    %840 = arith.addf %838, %839 : vector<8x128xf32>
    %841 = math.tanh %840 : vector<8x128xf32>
    %842 = arith.mulf %837, %841 : vector<8x128xf32>
    %c6_i32_260 = arith.constant 6 : i32
    %843 = arith.truncf %842 : vector<8x128xf32> to vector<8x128xbf16>
    %c0_261 = arith.constant 0 : index
    %c0_262 = arith.constant 0 : index
    %844 = vector.load %arg9[%c0_261, %c0_262] : memref<128x512xbf16, #tpu.memory_space<vmem>>, vector<128x512xbf16>
    %cst_263 = arith.constant dense<0.000000e+00> : vector<8x512xf32>
    %845 = tpu.matmul %843, %844, %cst_263 {dimension_numbers = #tpu.dot_dimension_numbers<[1], [0], [0], [1], [0, 0, 1, 1], [], []>} : vector<8x128xbf16>, vector<128x512xbf16>, vector<8x512xf32> -> vector<8x512xf32>
    %846 = arith.index_cast %c6_i32_260 : i32 to index
    %c0_264 = arith.constant 0 : index
    %c0_265 = arith.constant 0 : index
    %847 = vector.load %arg15[%846, %c0_264, %c0_265] : memref<8x8x512xbf16, #tpu.memory_space<vmem>>, vector<1x8x512xbf16>
    %848 = vector.shape_cast %847 : vector<1x8x512xbf16> to vector<8x512xbf16>
    %849 = arith.extf %848 : vector<8x512xbf16> to vector<8x512xf32>
    %850 = arith.addf %849, %845 : vector<8x512xf32>
    %851 = vector.extract_strided_slice %850 {offsets = [0, 0], sizes = [8, 128], strides = [1, 1]} : vector<8x512xf32> to vector<8x128xf32>
    %852 = arith.negf %851 : vector<8x128xf32>
    %853 = math.exp %852 : vector<8x128xf32>
    %cst_266 = arith.constant 1.000000e+00 : f32
    %854 = vector.broadcast %cst_266 : f32 to vector<8x128xf32>
    %855 = arith.addf %854, %853 : vector<8x128xf32>
    %856 = arith.divf %854, %855 : vector<8x128xf32>
    %857 = vector.extract_strided_slice %850 {offsets = [0, 128], sizes = [8, 128], strides = [1, 1]} : vector<8x512xf32> to vector<8x128xf32>
    %858 = arith.negf %857 : vector<8x128xf32>
    %859 = math.exp %858 : vector<8x128xf32>
    %cst_267 = arith.constant 1.000000e+00 : f32
    %860 = vector.broadcast %cst_267 : f32 to vector<8x128xf32>
    %861 = arith.addf %860, %859 : vector<8x128xf32>
    %862 = arith.divf %860, %861 : vector<8x128xf32>
    %863 = vector.extract_strided_slice %850 {offsets = [0, 256], sizes = [8, 128], strides = [1, 1]} : vector<8x512xf32> to vector<8x128xf32>
    %864 = math.tanh %863 : vector<8x128xf32>
    %865 = vector.extract_strided_slice %850 {offsets = [0, 384], sizes = [8, 128], strides = [1, 1]} : vector<8x512xf32> to vector<8x128xf32>
    %866 = arith.negf %865 : vector<8x128xf32>
    %867 = math.exp %866 : vector<8x128xf32>
    %cst_268 = arith.constant 1.000000e+00 : f32
    %868 = vector.broadcast %cst_268 : f32 to vector<8x128xf32>
    %869 = arith.addf %868, %867 : vector<8x128xf32>
    %870 = arith.divf %868, %869 : vector<8x128xf32>
    %871 = arith.mulf %862, %840 : vector<8x128xf32>
    %872 = arith.mulf %856, %864 : vector<8x128xf32>
    %873 = arith.addf %871, %872 : vector<8x128xf32>
    %874 = math.tanh %873 : vector<8x128xf32>
    %875 = arith.mulf %870, %874 : vector<8x128xf32>
    %c7_i32_269 = arith.constant 7 : i32
    %876 = arith.truncf %875 : vector<8x128xf32> to vector<8x128xbf16>
    %c0_270 = arith.constant 0 : index
    %c0_271 = arith.constant 0 : index
    %877 = vector.load %arg9[%c0_270, %c0_271] : memref<128x512xbf16, #tpu.memory_space<vmem>>, vector<128x512xbf16>
    %cst_272 = arith.constant dense<0.000000e+00> : vector<8x512xf32>
    %878 = tpu.matmul %876, %877, %cst_272 {dimension_numbers = #tpu.dot_dimension_numbers<[1], [0], [0], [1], [0, 0, 1, 1], [], []>} : vector<8x128xbf16>, vector<128x512xbf16>, vector<8x512xf32> -> vector<8x512xf32>
    %879 = arith.index_cast %c7_i32_269 : i32 to index
    %c0_273 = arith.constant 0 : index
    %c0_274 = arith.constant 0 : index
    %880 = vector.load %arg15[%879, %c0_273, %c0_274] : memref<8x8x512xbf16, #tpu.memory_space<vmem>>, vector<1x8x512xbf16>
    %881 = vector.shape_cast %880 : vector<1x8x512xbf16> to vector<8x512xbf16>
    %882 = arith.extf %881 : vector<8x512xbf16> to vector<8x512xf32>
    %883 = arith.addf %882, %878 : vector<8x512xf32>
    %884 = vector.extract_strided_slice %883 {offsets = [0, 0], sizes = [8, 128], strides = [1, 1]} : vector<8x512xf32> to vector<8x128xf32>
    %885 = arith.negf %884 : vector<8x128xf32>
    %886 = math.exp %885 : vector<8x128xf32>
    %cst_275 = arith.constant 1.000000e+00 : f32
    %887 = vector.broadcast %cst_275 : f32 to vector<8x128xf32>
    %888 = arith.addf %887, %886 : vector<8x128xf32>
    %889 = arith.divf %887, %888 : vector<8x128xf32>
    %890 = vector.extract_strided_slice %883 {offsets = [0, 128], sizes = [8, 128], strides = [1, 1]} : vector<8x512xf32> to vector<8x128xf32>
    %891 = arith.negf %890 : vector<8x128xf32>
    %892 = math.exp %891 : vector<8x128xf32>
    %cst_276 = arith.constant 1.000000e+00 : f32
    %893 = vector.broadcast %cst_276 : f32 to vector<8x128xf32>
    %894 = arith.addf %893, %892 : vector<8x128xf32>
    %895 = arith.divf %893, %894 : vector<8x128xf32>
    %896 = vector.extract_strided_slice %883 {offsets = [0, 256], sizes = [8, 128], strides = [1, 1]} : vector<8x512xf32> to vector<8x128xf32>
    %897 = math.tanh %896 : vector<8x128xf32>
    %898 = vector.extract_strided_slice %883 {offsets = [0, 384], sizes = [8, 128], strides = [1, 1]} : vector<8x512xf32> to vector<8x128xf32>
    %899 = arith.negf %898 : vector<8x128xf32>
    %900 = math.exp %899 : vector<8x128xf32>
    %cst_277 = arith.constant 1.000000e+00 : f32
    %901 = vector.broadcast %cst_277 : f32 to vector<8x128xf32>
    %902 = arith.addf %901, %900 : vector<8x128xf32>
    %903 = arith.divf %901, %902 : vector<8x128xf32>
    %904 = arith.mulf %895, %873 : vector<8x128xf32>
    %905 = arith.mulf %889, %897 : vector<8x128xf32>
    %906 = arith.addf %904, %905 : vector<8x128xf32>
    %907 = math.tanh %906 : vector<8x128xf32>
    %908 = arith.mulf %903, %907 : vector<8x128xf32>
    %c8_i32_278 = arith.constant 8 : i32
    %c0_279 = arith.constant 0 : index
    %c0_280 = arith.constant 0 : index
    %909 = vector.load %arg11[%c0_279, %c0_280] : memref<1x128xf32, #tpu.memory_space<vmem>>, vector<1x128xf32>
    %910 = vector.broadcast %909 : vector<1x128xf32> to vector<8x128xf32>
    %911 = arith.mulf %908, %910 : vector<8x128xf32>
    %cst_281 = arith.constant dense<0.000000e+00> : vector<8xf32>
    %912 = vector.multi_reduction <add>, %911, %cst_281 [1] : vector<8x128xf32> to vector<8xf32>
    %913 = vector.shape_cast %912 : vector<8xf32> to vector<8x1xf32>
    %c0_282 = arith.constant 0 : index
    %c0_283 = arith.constant 0 : index
    %914 = vector.load %arg12[%c0_282, %c0_283] : memref<1x1xf32, #tpu.memory_space<vmem>>, vector<1x1xf32>
    %915 = vector.broadcast %914 : vector<1x1xf32> to vector<8x1xf32>
    %916 = arith.addf %913, %915 : vector<8x1xf32>
    %c0_284 = arith.constant 0 : index
    %c0_285 = arith.constant 0 : index
    %917 = vector.load %arg13[%c0_284, %c0_285] : memref<8x1xf32, #tpu.memory_space<vmem>>, vector<8x1xf32>
    tpu.vector_store %arg13[%c0_284, %c0_285], %916 {strides = array<i32>} : memref<8x1xf32, #tpu.memory_space<vmem>>, vector<8x1xf32>,
    return
  }
  func.func @transform_0(%arg0: i32) -> (i32, i32, i32) {
    %c0_i32 = arith.constant 0 : i32
    %c0_i32_0 = arith.constant 0 : i32
    %c0_i32_1 = arith.constant 0 : i32
    return %c0_i32, %arg0, %c0_i32_0 : i32, i32, i32
  }
  func.func @transform_1(%arg0: i32) -> (i32, i32) {
    %c0_i32 = arith.constant 0 : i32
    %c0_i32_0 = arith.constant 0 : i32
    %c0_i32_1 = arith.constant 0 : i32
    return %c0_i32, %c0_i32_0 : i32, i32
  }
  func.func @transform_2(%arg0: i32) -> (i32, i32) {
    %c0_i32 = arith.constant 0 : i32
    %c0_i32_0 = arith.constant 0 : i32
    %c0_i32_1 = arith.constant 0 : i32
    return %c0_i32, %c0_i32_0 : i32, i32
  }
  func.func @transform_3(%arg0: i32) -> (i32, i32) {
    %c0_i32 = arith.constant 0 : i32
    %c0_i32_0 = arith.constant 0 : i32
    %c0_i32_1 = arith.constant 0 : i32
    return %c0_i32, %c0_i32_0 : i32, i32
  }
  func.func @transform_4(%arg0: i32) -> (i32, i32) {
    %c0_i32 = arith.constant 0 : i32
    %c0_i32_0 = arith.constant 0 : i32
    %c0_i32_1 = arith.constant 0 : i32
    return %c0_i32, %c0_i32_0 : i32, i32
  }
  func.func @transform_5(%arg0: i32) -> (i32, i32) {
    %c0_i32 = arith.constant 0 : i32
    %c0_i32_0 = arith.constant 0 : i32
    %c0_i32_1 = arith.constant 0 : i32
    return %c0_i32, %c0_i32_0 : i32, i32
  }
  func.func @transform_6(%arg0: i32) -> (i32, i32) {
    %c0_i32 = arith.constant 0 : i32
    %c0_i32_0 = arith.constant 0 : i32
    %c0_i32_1 = arith.constant 0 : i32
    return %c0_i32, %c0_i32_0 : i32, i32
  }
  func.func @transform_7(%arg0: i32) -> (i32, i32) {
    %c0_i32 = arith.constant 0 : i32
    %c0_i32_0 = arith.constant 0 : i32
    %c0_i32_1 = arith.constant 0 : i32
    return %c0_i32, %c0_i32_0 : i32, i32
  }
  func.func @transform_8(%arg0: i32) -> (i32, i32) {
    %c0_i32 = arith.constant 0 : i32
    %c0_i32_0 = arith.constant 0 : i32
    %c0_i32_1 = arith.constant 0 : i32
    return %c0_i32, %c0_i32_0 : i32, i32
  }
  func.func @transform_9(%arg0: i32) -> (i32, i32) {
    %c0_i32 = arith.constant 0 : i32
    %c0_i32_0 = arith.constant 0 : i32
    %c0_i32_1 = arith.constant 0 : i32
    return %c0_i32, %c0_i32_0 : i32, i32
  }
  func.func @transform_10(%arg0: i32) -> (i32, i32) {
    %c0_i32 = arith.constant 0 : i32
    %c0_i32_0 = arith.constant 0 : i32
    %c0_i32_1 = arith.constant 0 : i32
    return %c0_i32, %c0_i32_0 : i32, i32
  }
  func.func @transform_11(%arg0: i32) -> (i32, i32) {
    %c0_i32 = arith.constant 0 : i32
    %c0_i32_0 = arith.constant 0 : i32
    %c0_i32_1 = arith.constant 0 : i32
    return %c0_i32, %c0_i32_0 : i32, i32
  }
  func.func @transform_12(%arg0: i32) -> (i32, i32) {
    %c0_i32 = arith.constant 0 : i32
    %c0_i32_0 = arith.constant 0 : i32
    return %arg0, %c0_i32 : i32, i32
  }
}

</mosaic_0001>

<bundles_post_ra>
// kernel: lstm_model_forward.1
= control target key start
LH: loop header
LB: loop body
LE: loop exit
PB: predicated region body
PF: predicated region fallthrough
CT: control target
= control target key end

     0   :  { %s12398_s0 = inlined_call_operand.vmem [shape: f32[8,8,8], index: 0, kind: input, shape index: {}]   ;;  %s12399_s1 = inlined_call_operand.vmem [shape: bf16[8,512], index: 1, kind: input, shape index: {}]   ;;  %s12400_s2 = inlined_call_operand.hbm [shape: bf16[128,512], index: 2, kind: input, shape index: {}]   ;;  %s12401_s3 = inlined_call_operand.vmem [shape: f32[1,512], index: 3, kind: input, shape index: {}]   ;;  %s12402_s4 = inlined_call_operand.hbm [shape: bf16[128,512], index: 4, kind: input, shape index: {}]   ;;  %s12403_s5 = inlined_call_operand.hbm [shape: bf16[128,512], index: 5, kind: input, shape index: {}]   ;;  %s12404_s6 = inlined_call_operand.vmem [shape: f32[1,512], index: 6, kind: input, shape index: {}]   ;;  %s12405_s7 = inlined_call_operand.hbm [shape: bf16[128,512], index: 7, kind: input, shape index: {}]   ;;  %s12406_s8 = inlined_call_operand.hbm [shape: bf16[128,512], index: 8, kind: input, shape index: {}]   ;;  %s12407_s9 = inlined_call_operand.vmem [shape: f32[1,512], index: 9, kind: input, shape index: {}]   ;;  %s12408_s10 = inlined_call_operand.vmem [shape: f32[1,128], index: 10, kind: input, shape index: {}]   ;;  %s12409_s11 = inlined_call_operand.<no memory space> [shape: f32[1,1], index: 11, kind: input, shape index: {}]   ;;  %s12410_s12 = inlined_call_operand.vmem [shape: f32[8,1], index: 12, kind: output, shape index: {}]  }
   0x1   :  { %v17_v0 = vstv %s12409_s11 }
   0x2   :  { %18 = vst [vmem:[#allocation4] sm:$0x1] %v17_v0 }
   0x3   :  { %19 = vsyncpa [#allocation6], 0 }
   0x4   :  { %20 = vsyncpa [#allocation8], 0 }
   0x5   :  { %21 = vsyncpa [#allocation11], 0  ;;  %s45_s25 = sshll.u32 %s12402_s4, 4  ;;  %s11120_s26 = smov [#allocation7]   ;;  %s46_s25 = int_to_ptr.hbm [resolvable:$true] %s45_s25 }
   0x6   :  { %s47_s27 = sshll.u32 %s11120_s26, 4  ;;  %s73_s30 = sshll.u32 %s12405_s7, 4  ;;  %s48_s27 = int_to_ptr.vmem [resolvable:$true] %s47_s27  ;;  %s74_s30 = int_to_ptr.hbm [resolvable:$true] %s73_s30 }
   0x7   :  { %s11121_s13 = smov 256   ;;  %s11122_s14 = smov 16  }
   0x8   :  { %53 = dma.hbm_to_vmem [thread:$0]  %s46_s25, 4096, %s48_s27, [#allocation8], %s11121_s13, %s11121_s13, %s11122_s14  }
   0x9   :  { %s11123_s11 = smov [#allocation10]   ;;  %s30_s18 = sshll.u32 %s12400_s2, 4  ;;  %s31_s18 = int_to_ptr.hbm [resolvable:$true] %s30_s18 }
   0xa   :  { %s75_s15 = sshll.u32 %s11123_s11, 4  ;;  %s58_s20 = sshll.u32 %s12403_s5, 4  ;;  %s76_s15 = int_to_ptr.vmem [resolvable:$true] %s75_s15  ;;  %s59_s20 = int_to_ptr.hbm [resolvable:$true] %s58_s20 }
   0xb   :  { %81 = dma.hbm_to_vmem [thread:$0]  %s74_s30, 4096, %s76_s15, [#allocation11], %s11121_s13, %s11121_s13, %s11122_s14  }
   0xc   :  { %s11124_s21 = smov [#allocation5]   ;;  %s11125_s7 = smov [#allocation9]  }
   0xd   :  { %s32_s22 = sshll.u32 %s11124_s21, 4  ;;  %s60_s23 = sshll.u32 %s11125_s7, 4  ;;  %s33_s22 = int_to_ptr.vmem [resolvable:$true] %s32_s22  ;;  %s61_s23 = int_to_ptr.vmem [resolvable:$true] %s60_s23 }
   0xe   :  { %38 = dma.hbm_to_vmem [thread:$0]  %s31_s18, 4096, %s33_s22, [#allocation6], %s11121_s13, %s11121_s13, %s11122_s14  }
   0xf   :  { %s86_s26 = sshll.u32 %s12406_s8, 4  ;;  %s11126_s2 = smov [#allocation12]   ;;  %s87_s26 = int_to_ptr.hbm [resolvable:$true] %s86_s26 }
  0x10   :  { %66 = dma.hbm_to_vmem [thread:$0]  %s59_s20, 4096, %s61_s23, [#allocation8], %s11121_s13, %s11121_s13, %s11122_s14  }
  0x11   :  { %s88_s27 = sshll.u32 %s11126_s2, 4  ;;  %s89_s27 = int_to_ptr.vmem [resolvable:$true] %s88_s27 }
  0x12   :  { %94 = dma.hbm_to_vmem [thread:$0]  %s87_s26, 4096, %s89_s27, [#allocation11], %s11121_s13, %s11121_s13, %s11122_s14  }
  0x13   :  { %11114 = dma.done.wait [#allocation6], 4096  }
  0x14   :  { %11115 = vsyncadd [#allocation6], 4294963200 }
  0x15   :  { %11116 = dma.done.wait [#allocation8], 8192  }
  0x16   :  { %11117 = vsyncadd [#allocation8], 4294959104 }
  0x17   :  { %11118 = dma.done.wait [#allocation11], 8192  }
  0x18   :  { %11119 = vsyncadd [#allocation11], 4294959104  ;;  %v134_v1 = vld [vmem:[%s12399_s1] sm:$0xff]  ;;  %v135_v2 = vld [vmem:[%s12399_s1 + $0x8] sm:$0xff]  ;;  %vm169_vm0 = vcmask 1043456   ;;  %vm156_vm1 = vcmask 64512  }
  0x19   :  { %v122_v3 = vld [vmem:[%s12398_s0] sm:$0xff]  ;;  %v148_v4 = vunpack.c.l.b16 %v134_v1  ;;  %v149_v5 = vunpack.c.h.b16 %v134_v1  ;;  %v150_v6 = vunpack.c.l.b16 %v135_v2  ;;  %v151_v7 = vunpack.c.h.b16 %v135_v2  ;;  %v123_v8 = vld [vmem:[%s12398_s0 + $0x8] sm:$0xff]  ;;  %v10014_v10 = vld [vmem:[#allocation5 + $0xec] sm:$0xf0] }
  0x1a   :  { %v7562_v9 = vld [vmem:[#allocation5 + $0xe0] sm:$0xf]  ;;  %v10012_v11 = vld [vmem:[#allocation5 + $0xe4] sm:$0xf]  ;;  %v7564_v12 = vld [vmem:[#allocation5 + $0xf0] sm:$0xf0]  ;;  %v130_v19 = vpack.c.bf16 %v123_v8, %v122_v3 }
  0x1b   :  { %v152_v13 = vpack.c.b16 %v148_v4, %v148_v4  ;;  %v153_v14 = vpack.c.b16 %v149_v5, %v149_v5  ;;  %v154_v15 = vpack.c.b16 %v150_v6, %v150_v6  ;;  %v155_v16 = vpack.c.b16 %v151_v7, %v151_v7  ;;  %v10013_v17 = vld [vmem:[#allocation5 + $0xec] sm:$0xf]  ;;  %v7572_v18 = vld [vmem:[#allocation5 + $0xf8] sm:$0xf0]  ;;  %v7546_v22 = vld [vmem:[#allocation5 + $0xc0] sm:$0xf] }
  0x1c   :  { %v7563_v20 = vor.u32 %v10014_v10, %v7562_v9  ;;  %v7567_v21 = vor.u32 %v10012_v11, %v7564_v12  ;;  %v10010_v23 = vld [vmem:[#allocation5 + $0xcc] sm:$0xf0]  ;;  %v10008_v24 = vld [vmem:[#allocation5 + $0xc4] sm:$0xf]  ;;  %v7548_v29 = vld [vmem:[#allocation5 + $0xd0] sm:$0xf0]  ;;  %v7575_v32 = vor.u32 %v10013_v17, %v7572_v18 }
  0x1d   :  { %v171_v25 = vsel %vm169_vm0, %v152_v13, 0  ;;  %v174_v26 = vsel %vm169_vm0, %v153_v14, 0  ;;  %v177_v27 = vsel %vm169_vm0, %v154_v15, 0  ;;  %v180_v28 = vsel %vm169_vm0, %v155_v16, 0  ;;  %v7570_v30 = vld [vmem:[#allocation5 + $0xe8] sm:$0xf] }
  0x1e   :  { %189 = vmatpush.bf16.msra.mxu0 %v171_v25  ;;  %218 = vmatpush.bf16.msra.mxu1 %v174_v26  ;;  %v10015_v31 = vld [vmem:[#allocation5 + $0xf4] sm:$0xf0]  ;;  %v10009_v33 = vld [vmem:[#allocation5 + $0xcc] sm:$0xf]  ;;  %v7556_v34 = vld [vmem:[#allocation5 + $0xd8] sm:$0xf0]  ;;  %v7547_v36 = vor.u32 %v10010_v23, %v7546_v22  ;;  %v7551_v37 = vor.u32 %v10008_v24, %v7548_v29 }
  0x1f   :  { %247 = vmatpush.bf16.msra.mxu2 %v177_v27  ;;  %276 = vmatpush.bf16.msra.mxu3 %v180_v28  ;;  %v7571_v35 = vor.u32 %v10015_v31, %v7570_v30  ;;  %v7530_v38 = vld [vmem:[#allocation5 + $0xa0] sm:$0xf]  ;;  %v10006_v39 = vld [vmem:[#allocation5 + $0xac] sm:$0xf0]  ;;  %v10004_v40 = vld [vmem:[#allocation5 + $0xa4] sm:$0xf]  ;;  %v7559_v44 = vor.u32 %v10009_v33, %v7556_v34 }
  0x20   :  { %v7532_v41 = vld [vmem:[#allocation5 + $0xb0] sm:$0xf0]  ;;  %v7554_v42 = vld [vmem:[#allocation5 + $0xc8] sm:$0xf]  ;;  %v10011_v43 = vld [vmem:[#allocation5 + $0xd4] sm:$0xf0]  ;;  %v7531_v48 = vor.u32 %v10006_v39, %v7530_v38 }
  0x21   :  { %7432 = vmatmul.msk.bf16.vlgmr.msra.gmra.mxu0 %vm156_vm1, %v130_v19  ;;  %7436 = vmatmul.msk.bf16.vlgmr.msra.gmra.mxu1 %vm156_vm1, %v130_v19  ;;  %v10005_v45 = vld [vmem:[#allocation5 + $0xac] sm:$0xf]  ;;  %v7540_v46 = vld [vmem:[#allocation5 + $0xb8] sm:$0xf0]  ;;  %v7555_v47 = vor.u32 %v10011_v43, %v7554_v42  ;;  %v7535_v49 = vor.u32 %v10004_v40, %v7532_v41  ;;  %v7514_v50 = vld [vmem:[#allocation5 + $0x80] sm:$0xf] }
  0x22   :  { %522 = vmatpush.bf16.msrb.mxu0 %v7563_v20  ;;  %535 = vmatpush.bf16.msrb.mxu1 %v7567_v21  ;;  %v7538_v51 = vld [vmem:[#allocation5 + $0xa8] sm:$0xf]  ;;  %v10007_v52 = vld [vmem:[#allocation5 + $0xb4] sm:$0xf0]  ;;  %v10002_v53 = vld [vmem:[#allocation5 + $0x8c] sm:$0xf0]  ;;  %v7543_v56 = vor.u32 %v10005_v45, %v7540_v46 }
  0x23   :  { %7440 = vmatmul.msk.bf16.vlgmr.msra.gmra.mxu2 %vm156_vm1, %v130_v19  ;;  %7444 = vmatmul.msk.bf16.vlgmr.msra.gmra.mxu3 %vm156_vm1, %v130_v19  ;;  %v10000_v54 = vld [vmem:[#allocation5 + $0x84] sm:$0xf]  ;;  %v7516_v55 = vld [vmem:[#allocation5 + $0x90] sm:$0xf0]  ;;  %v10001_v57 = vld [vmem:[#allocation5 + $0x8c] sm:$0xf]  ;;  %v7539_v59 = vor.u32 %v10007_v52, %v7538_v51  ;;  %v7515_v60 = vor.u32 %v10002_v53, %v7514_v50 }
  0x24   :  { %561 = vmatpush.bf16.msrb.mxu3 %v7575_v32  ;;  %548 = vmatpush.bf16.msrb.mxu2 %v7571_v35  ;;  %v7524_v58 = vld [vmem:[#allocation5 + $0x98] sm:$0xf0]  ;;  %v7519_v61 = vor.u32 %v10000_v54, %v7516_v55  ;;  %v7498_v62 = vld [vmem:[#allocation5 + $0x60] sm:$0xf]  ;;  %v7522_v63 = vld [vmem:[#allocation5 + $0x88] sm:$0xf] }
  0x25   :  { %v10003_v0 = vld [vmem:[#allocation5 + $0x94] sm:$0xf0]  ;;  %v9998_v1 = vld [vmem:[#allocation5 + $0x6c] sm:$0xf0]  ;;  %v9996_v2 = vld [vmem:[#allocation5 + $0x64] sm:$0xf]  ;;  %v7527_v7 = vor.u32 %v10001_v57, %v7524_v58 }
  0x26   :  { %523 = vmatpush.bf16.msrb.mxu0 %v7547_v36  ;;  %536 = vmatpush.bf16.msrb.mxu1 %v7551_v37  ;;  %v7500_v3 = vld [vmem:[#allocation5 + $0x70] sm:$0xf0]  ;;  %v9997_v6 = vld [vmem:[#allocation5 + $0x6c] sm:$0xf]  ;;  %v7508_v8 = vld [vmem:[#allocation5 + $0x78] sm:$0xf0]  ;;  %v7523_v9 = vor.u32 %v10003_v0, %v7522_v63  ;;  %v7499_v10 = vor.u32 %v9998_v1, %v7498_v62 }
  0x27   :  { %v124_v4 = vld [vmem:[%s12398_s0 + $0x10] sm:$0xff]  ;;  %v125_v5 = vld [vmem:[%s12398_s0 + $0x18] sm:$0xff]  ;;  %v7503_v11 = vor.u32 %v9996_v2, %v7500_v3  ;;  %v7482_v12 = vld [vmem:[#allocation5 + $0x40] sm:$0xf]  ;;  %v7511_v19 = vor.u32 %v9997_v6, %v7508_v8 }
  0x28   :  { %562 = vmatpush.bf16.msrb.mxu3 %v7559_v44  ;;  %549 = vmatpush.bf16.msrb.mxu2 %v7555_v47  ;;  %v7506_v13 = vld [vmem:[#allocation5 + $0x68] sm:$0xf]  ;;  %v9999_v14 = vld [vmem:[#allocation5 + $0x74] sm:$0xf0]  ;;  %v131_v15 = vpack.c.bf16 %v125_v5, %v124_v4  ;;  %v9994_v16 = vld [vmem:[#allocation5 + $0x4c] sm:$0xf0] }
  0x29   :  { %v9992_v17 = vld [vmem:[#allocation5 + $0x44] sm:$0xf]  ;;  %v7484_v18 = vld [vmem:[#allocation5 + $0x50] sm:$0xf0]  ;;  %v7507_v20 = vor.u32 %v9999_v14, %v7506_v13  ;;  %v7483_v21 = vor.u32 %v9994_v16, %v7482_v12  ;;  %v9993_v23 = vld [vmem:[#allocation5 + $0x4c] sm:$0xf] }
  0x2a   :  { %524 = vmatpush.bf16.msrb.mxu0 %v7531_v48  ;;  %537 = vmatpush.bf16.msrb.mxu1 %v7535_v49  ;;  %v7487_v22 = vor.u32 %v9992_v17, %v7484_v18  ;;  %v7492_v24 = vld [vmem:[#allocation5 + $0x58] sm:$0xf0]  ;;  %v7466_v25 = vld [vmem:[#allocation5 + $0x20] sm:$0xf]  ;;  %v9990_v26 = vld [vmem:[#allocation5 + $0x2c] sm:$0xf0] }
  0x2b   :  { %v9988_v27 = vld [vmem:[#allocation5 + $0x24] sm:$0xf]  ;;  %v7495_v28 = vor.u32 %v9993_v23, %v7492_v24  ;;  %v7468_v29 = vld [vmem:[#allocation5 + $0x30] sm:$0xf0]  ;;  %v7490_v30 = vld [vmem:[#allocation5 + $0x48] sm:$0xf]  ;;  %v7467_v32 = vor.u32 %v9990_v26, %v7466_v25 }
  0x2c   :  { %563 = vmatpush.bf16.msrb.mxu3 %v7543_v56  ;;  %550 = vmatpush.bf16.msrb.mxu2 %v7539_v59  ;;  %v9995_v31 = vld [vmem:[#allocation5 + $0x54] sm:$0xf0]  ;;  %v7471_v33 = vor.u32 %v9988_v27, %v7468_v29  ;;  %v9989_v35 = vld [vmem:[#allocation5 + $0x2c] sm:$0xf]  ;;  %v7476_v36 = vld [vmem:[#allocation5 + $0x38] sm:$0xf0] }
  0x2d   :  { %v7491_v34 = vor.u32 %v9995_v31, %v7490_v30  ;;  %v7450_v37 = vld [vmem:[#allocation5] sm:$0xf]  ;;  %v9986_v38 = vld [vmem:[#allocation5 + $0xc] sm:$0xf0]  ;;  %v9984_v39 = vld [vmem:[#allocation5 + $0x4] sm:$0xf]  ;;  %v7479_v43 = vor.u32 %v9989_v35, %v7476_v36 }
  0x2e   :  { %525 = vmatpush.bf16.msrb.mxu0 %v7515_v60  ;;  %538 = vmatpush.bf16.msrb.mxu1 %v7519_v61  ;;  %v7452_v40 = vld [vmem:[#allocation5 + $0x10] sm:$0xf0]  ;;  %v7474_v41 = vld [vmem:[#allocation5 + $0x28] sm:$0xf]  ;;  %v9991_v42 = vld [vmem:[#allocation5 + $0x34] sm:$0xf0]  ;;  %v7451_v46 = vor.u32 %v9986_v38, %v7450_v37 }
  0x2f   :  { %v7475_v44 = vor.u32 %v9991_v42, %v7474_v41  ;;  %v7458_v45 = vld [vmem:[#allocation5 + $0x8] sm:$0xf]  ;;  %v7455_v47 = vor.u32 %v9984_v39, %v7452_v40  ;;  %v9987_v48 = vld [vmem:[#allocation5 + $0x14] sm:$0xf0]  ;;  %v9985_v49 = vld [vmem:[#allocation5 + $0xc] sm:$0xf] }
  0x30   :  { %564 = vmatpush.bf16.msrb.mxu3 %v7527_v7  ;;  %551 = vmatpush.bf16.msrb.mxu2 %v7523_v9  ;;  %v7460_v50 = vld [vmem:[#allocation5 + $0x18] sm:$0xf0]  ;;  %v127_v52 = vld [vmem:[%s12398_s0 + $0x28] sm:$0xff]  ;;  %v7459_v53 = vor.u32 %v9987_v48, %v7458_v45  ;;  %v128_v56 = vld [vmem:[%s12398_s0 + $0x30] sm:$0xff]  ;;  %v11127_v59 = vmov 0  }
  0x31   :  { %7433 = vmatmul.msk.bf16.gmra.mxu0 %vm156_vm1, %v131_v15  ;;  %7437 = vmatmul.msk.bf16.gmra.mxu1 %vm156_vm1, %v131_v15  ;;  %v126_v51 = vld [vmem:[%s12398_s0 + $0x20] sm:$0xff]  ;;  %v7463_v54 = vor.u32 %v9985_v49, %v7460_v50  ;;  %v129_v57 = vld [vmem:[%s12398_s0 + $0x38] sm:$0xff] }
  0x32   :  { %526 = vmatpush.bf16.msrb.mxu0 %v7499_v10  ;;  %539 = vmatpush.bf16.msrb.mxu1 %v7503_v11  ;;  %v132_v55 = vpack.c.bf16 %v127_v52, %v126_v51  ;;  %v133_v58 = vpack.c.bf16 %v129_v57, %v128_v56  ;;  %v136_v62 = vld [vmem:[%s12401_s3] sm:$0xf]  ;;  %v10046_v51 = vld [vmem:[#allocation5 + $0xec] sm:$0xf0]  ;;  %v10044_v52 = vld [vmem:[#allocation5 + $0xe4] sm:$0xf] }
  0x33   :  { %7441 = vmatmul.msk.bf16.gmra.mxu2 %vm156_vm1, %v131_v15  ;;  %7445 = vmatmul.msk.bf16.gmra.mxu3 %vm156_vm1, %v131_v15  ;;  %v11272_v63 = vperm.slane %v136_v62, 0  ;;  %v11274_v0 = vperm.slane %v136_v62, 1  ;;  %v11284_v8 = vperm.slane %v136_v62, 2  ;;  %v11286_v9 = vperm.slane %v136_v62, 3  ;;  %v7693_v50 = vld [vmem:[#allocation5 + $0xe0] sm:$0xf] }
  0x34   :  { %565 = vmatpush.bf16.msrb.mxu3 %v7511_v19  ;;  %552 = vmatpush.bf16.msrb.mxu2 %v7507_v20  ;;  %v7695_v56 = vld [vmem:[#allocation5 + $0xf0] sm:$0xf0]  ;;  %v7701_v57 = vld [vmem:[#allocation5 + $0xe8] sm:$0xf] }
  0x36   :  { %527 = vmatpush.bf16.msrb.mxu0 %v7483_v21  ;;  %540 = vmatpush.bf16.msrb.mxu1 %v7487_v22 }
  0x38   :  { %566 = vmatpush.bf16.msrb.mxu3 %v7495_v28  ;;  %553 = vmatpush.bf16.msrb.mxu2 %v7491_v34 }
  0x3a   :  { %528 = vmatpush.bf16.msrb.mxu0 %v7467_v32  ;;  %541 = vmatpush.bf16.msrb.mxu1 %v7471_v33 }
  0x3c   :  { %567 = vmatpush.bf16.msrb.mxu3 %v7479_v43  ;;  %554 = vmatpush.bf16.msrb.mxu2 %v7475_v44 }
  0x3e   :  { %529 = vmatpush.bf16.msrb.mxu0 %v7451_v46  ;;  %542 = vmatpush.bf16.msrb.mxu1 %v7455_v47 }
  0x40   :  { %555 = vmatpush.bf16.msrb.mxu2 %v7459_v53  ;;  %568 = vmatpush.bf16.msrb.mxu3 %v7463_v54 }
  0x41   :  { %7434 = vmatmul.msk.bf16.gmra.mxu0 %vm156_vm1, %v132_v55  ;;  %7438 = vmatmul.msk.bf16.gmra.mxu1 %vm156_vm1, %v132_v55 }
  0x43   :  { %7442 = vmatmul.msk.bf16.gmra.mxu2 %vm156_vm1, %v132_v55  ;;  %7446 = vmatmul.msk.bf16.gmra.mxu3 %vm156_vm1, %v132_v55  ;;  %v7694_v55 = vor.u32 %v10046_v51, %v7693_v50 }
  0x45   :  { %841 = vmatpush.bf16.msra.mxu0 %v7694_v55  ;;  %v10037_v55 = vld [vmem:[#allocation5 + $0xac] sm:$0xf] }
  0x51   :  { %7435 = vmatmul.msk.bf16.gmra.mxu0 %vm156_vm1, %v133_v58  ;;  %7439 = vmatmul.msk.bf16.gmra.mxu1 %vm156_vm1, %v133_v58 }
  0x53   :  { %7443 = vmatmul.msk.bf16.gmra.mxu2 %vm156_vm1, %v133_v58  ;;  %7447 = vmatmul.msk.bf16.gmra.mxu3 %vm156_vm1, %v133_v58  ;;  %v10047_v58 = vld [vmem:[#allocation5 + $0xf4] sm:$0xf0] }
  0x61   :  { %530 = vmatmul.bf16.vlgmr.msrb.gmra.mxu0 %v11127_v59  ;;  %543 = vmatmul.bf16.vlgmr.msrb.gmra.mxu1 %v11127_v59 }
  0x63   :  { %556 = vmatmul.bf16.vlgmr.msrb.gmra.mxu2 %v11127_v59  ;;  %569 = vmatmul.bf16.vlgmr.msrb.gmra.mxu3 %v11127_v59 }
  0x9e   :  { %v11265_v60 = vpop.f32.mrf.mxu0  ;;  %v11267_v61 = vpop.f32.mrf.mxu1 }
  0xa6   :  { %v11276_v1 = vpop.f32.mrf.mxu2  ;;  %v11278_v2 = vpop.f32.mrf.mxu3 }
  0xa7   :  { %v193_v3 = vpop.f32.mrf.mxu0  ;;  %v222_v4 = vpop.f32.mrf.mxu1 }
  0xa8   :  { %v194_v5 = vadd.f32 %v193_v3, %v11272_v63  ;;  %v223_v6 = vadd.f32 %v222_v4, %v11274_v0 }
  0xaa   :  { %v11282_v7 = vpack.c.bf16 %v223_v6, %v194_v5  ;;  %v7698_v6 = vor.u32 %v10044_v52, %v7695_v56 }
  0xac   :  { %854 = vmatpush.bf16.msra.mxu1 %v7698_v6 }
  0xae   :  { %v251_v10 = vpop.f32.mrf.mxu2  ;;  %v280_v11 = vpop.f32.mrf.mxu3 }
  0xaf   :  { %v252_v12 = vadd.f32 %v251_v10, %v11284_v8  ;;  %v281_v13 = vadd.f32 %v280_v11, %v11286_v9  ;;  %v196_v14 = vpop.f32.mrf.mxu0  ;;  %v225_v15 = vpop.f32.mrf.mxu1  ;;  %v7702_v10 = vor.u32 %v10047_v58, %v7701_v57  ;;  %v10045_v11 = vld [vmem:[#allocation5 + $0xec] sm:$0xf] }
  0xb0   :  { %v197_v16 = vadd.f32 %v196_v14, %v11272_v63  ;;  %v226_v17 = vadd.f32 %v225_v15, %v11274_v0 }
  0xb1   :  { %v11292_v18 = vpack.c.bf16 %v281_v13, %v252_v12  ;;  %v7703_v12 = vld [vmem:[#allocation5 + $0xf8] sm:$0xf0]  ;;  %867 = vmatpush.bf16.msra.mxu2 %v7702_v10 }
  0xb2   :  { %v11294_v19 = vpack.c.bf16 %v226_v17, %v197_v16  ;;  %v7706_v15 = vor.u32 %v10045_v11, %v7703_v12  ;;  %v7677_v17 = vld [vmem:[#allocation5 + $0xc0] sm:$0xf]  ;;  %v7647_v11 = vld [vmem:[#allocation5 + $0x90] sm:$0xf0]  ;;  %v7653_v12 = vld [vmem:[#allocation5 + $0x88] sm:$0xf] }
  0xb4   :  { %880 = vmatpush.bf16.msra.mxu3 %v7706_v15  ;;  %v7655_v15 = vld [vmem:[#allocation5 + $0x98] sm:$0xf0] }
  0xb6   :  { %v254_v20 = vpop.f32.mrf.mxu2  ;;  %v283_v21 = vpop.f32.mrf.mxu3 }
  0xb7   :  { %v255_v22 = vadd.f32 %v254_v20, %v11284_v8  ;;  %v284_v23 = vadd.f32 %v283_v21, %v11286_v9  ;;  %v198_v24 = vpop.f32.mrf.mxu0  ;;  %v227_v25 = vpop.f32.mrf.mxu1  ;;  %v10042_v20 = vld [vmem:[#allocation5 + $0xcc] sm:$0xf0]  ;;  %v10040_v21 = vld [vmem:[#allocation5 + $0xc4] sm:$0xf] }
  0xb8   :  { %v199_v26 = vadd.f32 %v198_v24, %v11272_v63  ;;  %v228_v27 = vadd.f32 %v227_v25, %v11274_v0  ;;  %v7679_v24 = vld [vmem:[#allocation5 + $0xd0] sm:$0xf0]  ;;  %v7685_v25 = vld [vmem:[#allocation5 + $0xc8] sm:$0xf] }
  0xb9   :  { %v11300_v28 = vpack.c.bf16 %v284_v23, %v255_v22  ;;  %v7678_v23 = vor.u32 %v10042_v20, %v7677_v17  ;;  %v250_v20 = vadd.f32 %v11276_v1, %v11284_v8 }
  0xba   :  { %v11302_v29 = vpack.c.bf16 %v228_v27, %v199_v26  ;;  %v10043_v26 = vld [vmem:[#allocation5 + $0xd4] sm:$0xf0]  ;;  %v7682_v27 = vor.u32 %v10040_v21, %v7679_v24  ;;  %v279_v21 = vadd.f32 %v11278_v2, %v11286_v9  ;;  %v10030_v24 = vld [vmem:[#allocation5 + $0x6c] sm:$0xf0] }
  0xbb   :  { %842 = vmatpush.bf16.msra.mxu0 %v7678_v23  ;;  %v7629_v23 = vld [vmem:[#allocation5 + $0x60] sm:$0xf] }
  0xbc   :  { %855 = vmatpush.bf16.msra.mxu1 %v7682_v27 }
  0xbe   :  { %v256_v30 = vpop.f32.mrf.mxu2  ;;  %v285_v31 = vpop.f32.mrf.mxu3 }
  0xbf   :  { %v257_v32 = vadd.f32 %v256_v30, %v11284_v8  ;;  %v286_v33 = vadd.f32 %v285_v31, %v11286_v9  ;;  %v201_v34 = vpop.f32.mrf.mxu0  ;;  %v230_v35 = vpop.f32.mrf.mxu1  ;;  %v7686_v30 = vor.u32 %v10043_v26, %v7685_v25  ;;  %v10041_v31 = vld [vmem:[#allocation5 + $0xcc] sm:$0xf]  ;;  %v10028_v25 = vld [vmem:[#allocation5 + $0x64] sm:$0xf] }
  0xc0   :  { %v202_v36 = vadd.f32 %v201_v34, %v11272_v63  ;;  %v231_v37 = vadd.f32 %v230_v35, %v11274_v0  ;;  %v7661_v34 = vld [vmem:[#allocation5 + $0xa0] sm:$0xf]  ;;  %v10038_v35 = vld [vmem:[#allocation5 + $0xac] sm:$0xf0] }
  0xc1   :  { %v11308_v38 = vpack.c.bf16 %v286_v33, %v257_v32  ;;  %v7687_v32 = vld [vmem:[#allocation5 + $0xd8] sm:$0xf0]  ;;  %868 = vmatpush.bf16.msra.mxu2 %v7686_v30 }
  0xc2   :  { %v11310_v39 = vpack.c.bf16 %v231_v37, %v202_v36  ;;  %v7690_v33 = vor.u32 %v10041_v31, %v7687_v32  ;;  %v10036_v36 = vld [vmem:[#allocation5 + $0xa4] sm:$0xf]  ;;  %v192_v37 = vadd.f32 %v11265_v60, %v11272_v63  ;;  %v7671_v60 = vld [vmem:[#allocation5 + $0xb8] sm:$0xf0]  ;;  %v7630_v32 = vor.u32 %v10030_v24, %v7629_v23 }
  0xc3   :  { %v7674_v57 = vor.u32 %v10037_v55, %v7671_v60  ;;  %v7615_v55 = vld [vmem:[#allocation5 + $0x50] sm:$0xf0]  ;;  %v7607_v23 = vld [vmem:[#allocation5 + $0x38] sm:$0xf0] }
  0xc4   :  { %881 = vmatpush.bf16.msra.mxu3 %v7690_v33  ;;  %v7631_v33 = vld [vmem:[#allocation5 + $0x70] sm:$0xf0] }
  0xc6   :  { %v259_v40 = vpop.f32.mrf.mxu2  ;;  %v288_v41 = vpop.f32.mrf.mxu3 }
  0xc7   :  { %v260_v42 = vadd.f32 %v259_v40, %v11284_v8  ;;  %v289_v43 = vadd.f32 %v288_v41, %v11286_v9  ;;  %v203_v44 = vpop.f32.mrf.mxu0  ;;  %v232_v45 = vpop.f32.mrf.mxu1  ;;  %v221_v40 = vadd.f32 %v11267_v61, %v11274_v0 }
  0xc8   :  { %v204_v46 = vadd.f32 %v203_v44, %v11272_v63  ;;  %v233_v47 = vadd.f32 %v232_v45, %v11274_v0  ;;  %v7663_v44 = vld [vmem:[#allocation5 + $0xb0] sm:$0xf0]  ;;  %v7669_v45 = vld [vmem:[#allocation5 + $0xa8] sm:$0xf]  ;;  %882 = vmatpush.bf16.msra.mxu3 %v7674_v57  ;;  %v10025_v57 = vld [vmem:[#allocation5 + $0x4c] sm:$0xf] }
  0xc9   :  { %v11316_v48 = vpack.c.bf16 %v289_v43, %v260_v42  ;;  %v7662_v43 = vor.u32 %v10038_v35, %v7661_v34  ;;  %v7637_v34 = vld [vmem:[#allocation5 + $0x68] sm:$0xf]  ;;  %v10031_v35 = vld [vmem:[#allocation5 + $0x74] sm:$0xf0] }
  0xca   :  { %v11318_v49 = vpack.c.bf16 %v233_v47, %v204_v46  ;;  %v10039_v46 = vld [vmem:[#allocation5 + $0xb4] sm:$0xf0] }
  0xcb   :  { %843 = vmatpush.bf16.msra.mxu0 %v7662_v43  ;;  %v7639_v43 = vld [vmem:[#allocation5 + $0x78] sm:$0xf0] }
  0xce   :  { %v261_v53 = vpop.f32.mrf.mxu2  ;;  %v290_v54 = vpop.f32.mrf.mxu3 }
  0xcf   :  { %v262_v62 = vadd.f32 %v261_v53, %v11284_v8  ;;  %v291_v3 = vadd.f32 %v290_v54, %v11286_v9  ;;  %v206_v4 = vpop.f32.mrf.mxu0  ;;  %v235_v5 = vpop.f32.mrf.mxu1  ;;  %v7666_v53 = vor.u32 %v10036_v36, %v7663_v44  ;;  %v7670_v54 = vor.u32 %v10039_v46, %v7669_v45 }
  0xd0   :  { %v207_v13 = vadd.f32 %v206_v4, %v11272_v63  ;;  %v236_v14 = vadd.f32 %v235_v5, %v11274_v0  ;;  %v10032_v4 = vld [vmem:[#allocation5 + $0x84] sm:$0xf]  ;;  %v298_v5 = vpack.c.bf16 %v221_v40, %v192_v37  ;;  %v7634_v40 = vor.u32 %v10028_v25, %v7631_v33 }
  0xd1   :  { %v11324_v16 = vpack.c.bf16 %v291_v3, %v262_v62  ;;  %856 = vmatpush.bf16.msra.mxu1 %v7666_v53  ;;  %869 = vmatpush.bf16.msra.mxu2 %v7670_v54  ;;  %v7645_v62 = vld [vmem:[#allocation5 + $0x80] sm:$0xf]  ;;  %v10034_v3 = vld [vmem:[#allocation5 + $0x8c] sm:$0xf0]  ;;  %v10016_v33 = vld [vmem:[#allocation5 + $0x4] sm:$0xf] }
  0xd2   :  { %v11326_v22 = vpack.c.bf16 %v236_v14, %v207_v13  ;;  %v7646_v10 = vor.u32 %v10034_v3, %v7645_v62  ;;  %v10035_v13 = vld [vmem:[#allocation5 + $0x94] sm:$0xf0]  ;;  %v576_v30 = vunpack.c.l.bf16 %v298_v5  ;;  %v577_v31 = vunpack.c.h.bf16 %v298_v5  ;;  %v7623_v3 = vld [vmem:[#allocation5 + $0x58] sm:$0xf0]  ;;  %v10022_v5 = vld [vmem:[#allocation5 + $0x2c] sm:$0xf0] }
  0xd3   :  { %v7654_v14 = vor.u32 %v10035_v13, %v7653_v12  ;;  %v10020_v13 = vld [vmem:[#allocation5 + $0x24] sm:$0xf] }
  0xd4   :  { %844 = vmatpush.bf16.msra.mxu0 %v7646_v10 }
  0xd5   :  { %870 = vmatpush.bf16.msra.mxu2 %v7654_v14  ;;  %v7605_v14 = vld [vmem:[#allocation5 + $0x28] sm:$0xf] }
  0xd6   :  { %v264_v41 = vpop.f32.mrf.mxu2  ;;  %v293_v42 = vpop.f32.mrf.mxu3 }
  0xd7   :  { %v265_v47 = vadd.f32 %v264_v41, %v11284_v8  ;;  %v294_v50 = vadd.f32 %v293_v42, %v11286_v9  ;;  %v208_v51 = vpop.f32.mrf.mxu0  ;;  %v237_v52 = vpop.f32.mrf.mxu1  ;;  %v7638_v41 = vor.u32 %v10031_v35, %v7637_v34  ;;  %v10029_v42 = vld [vmem:[#allocation5 + $0x6c] sm:$0xf]  ;;  %v7583_v35 = vld [vmem:[#allocation5 + $0x10] sm:$0xf0] }
  0xd8   :  { %v209_v56 = vadd.f32 %v208_v51, %v11272_v63  ;;  %v238_v61 = vadd.f32 %v237_v52, %v11274_v0  ;;  %v7650_v63 = vor.u32 %v10032_v4, %v7647_v11  ;;  %v10033_v0 = vld [vmem:[#allocation5 + $0x8c] sm:$0xf]  ;;  %845 = vmatpush.bf16.msra.mxu0 %v7630_v32  ;;  %v7642_v46 = vor.u32 %v10029_v42, %v7639_v43  ;;  %v7613_v51 = vld [vmem:[#allocation5 + $0x40] sm:$0xf]  ;;  %v10024_v52 = vld [vmem:[#allocation5 + $0x44] sm:$0xf] }
  0xd9   :  { %v11336_v58 = vpack.c.bf16 %v294_v50, %v265_v47  ;;  %v7658_v17 = vor.u32 %v10033_v0, %v7655_v15  ;;  %v11346_v47 = vpack.c.bf16 %v279_v21, %v250_v20  ;;  %871 = vmatpush.bf16.msra.mxu2 %v7638_v41  ;;  %v7618_v60 = vor.u32 %v10024_v52, %v7615_v55  ;;  %v7597_v4 = vld [vmem:[#allocation5 + $0x20] sm:$0xf]  ;;  %v10023_v20 = vld [vmem:[#allocation5 + $0x34] sm:$0xf0]  ;;  %v10021_v21 = vld [vmem:[#allocation5 + $0x2c] sm:$0xf] }
  0xda   :  { %v11338_v6 = vpack.c.bf16 %v238_v61, %v209_v56  ;;  %857 = vmatpush.bf16.msra.mxu1 %v7650_v63  ;;  %v7621_v56 = vld [vmem:[#allocation5 + $0x48] sm:$0xf]  ;;  %v10027_v61 = vld [vmem:[#allocation5 + $0x54] sm:$0xf0]  ;;  %v7626_v11 = vor.u32 %v10025_v57, %v7623_v3  ;;  %v7598_v12 = vor.u32 %v10022_v5, %v7597_v4  ;;  %v7599_v63 = vld [vmem:[#allocation5 + $0x30] sm:$0xf0] }
  0xdb   :  { %883 = vmatpush.bf16.msra.mxu3 %v7658_v17  ;;  %v7622_v62 = vor.u32 %v10027_v61, %v7621_v56  ;;  %v579_v10 = vunpack.c.h.bf16 %v11346_v47  ;;  %v7602_v17 = vor.u32 %v10020_v13, %v7599_v63  ;;  %v10018_v32 = vld [vmem:[#allocation5 + $0xc] sm:$0xf0]  ;;  %v7591_v41 = vld [vmem:[#allocation5 + $0x18] sm:$0xf0] }
  0xdd   :  { %872 = vmatpush.bf16.msra.mxu2 %v7622_v62 }
  0xde   :  { %v266_v26 = vpop.f32.mrf.mxu2  ;;  %v295_v27 = vpop.f32.mrf.mxu3  ;;  %858 = vmatpush.bf16.msra.mxu1 %v7634_v40  ;;  %v10017_v40 = vld [vmem:[#allocation5 + $0xc] sm:$0xf] }
  0xdf   :  { %v267_v36 = vadd.f32 %v266_v26, %v11284_v8  ;;  %v296_v1 = vadd.f32 %v295_v27, %v11286_v9  ;;  %v531_v37 = vpop.f32.mrf.mxu0  ;;  %v544_v2 = vpop.f32.mrf.mxu1  ;;  %v10026_v8 = vld [vmem:[#allocation5 + $0x4c] sm:$0xf0]  ;;  %884 = vmatpush.bf16.msra.mxu3 %v7642_v46  ;;  %v7606_v27 = vor.u32 %v10023_v20, %v7605_v14  ;;  %v7594_v46 = vor.u32 %v10017_v40, %v7591_v41 }
  0xe0   :  { %v580_v44 = vadd.f32 %v576_v30, %v531_v37  ;;  %v581_v45 = vadd.f32 %v577_v31, %v544_v2  ;;  %v7614_v54 = vor.u32 %v10026_v8, %v7613_v51  ;;  %v7610_v30 = vor.u32 %v10021_v21, %v7607_v23  ;;  %v7581_v31 = vld [vmem:[#allocation5] sm:$0xf] }
  0xe1   :  { %v11348_v50 = vpack.c.bf16 %v296_v1, %v267_v36  ;;  %v7582_v34 = vor.u32 %v10018_v32, %v7581_v31  ;;  %v7589_v36 = vld [vmem:[#allocation5 + $0x8] sm:$0xf]  ;;  %v10019_v1 = vld [vmem:[#allocation5 + $0x14] sm:$0xf0]  ;;  %v7586_v2 = vor.u32 %v10016_v33, %v7583_v35  ;;  %873 = vmatpush.bf16.msra.mxu2 %v7606_v27 }
  0xe2   :  { %v7576_v9 = vmul.f32 -1.442695, %v580_v44  ;;  %v7577_v53 = vmul.f32 -1.442695, %v581_v45  ;;  %846 = vmatpush.bf16.msra.mxu0 %v7614_v54  ;;  %859 = vmatpush.bf16.msra.mxu1 %v7618_v60  ;;  %v7590_v43 = vor.u32 %v10019_v1, %v7589_v36 }
  0xe3   :  { %885 = vmatpush.bf16.msra.mxu3 %v7626_v11 }
  0xe4   :  { %10610 = vpow2.f32 %v7576_v9 }
  0xe5   :  { %10612 = vpow2.f32 %v7577_v53  ;;  %874 = vmatpush.bf16.msra.mxu2 %v7590_v43  ;;  %v578_v53 = vunpack.c.l.bf16 %v11346_v47  ;;  %v10078_v43 = vld [vmem:[#allocation5 + $0xec] sm:$0xf0] }
  0xe6   :  { %v557_v0 = vpop.f32.mrf.mxu2  ;;  %v570_v15 = vpop.f32.mrf.mxu3  ;;  %847 = vmatpush.bf16.msra.mxu0 %v7598_v12  ;;  %860 = vmatpush.bf16.msra.mxu1 %v7602_v17 }
  0xe7   :  { %v583_v24 = vadd.f32 %v579_v10, %v570_v15  ;;  %v533_v25 = vpop.f32.mrf.mxu0  ;;  %v546_v26 = vpop.f32.mrf.mxu1  ;;  %886 = vmatpush.bf16.msra.mxu3 %v7610_v30  ;;  %v582_v60 = vadd.f32 %v578_v53, %v557_v0  ;;  %v10077_v53 = vld [vmem:[#allocation5 + $0xec] sm:$0xf] }
  0xe9   :  { %v7578_v37 = vmul.f32 -1.442695, %v583_v24 }
  0xea   :  { %v10611_v42 = vpop.eup %10610  ;;  %848 = vmatpush.bf16.msra.mxu0 %v7582_v34  ;;  %861 = vmatpush.bf16.msra.mxu1 %v7586_v2 }
  0xeb   :  { %v10613_v44 = vpop.eup %10612  ;;  %v587_v45 = vadd.f32 1.0, %v10611_v42  ;;  %10614 = vpow2.f32 %v7578_v37  ;;  %887 = vmatpush.bf16.msra.mxu3 %v7594_v46  ;;  %v7824_v42 = vld [vmem:[#allocation5 + $0xe0] sm:$0xf]  ;;  %v7826_v46 = vld [vmem:[#allocation5 + $0xf0] sm:$0xf0] }
  0xec   :  { %v606_v51 = vadd.f32 1.0, %v10613_v44  ;;  %v10076_v44 = vld [vmem:[#allocation5 + $0xe4] sm:$0xf] }
  0xed   :  { %10616 = vrcp.f32 %v587_v45  ;;  %v599_v4 = vand.u32 2147483648, %v587_v45  ;;  %v597_v11 = vand.u32 2147483647, %v587_v45  ;;  %vm593_vm4 = vweird.f32 %v587_v45 }
  0xee   :  { %10618 = vrcp.f32 %v606_v51  ;;  %v572_v8 = vpop.f32.mrf.mxu3  ;;  %v559_v52 = vpop.f32.mrf.mxu2  ;;  %v618_v5 = vand.u32 2147483648, %v606_v51  ;;  %v616_v13 = vand.u32 2147483647, %v606_v51  ;;  %vm612_vm5 = vweird.f32 %v606_v51 }
  0xef   :  { %v600_v14 = vor.u32 1.1754944e-38, %v599_v4  ;;  %vm598_vm7 = vcmp.eq.f32.partialorder %v597_v11, 8.507059e+37  ;;  %v10079_v8 = vld [vmem:[#allocation5 + $0xf4] sm:$0xf0]  ;;  %v7829_v52 = vor.u32 %v10076_v44, %v7826_v46  ;;  %v10073_v11 = vld [vmem:[#allocation5 + $0xcc] sm:$0xf]  ;;  %v897_v46 = vunpack.c.h.bf16 %v11282_v7 }
  0xf0   :  { %v619_v17 = vor.u32 1.1754944e-38, %v618_v5  ;;  %vm617_vm9 = vcmp.eq.f32.partialorder %v616_v13, 8.507059e+37  ;;  %v10075_v4 = vld [vmem:[#allocation5 + $0xd4] sm:$0xf0]  ;;  %v10060_v44 = vld [vmem:[#allocation5 + $0x64] sm:$0xf] }
  0xf1   :  { %v10615_v9 = vpop.eup %10614  ;;  %1175 = vmatpush.bf16.msrb.mxu1 %v7829_v52  ;;  %v7768_v52 = vld [vmem:[#allocation5 + $0x68] sm:$0xf] }
  0xf2   :  { %v626_v54 = vadd.f32 1.0, %v10615_v9 }
  0xf3   :  { %v10617_v55 = vpop.eup %10616 }
  0xf4   :  { %v10619_v56 = vpop.eup %10618  ;;  %v589_v61 = vmul.f32 %v10617_v55, %v587_v45  ;;  %10620 = vrcp.f32 %v626_v54  ;;  %vm594_vm2 = vweird.f32 %v10617_v55  ;;  %v638_v34 = vand.u32 2147483648, %v626_v54 }
  0xf5   :  { %v608_v57 = vmul.f32 %v10619_v56, %v606_v51  ;;  %10622 = vtanh.f32 %v582_v60  ;;  %vm613_vm3 = vweird.f32 %v10619_v56  ;;  %vm595_vm6 = vmor %vm593_vm4, %vm594_vm2  ;;  %vm632_vm11 = vweird.f32 %v626_v54  ;;  %v7832_v51 = vld [vmem:[#allocation5 + $0xe8] sm:$0xf]  ;;  %v7808_v60 = vld [vmem:[#allocation5 + $0xc0] sm:$0xf] }
  0xf6   :  { %v590_v62 = vsub.f32 1.0, %v589_v61  ;;  %vm614_vm8 = vmor %vm612_vm5, %vm613_vm3  ;;  %v636_v35 = vand.u32 2147483647, %v626_v54  ;;  %v639_v1 = vor.u32 1.1754944e-38, %v638_v34  ;;  %v7825_v45 = vor.u32 %v10078_v43, %v7824_v42  ;;  %v10072_v61 = vld [vmem:[#allocation5 + $0xc4] sm:$0xf] }
  0xf7   :  { %v609_v3 = vsub.f32 1.0, %v608_v57  ;;  %v7833_v9 = vor.u32 %v10079_v8, %v7832_v51  ;;  %v7778_v34 = vld [vmem:[#allocation5 + $0x90] sm:$0xf0]  ;;  %v7760_v42 = vld [vmem:[#allocation5 + $0x60] sm:$0xf] }
  0xf8   :  { %v591_v10 = vmul.f32 %v10617_v55, %v590_v62  ;;  %vm637_vm13 = vcmp.eq.f32.partialorder %v636_v35, 8.507059e+37  ;;  %1162 = vmatpush.bf16.msrb.mxu0 %v7825_v45  ;;  %v7810_v62 = vld [vmem:[#allocation5 + $0xd0] sm:$0xf0]  ;;  %v7784_v35 = vld [vmem:[#allocation5 + $0x88] sm:$0xf]  ;;  %v896_v45 = vunpack.c.l.bf16 %v11282_v7 }
  0xf9   :  { %v610_v12 = vmul.f32 %v10619_v56, %v609_v3  ;;  %1188 = vmatpush.bf16.msrb.mxu2 %v7833_v9  ;;  %v7816_v3 = vld [vmem:[#allocation5 + $0xc8] sm:$0xf]  ;;  %v7813_v5 = vor.u32 %v10072_v61, %v7810_v62  ;;  %v10062_v43 = vld [vmem:[#allocation5 + $0x6c] sm:$0xf0]  ;;  %v7762_v8 = vld [vmem:[#allocation5 + $0x70] sm:$0xf0] }
  0xfa   :  { %v10621_v63 = vpop.eup %10620  ;;  %v592_v47 = vadd.f32 %v10617_v55, %v591_v10  ;;  %v7817_v10 = vor.u32 %v10075_v4, %v7816_v3  ;;  %v7761_v51 = vor.u32 %v10062_v43, %v7760_v42  ;;  %v10063_v9 = vld [vmem:[#allocation5 + $0x74] sm:$0xf0]  ;;  %v7770_v61 = vld [vmem:[#allocation5 + $0x78] sm:$0xf0]  ;;  %v7744_v4 = vld [vmem:[#allocation5 + $0x40] sm:$0xf] }
  0xfb   :  { %v611_v0 = vadd.f32 %v10619_v56, %v610_v12  ;;  %v628_v15 = vmul.f32 %v10621_v63, %v626_v54  ;;  %v10623_v21 = vpop.eup %10622  ;;  %vm633_vm10 = vweird.f32 %v10621_v63  ;;  %v7834_v54 = vld [vmem:[#allocation5 + $0xf8] sm:$0xf0]  ;;  %1176 = vmatpush.bf16.msrb.mxu1 %v7813_v5  ;;  %v10058_v5 = vld [vmem:[#allocation5 + $0x4c] sm:$0xf0]  ;;  %v10056_v7 = vld [vmem:[#allocation5 + $0x44] sm:$0xf] }
  0xfc   :  { %v596_v20 = vsel %vm595_vm6, %v10617_v55, %v592_v47  ;;  %vm634_vm12 = vmor %vm632_vm11, %vm633_vm10  ;;  %v7837_v55 = vor.u32 %v10077_v53, %v7834_v54  ;;  %v7818_v12 = vld [vmem:[#allocation5 + $0xd8] sm:$0xf0]  ;;  %v10070_v47 = vld [vmem:[#allocation5 + $0xac] sm:$0xf0] }
  0xfd   :  { %v601_v23 = vsel %vm598_vm7, %v600_v14, %v596_v20  ;;  %v615_v24 = vsel %vm614_vm8, %v10619_v56, %v611_v0  ;;  %v629_v25 = vsub.f32 1.0, %v628_v15  ;;  %v10074_v56 = vld [vmem:[#allocation5 + $0xcc] sm:$0xf0]  ;;  %v7821_v13 = vor.u32 %v10073_v11, %v7818_v12  ;;  %1189 = vmatpush.bf16.msrb.mxu2 %v7817_v10  ;;  %v10068_v14 = vld [vmem:[#allocation5 + $0xa4] sm:$0xf] }
  0xfe   :  { %v620_v26 = vsel %vm617_vm9, %v619_v17, %v615_v24  ;;  %v643_v27 = vmul.f32 %v10623_v21, %v601_v23  ;;  %1201 = vmatpush.bf16.msrb.mxu3 %v7837_v55  ;;  %v7809_v57 = vor.u32 %v10074_v56, %v7808_v60  ;;  %v7794_v15 = vld [vmem:[#allocation5 + $0xb0] sm:$0xf0]  ;;  %v7800_v17 = vld [vmem:[#allocation5 + $0xa8] sm:$0xf]  ;;  %v10071_v20 = vld [vmem:[#allocation5 + $0xb4] sm:$0xf0]  ;;  %v7765_v55 = vor.u32 %v10060_v44, %v7762_v8 }
  0xff   :  { %v642_v30 = vmul.f32 0.0, %v620_v26  ;;  %v630_v31 = vmul.f32 %v10621_v63, %v629_v25  ;;  %v7797_v21 = vor.u32 %v10068_v14, %v7794_v15  ;;  %v7801_v23 = vor.u32 %v10071_v20, %v7800_v17  ;;  %v10069_v24 = vld [vmem:[#allocation5 + $0xac] sm:$0xf]  ;;  %v7802_v25 = vld [vmem:[#allocation5 + $0xb8] sm:$0xf0] }
 0x100   :  { %1163 = vmatpush.bf16.msrb.mxu0 %v7809_v57  ;;  %v7805_v26 = vor.u32 %v10069_v24, %v7802_v25  ;;  %v7769_v60 = vor.u32 %v10063_v9, %v7768_v52  ;;  %v10061_v56 = vld [vmem:[#allocation5 + $0x6c] sm:$0xf]  ;;  %v7745_v12 = vor.u32 %v10058_v5, %v7744_v4  ;;  %v10059_v14 = vld [vmem:[#allocation5 + $0x54] sm:$0xf0]  ;;  %v7754_v17 = vld [vmem:[#allocation5 + $0x58] sm:$0xf0] }
 0x101   :  { %v11352_v32 = vadd.f32 %v643_v27, %v642_v30  ;;  %v631_v33 = vadd.f32 %v10621_v63, %v630_v31  ;;  %1177 = vmatpush.bf16.msrb.mxu1 %v7797_v21  ;;  %1190 = vmatpush.bf16.msrb.mxu2 %v7801_v23  ;;  %v7776_v27 = vld [vmem:[#allocation5 + $0x80] sm:$0xf]  ;;  %v10066_v30 = vld [vmem:[#allocation5 + $0x8c] sm:$0xf0]  ;;  %v10064_v31 = vld [vmem:[#allocation5 + $0x84] sm:$0xf]  ;;  %v7773_v3 = vor.u32 %v10061_v56, %v7770_v61  ;;  %v899_v23 = vunpack.c.h.bf16 %v11292_v18 }
 0x102   :  { %1202 = vmatpush.bf16.msrb.mxu3 %v7821_v13  ;;  %v7746_v13 = vld [vmem:[#allocation5 + $0x50] sm:$0xf0]  ;;  %v7728_v20 = vld [vmem:[#allocation5 + $0x20] sm:$0xf]  ;;  %v10054_v21 = vld [vmem:[#allocation5 + $0x2c] sm:$0xf0] }
 0x103   :  { %10624 = vtanh.f32 %v11352_v32  ;;  %v635_v36 = vsel %vm634_vm12, %v10621_v63, %v631_v33  ;;  %v7792_v63 = vld [vmem:[#allocation5 + $0xa0] sm:$0xf]  ;;  %v7777_v33 = vor.u32 %v10066_v30, %v7776_v27  ;;  %v7729_v25 = vor.u32 %v10054_v21, %v7728_v20  ;;  %v7730_v27 = vld [vmem:[#allocation5 + $0x30] sm:$0xf0]  ;;  %v7736_v30 = vld [vmem:[#allocation5 + $0x28] sm:$0xf] }
 0x104   :  { %v640_v2 = vsel %vm637_vm13, %v639_v1, %v635_v36  ;;  %v7793_v0 = vor.u32 %v10070_v47, %v7792_v63  ;;  %v10067_v36 = vld [vmem:[#allocation5 + $0x94] sm:$0xf0]  ;;  %v7781_v1 = vor.u32 %v10064_v31, %v7778_v34  ;;  %v7749_v63 = vor.u32 %v10056_v7, %v7746_v13  ;;  %v7752_v47 = vld [vmem:[#allocation5 + $0x48] sm:$0xf]  ;;  %v7712_v43 = vld [vmem:[#allocation5] sm:$0xf] }
 0x105   :  { %v7753_v15 = vor.u32 %v10059_v14, %v7752_v47  ;;  %v10050_v44 = vld [vmem:[#allocation5 + $0xc] sm:$0xf0]  ;;  %v7720_v8 = vld [vmem:[#allocation5 + $0x8] sm:$0xf]  ;;  %v10051_v52 = vld [vmem:[#allocation5 + $0x14] sm:$0xf0] }
 0x106   :  { %1164 = vmatpush.bf16.msrb.mxu0 %v7793_v0  ;;  %1203 = vmatpush.bf16.msrb.mxu3 %v7805_v26  ;;  %v10057_v0 = vld [vmem:[#allocation5 + $0x4c] sm:$0xf]  ;;  %v10052_v26 = vld [vmem:[#allocation5 + $0x24] sm:$0xf]  ;;  %v7721_v56 = vor.u32 %v10051_v52, %v7720_v8 }
 0x107   :  { %1178 = vmatpush.bf16.msrb.mxu1 %v7781_v1  ;;  %v7757_v24 = vor.u32 %v10057_v0, %v7754_v17  ;;  %v7733_v34 = vor.u32 %v10052_v26, %v7730_v27  ;;  %v7738_v1 = vld [vmem:[#allocation5 + $0x38] sm:$0xf0] }
 0x109   :  { %v10625_v37 = vpop.eup %10624 }
 0x10a   :  { %v646_v40 = vmul.f32 %v10625_v37, %v640_v2  ;;  %v7785_v37 = vor.u32 %v10067_v36, %v7784_v35  ;;  %v10065_v2 = vld [vmem:[#allocation5 + $0x8c] sm:$0xf]  ;;  %1165 = vmatpush.bf16.msrb.mxu0 %v7777_v33  ;;  %v10055_v35 = vld [vmem:[#allocation5 + $0x34] sm:$0xf0] }
 0x10b   :  { %1179 = vmatpush.bf16.msrb.mxu1 %v7765_v55  ;;  %v10053_v36 = vld [vmem:[#allocation5 + $0x2c] sm:$0xf]  ;;  %v7722_v55 = vld [vmem:[#allocation5 + $0x18] sm:$0xf0] }
 0x10c   :  { %v647_v41 = vpack.c.bf16 %v646_v40, %v646_v40  ;;  %v7786_v40 = vld [vmem:[#allocation5 + $0x98] sm:$0xf0]  ;;  %1191 = vmatpush.bf16.msrb.mxu2 %v7785_v37  ;;  %v7741_v42 = vor.u32 %v10053_v36, %v7738_v1 }
 0x10e   :  { %648 = vst [vmem:[#allocation2] sm:$0xf] %v647_v41  ;;  %849 = vmatmul.bf16.vlgmr.msra.gmra.mxu0 %v647_v41  ;;  %862 = vmatmul.bf16.vlgmr.msra.gmra.mxu1 %v647_v41 }
 0x10f   :  { %875 = vmatmul.bf16.vlgmr.msra.gmra.mxu2 %v647_v41  ;;  %888 = vmatmul.bf16.vlgmr.msra.gmra.mxu3 %v647_v41  ;;  %v7789_v41 = vor.u32 %v10065_v2, %v7786_v40 }
 0x110   :  { %1166 = vmatpush.bf16.msrb.mxu0 %v7761_v51  ;;  %1192 = vmatpush.bf16.msrb.mxu2 %v7769_v60  ;;  %v7714_v51 = vld [vmem:[#allocation5 + $0x10] sm:$0xf0] }
 0x111   :  { %1204 = vmatpush.bf16.msrb.mxu3 %v7789_v41  ;;  %1180 = vmatpush.bf16.msrb.mxu1 %v7749_v63  ;;  %v7737_v41 = vor.u32 %v10055_v35, %v7736_v30 }
 0x114   :  { %1167 = vmatpush.bf16.msrb.mxu0 %v7745_v12  ;;  %1193 = vmatpush.bf16.msrb.mxu2 %v7753_v15 }
 0x115   :  { %1205 = vmatpush.bf16.msrb.mxu3 %v7773_v3  ;;  %1181 = vmatpush.bf16.msrb.mxu1 %v7733_v34 }
 0x118   :  { %1168 = vmatpush.bf16.msrb.mxu0 %v7729_v25  ;;  %1194 = vmatpush.bf16.msrb.mxu2 %v7737_v41 }
 0x119   :  { %1206 = vmatpush.bf16.msrb.mxu3 %v7757_v24 }
 0x11c   :  { %1195 = vmatpush.bf16.msrb.mxu2 %v7721_v56 }
 0x11d   :  { %1207 = vmatpush.bf16.msrb.mxu3 %v7741_v42 }
 0x18b   :  { %v850_v53 = vpop.f32.mrf.mxu0  ;;  %v863_v54 = vpop.f32.mrf.mxu1 }
 0x18c   :  { %v900_v57 = vadd.f32 %v896_v45, %v850_v53  ;;  %v901_v62 = vadd.f32 %v897_v46, %v863_v54  ;;  %v10048_v45 = vld [vmem:[#allocation5 + $0x4] sm:$0xf]  ;;  %v7713_v46 = vor.u32 %v10050_v44, %v7712_v43  ;;  %v10049_v54 = vld [vmem:[#allocation5 + $0xc] sm:$0xf] }
 0x18d   :  { %v7717_v53 = vor.u32 %v10048_v45, %v7714_v51 }
 0x18e   :  { %v7707_v10 = vmul.f32 -1.442695, %v900_v57  ;;  %v7708_v11 = vmul.f32 -1.442695, %v901_v62  ;;  %v7725_v62 = vor.u32 %v10049_v54, %v7722_v55  ;;  %1169 = vmatpush.bf16.msrb.mxu0 %v7713_v46  ;;  %v10110_v55 = vld [vmem:[#allocation5 + $0xec] sm:$0xf0] }
 0x18f   :  { %1182 = vmatpush.bf16.msrb.mxu1 %v7717_v53 }
 0x190   :  { %10626 = vpow2.f32 %v7707_v10  ;;  %1208 = vmatpush.bf16.msrb.mxu3 %v7725_v62  ;;  %v898_v10 = vunpack.c.l.bf16 %v11292_v18  ;;  %v10111_v62 = vld [vmem:[#allocation5 + $0xf4] sm:$0xf0] }
 0x191   :  { %10628 = vpow2.f32 %v7708_v11 }
 0x192   :  { %v876_v31 = vpop.f32.mrf.mxu2  ;;  %v889_v33 = vpop.f32.mrf.mxu3 }
 0x193   :  { %v903_v37 = vadd.f32 %v899_v23, %v889_v33  ;;  %v852_v2 = vpop.f32.mrf.mxu0  ;;  %v865_v40 = vpop.f32.mrf.mxu1  ;;  %v902_v13 = vadd.f32 %v898_v10, %v876_v31 }
 0x195   :  { %v7709_v9 = vmul.f32 -1.442695, %v903_v37 }
 0x196   :  { %v10627_v60 = vpop.eup %10626 }
 0x197   :  { %v10629_v61 = vpop.eup %10628  ;;  %v907_v57 = vadd.f32 1.0, %v10627_v60  ;;  %10630 = vpow2.f32 %v7709_v9  ;;  %v10108_v60 = vld [vmem:[#allocation5 + $0xe4] sm:$0xf] }
 0x198   :  { %v926_v3 = vadd.f32 1.0, %v10629_v61  ;;  %v7957_v61 = vld [vmem:[#allocation5 + $0xf0] sm:$0xf0] }
 0x199   :  { %10632 = vrcp.f32 %v907_v57  ;;  %v919_v17 = vand.u32 2147483648, %v907_v57  ;;  %v917_v23 = vand.u32 2147483647, %v907_v57  ;;  %vm913_vm0 = vweird.f32 %v907_v57 }
 0x19a   :  { %10634 = vrcp.f32 %v926_v3  ;;  %v878_v4 = vpop.f32.mrf.mxu2  ;;  %v891_v5 = vpop.f32.mrf.mxu3  ;;  %v938_v20 = vand.u32 2147483648, %v926_v3  ;;  %v936_v25 = vand.u32 2147483647, %v926_v3  ;;  %vm932_vm1 = vweird.f32 %v926_v3 }
 0x19b   :  { %v920_v27 = vor.u32 1.1754944e-38, %v919_v17  ;;  %vm918_vm4 = vcmp.eq.f32.partialorder %v917_v23, 8.507059e+37  ;;  %v10109_v5 = vld [vmem:[#allocation5 + $0xec] sm:$0xf] }
 0x19c   :  { %v939_v33 = vor.u32 1.1754944e-38, %v938_v20  ;;  %vm937_vm5 = vcmp.eq.f32.partialorder %v936_v25, 8.507059e+37  ;;  %v10105_v20 = vld [vmem:[#allocation5 + $0xcc] sm:$0xf]  ;;  %v10102_v25 = vld [vmem:[#allocation5 + $0xac] sm:$0xf0] }
 0x19d   :  { %v10631_v7 = vpop.eup %10630 }
 0x19e   :  { %v946_v11 = vadd.f32 1.0, %v10631_v7  ;;  %v7965_v7 = vld [vmem:[#allocation5 + $0xf8] sm:$0xf0] }
 0x19f   :  { %v10633_v12 = vpop.eup %10632  ;;  %v7968_v10 = vor.u32 %v10109_v5, %v7965_v7 }
 0x1a0   :  { %v10635_v63 = vpop.eup %10634  ;;  %v909_v47 = vmul.f32 %v10633_v12, %v907_v57  ;;  %10636 = vrcp.f32 %v946_v11  ;;  %vm914_vm14 = vweird.f32 %v10633_v12  ;;  %v958_v45 = vand.u32 2147483648, %v946_v11  ;;  %v7963_v57 = vld [vmem:[#allocation5 + $0xe8] sm:$0xf] }
 0x1a1   :  { %v928_v14 = vmul.f32 %v10635_v63, %v926_v3  ;;  %10638 = vtanh.f32 %v902_v13  ;;  %vm933_vm15 = vweird.f32 %v10635_v63  ;;  %vm915_vm2 = vmor %vm913_vm0, %vm914_vm14  ;;  %vm952_vm7 = vweird.f32 %v946_v11  ;;  %v10104_v13 = vld [vmem:[#allocation5 + $0xc4] sm:$0xf]  ;;  %1522 = vmatpush.bf16.msra.mxu3 %v7968_v10  ;;  %v10093_v10 = vld [vmem:[#allocation5 + $0x6c] sm:$0xf] }
 0x1a2   :  { %v910_v0 = vsub.f32 1.0, %v909_v47  ;;  %vm934_vm3 = vmor %vm932_vm1, %vm933_vm15  ;;  %v956_v46 = vand.u32 2147483647, %v946_v11  ;;  %v959_v8 = vor.u32 1.1754944e-38, %v958_v45  ;;  %v7960_v3 = vor.u32 %v10108_v60, %v7957_v61  ;;  %v7941_v47 = vld [vmem:[#allocation5 + $0xd0] sm:$0xf0] }
 0x1a3   :  { %v929_v15 = vsub.f32 1.0, %v928_v14  ;;  %v7964_v4 = vor.u32 %v10111_v62, %v7963_v57  ;;  %v7947_v14 = vld [vmem:[#allocation5 + $0xc8] sm:$0xf]  ;;  %v10099_v45 = vld [vmem:[#allocation5 + $0x94] sm:$0xf0]  ;;  %v1218_v60 = vunpack.c.h.bf16 %v11294_v19 }
 0x1a4   :  { %v911_v21 = vmul.f32 %v10633_v12, %v910_v0  ;;  %vm957_vm9 = vcmp.eq.f32.partialorder %v956_v46, 8.507059e+37  ;;  %1496 = vmatpush.bf16.msra.mxu1 %v7960_v3  ;;  %v10107_v0 = vld [vmem:[#allocation5 + $0xd4] sm:$0xf0]  ;;  %v7893_v61 = vld [vmem:[#allocation5 + $0x70] sm:$0xf0] }
 0x1a5   :  { %v930_v24 = vmul.f32 %v10635_v63, %v929_v15  ;;  %1509 = vmatpush.bf16.msra.mxu2 %v7964_v4  ;;  %v7944_v15 = vor.u32 %v10104_v13, %v7941_v47  ;;  %v7948_v17 = vor.u32 %v10107_v0, %v7947_v14  ;;  %v7899_v57 = vld [vmem:[#allocation5 + $0x68] sm:$0xf]  ;;  %v10095_v62 = vld [vmem:[#allocation5 + $0x74] sm:$0xf0]  ;;  %v7875_v47 = vld [vmem:[#allocation5 + $0x40] sm:$0xf] }
 0x1a6   :  { %v10637_v26 = vpop.eup %10636  ;;  %v912_v18 = vadd.f32 %v10633_v12, %v911_v21  ;;  %v7949_v21 = vld [vmem:[#allocation5 + $0xd8] sm:$0xf0]  ;;  %v7900_v7 = vor.u32 %v10095_v62, %v7899_v57  ;;  %v10090_v14 = vld [vmem:[#allocation5 + $0x4c] sm:$0xf0]  ;;  %v10081_v62 = vld [vmem:[#allocation5 + $0xc] sm:$0xf] }
 0x1a7   :  { %v931_v30 = vadd.f32 %v10635_v63, %v930_v24  ;;  %v948_v31 = vmul.f32 %v10637_v26, %v946_v11  ;;  %v10639_v35 = vpop.eup %10638  ;;  %vm953_vm6 = vweird.f32 %v10637_v26  ;;  %v7939_v11 = vld [vmem:[#allocation5 + $0xc0] sm:$0xf]  ;;  %v7952_v23 = vor.u32 %v10105_v20, %v7949_v21  ;;  %v7877_v20 = vld [vmem:[#allocation5 + $0x50] sm:$0xf0] }
 0x1a8   :  { %v916_v34 = vsel %vm915_vm2, %v10633_v12, %v912_v18  ;;  %vm954_vm8 = vmor %vm952_vm7, %vm953_vm6  ;;  %v10106_v12 = vld [vmem:[#allocation5 + $0xcc] sm:$0xf0]  ;;  %1497 = vmatpush.bf16.msra.mxu1 %v7944_v15  ;;  %v7923_v24 = vld [vmem:[#allocation5 + $0xa0] sm:$0xf] }
 0x1a9   :  { %v921_v36 = vsel %vm918_vm4, %v920_v27, %v916_v34  ;;  %v935_v1 = vsel %vm934_vm3, %v10635_v63, %v931_v30  ;;  %v949_v37 = vsub.f32 1.0, %v948_v31  ;;  %v7940_v63 = vor.u32 %v10106_v12, %v7939_v11  ;;  %1510 = vmatpush.bf16.msra.mxu2 %v7948_v17  ;;  %1523 = vmatpush.bf16.msra.mxu3 %v7952_v23  ;;  %v7925_v27 = vld [vmem:[#allocation5 + $0xb0] sm:$0xf0]  ;;  %v7931_v30 = vld [vmem:[#allocation5 + $0xa8] sm:$0xf] }
 0x1aa   :  { %v940_v2 = vsel %vm937_vm5, %v939_v33, %v935_v1  ;;  %v963_v40 = vmul.f32 %v10639_v35, %v921_v36  ;;  %v7924_v18 = vor.u32 %v10102_v25, %v7923_v24  ;;  %v10103_v31 = vld [vmem:[#allocation5 + $0xb4] sm:$0xf0]  ;;  %v10101_v35 = vld [vmem:[#allocation5 + $0xac] sm:$0xf]  ;;  %v7933_v36 = vld [vmem:[#allocation5 + $0xb8] sm:$0xf0]  ;;  %v7876_v17 = vor.u32 %v10090_v14, %v7875_v47 }
 0x1ab   :  { %v962_v41 = vmul.f32 %v940_v2, %v11352_v32  ;;  %v950_v42 = vmul.f32 %v10637_v26, %v949_v37  ;;  %v7955_v32 = vld [vmem:[#allocation5 + $0xe0] sm:$0xf]  ;;  %v7932_v34 = vor.u32 %v10103_v31, %v7931_v30  ;;  %v7936_v1 = vor.u32 %v10101_v35, %v7933_v36  ;;  %v10098_v2 = vld [vmem:[#allocation5 + $0x8c] sm:$0xf0]  ;;  %v7901_v11 = vld [vmem:[#allocation5 + $0x78] sm:$0xf0] }
 0x1ac   :  { %v7956_v56 = vor.u32 %v10110_v55, %v7955_v32  ;;  %v7907_v37 = vld [vmem:[#allocation5 + $0x80] sm:$0xf]  ;;  %v10092_v32 = vld [vmem:[#allocation5 + $0x64] sm:$0xf]  ;;  %v1217_v55 = vunpack.c.l.bf16 %v11294_v19  ;;  %v7883_v23 = vld [vmem:[#allocation5 + $0x48] sm:$0xf]  ;;  %v1220_v31 = vunpack.c.h.bf16 %v11300_v28  ;;  %v1219_v14 = vunpack.c.l.bf16 %v11300_v28 }
 0x1ad   :  { %v11360_v43 = vadd.f32 %v963_v40, %v962_v41  ;;  %v951_v44 = vadd.f32 %v10637_v26, %v950_v42  ;;  %1511 = vmatpush.bf16.msra.mxu2 %v7932_v34  ;;  %v10096_v40 = vld [vmem:[#allocation5 + $0x84] sm:$0xf]  ;;  %1524 = vmatpush.bf16.msra.mxu3 %v7936_v1  ;;  %v7908_v41 = vor.u32 %v10098_v2, %v7907_v37  ;;  %v7909_v42 = vld [vmem:[#allocation5 + $0x90] sm:$0xf0]  ;;  %v10091_v24 = vld [vmem:[#allocation5 + $0x54] sm:$0xf0] }
 0x1ae   :  { %1483 = vmatpush.bf16.msra.mxu0 %v7956_v56  ;;  %v7912_v46 = vor.u32 %v10096_v40, %v7909_v42  ;;  %v7896_v5 = vor.u32 %v10092_v32, %v7893_v61  ;;  %v10088_v19 = vld [vmem:[#allocation5 + $0x44] sm:$0xf]  ;;  %v10089_v25 = vld [vmem:[#allocation5 + $0x4c] sm:$0xf]  ;;  %v10086_v30 = vld [vmem:[#allocation5 + $0x2c] sm:$0xf0] }
 0x1af   :  { %10640 = vtanh.f32 %v11360_v43  ;;  %v955_v51 = vsel %vm954_vm8, %v10637_v26, %v951_v44  ;;  %v10100_v26 = vld [vmem:[#allocation5 + $0xa4] sm:$0xf]  ;;  %v7915_v44 = vld [vmem:[#allocation5 + $0x88] sm:$0xf]  ;;  %v7880_v21 = vor.u32 %v10088_v19, %v7877_v20  ;;  %v7861_v36 = vld [vmem:[#allocation5 + $0x30] sm:$0xf0] }
 0x1b0   :  { %v960_v9 = vsel %vm957_vm9, %v959_v8, %v955_v51  ;;  %v7928_v33 = vor.u32 %v10100_v26, %v7925_v27  ;;  %v7916_v51 = vor.u32 %v10099_v45, %v7915_v44  ;;  %v10097_v8 = vld [vmem:[#allocation5 + $0x8c] sm:$0xf]  ;;  %v7884_v26 = vor.u32 %v10091_v24, %v7883_v23  ;;  %v7859_v27 = vld [vmem:[#allocation5 + $0x20] sm:$0xf]  ;;  %v10084_v35 = vld [vmem:[#allocation5 + $0x24] sm:$0xf] }
 0x1b1   :  { %v7860_v34 = vor.u32 %v10086_v30, %v7859_v27  ;;  %v7867_v1 = vld [vmem:[#allocation5 + $0x28] sm:$0xf]  ;;  %v7864_v40 = vor.u32 %v10084_v35, %v7861_v36  ;;  %v10085_v42 = vld [vmem:[#allocation5 + $0x2c] sm:$0xf]  ;;  %v7869_v44 = vld [vmem:[#allocation5 + $0x38] sm:$0xf0] }
 0x1b2   :  { %1484 = vmatpush.bf16.msra.mxu0 %v7940_v63  ;;  %1498 = vmatpush.bf16.msra.mxu1 %v7928_v33  ;;  %v7904_v63 = vor.u32 %v10093_v10, %v7901_v11 }
 0x1b3   :  { %1512 = vmatpush.bf16.msra.mxu2 %v7916_v51 }
 0x1b5   :  { %v10641_v52 = vpop.eup %10640 }
 0x1b6   :  { %v966_v53 = vmul.f32 %v10641_v52, %v960_v9  ;;  %1485 = vmatpush.bf16.msra.mxu0 %v7924_v18  ;;  %v7917_v52 = vld [vmem:[#allocation5 + $0x98] sm:$0xf0]  ;;  %1499 = vmatpush.bf16.msra.mxu1 %v7912_v46 }
 0x1b7   :  { %v7920_v9 = vor.u32 %v10097_v8, %v7917_v52  ;;  %1513 = vmatpush.bf16.msra.mxu2 %v7900_v7  ;;  %v7885_v18 = vld [vmem:[#allocation5 + $0x58] sm:$0xf0]  ;;  %v7872_v52 = vor.u32 %v10085_v42, %v7869_v44 }
 0x1b8   :  { %v967_v54 = vpack.c.bf16 %v966_v53, %v966_v53  ;;  %v7891_v53 = vld [vmem:[#allocation5 + $0x60] sm:$0xf]  ;;  %v7888_v33 = vor.u32 %v10089_v25, %v7885_v18 }
 0x1b9   :  { %1525 = vmatpush.bf16.msra.mxu3 %v7920_v9  ;;  %v7843_v9 = vld [vmem:[#allocation5] sm:$0xf] }
 0x1ba   :  { %969 = vst [vmem:[#allocation2 + $0x4] sm:$0xf] %v967_v54  ;;  %1170 = vmatmul.bf16.vlgmr.msrb.gmra.mxu0 %v967_v54  ;;  %1183 = vmatmul.bf16.vlgmr.msrb.gmra.mxu1 %v967_v54 }
 0x1bb   :  { %1196 = vmatmul.bf16.vlgmr.msrb.gmra.mxu2 %v967_v54  ;;  %1209 = vmatmul.bf16.vlgmr.msrb.gmra.mxu3 %v967_v54  ;;  %v10094_v54 = vld [vmem:[#allocation5 + $0x6c] sm:$0xf0] }
 0x1bc   :  { %1486 = vmatpush.bf16.msra.mxu0 %v7908_v41  ;;  %v7892_v56 = vor.u32 %v10094_v54, %v7891_v53  ;;  %1500 = vmatpush.bf16.msra.mxu1 %v7896_v5  ;;  %v10087_v41 = vld [vmem:[#allocation5 + $0x34] sm:$0xf0]  ;;  %v10082_v53 = vld [vmem:[#allocation5 + $0xc] sm:$0xf0]  ;;  %v10080_v54 = vld [vmem:[#allocation5 + $0x4] sm:$0xf] }
 0x1bd   :  { %1526 = vmatpush.bf16.msra.mxu3 %v7904_v63  ;;  %1514 = vmatpush.bf16.msra.mxu2 %v7884_v26  ;;  %v7868_v8 = vor.u32 %v10087_v41, %v7867_v1  ;;  %v7844_v32 = vor.u32 %v10082_v53, %v7843_v9 }
 0x1c0   :  { %1487 = vmatpush.bf16.msra.mxu0 %v7892_v56  ;;  %1501 = vmatpush.bf16.msra.mxu1 %v7880_v21  ;;  %v10083_v56 = vld [vmem:[#allocation5 + $0x14] sm:$0xf0] }
 0x1c1   :  { %1527 = vmatpush.bf16.msra.mxu3 %v7888_v33  ;;  %1515 = vmatpush.bf16.msra.mxu2 %v7868_v8 }
 0x1c4   :  { %1488 = vmatpush.bf16.msra.mxu0 %v7876_v17  ;;  %1502 = vmatpush.bf16.msra.mxu1 %v7864_v40 }
 0x1c5   :  { %1528 = vmatpush.bf16.msra.mxu3 %v7872_v52 }
 0x1c8   :  { %1489 = vmatpush.bf16.msra.mxu0 %v7860_v34 }
 0x1cc   :  { %1490 = vmatpush.bf16.msra.mxu0 %v7844_v32 }
 0x237   :  { %v1171_v3 = vpop.f32.mrf.mxu0  ;;  %v1184_v4 = vpop.f32.mrf.mxu1 }
 0x238   :  { %v1221_v12 = vadd.f32 %v1217_v55, %v1171_v3  ;;  %v1222_v13 = vadd.f32 %v1218_v60, %v1184_v4  ;;  %v7845_v55 = vld [vmem:[#allocation5 + $0x10] sm:$0xf0]  ;;  %v7851_v60 = vld [vmem:[#allocation5 + $0x8] sm:$0xf]  ;;  %v7853_v3 = vld [vmem:[#allocation5 + $0x18] sm:$0xf0] }
 0x239   :  { %v7848_v57 = vor.u32 %v10080_v54, %v7845_v55  ;;  %v7852_v5 = vor.u32 %v10083_v56, %v7851_v60  ;;  %v7856_v11 = vor.u32 %v10081_v62, %v7853_v3  ;;  %v10140_v62 = vld [vmem:[#allocation5 + $0xe4] sm:$0xf] }
 0x23a   :  { %v7838_v0 = vmul.f32 -1.442695, %v1221_v12  ;;  %v7839_v15 = vmul.f32 -1.442695, %v1222_v13 }
 0x23b   :  { %1503 = vmatpush.bf16.msra.mxu1 %v7848_v57  ;;  %1516 = vmatpush.bf16.msra.mxu2 %v7852_v5  ;;  %v10142_v57 = vld [vmem:[#allocation5 + $0xec] sm:$0xf0]  ;;  %v8094_v5 = vld [vmem:[#allocation5 + $0xe8] sm:$0xf] }
 0x23c   :  { %10642 = vpow2.f32 %v7838_v0  ;;  %1529 = vmatpush.bf16.msra.mxu3 %v7856_v11 }
 0x23d   :  { %10644 = vpow2.f32 %v7839_v15 }
 0x23e   :  { %v1197_v37 = vpop.f32.mrf.mxu2  ;;  %v1210_v2 = vpop.f32.mrf.mxu3 }
 0x23f   :  { %v1224_v45 = vadd.f32 %v1220_v31, %v1210_v2  ;;  %v1173_v46 = vpop.f32.mrf.mxu0  ;;  %v1186_v51 = vpop.f32.mrf.mxu1  ;;  %v1223_v15 = vadd.f32 %v1219_v14, %v1197_v37  ;;  %v10138_v14 = vld [vmem:[#allocation5 + $0xcc] sm:$0xf0] }
 0x241   :  { %v7840_v61 = vmul.f32 -1.442695, %v1224_v45 }
 0x242   :  { %v10643_v4 = vpop.eup %10642 }
 0x243   :  { %v10645_v7 = vpop.eup %10644  ;;  %v1228_v10 = vadd.f32 1.0, %v10643_v4  ;;  %10646 = vpow2.f32 %v7840_v61  ;;  %v8088_v4 = vld [vmem:[#allocation5 + $0xf0] sm:$0xf0] }
 0x244   :  { %v1247_v12 = vadd.f32 1.0, %v10645_v7  ;;  %v10143_v7 = vld [vmem:[#allocation5 + $0xf4] sm:$0xf0] }
 0x245   :  { %10648 = vrcp.f32 %v1228_v10  ;;  %v1240_v25 = vand.u32 2147483648, %v1228_v10  ;;  %v1238_v27 = vand.u32 2147483647, %v1228_v10  ;;  %vm1234_vm12 = vweird.f32 %v1228_v10 }
 0x246   :  { %10650 = vrcp.f32 %v1247_v12  ;;  %v1199_v13 = vpop.f32.mrf.mxu2  ;;  %v1212_v63 = vpop.f32.mrf.mxu3  ;;  %v1259_v26 = vand.u32 2147483648, %v1247_v12  ;;  %v1257_v31 = vand.u32 2147483647, %v1247_v12  ;;  %vm1253_vm13 = vweird.f32 %v1247_v12 }
 0x247   :  { %v1241_v34 = vor.u32 1.1754944e-38, %v1240_v25  ;;  %vm1239_vm0 = vcmp.eq.f32.partialorder %v1238_v27, 8.507059e+37  ;;  %v8095_v11 = vor.u32 %v10143_v7, %v8094_v5  ;;  %v8096_v13 = vld [vmem:[#allocation5 + $0xf8] sm:$0xf0]  ;;  %v10134_v27 = vld [vmem:[#allocation5 + $0xac] sm:$0xf0] }
 0x248   :  { %v1260_v1 = vor.u32 1.1754944e-38, %v1259_v26  ;;  %vm1258_vm1 = vcmp.eq.f32.partialorder %v1257_v31, 8.507059e+37  ;;  %v8080_v25 = vld [vmem:[#allocation5 + $0xd8] sm:$0xf0] }
 0x249   :  { %v10647_v47 = vpop.eup %10646  ;;  %1830 = vmatpush.bf16.msrb.mxu2 %v8095_v11 }
 0x24a   :  { %v1267_v19 = vadd.f32 1.0, %v10647_v47  ;;  %v8070_v47 = vld [vmem:[#allocation5 + $0xc0] sm:$0xf] }
 0x24b   :  { %v10649_v0 = vpop.eup %10648 }
 0x24c   :  { %v10651_v17 = vpop.eup %10650  ;;  %v1230_v20 = vmul.f32 %v10649_v0, %v1228_v10  ;;  %10652 = vrcp.f32 %v1267_v19  ;;  %vm1235_vm10 = vweird.f32 %v10649_v0  ;;  %v1279_v9 = vand.u32 2147483648, %v1267_v19 }
 0x24d   :  { %v1249_v21 = vmul.f32 %v10651_v17, %v1247_v12  ;;  %10654 = vtanh.f32 %v1223_v15  ;;  %vm1254_vm11 = vweird.f32 %v10651_v17  ;;  %vm1236_vm14 = vmor %vm1234_vm12, %vm1235_vm10  ;;  %vm1273_vm3 = vweird.f32 %v1267_v19  ;;  %v10141_v12 = vld [vmem:[#allocation5 + $0xec] sm:$0xf]  ;;  %v8072_v15 = vld [vmem:[#allocation5 + $0xd0] sm:$0xf0] }
 0x24e   :  { %v1231_v23 = vsub.f32 1.0, %v1230_v20  ;;  %vm1255_vm15 = vmor %vm1253_vm13, %vm1254_vm11  ;;  %v1277_v53 = vand.u32 2147483647, %v1267_v19  ;;  %v1280_v32 = vor.u32 1.1754944e-38, %v1279_v9  ;;  %v8091_v10 = vor.u32 %v10140_v62, %v8088_v4  ;;  %v10139_v20 = vld [vmem:[#allocation5 + $0xd4] sm:$0xf0] }
 0x24f   :  { %v1250_v24 = vsub.f32 1.0, %v1249_v21  ;;  %v8099_v63 = vor.u32 %v10141_v12, %v8096_v13  ;;  %v8024_v62 = vld [vmem:[#allocation5 + $0x70] sm:$0xf0]  ;;  %v10127_v4 = vld [vmem:[#allocation5 + $0x74] sm:$0xf0] }
 0x250   :  { %v1232_v18 = vmul.f32 %v10649_v0, %v1231_v23  ;;  %vm1278_vm5 = vcmp.eq.f32.partialorder %v1277_v53, 8.507059e+37  ;;  %1817 = vmatpush.bf16.msrb.mxu1 %v8091_v10  ;;  %v10129_v53 = vld [vmem:[#allocation5 + $0x8c] sm:$0xf]  ;;  %v8032_v13 = vld [vmem:[#allocation5 + $0x78] sm:$0xf0] }
 0x251   :  { %v1251_v30 = vmul.f32 %v10651_v17, %v1250_v24  ;;  %1843 = vmatpush.bf16.msrb.mxu3 %v8099_v63  ;;  %v10137_v24 = vld [vmem:[#allocation5 + $0xcc] sm:$0xf] }
 0x252   :  { %v10653_v33 = vpop.eup %10652  ;;  %v1233_v28 = vadd.f32 %v10649_v0, %v1232_v18  ;;  %v8083_v26 = vor.u32 %v10137_v24, %v8080_v25  ;;  %v8054_v18 = vld [vmem:[#allocation5 + $0xa0] sm:$0xf]  ;;  %v10125_v12 = vld [vmem:[#allocation5 + $0x6c] sm:$0xf]  ;;  %v8014_v24 = vld [vmem:[#allocation5 + $0x48] sm:$0xf] }
 0x253   :  { %v1252_v35 = vadd.f32 %v10651_v17, %v1251_v30  ;;  %v1269_v36 = vmul.f32 %v10653_v33, %v1267_v19  ;;  %v10655_v2 = vpop.eup %10654  ;;  %vm1274_vm2 = vweird.f32 %v10653_v33  ;;  %v10136_v19 = vld [vmem:[#allocation5 + $0xc4] sm:$0xf]  ;;  %v8055_v31 = vor.u32 %v10134_v27, %v8054_v18  ;;  %v10123_v25 = vld [vmem:[#allocation5 + $0x54] sm:$0xf0]  ;;  %v8016_v27 = vld [vmem:[#allocation5 + $0x58] sm:$0xf0] }
 0x254   :  { %v1237_v37 = vsel %vm1236_vm14, %v10649_v0, %v1233_v28  ;;  %vm1275_vm4 = vmor %vm1273_vm3, %vm1274_vm2  ;;  %v8071_v0 = vor.u32 %v10138_v14, %v8070_v47  ;;  %v8075_v21 = vor.u32 %v10136_v19, %v8072_v15  ;;  %v10132_v30 = vld [vmem:[#allocation5 + $0xa4] sm:$0xf]  ;;  %v8062_v28 = vld [vmem:[#allocation5 + $0xa8] sm:$0xf]  ;;  %v8035_v14 = vor.u32 %v10125_v12, %v8032_v13 }
 0x255   :  { %v1242_v40 = vsel %vm1239_vm0, %v1241_v34, %v1237_v37  ;;  %v1256_v41 = vsel %vm1255_vm15, %v10651_v17, %v1252_v35  ;;  %v1270_v42 = vsub.f32 1.0, %v1269_v36  ;;  %v8078_v17 = vld [vmem:[#allocation5 + $0xc8] sm:$0xf]  ;;  %1844 = vmatpush.bf16.msrb.mxu3 %v8083_v26  ;;  %v10135_v34 = vld [vmem:[#allocation5 + $0xb4] sm:$0xf0]  ;;  %v8015_v18 = vor.u32 %v10123_v25, %v8014_v24 }
 0x256   :  { %v1261_v44 = vsel %vm1258_vm1, %v1260_v1, %v1256_v41  ;;  %v1284_v45 = vmul.f32 %v10655_v2, %v1242_v40  ;;  %v8079_v23 = vor.u32 %v10139_v20, %v8078_v17  ;;  %1818 = vmatpush.bf16.msrb.mxu1 %v8075_v21  ;;  %v8063_v36 = vor.u32 %v10135_v34, %v8062_v28  ;;  %v10133_v1 = vld [vmem:[#allocation5 + $0xac] sm:$0xf]  ;;  %v8064_v37 = vld [vmem:[#allocation5 + $0xb8] sm:$0xf0]  ;;  %v8038_v40 = vld [vmem:[#allocation5 + $0x80] sm:$0xf] }
 0x257   :  { %v1283_v46 = vmul.f32 %v1261_v44, %v11360_v43  ;;  %v1271_v51 = vmul.f32 %v10653_v33, %v1270_v42  ;;  %v8086_v43 = vld [vmem:[#allocation5 + $0xe0] sm:$0xf]  ;;  %v8067_v2 = vor.u32 %v10133_v1, %v8064_v37  ;;  %v10130_v41 = vld [vmem:[#allocation5 + $0x8c] sm:$0xf0]  ;;  %v10128_v42 = vld [vmem:[#allocation5 + $0x84] sm:$0xf] }
 0x258   :  { %v8087_v3 = vor.u32 %v10142_v57, %v8086_v43  ;;  %1831 = vmatpush.bf16.msrb.mxu2 %v8079_v23  ;;  %v8039_v44 = vor.u32 %v10130_v41, %v8038_v40  ;;  %v1539_v43 = vunpack.c.h.bf16 %v11302_v29  ;;  %v8006_v19 = vld [vmem:[#allocation5 + $0x40] sm:$0xf]  ;;  %v8008_v21 = vld [vmem:[#allocation5 + $0x50] sm:$0xf0]  ;;  %v10121_v26 = vld [vmem:[#allocation5 + $0x4c] sm:$0xf] }
 0x259   :  { %v11368_v8 = vadd.f32 %v1284_v45, %v1283_v46  ;;  %v1272_v52 = vadd.f32 %v10653_v33, %v1271_v51  ;;  %1845 = vmatpush.bf16.msrb.mxu3 %v8067_v2  ;;  %v8040_v45 = vld [vmem:[#allocation5 + $0x90] sm:$0xf0]  ;;  %v8046_v46 = vld [vmem:[#allocation5 + $0x88] sm:$0xf]  ;;  %v10131_v51 = vld [vmem:[#allocation5 + $0x94] sm:$0xf0]  ;;  %v8019_v28 = vor.u32 %v10121_v26, %v8016_v27 }
 0x25a   :  { %1804 = vmatpush.bf16.msrb.mxu0 %v8087_v3  ;;  %v8047_v9 = vor.u32 %v10131_v51, %v8046_v46  ;;  %v8030_v3 = vld [vmem:[#allocation5 + $0x68] sm:$0xf]  ;;  %v10119_v41 = vld [vmem:[#allocation5 + $0x34] sm:$0xf0] }
 0x25b   :  { %10656 = vtanh.f32 %v11368_v8  ;;  %v1276_v54 = vsel %vm1275_vm4, %v10653_v33, %v1272_v52  ;;  %v8056_v33 = vld [vmem:[#allocation5 + $0xb0] sm:$0xf0]  ;;  %v8043_v52 = vor.u32 %v10128_v42, %v8040_v45  ;;  %v8031_v11 = vor.u32 %v10127_v4, %v8030_v3  ;;  %v7998_v1 = vld [vmem:[#allocation5 + $0x28] sm:$0xf]  ;;  %v10117_v42 = vld [vmem:[#allocation5 + $0x2c] sm:$0xf] }
 0x25c   :  { %v1281_v60 = vsel %vm1278_vm5, %v1280_v32, %v1276_v54  ;;  %v8059_v35 = vor.u32 %v10132_v30, %v8056_v33  ;;  %1832 = vmatpush.bf16.msrb.mxu2 %v8063_v36  ;;  %v8048_v54 = vld [vmem:[#allocation5 + $0x98] sm:$0xf0]  ;;  %v7990_v30 = vld [vmem:[#allocation5 + $0x20] sm:$0xf]  ;;  %v1541_v33 = vunpack.c.h.bf16 %v11308_v38  ;;  %v7992_v36 = vld [vmem:[#allocation5 + $0x30] sm:$0xf0] }
 0x25d   :  { %v8051_v32 = vor.u32 %v10129_v53, %v8048_v54  ;;  %v7974_v53 = vld [vmem:[#allocation5] sm:$0xf]  ;;  %v10114_v54 = vld [vmem:[#allocation5 + $0xc] sm:$0xf0]  ;;  %v7984_v3 = vld [vmem:[#allocation5 + $0x18] sm:$0xf0] }
 0x25e   :  { %1805 = vmatpush.bf16.msrb.mxu0 %v8071_v0  ;;  %1819 = vmatpush.bf16.msrb.mxu1 %v8059_v35  ;;  %v10122_v0 = vld [vmem:[#allocation5 + $0x4c] sm:$0xf0]  ;;  %v10116_v35 = vld [vmem:[#allocation5 + $0x24] sm:$0xf] }
 0x25f   :  { %1846 = vmatpush.bf16.msrb.mxu3 %v8051_v32  ;;  %v8007_v20 = vor.u32 %v10122_v0, %v8006_v19  ;;  %v7995_v40 = vor.u32 %v10116_v35, %v7992_v36  ;;  %v10112_v32 = vld [vmem:[#allocation5 + $0x4] sm:$0xf] }
 0x260   :  { %1833 = vmatpush.bf16.msrb.mxu2 %v8047_v9 }
 0x261   :  { %v10657_v55 = vpop.eup %10656 }
 0x262   :  { %v1287_v56 = vmul.f32 %v10657_v55, %v1281_v60  ;;  %1806 = vmatpush.bf16.msrb.mxu0 %v8055_v31  ;;  %1820 = vmatpush.bf16.msrb.mxu1 %v8043_v52  ;;  %v8022_v55 = vld [vmem:[#allocation5 + $0x60] sm:$0xf]  ;;  %v10126_v60 = vld [vmem:[#allocation5 + $0x6c] sm:$0xf0]  ;;  %v7999_v52 = vor.u32 %v10119_v41, %v7998_v1 }
 0x263   :  { %v8023_v57 = vor.u32 %v10126_v60, %v8022_v55  ;;  %1847 = vmatpush.bf16.msrb.mxu3 %v8035_v14  ;;  %v10118_v31 = vld [vmem:[#allocation5 + $0x2c] sm:$0xf0]  ;;  %v7975_v55 = vor.u32 %v10114_v54, %v7974_v53  ;;  %v7976_v60 = vld [vmem:[#allocation5 + $0x10] sm:$0xf0]  ;;  %v1540_v14 = vunpack.c.l.bf16 %v11308_v38 }
 0x264   :  { %v1288_v61 = vpack.c.bf16 %v1287_v56, %v1287_v56  ;;  %v10124_v56 = vld [vmem:[#allocation5 + $0x64] sm:$0xf]  ;;  %1834 = vmatpush.bf16.msrb.mxu2 %v8031_v11  ;;  %v7991_v34 = vor.u32 %v10118_v31, %v7990_v30 }
 0x265   :  { %v8027_v10 = vor.u32 %v10124_v56, %v8024_v62  ;;  %v7982_v56 = vld [vmem:[#allocation5 + $0x8] sm:$0xf]  ;;  %v10113_v62 = vld [vmem:[#allocation5 + $0xc] sm:$0xf] }
 0x266   :  { %1290 = vst [vmem:[#allocation2 + $0x8] sm:$0xf] %v1288_v61  ;;  %1491 = vmatmul.bf16.vlgmr.msra.gmra.mxu0 %v1288_v61  ;;  %1504 = vmatmul.bf16.vlgmr.msra.gmra.mxu1 %v1288_v61  ;;  %v7987_v11 = vor.u32 %v10113_v62, %v7984_v3  ;;  %v8219_v62 = vld [vmem:[#allocation5 + $0xf0] sm:$0xf0]  ;;  %v8225_v3 = vld [vmem:[#allocation5 + $0xe8] sm:$0xf] }
 0x267   :  { %1517 = vmatmul.bf16.vlgmr.msra.gmra.mxu2 %v1288_v61  ;;  %1530 = vmatmul.bf16.vlgmr.msra.gmra.mxu3 %v1288_v61  ;;  %v1538_v61 = vunpack.c.l.bf16 %v11302_v29  ;;  %v10120_v29 = vld [vmem:[#allocation5 + $0x44] sm:$0xf] }
 0x268   :  { %1807 = vmatpush.bf16.msrb.mxu0 %v8039_v44  ;;  %1821 = vmatpush.bf16.msrb.mxu1 %v8027_v10  ;;  %v8011_v23 = vor.u32 %v10120_v29, %v8008_v21  ;;  %v8000_v44 = vld [vmem:[#allocation5 + $0x38] sm:$0xf0] }
 0x269   :  { %1835 = vmatpush.bf16.msrb.mxu2 %v8015_v18  ;;  %1848 = vmatpush.bf16.msrb.mxu3 %v8019_v28  ;;  %v8003_v9 = vor.u32 %v10117_v42, %v8000_v44 }
 0x26c   :  { %1808 = vmatpush.bf16.msrb.mxu0 %v8023_v57  ;;  %1822 = vmatpush.bf16.msrb.mxu1 %v8011_v23  ;;  %v7979_v57 = vor.u32 %v10112_v32, %v7976_v60 }
 0x26d   :  { %1836 = vmatpush.bf16.msrb.mxu2 %v7999_v52  ;;  %1849 = vmatpush.bf16.msrb.mxu3 %v8003_v9 }
 0x270   :  { %1809 = vmatpush.bf16.msrb.mxu0 %v8007_v20  ;;  %1823 = vmatpush.bf16.msrb.mxu1 %v7995_v40 }
 0x271   :  { %1850 = vmatpush.bf16.msrb.mxu3 %v7987_v11  ;;  %v8227_v11 = vld [vmem:[#allocation5 + $0xf8] sm:$0xf0] }
 0x274   :  { %1810 = vmatpush.bf16.msrb.mxu0 %v7991_v34  ;;  %1824 = vmatpush.bf16.msrb.mxu1 %v7979_v57 }
 0x278   :  { %1811 = vmatpush.bf16.msrb.mxu0 %v7975_v55 }
 0x2e3   :  { %v1492_v5 = vpop.f32.mrf.mxu0  ;;  %v1505_v7 = vpop.f32.mrf.mxu1 }
 0x2e4   :  { %v1542_v63 = vadd.f32 %v1538_v61, %v1492_v5  ;;  %v1543_v47 = vadd.f32 %v1539_v43, %v1505_v7  ;;  %v10115_v61 = vld [vmem:[#allocation5 + $0x14] sm:$0xf0] }
 0x2e5   :  { %v7983_v5 = vor.u32 %v10115_v61, %v7982_v56  ;;  %v10174_v61 = vld [vmem:[#allocation5 + $0xec] sm:$0xf0] }
 0x2e6   :  { %v7969_v15 = vmul.f32 -1.442695, %v1542_v63  ;;  %v7970_v17 = vmul.f32 -1.442695, %v1543_v47 }
 0x2e7   :  { %1837 = vmatpush.bf16.msrb.mxu2 %v7983_v5 }
 0x2e8   :  { %10658 = vpow2.f32 %v7969_v15 }
 0x2e9   :  { %10660 = vpow2.f32 %v7970_v17 }
 0x2ea   :  { %v1518_v37 = vpop.f32.mrf.mxu2  ;;  %v1531_v2 = vpop.f32.mrf.mxu3 }
 0x2eb   :  { %v1545_v45 = vadd.f32 %v1541_v33, %v1531_v2  ;;  %v1494_v46 = vpop.f32.mrf.mxu0  ;;  %v1507_v51 = vpop.f32.mrf.mxu1  ;;  %v1544_v29 = vadd.f32 %v1540_v14, %v1518_v37 }
 0x2ed   :  { %v7971_v43 = vmul.f32 -1.442695, %v1545_v45 }
 0x2ee   :  { %v10659_v4 = vpop.eup %10658 }
 0x2ef   :  { %v10661_v7 = vpop.eup %10660  ;;  %v1549_v10 = vadd.f32 1.0, %v10659_v4  ;;  %10662 = vpow2.f32 %v7971_v43  ;;  %v10172_v43 = vld [vmem:[#allocation5 + $0xe4] sm:$0xf]  ;;  %v10175_v4 = vld [vmem:[#allocation5 + $0xf4] sm:$0xf0] }
 0x2f0   :  { %v1568_v12 = vadd.f32 1.0, %v10661_v7  ;;  %v8222_v5 = vor.u32 %v10172_v43, %v8219_v62  ;;  %v8226_v7 = vor.u32 %v10175_v4, %v8225_v3  ;;  %v10159_v43 = vld [vmem:[#allocation5 + $0x74] sm:$0xf0] }
 0x2f1   :  { %10664 = vrcp.f32 %v1549_v10  ;;  %v1561_v24 = vand.u32 2147483648, %v1549_v10  ;;  %v1559_v18 = vand.u32 2147483647, %v1549_v10  ;;  %vm1555_vm8 = vweird.f32 %v1549_v10 }
 0x2f2   :  { %10666 = vrcp.f32 %v1568_v12  ;;  %v1520_v13 = vpop.f32.mrf.mxu2  ;;  %v1533_v63 = vpop.f32.mrf.mxu3  ;;  %v1580_v25 = vand.u32 2147483648, %v1568_v12  ;;  %v1578_v30 = vand.u32 2147483647, %v1568_v12  ;;  %vm1574_vm9 = vweird.f32 %v1568_v12  ;;  %2138 = vmatpush.bf16.msra.mxu1 %v8222_v5  ;;  %2151 = vmatpush.bf16.msra.mxu2 %v8226_v7  ;;  %v10157_v5 = vld [vmem:[#allocation5 + $0x6c] sm:$0xf] }
 0x2f3   :  { %v1562_v33 = vor.u32 1.1754944e-38, %v1561_v24  ;;  %vm1560_vm12 = vcmp.eq.f32.partialorder %v1559_v18, 8.507059e+37  ;;  %v8201_v13 = vld [vmem:[#allocation5 + $0xc0] sm:$0xf]  ;;  %v10170_v63 = vld [vmem:[#allocation5 + $0xcc] sm:$0xf0] }
 0x2f4   :  { %v1581_v35 = vor.u32 1.1754944e-38, %v1580_v25  ;;  %vm1579_vm13 = vcmp.eq.f32.partialorder %v1578_v30, 8.507059e+37  ;;  %v8202_v14 = vor.u32 %v10170_v63, %v8201_v13  ;;  %v8185_v24 = vld [vmem:[#allocation5 + $0xa0] sm:$0xf]  ;;  %v10166_v25 = vld [vmem:[#allocation5 + $0xac] sm:$0xf0] }
 0x2f5   :  { %v10663_v47 = vpop.eup %10662  ;;  %v8186_v18 = vor.u32 %v10166_v25, %v8185_v24  ;;  %v8193_v30 = vld [vmem:[#allocation5 + $0xa8] sm:$0xf]  ;;  %v8163_v7 = vld [vmem:[#allocation5 + $0x78] sm:$0xf0]  ;;  %v8137_v13 = vld [vmem:[#allocation5 + $0x40] sm:$0xf] }
 0x2f6   :  { %v1588_v19 = vadd.f32 1.0, %v10663_v47  ;;  %v10168_v47 = vld [vmem:[#allocation5 + $0xc4] sm:$0xf]  ;;  %v10154_v63 = vld [vmem:[#allocation5 + $0x4c] sm:$0xf0] }
 0x2f7   :  { %v10665_v0 = vpop.eup %10664  ;;  %v8121_v24 = vld [vmem:[#allocation5 + $0x20] sm:$0xf]  ;;  %v10150_v25 = vld [vmem:[#allocation5 + $0x2c] sm:$0xf0] }
 0x2f8   :  { %v10667_v15 = vpop.eup %10666  ;;  %v1551_v17 = vmul.f32 %v10665_v0, %v1549_v10  ;;  %10668 = vrcp.f32 %v1588_v19  ;;  %vm1556_vm6 = vweird.f32 %v10665_v0  ;;  %v1600_v52 = vand.u32 2147483648, %v1588_v19  ;;  %v10173_v10 = vld [vmem:[#allocation5 + $0xec] sm:$0xf] }
 0x2f9   :  { %v1570_v20 = vmul.f32 %v10667_v15, %v1568_v12  ;;  %10670 = vtanh.f32 %v1544_v29  ;;  %vm1575_vm7 = vweird.f32 %v10667_v15  ;;  %vm1557_vm10 = vmor %vm1555_vm8, %vm1556_vm6  ;;  %vm1594_vm15 = vweird.f32 %v1588_v19  ;;  %v10171_v29 = vld [vmem:[#allocation5 + $0xd4] sm:$0xf0] }
 0x2fa   :  { %v1552_v21 = vsub.f32 1.0, %v1551_v17  ;;  %vm1576_vm11 = vmor %vm1574_vm9, %vm1575_vm7  ;;  %v1598_v9 = vand.u32 2147483647, %v1588_v19  ;;  %v1601_v54 = vor.u32 1.1754944e-38, %v1600_v52  ;;  %v8230_v12 = vor.u32 %v10173_v10, %v8227_v11  ;;  %v8179_v52 = vld [vmem:[#allocation5 + $0x98] sm:$0xf0] }
 0x2fb   :  { %v1571_v23 = vsub.f32 1.0, %v1570_v20  ;;  %v10169_v20 = vld [vmem:[#allocation5 + $0xcc] sm:$0xf] }
 0x2fc   :  { %v1553_v26 = vmul.f32 %v10665_v0, %v1552_v21  ;;  %vm1599_vm1 = vcmp.eq.f32.partialorder %v1598_v9, 8.507059e+37  ;;  %2164 = vmatpush.bf16.msra.mxu3 %v8230_v12  ;;  %v8211_v21 = vld [vmem:[#allocation5 + $0xd8] sm:$0xf0]  ;;  %v8166_v12 = vor.u32 %v10157_v5, %v8163_v7 }
 0x2fd   :  { %v1572_v27 = vmul.f32 %v10667_v15, %v1571_v23  ;;  %v8214_v23 = vor.u32 %v10169_v20, %v8211_v21  ;;  %v10153_v20 = vld [vmem:[#allocation5 + $0x4c] sm:$0xf] }
 0x2fe   :  { %v10669_v31 = vpop.eup %10668  ;;  %v1554_v38 = vadd.f32 %v10665_v0, %v1553_v26  ;;  %v10164_v26 = vld [vmem:[#allocation5 + $0xa4] sm:$0xf] }
 0x2ff   :  { %v1573_v28 = vadd.f32 %v10667_v15, %v1572_v27  ;;  %v1590_v34 = vmul.f32 %v10669_v31, %v1588_v19  ;;  %v10671_v1 = vpop.eup %10670  ;;  %vm1595_vm14 = vweird.f32 %v10669_v31  ;;  %v8203_v19 = vld [vmem:[#allocation5 + $0xd0] sm:$0xf0] }
 0x300   :  { %v1558_v36 = vsel %vm1557_vm10, %v10665_v0, %v1554_v38  ;;  %vm1596_vm0 = vmor %vm1594_vm15, %vm1595_vm14  ;;  %v8209_v0 = vld [vmem:[#allocation5 + $0xc8] sm:$0xf]  ;;  %2165 = vmatpush.bf16.msra.mxu3 %v8214_v23  ;;  %v8187_v27 = vld [vmem:[#allocation5 + $0xb0] sm:$0xf0] }
 0x301   :  { %v1563_v37 = vsel %vm1560_vm12, %v1562_v33, %v1558_v36  ;;  %v1577_v2 = vsel %vm1576_vm11, %v10667_v15, %v1573_v28  ;;  %v1591_v40 = vsub.f32 1.0, %v1590_v34  ;;  %v8206_v15 = vor.u32 %v10168_v47, %v8203_v19  ;;  %v10165_v28 = vld [vmem:[#allocation5 + $0xac] sm:$0xf]  ;;  %v8195_v34 = vld [vmem:[#allocation5 + $0xb8] sm:$0xf0] }
 0x302   :  { %v1582_v41 = vsel %vm1579_vm13, %v1581_v35, %v1577_v2  ;;  %v1605_v42 = vmul.f32 %v10671_v1, %v1563_v37  ;;  %v8210_v17 = vor.u32 %v10171_v29, %v8209_v0  ;;  %v8190_v38 = vor.u32 %v10164_v26, %v8187_v27  ;;  %v8169_v36 = vld [vmem:[#allocation5 + $0x80] sm:$0xf]  ;;  %v10162_v1 = vld [vmem:[#allocation5 + $0x8c] sm:$0xf0]  ;;  %v10160_v37 = vld [vmem:[#allocation5 + $0x84] sm:$0xf] }
 0x303   :  { %v1604_v44 = vmul.f32 %v1582_v41, %v11368_v8  ;;  %v1592_v45 = vmul.f32 %v10669_v31, %v1591_v40  ;;  %v8217_v8 = vld [vmem:[#allocation5 + $0xe0] sm:$0xf]  ;;  %2139 = vmatpush.bf16.msra.mxu1 %v8206_v15  ;;  %v8198_v35 = vor.u32 %v10165_v28, %v8195_v34  ;;  %v8170_v2 = vor.u32 %v10162_v1, %v8169_v36  ;;  %v8171_v40 = vld [vmem:[#allocation5 + $0x90] sm:$0xf0]  ;;  %v8177_v41 = vld [vmem:[#allocation5 + $0x88] sm:$0xf] }
 0x304   :  { %v8218_v57 = vor.u32 %v10174_v61, %v8217_v8  ;;  %2152 = vmatpush.bf16.msra.mxu2 %v8210_v17  ;;  %v8155_v8 = vld [vmem:[#allocation5 + $0x70] sm:$0xf0]  ;;  %v8161_v61 = vld [vmem:[#allocation5 + $0x68] sm:$0xf]  ;;  %v8138_v19 = vor.u32 %v10154_v63, %v8137_v13  ;;  %v10155_v17 = vld [vmem:[#allocation5 + $0x54] sm:$0xf0]  ;;  %v1862_v26 = vunpack.c.h.bf16 %v11316_v48  ;;  %v8122_v27 = vor.u32 %v10150_v25, %v8121_v24 }
 0x305   :  { %v11376_v46 = vadd.f32 %v1605_v42, %v1604_v44  ;;  %v1593_v51 = vadd.f32 %v10669_v31, %v1592_v45  ;;  %2166 = vmatpush.bf16.msra.mxu3 %v8198_v35  ;;  %v10163_v42 = vld [vmem:[#allocation5 + $0x94] sm:$0xf0]  ;;  %v8174_v44 = vor.u32 %v10160_v37, %v8171_v40  ;;  %v8162_v4 = vor.u32 %v10159_v43, %v8161_v61  ;;  %v8139_v0 = vld [vmem:[#allocation5 + $0x50] sm:$0xf0]  ;;  %v8145_v15 = vld [vmem:[#allocation5 + $0x48] sm:$0xf] }
 0x306   :  { %2125 = vmatpush.bf16.msra.mxu0 %v8218_v57  ;;  %v8178_v45 = vor.u32 %v10163_v42, %v8177_v41  ;;  %v8146_v21 = vor.u32 %v10155_v17, %v8145_v15  ;;  %v8147_v23 = vld [vmem:[#allocation5 + $0x58] sm:$0xf0]  ;;  %v10151_v35 = vld [vmem:[#allocation5 + $0x34] sm:$0xf0]  ;;  %v10149_v36 = vld [vmem:[#allocation5 + $0x2c] sm:$0xf] }
 0x307   :  { %10672 = vtanh.f32 %v11376_v46  ;;  %v1597_v53 = vsel %vm1596_vm0, %v10669_v31, %v1593_v51  ;;  %v10167_v31 = vld [vmem:[#allocation5 + $0xb4] sm:$0xf0]  ;;  %2140 = vmatpush.bf16.msra.mxu1 %v8190_v38  ;;  %v10161_v51 = vld [vmem:[#allocation5 + $0x8c] sm:$0xf]  ;;  %v8129_v38 = vld [vmem:[#allocation5 + $0x28] sm:$0xf] }
 0x308   :  { %v1602_v55 = vsel %vm1599_vm1, %v1601_v54, %v1597_v53  ;;  %v8194_v33 = vor.u32 %v10167_v31, %v8193_v30  ;;  %v8182_v9 = vor.u32 %v10161_v51, %v8179_v52  ;;  %v8153_v53 = vld [vmem:[#allocation5 + $0x60] sm:$0xf]  ;;  %v10158_v54 = vld [vmem:[#allocation5 + $0x6c] sm:$0xf0]  ;;  %v10148_v30 = vld [vmem:[#allocation5 + $0x24] sm:$0xf]  ;;  %v8130_v41 = vor.u32 %v10151_v35, %v8129_v38 }
 0x309   :  { %v8123_v31 = vld [vmem:[#allocation5 + $0x30] sm:$0xf0]  ;;  %v8131_v1 = vld [vmem:[#allocation5 + $0x38] sm:$0xf0]  ;;  %v10144_v51 = vld [vmem:[#allocation5 + $0x4] sm:$0xf] }
 0x30a   :  { %2126 = vmatpush.bf16.msra.mxu0 %v8202_v14  ;;  %2153 = vmatpush.bf16.msra.mxu2 %v8194_v33  ;;  %v8126_v34 = vor.u32 %v10148_v30, %v8123_v31  ;;  %v8134_v42 = vor.u32 %v10149_v36, %v8131_v1 }
 0x30b   :  { %2141 = vmatpush.bf16.msra.mxu1 %v8174_v44  ;;  %2167 = vmatpush.bf16.msra.mxu3 %v8182_v9  ;;  %v8105_v44 = vld [vmem:[#allocation5] sm:$0xf]  ;;  %v8107_v9 = vld [vmem:[#allocation5 + $0x10] sm:$0xf0] }
 0x30d   :  { %v10673_v32 = vpop.eup %10672 }
 0x30e   :  { %v1608_v60 = vmul.f32 %v10673_v32, %v1602_v55  ;;  %2127 = vmatpush.bf16.msra.mxu0 %v8186_v18  ;;  %2154 = vmatpush.bf16.msra.mxu2 %v8178_v45  ;;  %v10156_v32 = vld [vmem:[#allocation5 + $0x64] sm:$0xf]  ;;  %v1859_v55 = vunpack.c.l.bf16 %v11310_v39  ;;  %v8150_v18 = vor.u32 %v10153_v20, %v8147_v23  ;;  %v10146_v45 = vld [vmem:[#allocation5 + $0xc] sm:$0xf0] }
 0x30f   :  { %v8158_v3 = vor.u32 %v10156_v32, %v8155_v8  ;;  %2168 = vmatpush.bf16.msra.mxu3 %v8166_v12  ;;  %v8106_v52 = vor.u32 %v10146_v45, %v8105_v44 }
 0x310   :  { %v1609_v56 = vpack.c.bf16 %v1608_v60, %v1608_v60  ;;  %v1860_v60 = vunpack.c.h.bf16 %v11310_v39  ;;  %v10152_v39 = vld [vmem:[#allocation5 + $0x44] sm:$0xf] }
 0x311   :  { %2142 = vmatpush.bf16.msra.mxu1 %v8158_v3  ;;  %v8142_v29 = vor.u32 %v10152_v39, %v8139_v0 }
 0x312   :  { %1611 = vst [vmem:[#allocation2 + $0xc] sm:$0xf] %v1609_v56  ;;  %1812 = vmatmul.bf16.vlgmr.msrb.gmra.mxu0 %v1609_v56  ;;  %1825 = vmatmul.bf16.vlgmr.msrb.gmra.mxu1 %v1609_v56 }
 0x313   :  { %1838 = vmatmul.bf16.vlgmr.msrb.gmra.mxu2 %v1609_v56  ;;  %1851 = vmatmul.bf16.vlgmr.msrb.gmra.mxu3 %v1609_v56  ;;  %v8154_v56 = vor.u32 %v10158_v54, %v8153_v53  ;;  %v8113_v53 = vld [vmem:[#allocation5 + $0x8] sm:$0xf]  ;;  %v10147_v54 = vld [vmem:[#allocation5 + $0x14] sm:$0xf0] }
 0x314   :  { %2128 = vmatpush.bf16.msra.mxu0 %v8170_v2  ;;  %2155 = vmatpush.bf16.msra.mxu2 %v8162_v4  ;;  %v8114_v61 = vor.u32 %v10147_v54, %v8113_v53  ;;  %v10204_v53 = vld [vmem:[#allocation5 + $0xe4] sm:$0xf] }
 0x315   :  { %2143 = vmatpush.bf16.msra.mxu1 %v8142_v29  ;;  %2169 = vmatpush.bf16.msra.mxu3 %v8150_v18 }
 0x318   :  { %2129 = vmatpush.bf16.msra.mxu0 %v8154_v56  ;;  %2156 = vmatpush.bf16.msra.mxu2 %v8146_v21  ;;  %v8115_v56 = vld [vmem:[#allocation5 + $0x18] sm:$0xf0] }
 0x319   :  { %2144 = vmatpush.bf16.msra.mxu1 %v8126_v34  ;;  %2170 = vmatpush.bf16.msra.mxu3 %v8134_v42 }
 0x31c   :  { %2130 = vmatpush.bf16.msra.mxu0 %v8138_v19  ;;  %2157 = vmatpush.bf16.msra.mxu2 %v8130_v41 }
 0x320   :  { %2131 = vmatpush.bf16.msra.mxu0 %v8122_v27  ;;  %2158 = vmatpush.bf16.msra.mxu2 %v8114_v61  ;;  %v10205_v61 = vld [vmem:[#allocation5 + $0xec] sm:$0xf] }
 0x324   :  { %2132 = vmatpush.bf16.msra.mxu0 %v8106_v52 }
 0x38f   :  { %v1813_v57 = vpop.f32.mrf.mxu0  ;;  %v1826_v62 = vpop.f32.mrf.mxu1 }
 0x390   :  { %v1863_v10 = vadd.f32 %v1859_v55, %v1813_v57  ;;  %v1864_v11 = vadd.f32 %v1860_v60, %v1826_v62  ;;  %v8110_v55 = vor.u32 %v10144_v51, %v8107_v9  ;;  %v10145_v60 = vld [vmem:[#allocation5 + $0xc] sm:$0xf]  ;;  %v10206_v9 = vld [vmem:[#allocation5 + $0xec] sm:$0xf0] }
 0x391   :  { %v8118_v62 = vor.u32 %v10145_v60, %v8115_v56  ;;  %v10207_v60 = vld [vmem:[#allocation5 + $0xf4] sm:$0xf0] }
 0x392   :  { %v8100_v47 = vmul.f32 -1.442695, %v1863_v10  ;;  %v8101_v14 = vmul.f32 -1.442695, %v1864_v11  ;;  %2145 = vmatpush.bf16.msra.mxu1 %v8110_v55  ;;  %v1861_v10 = vunpack.c.l.bf16 %v11316_v48  ;;  %v8356_v55 = vld [vmem:[#allocation5 + $0xe8] sm:$0xf] }
 0x393   :  { %2171 = vmatpush.bf16.msra.mxu3 %v8118_v62  ;;  %v8332_v62 = vld [vmem:[#allocation5 + $0xc0] sm:$0xf] }
 0x394   :  { %10674 = vpow2.f32 %v8100_v47 }
 0x395   :  { %10676 = vpow2.f32 %v8101_v14 }
 0x396   :  { %v1839_v33 = vpop.f32.mrf.mxu2  ;;  %v1852_v28 = vpop.f32.mrf.mxu3 }
 0x397   :  { %v1866_v37 = vadd.f32 %v1862_v26, %v1852_v28  ;;  %v1815_v2 = vpop.f32.mrf.mxu0  ;;  %v1828_v40 = vpop.f32.mrf.mxu1  ;;  %v1865_v13 = vadd.f32 %v1861_v10, %v1839_v33  ;;  %v8340_v10 = vld [vmem:[#allocation5 + $0xc8] sm:$0xf] }
 0x399   :  { %v8102_v32 = vmul.f32 -1.442695, %v1866_v37 }
 0x39a   :  { %v10675_v8 = vpop.eup %10674 }
 0x39b   :  { %v10677_v43 = vpop.eup %10676  ;;  %v1870_v57 = vadd.f32 1.0, %v10675_v8  ;;  %10678 = vpow2.f32 %v8102_v32  ;;  %v8350_v32 = vld [vmem:[#allocation5 + $0xf0] sm:$0xf0]  ;;  %v8357_v8 = vor.u32 %v10207_v60, %v8356_v55  ;;  %v10189_v55 = vld [vmem:[#allocation5 + $0x6c] sm:$0xf] }
 0x39c   :  { %v1889_v3 = vadd.f32 1.0, %v10677_v43  ;;  %v8353_v56 = vor.u32 %v10204_v53, %v8350_v32  ;;  %v8358_v43 = vld [vmem:[#allocation5 + $0xf8] sm:$0xf0] }
 0x39d   :  { %10680 = vrcp.f32 %v1870_v57  ;;  %v1882_v0 = vand.u32 2147483648, %v1870_v57  ;;  %v1880_v17 = vand.u32 2147483647, %v1870_v57  ;;  %vm1876_vm4 = vweird.f32 %v1870_v57  ;;  %2472 = vmatpush.bf16.msrb.mxu2 %v8357_v8  ;;  %v8294_v60 = vld [vmem:[#allocation5 + $0x78] sm:$0xf0] }
 0x39e   :  { %10682 = vrcp.f32 %v1889_v3  ;;  %v1841_v4 = vpop.f32.mrf.mxu2  ;;  %v1854_v5 = vpop.f32.mrf.mxu3  ;;  %v1901_v29 = vand.u32 2147483648, %v1889_v3  ;;  %v1899_v21 = vand.u32 2147483647, %v1889_v3  ;;  %vm1895_vm5 = vweird.f32 %v1889_v3  ;;  %2459 = vmatpush.bf16.msrb.mxu1 %v8353_v56 }
 0x39f   :  { %v1883_v24 = vor.u32 1.1754944e-38, %v1882_v0  ;;  %vm1881_vm8 = vcmp.eq.f32.partialorder %v1880_v17, 8.507059e+37  ;;  %v10200_v4 = vld [vmem:[#allocation5 + $0xc4] sm:$0xf]  ;;  %v8324_v17 = vld [vmem:[#allocation5 + $0xa8] sm:$0xf] }
 0x3a0   :  { %v1902_v18 = vor.u32 1.1754944e-38, %v1901_v29  ;;  %vm1900_vm9 = vcmp.eq.f32.partialorder %v1899_v21, 8.507059e+37  ;;  %v10196_v0 = vld [vmem:[#allocation5 + $0xa4] sm:$0xf] }
 0x3a1   :  { %v10679_v7 = vpop.eup %10678 }
 0x3a2   :  { %v1909_v11 = vadd.f32 1.0, %v10679_v7  ;;  %v8334_v7 = vld [vmem:[#allocation5 + $0xd0] sm:$0xf0] }
 0x3a3   :  { %v10681_v12 = vpop.eup %10680 }
 0x3a4   :  { %v10683_v63 = vpop.eup %10682  ;;  %v1872_v39 = vmul.f32 %v10681_v12, %v1870_v57  ;;  %10684 = vrcp.f32 %v1909_v11  ;;  %vm1877_vm2 = vweird.f32 %v10681_v12  ;;  %v1921_v2 = vand.u32 2147483648, %v1909_v11 }
 0x3a5   :  { %v1891_v47 = vmul.f32 %v10683_v63, %v1889_v3  ;;  %10686 = vtanh.f32 %v1865_v13  ;;  %vm1896_vm3 = vweird.f32 %v10683_v63  ;;  %vm1878_vm6 = vmor %vm1876_vm4, %vm1877_vm2  ;;  %vm1915_vm11 = vweird.f32 %v1909_v11  ;;  %v10202_v3 = vld [vmem:[#allocation5 + $0xcc] sm:$0xf0] }
 0x3a6   :  { %v1873_v14 = vsub.f32 1.0, %v1872_v39  ;;  %vm1897_vm7 = vmor %vm1895_vm5, %vm1896_vm3  ;;  %v1919_v40 = vand.u32 2147483647, %v1909_v11  ;;  %v1922_v42 = vor.u32 1.1754944e-38, %v1921_v2  ;;  %v8361_v57 = vor.u32 %v10205_v61, %v8358_v43  ;;  %v8342_v39 = vld [vmem:[#allocation5 + $0xd8] sm:$0xf0] }
 0x3a7   :  { %v1892_v19 = vsub.f32 1.0, %v1891_v47  ;;  %v8333_v5 = vor.u32 %v10202_v3, %v8332_v62  ;;  %v8284_v2 = vld [vmem:[#allocation5 + $0x60] sm:$0xf]  ;;  %v8297_v61 = vor.u32 %v10189_v55, %v8294_v60  ;;  %v2182_v55 = vunpack.c.l.bf16 %v11324_v16 }
 0x3a8   :  { %v1874_v15 = vmul.f32 %v10681_v12, %v1873_v14  ;;  %vm1920_vm13 = vcmp.eq.f32.partialorder %v1919_v40, 8.507059e+37  ;;  %2485 = vmatpush.bf16.msrb.mxu3 %v8361_v57  ;;  %v8316_v14 = vld [vmem:[#allocation5 + $0xa0] sm:$0xf]  ;;  %v10190_v40 = vld [vmem:[#allocation5 + $0x6c] sm:$0xf0] }
 0x3a9   :  { %v1893_v20 = vmul.f32 %v10683_v63, %v1892_v19  ;;  %v10198_v19 = vld [vmem:[#allocation5 + $0xac] sm:$0xf0]  ;;  %v8268_v43 = vld [vmem:[#allocation5 + $0x40] sm:$0xf] }
 0x3aa   :  { %v10685_v23 = vpop.eup %10684  ;;  %v1875_v48 = vadd.f32 %v10681_v12, %v1874_v15  ;;  %v8317_v29 = vor.u32 %v10198_v19, %v8316_v14  ;;  %v8318_v15 = vld [vmem:[#allocation5 + $0xb0] sm:$0xf0]  ;;  %v10186_v57 = vld [vmem:[#allocation5 + $0x4c] sm:$0xf0]  ;;  %v2183_v14 = vunpack.c.h.bf16 %v11324_v16 }
 0x3ab   :  { %v1894_v25 = vadd.f32 %v10683_v63, %v1893_v20  ;;  %v1911_v26 = vmul.f32 %v10685_v23, %v1909_v11  ;;  %v10687_v30 = vpop.eup %10686  ;;  %vm1916_vm10 = vweird.f32 %v10685_v23  ;;  %v10203_v11 = vld [vmem:[#allocation5 + $0xd4] sm:$0xf0]  ;;  %v8321_v21 = vor.u32 %v10196_v0, %v8318_v15  ;;  %v8254_v15 = vld [vmem:[#allocation5 + $0x30] sm:$0xf0] }
 0x3ac   :  { %v1879_v27 = vsel %vm1878_vm6, %v10681_v12, %v1875_v48  ;;  %vm1917_vm12 = vmor %vm1915_vm11, %vm1916_vm10  ;;  %v8337_v12 = vor.u32 %v10200_v4, %v8334_v7  ;;  %v8341_v13 = vor.u32 %v10203_v11, %v8340_v10  ;;  %v10199_v20 = vld [vmem:[#allocation5 + $0xb4] sm:$0xf0]  ;;  %v10197_v48 = vld [vmem:[#allocation5 + $0xac] sm:$0xf]  ;;  %v8269_v4 = vor.u32 %v10186_v57, %v8268_v43 }
 0x3ad   :  { %v1884_v31 = vsel %vm1881_vm8, %v1883_v24, %v1879_v27  ;;  %v1898_v38 = vsel %vm1897_vm7, %v10683_v63, %v1894_v25  ;;  %v1912_v33 = vsub.f32 1.0, %v1911_v26  ;;  %v10201_v63 = vld [vmem:[#allocation5 + $0xcc] sm:$0xf]  ;;  %v8326_v24 = vld [vmem:[#allocation5 + $0xb8] sm:$0xf0] }
 0x3ae   :  { %v1903_v28 = vsel %vm1900_vm9, %v1902_v18, %v1898_v38  ;;  %v1926_v34 = vmul.f32 %v10687_v30, %v1884_v31  ;;  %v8345_v47 = vor.u32 %v10201_v63, %v8342_v39  ;;  %2460 = vmatpush.bf16.msrb.mxu1 %v8337_v12  ;;  %2473 = vmatpush.bf16.msrb.mxu2 %v8341_v13  ;;  %v8300_v26 = vld [vmem:[#allocation5 + $0x80] sm:$0xf]  ;;  %v10194_v18 = vld [vmem:[#allocation5 + $0x8c] sm:$0xf0]  ;;  %v10192_v27 = vld [vmem:[#allocation5 + $0x84] sm:$0xf] }
 0x3af   :  { %v1925_v35 = vmul.f32 %v1903_v28, %v11376_v46  ;;  %v1913_v36 = vmul.f32 %v10685_v23, %v1912_v33  ;;  %v8348_v46 = vld [vmem:[#allocation5 + $0xe0] sm:$0xf]  ;;  %v8329_v25 = vor.u32 %v10197_v48, %v8326_v24  ;;  %v8301_v30 = vor.u32 %v10194_v18, %v8300_v26  ;;  %v8302_v31 = vld [vmem:[#allocation5 + $0x90] sm:$0xf0]  ;;  %v8308_v38 = vld [vmem:[#allocation5 + $0x88] sm:$0xf] }
 0x3b0   :  { %v8349_v54 = vor.u32 %v10206_v9, %v8348_v46  ;;  %2486 = vmatpush.bf16.msrb.mxu3 %v8345_v47  ;;  %v10195_v33 = vld [vmem:[#allocation5 + $0x94] sm:$0xf0]  ;;  %v8305_v28 = vor.u32 %v10192_v27, %v8302_v31  ;;  %v8276_v10 = vld [vmem:[#allocation5 + $0x48] sm:$0xf]  ;;  %v10185_v12 = vld [vmem:[#allocation5 + $0x4c] sm:$0xf] }
 0x3b1   :  { %v11384_v1 = vadd.f32 %v1926_v34, %v1925_v35  ;;  %v1914_v37 = vadd.f32 %v10685_v23, %v1913_v36  ;;  %v8309_v34 = vor.u32 %v10195_v33, %v8308_v38  ;;  %v10193_v35 = vld [vmem:[#allocation5 + $0x8c] sm:$0xf]  ;;  %v8310_v36 = vld [vmem:[#allocation5 + $0x98] sm:$0xf0]  ;;  %v10191_v46 = vld [vmem:[#allocation5 + $0x74] sm:$0xf0] }
 0x3b2   :  { %2446 = vmatpush.bf16.msrb.mxu0 %v8349_v54  ;;  %2461 = vmatpush.bf16.msrb.mxu1 %v8321_v21  ;;  %v10187_v11 = vld [vmem:[#allocation5 + $0x54] sm:$0xf0]  ;;  %v8278_v63 = vld [vmem:[#allocation5 + $0x58] sm:$0xf0]  ;;  %v8252_v39 = vld [vmem:[#allocation5 + $0x20] sm:$0xf] }
 0x3b3   :  { %10688 = vtanh.f32 %v11384_v1  ;;  %v1918_v41 = vsel %vm1917_vm12, %v10685_v23, %v1914_v37  ;;  %v8325_v23 = vor.u32 %v10199_v20, %v8324_v17  ;;  %v8313_v37 = vor.u32 %v10193_v35, %v8310_v36  ;;  %v10182_v47 = vld [vmem:[#allocation5 + $0x2c] sm:$0xf0]  ;;  %v8260_v17 = vld [vmem:[#allocation5 + $0x28] sm:$0xf]  ;;  %v10183_v48 = vld [vmem:[#allocation5 + $0x34] sm:$0xf0] }
 0x3b4   :  { %v1923_v45 = vsel %vm1920_vm13, %v1922_v42, %v1918_v41  ;;  %2487 = vmatpush.bf16.msrb.mxu3 %v8329_v25  ;;  %v10188_v41 = vld [vmem:[#allocation5 + $0x64] sm:$0xf]  ;;  %v2180_v42 = vunpack.c.l.bf16 %v11318_v49  ;;  %v8277_v13 = vor.u32 %v10187_v11, %v8276_v10  ;;  %v8281_v19 = vor.u32 %v10185_v12, %v8278_v63  ;;  %v10181_v24 = vld [vmem:[#allocation5 + $0x2c] sm:$0xf]  ;;  %v8262_v25 = vld [vmem:[#allocation5 + $0x38] sm:$0xf0] }
 0x3b5   :  { %2474 = vmatpush.bf16.msrb.mxu2 %v8325_v23  ;;  %v8253_v0 = vor.u32 %v10182_v47, %v8252_v39  ;;  %v8265_v31 = vor.u32 %v10181_v24, %v8262_v25  ;;  %v8236_v38 = vld [vmem:[#allocation5] sm:$0xf]  ;;  %v10178_v33 = vld [vmem:[#allocation5 + $0xc] sm:$0xf0]  ;;  %v8238_v35 = vld [vmem:[#allocation5 + $0x10] sm:$0xf0] }
 0x3b6   :  { %2447 = vmatpush.bf16.msrb.mxu0 %v8333_v5  ;;  %2462 = vmatpush.bf16.msrb.mxu1 %v8305_v28  ;;  %v8270_v5 = vld [vmem:[#allocation5 + $0x50] sm:$0xf0]  ;;  %v10176_v28 = vld [vmem:[#allocation5 + $0x4] sm:$0xf]  ;;  %v8244_v36 = vld [vmem:[#allocation5 + $0x8] sm:$0xf] }
 0x3b8   :  { %2488 = vmatpush.bf16.msrb.mxu3 %v8313_v37  ;;  %v10179_v37 = vld [vmem:[#allocation5 + $0x14] sm:$0xf0] }
 0x3b9   :  { %v10689_v44 = vpop.eup %10688  ;;  %2475 = vmatpush.bf16.msrb.mxu2 %v8309_v34  ;;  %v8237_v34 = vor.u32 %v10178_v33, %v8236_v38 }
 0x3ba   :  { %v1929_v51 = vmul.f32 %v10689_v44, %v1923_v45  ;;  %2448 = vmatpush.bf16.msrb.mxu0 %v8317_v29  ;;  %v2181_v44 = vunpack.c.h.bf16 %v11318_v49  ;;  %v8285_v45 = vor.u32 %v10190_v40, %v8284_v2  ;;  %v10184_v49 = vld [vmem:[#allocation5 + $0x44] sm:$0xf]  ;;  %v8241_v40 = vor.u32 %v10176_v28, %v8238_v35  ;;  %v10238_v28 = vld [vmem:[#allocation5 + $0xec] sm:$0xf0] }
 0x3bb   :  { %v8273_v7 = vor.u32 %v10184_v49, %v8270_v5  ;;  %v10180_v29 = vld [vmem:[#allocation5 + $0x24] sm:$0xf] }
 0x3bc   :  { %v1930_v52 = vpack.c.bf16 %v1929_v51, %v1929_v51  ;;  %v8286_v51 = vld [vmem:[#allocation5 + $0x70] sm:$0xf0]  ;;  %2489 = vmatpush.bf16.msrb.mxu3 %v8297_v61  ;;  %v8257_v23 = vor.u32 %v10180_v29, %v8254_v15 }
 0x3bd   :  { %v8289_v54 = vor.u32 %v10188_v41, %v8286_v51  ;;  %v10177_v41 = vld [vmem:[#allocation5 + $0xc] sm:$0xf] }
 0x3be   :  { %1932 = vst [vmem:[#allocation2 + $0x10] sm:$0xf] %v1930_v52  ;;  %2133 = vmatmul.bf16.vlgmr.msra.gmra.mxu0 %v1930_v52  ;;  %2146 = vmatmul.bf16.vlgmr.msra.gmra.mxu1 %v1930_v52 }
 0x3bf   :  { %2159 = vmatmul.bf16.vlgmr.msra.gmra.mxu2 %v1930_v52  ;;  %2172 = vmatmul.bf16.vlgmr.msra.gmra.mxu3 %v1930_v52  ;;  %v8292_v52 = vld [vmem:[#allocation5 + $0x68] sm:$0xf] }
 0x3c0   :  { %2449 = vmatpush.bf16.msrb.mxu0 %v8301_v30  ;;  %v8293_v32 = vor.u32 %v10191_v46, %v8292_v52  ;;  %2463 = vmatpush.bf16.msrb.mxu1 %v8289_v54  ;;  %v8261_v30 = vor.u32 %v10183_v48, %v8260_v17 }
 0x3c1   :  { %2490 = vmatpush.bf16.msrb.mxu3 %v8281_v19 }
 0x3c2   :  { %2476 = vmatpush.bf16.msrb.mxu2 %v8293_v32 }
 0x3c4   :  { %2450 = vmatpush.bf16.msrb.mxu0 %v8285_v45  ;;  %2464 = vmatpush.bf16.msrb.mxu1 %v8273_v7  ;;  %v8245_v45 = vor.u32 %v10179_v37, %v8244_v36  ;;  %v8481_v36 = vld [vmem:[#allocation5 + $0xf0] sm:$0xf0]  ;;  %v8487_v37 = vld [vmem:[#allocation5 + $0xe8] sm:$0xf] }
 0x3c5   :  { %2491 = vmatpush.bf16.msrb.mxu3 %v8265_v31 }
 0x3c6   :  { %2477 = vmatpush.bf16.msrb.mxu2 %v8277_v13 }
 0x3c8   :  { %2451 = vmatpush.bf16.msrb.mxu0 %v8269_v4  ;;  %2465 = vmatpush.bf16.msrb.mxu1 %v8257_v23 }
 0x3ca   :  { %2478 = vmatpush.bf16.msrb.mxu2 %v8261_v30 }
 0x3cc   :  { %2452 = vmatpush.bf16.msrb.mxu0 %v8253_v0  ;;  %2466 = vmatpush.bf16.msrb.mxu1 %v8241_v40 }
 0x3ce   :  { %2479 = vmatpush.bf16.msrb.mxu2 %v8245_v45 }
 0x3d0   :  { %2453 = vmatpush.bf16.msrb.mxu0 %v8237_v34  ;;  %v10236_v34 = vld [vmem:[#allocation5 + $0xe4] sm:$0xf] }
 0x3d1   :  { %v8484_v40 = vor.u32 %v10236_v34, %v8481_v36  ;;  %v8399_v34 = vld [vmem:[#allocation5 + $0x40] sm:$0xf]  ;;  %v10216_v36 = vld [vmem:[#allocation5 + $0x44] sm:$0xf] }
 0x3d3   :  { %2780 = vmatpush.bf16.msra.mxu1 %v8484_v40  ;;  %v8407_v40 = vld [vmem:[#allocation5 + $0x48] sm:$0xf] }
 0x43b   :  { %v2134_v9 = vpop.f32.mrf.mxu0  ;;  %v2147_v53 = vpop.f32.mrf.mxu1 }
 0x43c   :  { %v2184_v56 = vadd.f32 %v2180_v42, %v2134_v9  ;;  %v2185_v8 = vadd.f32 %v2181_v44, %v2147_v53  ;;  %v8246_v42 = vld [vmem:[#allocation5 + $0x18] sm:$0xf0] }
 0x43d   :  { %v8249_v46 = vor.u32 %v10177_v41, %v8246_v42  ;;  %v10237_v42 = vld [vmem:[#allocation5 + $0xec] sm:$0xf] }
 0x43e   :  { %v8231_v62 = vmul.f32 -1.442695, %v2184_v56  ;;  %v8232_v3 = vmul.f32 -1.442695, %v2185_v8 }
 0x43f   :  { %2492 = vmatpush.bf16.msrb.mxu3 %v8249_v46  ;;  %v10232_v46 = vld [vmem:[#allocation5 + $0xc4] sm:$0xf] }
 0x440   :  { %10690 = vpow2.f32 %v8231_v62 }
 0x441   :  { %10692 = vpow2.f32 %v8232_v3 }
 0x442   :  { %v2160_v20 = vpop.f32.mrf.mxu2  ;;  %v2173_v21 = vpop.f32.mrf.mxu3 }
 0x443   :  { %v2187_v26 = vadd.f32 %v2183_v14, %v2173_v21  ;;  %v2136_v18 = vpop.f32.mrf.mxu0  ;;  %v2149_v27 = vpop.f32.mrf.mxu1  ;;  %v2186_v8 = vadd.f32 %v2182_v55, %v2160_v20 }
 0x445   :  { %v8233_v2 = vmul.f32 -1.442695, %v2187_v26 }
 0x446   :  { %v10691_v44 = vpop.eup %10690 }
 0x447   :  { %v10693_v51 = vpop.eup %10692  ;;  %v2191_v52 = vadd.f32 1.0, %v10691_v44  ;;  %10694 = vpow2.f32 %v8233_v2  ;;  %v10239_v2 = vld [vmem:[#allocation5 + $0xf4] sm:$0xf0]  ;;  %v8489_v44 = vld [vmem:[#allocation5 + $0xf8] sm:$0xf0] }
 0x448   :  { %v2210_v9 = vadd.f32 1.0, %v10693_v51  ;;  %v8488_v41 = vor.u32 %v10239_v2, %v8487_v37  ;;  %v8492_v45 = vor.u32 %v10237_v42, %v8489_v44  ;;  %v8463_v51 = vld [vmem:[#allocation5 + $0xc0] sm:$0xf]  ;;  %v8401_v2 = vld [vmem:[#allocation5 + $0x50] sm:$0xf0] }
 0x449   :  { %10696 = vrcp.f32 %v2191_v52  ;;  %v2203_v3 = vand.u32 2147483648, %v2191_v52  ;;  %v2201_v7 = vand.u32 2147483647, %v2191_v52  ;;  %vm2197_vm0 = vweird.f32 %v2191_v52 }
 0x44a   :  { %10698 = vrcp.f32 %v2210_v9  ;;  %v2162_v53 = vpop.f32.mrf.mxu2  ;;  %v2175_v54 = vpop.f32.mrf.mxu3  ;;  %v2222_v4 = vand.u32 2147483648, %v2210_v9  ;;  %v2220_v11 = vand.u32 2147483647, %v2210_v9  ;;  %vm2216_vm1 = vweird.f32 %v2210_v9  ;;  %2793 = vmatpush.bf16.msra.mxu2 %v8488_v41  ;;  %2806 = vmatpush.bf16.msra.mxu3 %v8492_v45  ;;  %v10219_v41 = vld [vmem:[#allocation5 + $0x54] sm:$0xf0] }
 0x44b   :  { %v2204_v13 = vor.u32 1.1754944e-38, %v2203_v3  ;;  %vm2202_vm4 = vcmp.eq.f32.partialorder %v2201_v7, 8.507059e+37  ;;  %v8465_v53 = vld [vmem:[#allocation5 + $0xd0] sm:$0xf0]  ;;  %v8471_v54 = vld [vmem:[#allocation5 + $0xc8] sm:$0xf]  ;;  %v8404_v42 = vor.u32 %v10216_v36, %v8401_v2  ;;  %v8408_v44 = vor.u32 %v10219_v41, %v8407_v40 }
 0x44c   :  { %v2223_v47 = vor.u32 1.1754944e-38, %v2222_v4  ;;  %vm2221_vm5 = vcmp.eq.f32.partialorder %v2220_v11, 8.507059e+37  ;;  %v8468_v55 = vor.u32 %v10232_v46, %v8465_v53  ;;  %v8449_v3 = vld [vmem:[#allocation5 + $0xb0] sm:$0xf0]  ;;  %v8455_v4 = vld [vmem:[#allocation5 + $0xa8] sm:$0xf] }
 0x44d   :  { %v10695_v32 = vpop.eup %10694  ;;  %v10229_v11 = vld [vmem:[#allocation5 + $0xac] sm:$0xf]  ;;  %v8383_v46 = vld [vmem:[#allocation5 + $0x20] sm:$0xf]  ;;  %v10212_v53 = vld [vmem:[#allocation5 + $0x24] sm:$0xf] }
 0x44e   :  { %v2230_v60 = vadd.f32 1.0, %v10695_v32  ;;  %v10235_v32 = vld [vmem:[#allocation5 + $0xd4] sm:$0xf0]  ;;  %2781 = vmatpush.bf16.msra.mxu1 %v8468_v55  ;;  %v10217_v45 = vld [vmem:[#allocation5 + $0x4c] sm:$0xf] }
 0x44f   :  { %v10697_v56 = vpop.eup %10696  ;;  %v8391_v55 = vld [vmem:[#allocation5 + $0x28] sm:$0xf]  ;;  %v10269_v41 = vld [vmem:[#allocation7 + $0xcc] sm:$0xf] }
 0x450   :  { %v10699_v61 = vpop.eup %10698  ;;  %v2193_v43 = vmul.f32 %v10697_v56, %v2191_v52  ;;  %10700 = vrcp.f32 %v2230_v60  ;;  %vm2198_vm14 = vweird.f32 %v10697_v56  ;;  %v2242_v25 = vand.u32 2147483648, %v2230_v60  ;;  %v10234_v52 = vld [vmem:[#allocation5 + $0xcc] sm:$0xf0]  ;;  %v8618_v36 = vld [vmem:[#allocation7 + $0xc8] sm:$0xf] }
 0x451   :  { %v2212_v57 = vmul.f32 %v10699_v61, %v2210_v9  ;;  %10702 = vtanh.f32 %v2186_v8  ;;  %vm2217_vm15 = vweird.f32 %v10699_v61  ;;  %vm2199_vm2 = vmor %vm2197_vm0, %vm2198_vm14  ;;  %vm2236_vm7 = vweird.f32 %v2230_v60  ;;  %v8473_v8 = vld [vmem:[#allocation5 + $0xd8] sm:$0xf0] }
 0x452   :  { %v2194_v49 = vsub.f32 1.0, %v2193_v43  ;;  %vm2218_vm3 = vmor %vm2216_vm1, %vm2217_vm15  ;;  %v2240_v26 = vand.u32 2147483647, %v2230_v60  ;;  %v2243_v27 = vor.u32 1.1754944e-38, %v2242_v25  ;;  %v8464_v9 = vor.u32 %v10234_v52, %v8463_v51  ;;  %v8447_v43 = vld [vmem:[#allocation5 + $0xa0] sm:$0xf] }
 0x453   :  { %v2213_v62 = vsub.f32 1.0, %v2212_v57  ;;  %v10230_v57 = vld [vmem:[#allocation5 + $0xac] sm:$0xf0]  ;;  %v10220_v25 = vld [vmem:[#allocation5 + $0x64] sm:$0xf] }
 0x454   :  { %v2195_v5 = vmul.f32 %v10697_v56, %v2194_v49  ;;  %vm2241_vm9 = vcmp.eq.f32.partialorder %v2240_v26, 8.507059e+37  ;;  %v10228_v49 = vld [vmem:[#allocation5 + $0xa4] sm:$0xf]  ;;  %v8409_v51 = vld [vmem:[#allocation5 + $0x58] sm:$0xf0] }
 0x455   :  { %v2214_v10 = vmul.f32 %v10699_v61, %v2213_v62  ;;  %v8448_v62 = vor.u32 %v10230_v57, %v8447_v43  ;;  %v8452_v7 = vor.u32 %v10228_v49, %v8449_v3  ;;  %v8412_v52 = vor.u32 %v10217_v45, %v8409_v51  ;;  %v8393_v43 = vld [vmem:[#allocation5 + $0x38] sm:$0xf0]  ;;  %v8367_v49 = vld [vmem:[#allocation5] sm:$0xf]  ;;  %v10208_v3 = vld [vmem:[#allocation5 + $0x4] sm:$0xf] }
 0x456   :  { %v10701_v12 = vpop.eup %10700  ;;  %v2196_v16 = vadd.f32 %v10697_v56, %v2195_v5  ;;  %v10231_v5 = vld [vmem:[#allocation5 + $0xb4] sm:$0xf0]  ;;  %v2504_v45 = vunpack.c.h.bf16 %v11336_v58 }
 0x457   :  { %v2215_v63 = vadd.f32 %v10699_v61, %v2214_v10  ;;  %v2232_v39 = vmul.f32 %v10701_v12, %v2230_v60  ;;  %v10703_v19 = vpop.eup %10702  ;;  %vm2237_vm6 = vweird.f32 %v10701_v12  ;;  %v8472_v60 = vor.u32 %v10235_v32, %v8471_v54  ;;  %2782 = vmatpush.bf16.msra.mxu1 %v8452_v7  ;;  %v8385_v32 = vld [vmem:[#allocation5 + $0x30] sm:$0xf0]  ;;  %v8375_v7 = vld [vmem:[#allocation5 + $0x8] sm:$0xf] }
 0x458   :  { %v2200_v14 = vsel %vm2199_vm2, %v10697_v56, %v2196_v16  ;;  %vm2238_vm8 = vmor %vm2236_vm7, %vm2237_vm6  ;;  %v10233_v56 = vld [vmem:[#allocation5 + $0xcc] sm:$0xf]  ;;  %v8456_v10 = vor.u32 %v10231_v5, %v8455_v4  ;;  %v8369_v5 = vld [vmem:[#allocation5 + $0x10] sm:$0xf0] }
 0x459   :  { %v2205_v0 = vsel %vm2202_vm4, %v2204_v13, %v2200_v14  ;;  %v2219_v29 = vsel %vm2218_vm3, %v10699_v61, %v2215_v63  ;;  %v2233_v15 = vsub.f32 1.0, %v2232_v39  ;;  %v8476_v61 = vor.u32 %v10233_v56, %v8473_v8  ;;  %2794 = vmatpush.bf16.msra.mxu2 %v8472_v60  ;;  %v8431_v13 = vld [vmem:[#allocation5 + $0x80] sm:$0xf]  ;;  %v10226_v63 = vld [vmem:[#allocation5 + $0x8c] sm:$0xf0] }
 0x45a   :  { %v2224_v17 = vsel %vm2221_vm5, %v2223_v47, %v2219_v29  ;;  %v2247_v20 = vmul.f32 %v10703_v19, %v2205_v0  ;;  %v10224_v39 = vld [vmem:[#allocation5 + $0x84] sm:$0xf]  ;;  %v8432_v47 = vor.u32 %v10226_v63, %v8431_v13  ;;  %v8433_v14 = vld [vmem:[#allocation5 + $0x90] sm:$0xf0]  ;;  %v8439_v19 = vld [vmem:[#allocation5 + $0x88] sm:$0xf]  ;;  %v8388_v56 = vor.u32 %v10212_v53, %v8385_v32 }
 0x45b   :  { %v2246_v21 = vmul.f32 %v2224_v17, %v11384_v1  ;;  %v2234_v23 = vmul.f32 %v10701_v12, %v2233_v15  ;;  %v8479_v1 = vld [vmem:[#allocation5 + $0xe0] sm:$0xf]  ;;  %2807 = vmatpush.bf16.msra.mxu3 %v8476_v61  ;;  %v10227_v0 = vld [vmem:[#allocation5 + $0x94] sm:$0xf0]  ;;  %v8436_v29 = vor.u32 %v10224_v39, %v8433_v14  ;;  %v10225_v17 = vld [vmem:[#allocation5 + $0x8c] sm:$0xf] }
 0x45c   :  { %v8480_v35 = vor.u32 %v10238_v28, %v8479_v1  ;;  %v8440_v15 = vor.u32 %v10227_v0, %v8439_v19  ;;  %v8425_v1 = vld [vmem:[#allocation5 + $0x78] sm:$0xf0]  ;;  %v10215_v60 = vld [vmem:[#allocation5 + $0x34] sm:$0xf0]  ;;  %v10213_v61 = vld [vmem:[#allocation5 + $0x2c] sm:$0xf] }
 0x45d   :  { %v11392_v48 = vadd.f32 %v2247_v20, %v2246_v21  ;;  %v2235_v24 = vadd.f32 %v10701_v12, %v2234_v23  ;;  %2795 = vmatpush.bf16.msra.mxu2 %v8456_v10  ;;  %v8441_v20 = vld [vmem:[#allocation5 + $0x98] sm:$0xf0]  ;;  %2783 = vmatpush.bf16.msra.mxu1 %v8436_v29  ;;  %v8415_v23 = vld [vmem:[#allocation5 + $0x60] sm:$0xf]  ;;  %v8392_v8 = vor.u32 %v10215_v60, %v8391_v55  ;;  %v10211_v10 = vld [vmem:[#allocation5 + $0x14] sm:$0xf0] }
 0x45e   :  { %2767 = vmatpush.bf16.msra.mxu0 %v8480_v35  ;;  %v8444_v21 = vor.u32 %v10225_v17, %v8441_v20  ;;  %v10218_v35 = vld [vmem:[#allocation5 + $0x4c] sm:$0xf0]  ;;  %v8396_v57 = vor.u32 %v10213_v61, %v8393_v43  ;;  %v8376_v13 = vor.u32 %v10211_v10, %v8375_v7  ;;  %v10209_v63 = vld [vmem:[#allocation5 + $0xc] sm:$0xf]  ;;  %v8377_v39 = vld [vmem:[#allocation5 + $0x18] sm:$0xf0] }
 0x45f   :  { %10704 = vtanh.f32 %v11392_v48  ;;  %v2239_v18 = vsel %vm2238_vm8, %v10701_v12, %v2235_v24  ;;  %v8457_v12 = vld [vmem:[#allocation5 + $0xb8] sm:$0xf0]  ;;  %v10222_v24 = vld [vmem:[#allocation5 + $0x6c] sm:$0xf0]  ;;  %v8400_v37 = vor.u32 %v10218_v35, %v8399_v34  ;;  %v8380_v0 = vor.u32 %v10209_v63, %v8377_v39  ;;  %v8628_v17 = vld [vmem:[#allocation7 + $0xf0] sm:$0xf0] }
 0x460   :  { %v2244_v31 = vsel %vm2241_vm9, %v2243_v27, %v2239_v18  ;;  %v8460_v16 = vor.u32 %v10229_v11, %v8457_v12  ;;  %v8416_v26 = vor.u32 %v10222_v24, %v8415_v23  ;;  %v8417_v18 = vld [vmem:[#allocation5 + $0x70] sm:$0xf0]  ;;  %v8423_v27 = vld [vmem:[#allocation5 + $0x68] sm:$0xf]  ;;  %v2501_v11 = vunpack.c.l.bf16 %v11326_v22  ;;  %v10274_v29 = vld [vmem:[#allocation7 + $0xec] sm:$0xf0] }
 0x461   :  { %2796 = vmatpush.bf16.msra.mxu2 %v8440_v15  ;;  %v2502_v12 = vunpack.c.h.bf16 %v11326_v22  ;;  %v10272_v15 = vld [vmem:[#allocation7 + $0xe4] sm:$0xf]  ;;  %v8634_v24 = vld [vmem:[#allocation7 + $0xe8] sm:$0xf]  ;;  %v10273_v22 = vld [vmem:[#allocation7 + $0xec] sm:$0xf] }
 0x462   :  { %2768 = vmatpush.bf16.msra.mxu0 %v8464_v9  ;;  %2808 = vmatpush.bf16.msra.mxu3 %v8460_v16  ;;  %v10214_v9 = vld [vmem:[#allocation5 + $0x2c] sm:$0xf0]  ;;  %v8372_v16 = vor.u32 %v10208_v3, %v8369_v5  ;;  %v10268_v34 = vld [vmem:[#allocation7 + $0xc4] sm:$0xf]  ;;  %v8612_v35 = vld [vmem:[#allocation7 + $0xd0] sm:$0xf0] }
 0x463   :  { %v8384_v54 = vor.u32 %v10214_v9, %v8383_v46  ;;  %v8615_v2 = vor.u32 %v10268_v34, %v8612_v35  ;;  %v10264_v46 = vld [vmem:[#allocation7 + $0xa4] sm:$0xf]  ;;  %v8596_v9 = vld [vmem:[#allocation7 + $0xb0] sm:$0xf0]  ;;  %v8602_v55 = vld [vmem:[#allocation7 + $0xa8] sm:$0xf] }
 0x464   :  { %v10267_v60 = vld [vmem:[#allocation7 + $0xb4] sm:$0xf0]  ;;  %v8578_v3 = vld [vmem:[#allocation7 + $0x80] sm:$0xf]  ;;  %v10260_v7 = vld [vmem:[#allocation7 + $0x84] sm:$0xf] }
 0x465   :  { %v10705_v30 = vpop.eup %10704  ;;  %v8580_v10 = vld [vmem:[#allocation7 + $0x90] sm:$0xf0]  ;;  %v10257_v34 = vld [vmem:[#allocation7 + $0x6c] sm:$0xf]  ;;  %v8572_v35 = vld [vmem:[#allocation7 + $0x78] sm:$0xf0] }
 0x466   :  { %v2250_v38 = vmul.f32 %v10705_v30, %v2244_v31  ;;  %2769 = vmatpush.bf16.msra.mxu0 %v8448_v62  ;;  %2809 = vmatpush.bf16.msra.mxu3 %v8444_v21  ;;  %v10223_v30 = vld [vmem:[#allocation5 + $0x74] sm:$0xf0]  ;;  %v8420_v31 = vor.u32 %v10220_v25, %v8417_v18  ;;  %v10210_v62 = vld [vmem:[#allocation5 + $0xc] sm:$0xf0] }
 0x467   :  { %v8368_v4 = vor.u32 %v10210_v62, %v8367_v49  ;;  %v10275_v25 = vld [vmem:[#allocation7 + $0xf4] sm:$0xf0]  ;;  %v8603_v49 = vor.u32 %v10267_v60, %v8602_v55  ;;  %v8604_v62 = vld [vmem:[#allocation7 + $0xb8] sm:$0xf0] }
 0x468   :  { %v2251_v33 = vpack.c.bf16 %v2250_v38, %v2250_v38  ;;  %v8424_v38 = vor.u32 %v10223_v30, %v8423_v27  ;;  %2784 = vmatpush.bf16.msra.mxu1 %v8420_v31  ;;  %v8635_v18 = vor.u32 %v10275_v25, %v8634_v24  ;;  %v8636_v27 = vld [vmem:[#allocation7 + $0xf8] sm:$0xf0]  ;;  %v8610_v30 = vld [vmem:[#allocation7 + $0xc0] sm:$0xf]  ;;  %v10270_v31 = vld [vmem:[#allocation7 + $0xcc] sm:$0xf0]  ;;  %v2503_v25 = vunpack.c.l.bf16 %v11336_v58 }
 0x469   :  { %v10258_v24 = vld [vmem:[#allocation7 + $0x6c] sm:$0xf0]  ;;  %v8575_v58 = vor.u32 %v10257_v34, %v8572_v35 }
 0x46a   :  { %2253 = vst [vmem:[#allocation2 + $0x14] sm:$0xf] %v2251_v33  ;;  %2454 = vmatmul.bf16.vlgmr.msrb.gmra.mxu0 %v2251_v33  ;;  %2467 = vmatmul.bf16.vlgmr.msrb.gmra.mxu1 %v2251_v33 }
 0x46b   :  { %2480 = vmatmul.bf16.vlgmr.msrb.gmra.mxu2 %v2251_v33  ;;  %2493 = vmatmul.bf16.vlgmr.msrb.gmra.mxu3 %v2251_v33  ;;  %v10221_v33 = vld [vmem:[#allocation5 + $0x6c] sm:$0xf] }
 0x46c   :  { %2770 = vmatpush.bf16.msra.mxu0 %v8432_v47  ;;  %v8428_v28 = vor.u32 %v10221_v33, %v8425_v1  ;;  %2797 = vmatpush.bf16.msra.mxu2 %v8424_v38  ;;  %v8626_v47 = vld [vmem:[#allocation7 + $0xe0] sm:$0xf]  ;;  %v8639_v1 = vor.u32 %v10273_v22, %v8636_v27 }
 0x46d   :  { %2785 = vmatpush.bf16.msra.mxu1 %v8404_v42  ;;  %v8627_v23 = vor.u32 %v10274_v29, %v8626_v47  ;;  %v8620_v42 = vld [vmem:[#allocation7 + $0xd8] sm:$0xf0] }
 0x46e   :  { %2810 = vmatpush.bf16.msra.mxu3 %v8428_v28  ;;  %v8611_v28 = vor.u32 %v10270_v31, %v8610_v30  ;;  %v8623_v51 = vor.u32 %v10269_v41, %v8620_v42  ;;  %v8588_v47 = vld [vmem:[#allocation7 + $0x98] sm:$0xf0]  ;;  %v8570_v31 = vld [vmem:[#allocation7 + $0x68] sm:$0xf] }
 0x470   :  { %2771 = vmatpush.bf16.msra.mxu0 %v8416_v26  ;;  %2798 = vmatpush.bf16.msra.mxu2 %v8408_v44  ;;  %v8631_v26 = vor.u32 %v10272_v15, %v8628_v17  ;;  %v8594_v44 = vld [vmem:[#allocation7 + $0xa0] sm:$0xf] }
 0x471   :  { %2786 = vmatpush.bf16.msra.mxu1 %v8388_v56  ;;  %v10265_v56 = vld [vmem:[#allocation7 + $0xac] sm:$0xf] }
 0x472   :  { %2811 = vmatpush.bf16.msra.mxu3 %v8412_v52  ;;  %v10266_v52 = vld [vmem:[#allocation7 + $0xac] sm:$0xf0]  ;;  %v8607_v5 = vor.u32 %v10265_v56, %v8604_v62  ;;  %v8532_v62 = vld [vmem:[#allocation7 + $0x30] sm:$0xf0] }
 0x473   :  { %v8595_v32 = vor.u32 %v10266_v52, %v8594_v44  ;;  %v8548_v44 = vld [vmem:[#allocation7 + $0x50] sm:$0xf0]  ;;  %v10250_v56 = vld [vmem:[#allocation7 + $0x2c] sm:$0xf0] }
 0x474   :  { %2772 = vmatpush.bf16.msra.mxu0 %v8400_v37  ;;  %2799 = vmatpush.bf16.msra.mxu2 %v8392_v8  ;;  %v10271_v37 = vld [vmem:[#allocation7 + $0xd4] sm:$0xf0] }
 0x475   :  { %2787 = vmatpush.bf16.msra.mxu1 %v8372_v16  ;;  %v8619_v40 = vor.u32 %v10271_v37, %v8618_v36  ;;  %v10263_v16 = vld [vmem:[#allocation7 + $0x94] sm:$0xf0]  ;;  %v8546_v36 = vld [vmem:[#allocation7 + $0x40] sm:$0xf] }
 0x476   :  { %2812 = vmatpush.bf16.msra.mxu3 %v8396_v57  ;;  %v8599_v57 = vor.u32 %v10264_v46, %v8596_v9  ;;  %v10253_v9 = vld [vmem:[#allocation7 + $0x4c] sm:$0xf] }
 0x478   :  { %2773 = vmatpush.bf16.msra.mxu0 %v8384_v54  ;;  %2800 = vmatpush.bf16.msra.mxu2 %v8376_v13  ;;  %v10261_v13 = vld [vmem:[#allocation7 + $0x8c] sm:$0xf] }
 0x479   :  { %3159 = vmatpush.bf16.msrb.mxu1 %v8631_v26  ;;  %v8591_v17 = vor.u32 %v10261_v13, %v8588_v47  ;;  %v10256_v26 = vld [vmem:[#allocation7 + $0x64] sm:$0xf]  ;;  %v10249_v13 = vld [vmem:[#allocation7 + $0x2c] sm:$0xf] }
 0x47a   :  { %2813 = vmatpush.bf16.msra.mxu3 %v8380_v0  ;;  %v8583_v0 = vor.u32 %v10260_v7, %v8580_v10  ;;  %v8538_v10 = vld [vmem:[#allocation7 + $0x28] sm:$0xf] }
 0x47c   :  { %2774 = vmatpush.bf16.msra.mxu0 %v8368_v4  ;;  %3188 = vmatpush.bf16.msrb.mxu2 %v8635_v18  ;;  %v10262_v4 = vld [vmem:[#allocation7 + $0x8c] sm:$0xf0]  ;;  %v8564_v18 = vld [vmem:[#allocation7 + $0x70] sm:$0xf0] }
 0x47d   :  { %3160 = vmatpush.bf16.msrb.mxu1 %v8615_v2  ;;  %v8579_v39 = vor.u32 %v10262_v4, %v8578_v3  ;;  %v8567_v30 = vor.u32 %v10256_v26, %v8564_v18  ;;  %v10254_v2 = vld [vmem:[#allocation7 + $0x4c] sm:$0xf0] }
 0x47e   :  { %3217 = vmatpush.bf16.msrb.mxu3 %v8639_v1  ;;  %v8547_v42 = vor.u32 %v10254_v2, %v8546_v36 }
 0x480   :  { %3130 = vmatpush.bf16.msrb.mxu0 %v8627_v23  ;;  %3189 = vmatpush.bf16.msrb.mxu2 %v8619_v40  ;;  %v10252_v40 = vld [vmem:[#allocation7 + $0x44] sm:$0xf] }
 0x481   :  { %3161 = vmatpush.bf16.msrb.mxu1 %v8599_v57 }
 0x482   :  { %3218 = vmatpush.bf16.msrb.mxu3 %v8623_v51  ;;  %v10255_v51 = vld [vmem:[#allocation7 + $0x54] sm:$0xf0] }
 0x484   :  { %3131 = vmatpush.bf16.msrb.mxu0 %v8611_v28  ;;  %3190 = vmatpush.bf16.msrb.mxu2 %v8603_v49  ;;  %v10248_v49 = vld [vmem:[#allocation7 + $0x24] sm:$0xf] }
 0x485   :  { %3162 = vmatpush.bf16.msrb.mxu1 %v8583_v0  ;;  %v8514_v0 = vld [vmem:[#allocation7] sm:$0xf] }
 0x486   :  { %3219 = vmatpush.bf16.msrb.mxu3 %v8607_v5 }
 0x488   :  { %3132 = vmatpush.bf16.msrb.mxu0 %v8595_v32 }
 0x489   :  { %3163 = vmatpush.bf16.msrb.mxu1 %v8567_v30 }
 0x48a   :  { %3220 = vmatpush.bf16.msrb.mxu3 %v8591_v17  ;;  %v10244_v17 = vld [vmem:[#allocation7 + $0x4] sm:$0xf] }
 0x48c   :  { %3133 = vmatpush.bf16.msrb.mxu0 %v8579_v39 }
 0x48e   :  { %3221 = vmatpush.bf16.msrb.mxu3 %v8575_v58 }
 0x4e7   :  { %v2455_v14 = vpop.f32.mrf.mxu0  ;;  %v2468_v19 = vpop.f32.mrf.mxu1 }
 0x4e8   :  { %v2505_v20 = vadd.f32 %v2501_v11, %v2455_v14  ;;  %v2506_v21 = vadd.f32 %v2502_v12, %v2468_v19  ;;  %v8586_v11 = vld [vmem:[#allocation7 + $0x88] sm:$0xf] }
 0x4e9   :  { %v8587_v29 = vor.u32 %v10263_v16, %v8586_v11  ;;  %v10251_v16 = vld [vmem:[#allocation7 + $0x34] sm:$0xf0] }
 0x4ea   :  { %v8362_v38 = vmul.f32 -1.442695, %v2505_v20  ;;  %v8363_v33 = vmul.f32 -1.442695, %v2506_v21  ;;  %v8562_v20 = vld [vmem:[#allocation7 + $0x60] sm:$0xf]  ;;  %v8539_v47 = vor.u32 %v10251_v16, %v8538_v10 }
 0x4eb   :  { %3191 = vmatpush.bf16.msrb.mxu2 %v8587_v29  ;;  %v8563_v22 = vor.u32 %v10258_v24, %v8562_v20  ;;  %v10246_v29 = vld [vmem:[#allocation7 + $0xc] sm:$0xf0]  ;;  %v8516_v24 = vld [vmem:[#allocation7 + $0x10] sm:$0xf0] }
 0x4ec   :  { %10706 = vpow2.f32 %v8362_v38  ;;  %v10259_v38 = vld [vmem:[#allocation7 + $0x74] sm:$0xf0]  ;;  %v10306_v10 = vld [vmem:[#allocation9 + $0xec] sm:$0xf0] }
 0x4ed   :  { %10708 = vpow2.f32 %v8363_v33  ;;  %v8571_v28 = vor.u32 %v10259_v38, %v8570_v31  ;;  %3134 = vmatpush.bf16.msrb.mxu0 %v8563_v22  ;;  %v10247_v22 = vld [vmem:[#allocation7 + $0x14] sm:$0xf0]  ;;  %v10245_v38 = vld [vmem:[#allocation7 + $0xc] sm:$0xf] }
 0x4ee   :  { %v2481_v53 = vpop.f32.mrf.mxu2  ;;  %v2494_v54 = vpop.f32.mrf.mxu3 }
 0x4ef   :  { %v2508_v8 = vadd.f32 %v2504_v45, %v2494_v54  ;;  %v2457_v61 = vpop.f32.mrf.mxu0  ;;  %v2470_v43 = vpop.f32.mrf.mxu1  ;;  %v2507_v1 = vadd.f32 %v2503_v25, %v2481_v53  ;;  %3192 = vmatpush.bf16.msrb.mxu2 %v8571_v28  ;;  %v8554_v45 = vld [vmem:[#allocation7 + $0x48] sm:$0xf]  ;;  %v8556_v53 = vld [vmem:[#allocation7 + $0x58] sm:$0xf0]  ;;  %v8530_v54 = vld [vmem:[#allocation7 + $0x20] sm:$0xf] }
 0x4f0   :  { %v8551_v61 = vor.u32 %v10252_v40, %v8548_v44  ;;  %v8555_v43 = vor.u32 %v10255_v51, %v8554_v45  ;;  %v8559_v57 = vor.u32 %v10253_v9, %v8556_v53  ;;  %v8531_v7 = vor.u32 %v10250_v56, %v8530_v54  ;;  %v8522_v25 = vld [vmem:[#allocation7 + $0x8] sm:$0xf] }
 0x4f1   :  { %v8364_v12 = vmul.f32 -1.442695, %v2508_v8  ;;  %3135 = vmatpush.bf16.msrb.mxu0 %v8547_v42  ;;  %v8523_v28 = vor.u32 %v10247_v22, %v8522_v25  ;;  %v2823_v56 = vunpack.c.h.bf16 %v11338_v6  ;;  %v10302_v25 = vld [vmem:[#allocation9 + $0xcc] sm:$0xf0]  ;;  %v10300_v22 = vld [vmem:[#allocation9 + $0xc4] sm:$0xf] }
 0x4f2   :  { %v10707_v63 = vpop.eup %10706  ;;  %3164 = vmatpush.bf16.msrb.mxu1 %v8551_v61  ;;  %3222 = vmatpush.bf16.msrb.mxu3 %v8559_v57 }
 0x4f3   :  { %v10709_v14 = vpop.eup %10708  ;;  %v11398_v19 = vadd.f32 1.0, %v10707_v63  ;;  %10710 = vpow2.f32 %v8364_v12  ;;  %3193 = vmatpush.bf16.msrb.mxu2 %v8555_v43  ;;  %v8535_v12 = vor.u32 %v10248_v49, %v8532_v62  ;;  %v8540_v63 = vld [vmem:[#allocation7 + $0x38] sm:$0xf0] }
 0x4f4   :  { %v11400_v15 = vadd.f32 1.0, %v10709_v14  ;;  %v8543_v14 = vor.u32 %v10249_v13, %v8540_v63 }
 0x4f5   :  { %10712 = vrcp.f32 %v11398_v19  ;;  %v2522_v27 = vand.u32 2147483647, %v11398_v19  ;;  %v2524_v60 = vand.u32 2147483648, %v11398_v19  ;;  %vm2518_vm14 = vweird.f32 %v11398_v19  ;;  %3136 = vmatpush.bf16.msrb.mxu0 %v8531_v7  ;;  %v8754_v7 = vld [vmem:[#allocation9 + $0xe0] sm:$0xf] }
 0x4f6   :  { %10714 = vrcp.f32 %v11400_v15  ;;  %v2483_v21 = vpop.f32.mrf.mxu2  ;;  %v2496_v23 = vpop.f32.mrf.mxu3  ;;  %v2543_v55 = vand.u32 2147483648, %v11400_v15  ;;  %v2541_v5 = vand.u32 2147483647, %v11400_v15  ;;  %vm2537_vm13 = vweird.f32 %v11400_v15  ;;  %3165 = vmatpush.bf16.msrb.mxu1 %v8535_v12  ;;  %3223 = vmatpush.bf16.msrb.mxu3 %v8543_v14 }
 0x4f7   :  { %vm11419_vm10 = vcmp.eq.f32.partialorder %v2522_v27, 8.507059e+37  ;;  %v8515_v23 = vor.u32 %v10246_v29, %v8514_v0  ;;  %v2525_v27 = vor.u32 1.1754944e-38, %v2524_v60  ;;  %3194 = vmatpush.bf16.msrb.mxu2 %v8539_v47  ;;  %v2822_v60 = vunpack.c.l.bf16 %v11338_v6  ;;  %v8756_v6 = vld [vmem:[#allocation9 + $0xf0] sm:$0xf0]  ;;  %v8764_v47 = vld [vmem:[#allocation9 + $0xf8] sm:$0xf0] }
 0x4f8   :  { %v2544_v18 = vor.u32 1.1754944e-38, %v2543_v55  ;;  %vm2542_vm1 = vcmp.eq.f32.partialorder %v2541_v5, 8.507059e+37  ;;  %v10241_v55 = vld [vmem:[#allocation2 + $0x8] sm:$0xff]  ;;  %v8755_v63 = vor.u32 %v10306_v10, %v8754_v7 }
 0x4f9   :  { %v10711_v33 = vpop.eup %10710  ;;  %3137 = vmatpush.bf16.msrb.mxu0 %v8515_v23  ;;  %v8762_v29 = vld [vmem:[#allocation9 + $0xe8] sm:$0xf] }
 0x4fa   :  { %v11406_v37 = vadd.f32 1.0, %v10711_v33  ;;  %v8524_v33 = vld [vmem:[#allocation7 + $0x18] sm:$0xf0] }
 0x4fb   :  { %v11408_v41 = vpop.eup %10712  ;;  %v8527_v58 = vor.u32 %v10245_v38, %v8524_v33  ;;  %3195 = vmatpush.bf16.msrb.mxu2 %v8523_v28  ;;  %v10303_v28 = vld [vmem:[#allocation9 + $0xd4] sm:$0xf0] }
 0x4fc   :  { %v11410_v52 = vpop.eup %10714  ;;  %v2514_v46 = vmul.f32 %v11408_v41, %v11398_v19  ;;  %10716 = vrcp.f32 %v11406_v37  ;;  %vm2519_vm11 = vweird.f32 %v11408_v41  ;;  %v2563_v45 = vand.u32 2147483648, %v11406_v37 }
 0x4fd   :  { %v2533_v32 = vmul.f32 %v11410_v52, %v11400_v15  ;;  %10718 = vtanh.f32 %v2507_v1  ;;  %vm2538_vm12 = vweird.f32 %v11410_v52  ;;  %vm2520_vm15 = vmor %vm2518_vm14, %vm2519_vm11  ;;  %v8519_v1 = vor.u32 %v10244_v17, %v8516_v24  ;;  %3224 = vmatpush.bf16.msrb.mxu3 %v8527_v58  ;;  %v10307_v17 = vld [vmem:[#allocation9 + $0xf4] sm:$0xf0]  ;;  %v8738_v24 = vld [vmem:[#allocation9 + $0xc0] sm:$0xf] }
 0x4fe   :  { %v2515_v8 = vsub.f32 1.0, %v2514_v46  ;;  %vm2539_vm0 = vmor %vm2537_vm13, %vm2538_vm12  ;;  %vm2557_vm3 = vweird.f32 %v11406_v37  ;;  %v2561_v51 = vand.u32 2147483647, %v11406_v37  ;;  %v2564_v46 = vor.u32 1.1754944e-38, %v2563_v45  ;;  %v10296_v45 = vld [vmem:[#allocation9 + $0xa4] sm:$0xf] }
 0x4ff   :  { %v2534_v3 = vsub.f32 1.0, %v2533_v32  ;;  %3166 = vmatpush.bf16.msrb.mxu1 %v8519_v1  ;;  %v10240_v32 = vld [vmem:[#allocation2] sm:$0xff]  ;;  %v8746_v1 = vld [vmem:[#allocation9 + $0xc8] sm:$0xf]  ;;  %v2824_v58 = vunpack.c.l.bf16 %v11348_v50 }
 0x500   :  { %v2516_v11 = vmul.f32 %v11408_v41, %v2515_v8  ;;  %vm2562_vm5 = vcmp.eq.f32.partialorder %v2561_v51, 8.507059e+37  ;;  %v8747_v51 = vor.u32 %v10303_v28, %v8746_v1  ;;  %v8674_v1 = vld [vmem:[#allocation9 + $0x40] sm:$0xf] }
 0x501   :  { %v2535_v39 = vmul.f32 %v11410_v52, %v2534_v3  ;;  %v2825_v3 = vunpack.c.h.bf16 %v11348_v50  ;;  %v8732_v50 = vld [vmem:[#allocation9 + $0xb8] sm:$0xf0] }
 0x502   :  { %v10717_v20 = vpop.eup %10716  ;;  %v2517_v21 = vadd.f32 %v11408_v41, %v2516_v11  ;;  %v10304_v11 = vld [vmem:[#allocation9 + $0xe4] sm:$0xf] }
 0x503   :  { %v10719_v26 = vpop.eup %10718  ;;  %v2536_v30 = vadd.f32 %v11410_v52, %v2535_v39  ;;  %v2553_v31 = vmul.f32 %v10717_v20, %v11406_v37  ;;  %vm2558_vm2 = vweird.f32 %v10717_v20  ;;  %v10242_v37 = vld [vmem:[#allocation2 + $0x10] sm:$0xff]  ;;  %v8759_v14 = vor.u32 %v10304_v11, %v8756_v6  ;;  %v10299_v11 = vld [vmem:[#allocation9 + $0xb4] sm:$0xf0]  ;;  %v10288_v6 = vld [vmem:[#allocation9 + $0x64] sm:$0xf] }
 0x504   :  { %v2521_v19 = vsel %vm2520_vm15, %v11408_v41, %v2517_v21  ;;  %vm2559_vm4 = vmor %vm2557_vm3, %vm2558_vm2  ;;  %v10305_v39 = vld [vmem:[#allocation9 + $0xec] sm:$0xf]  ;;  %v8763_v21 = vor.u32 %v10307_v17, %v8762_v29 }
 0x505   :  { %v2526_v34 = vsel %vm11419_vm10, %v2525_v27, %v2521_v19  ;;  %v2540_v35 = vsel %vm2539_vm0, %v11410_v52, %v2536_v30  ;;  %v2554_v36 = vsub.f32 1.0, %v2553_v31  ;;  %v8767_v0 = vor.u32 %v10305_v39, %v8764_v47  ;;  %v8740_v30 = vld [vmem:[#allocation9 + $0xd0] sm:$0xf0]  ;;  %v10301_v31 = vld [vmem:[#allocation9 + $0xcc] sm:$0xf] }
 0x506   :  { %v2545_v2 = vsel %vm2542_vm1, %v2544_v18, %v2540_v35  ;;  %v2568_v40 = vmul.f32 %v10719_v26, %v2526_v34  ;;  %v8739_v27 = vor.u32 %v10302_v25, %v8738_v24  ;;  %v8743_v33 = vor.u32 %v10300_v22, %v8740_v30  ;;  %v8748_v19 = vld [vmem:[#allocation9 + $0xd8] sm:$0xf0] }
 0x507   :  { %v2567_v15 = vmul.f32 %v2545_v2, %v11392_v48  ;;  %v2555_v42 = vmul.f32 %v10717_v20, %v2554_v36  ;;  %v8722_v36 = vld [vmem:[#allocation9 + $0xa0] sm:$0xf]  ;;  %v8668_v47 = vld [vmem:[#allocation9 + $0x38] sm:$0xf0] }
 0x509   :  { %v11444_v41 = vadd.f32 %v2568_v40, %v2567_v15  ;;  %v2556_v44 = vadd.f32 %v10717_v20, %v2555_v42  ;;  %v8751_v42 = vor.u32 %v10301_v31, %v8748_v19  ;;  %v8700_v31 = vld [vmem:[#allocation9 + $0x78] sm:$0xf0]  ;;  %v8714_v19 = vld [vmem:[#allocation9 + $0x88] sm:$0xf] }
 0x50b   :  { %10720 = vtanh.f32 %v11444_v41  ;;  %v2560_v52 = vsel %vm2559_vm4, %v10717_v20, %v2556_v44  ;;  %v10298_v44 = vld [vmem:[#allocation9 + $0xac] sm:$0xf0] }
 0x50c   :  { %v2565_v9 = vsel %vm2562_vm5, %v2564_v46, %v2560_v52  ;;  %v8724_v46 = vld [vmem:[#allocation9 + $0xb0] sm:$0xf0] }
 0x511   :  { %v10721_v48 = vpop.eup %10720 }
 0x512   :  { %v2571_v53 = vmul.f32 %v10721_v48, %v2565_v9  ;;  %v10297_v48 = vld [vmem:[#allocation9 + $0xac] sm:$0xf] }
 0x514   :  { %v2572_v54 = vpack.c.bf16 %v2571_v53, %v2571_v53 }
 0x516   :  { %2574 = vst [vmem:[#allocation2 + $0x18] sm:$0xf] %v2572_v54  ;;  %2775 = vmatmul.bf16.vlgmr.msra.gmra.mxu0 %v2572_v54  ;;  %2788 = vmatmul.bf16.vlgmr.msra.gmra.mxu1 %v2572_v54 }
 0x517   :  { %2801 = vmatmul.bf16.vlgmr.msra.gmra.mxu2 %v2572_v54  ;;  %2814 = vmatmul.bf16.vlgmr.msra.gmra.mxu3 %v2572_v54  ;;  %v8723_v54 = vor.u32 %v10298_v44, %v8722_v36  ;;  %v8676_v44 = vld [vmem:[#allocation9 + $0x50] sm:$0xf0] }
 0x518   :  { %3470 = vmatpush.bf16.msra.mxu0 %v8755_v63  ;;  %3483 = vmatpush.bf16.msra.mxu1 %v8759_v14 }
 0x519   :  { %3509 = vmatpush.bf16.msra.mxu3 %v8767_v0  ;;  %3496 = vmatpush.bf16.msra.mxu2 %v8763_v21  ;;  %v10289_v21 = vld [vmem:[#allocation9 + $0x6c] sm:$0xf] }
 0x51a   :  { %v8703_v36 = vor.u32 %v10289_v21, %v8700_v31  ;;  %v8666_v31 = vld [vmem:[#allocation9 + $0x28] sm:$0xf] }
 0x51c   :  { %3471 = vmatpush.bf16.msra.mxu0 %v8739_v27  ;;  %3484 = vmatpush.bf16.msra.mxu1 %v8743_v33 }
 0x51d   :  { %3510 = vmatpush.bf16.msra.mxu3 %v8751_v42  ;;  %3497 = vmatpush.bf16.msra.mxu2 %v8747_v51  ;;  %v10284_v42 = vld [vmem:[#allocation9 + $0x44] sm:$0xf] }
 0x520   :  { %3472 = vmatpush.bf16.msra.mxu0 %v8723_v54 }
 0x526   :  { %3138 = vmatmul.bf16.vlgmr.msrb.gmra.mxu0 %v10240_v32  ;;  %3167 = vmatmul.bf16.vlgmr.msrb.gmra.mxu1 %v10240_v32 }
 0x527   :  { %3196 = vmatmul.bf16.vlgmr.msrb.gmra.mxu2 %v10240_v32  ;;  %3225 = vmatmul.bf16.vlgmr.msrb.gmra.mxu3 %v10240_v32  ;;  %v8727_v32 = vor.u32 %v10296_v45, %v8724_v46  ;;  %v8684_v46 = vld [vmem:[#allocation9 + $0x58] sm:$0xf0] }
 0x529   :  { %3485 = vmatpush.bf16.msra.mxu1 %v8727_v32  ;;  %v8650_v32 = vld [vmem:[#allocation9 + $0x8] sm:$0xf] }
 0x536   :  { %3143 = vmatmul.bf16.gmra.mxu0 %v10241_v55  ;;  %3172 = vmatmul.bf16.gmra.mxu1 %v10241_v55 }
 0x537   :  { %3201 = vmatmul.bf16.gmra.mxu2 %v10241_v55  ;;  %3230 = vmatmul.bf16.gmra.mxu3 %v10241_v55  ;;  %v8706_v55 = vld [vmem:[#allocation9 + $0x80] sm:$0xf] }
 0x546   :  { %3148 = vmatmul.bf16.gmra.mxu0 %v10242_v37  ;;  %3177 = vmatmul.bf16.gmra.mxu1 %v10242_v37 }
 0x547   :  { %3206 = vmatmul.bf16.gmra.mxu2 %v10242_v37  ;;  %3235 = vmatmul.bf16.gmra.mxu3 %v10242_v37  ;;  %v10294_v37 = vld [vmem:[#allocation9 + $0x8c] sm:$0xf0] }
 0x593   :  { %v2776_v8 = vpop.f32.mrf.mxu0  ;;  %v2789_v61 = vpop.f32.mrf.mxu1 }
 0x594   :  { %v2826_v43 = vadd.f32 %v2822_v60, %v2776_v8  ;;  %v2827_v57 = vadd.f32 %v2823_v56, %v2789_v61  ;;  %v8735_v8 = vor.u32 %v10297_v48, %v8732_v50  ;;  %v10292_v61 = vld [vmem:[#allocation9 + $0x84] sm:$0xf]  ;;  %v8698_v48 = vld [vmem:[#allocation9 + $0x68] sm:$0xf] }
 0x596   :  { %v8493_v49 = vmul.f32 -1.442695, %v2826_v43  ;;  %v8494_v62 = vmul.f32 -1.442695, %v2827_v57  ;;  %v8708_v43 = vld [vmem:[#allocation9 + $0x90] sm:$0xf0]  ;;  %3511 = vmatpush.bf16.msra.mxu3 %v8735_v8  ;;  %v8679_v8 = vor.u32 %v10284_v42, %v8676_v44 }
 0x597   :  { %v10277_v44 = vld [vmem:[#allocation9 + $0xc] sm:$0xf] }
 0x598   :  { %10722 = vpow2.f32 %v8493_v49  ;;  %v8707_v49 = vor.u32 %v10294_v37, %v8706_v55  ;;  %v10291_v55 = vld [vmem:[#allocation9 + $0x74] sm:$0xf0]  ;;  %v8658_v37 = vld [vmem:[#allocation9 + $0x20] sm:$0xf] }
 0x599   :  { %10724 = vpow2.f32 %v8494_v62  ;;  %v8711_v62 = vor.u32 %v10292_v61, %v8708_v43  ;;  %v8699_v61 = vor.u32 %v10291_v55, %v8698_v48  ;;  %v10282_v43 = vld [vmem:[#allocation9 + $0x2c] sm:$0xf0] }
 0x59a   :  { %v2802_v4 = vpop.f32.mrf.mxu2  ;;  %v2815_v5 = vpop.f32.mrf.mxu3  ;;  %3473 = vmatpush.bf16.msra.mxu0 %v8707_v49  ;;  %v10280_v49 = vld [vmem:[#allocation9 + $0x24] sm:$0xf] }
 0x59b   :  { %v2829_v12 = vadd.f32 %v2825_v3, %v2815_v5  ;;  %v2778_v16 = vpop.f32.mrf.mxu0  ;;  %v2791_v13 = vpop.f32.mrf.mxu1  ;;  %v2828_v53 = vadd.f32 %v2824_v58, %v2802_v4  ;;  %v10293_v3 = vld [vmem:[#allocation9 + $0x8c] sm:$0xf]  ;;  %v8716_v4 = vld [vmem:[#allocation9 + $0x98] sm:$0xf0]  ;;  %v8730_v5 = vld [vmem:[#allocation9 + $0xa8] sm:$0xf]  ;;  %3486 = vmatpush.bf16.msra.mxu1 %v8711_v62 }
 0x59c   :  { %v10290_v16 = vld [vmem:[#allocation9 + $0x6c] sm:$0xf0]  ;;  %v8719_v29 = vor.u32 %v10293_v3, %v8716_v4  ;;  %v8731_v17 = vor.u32 %v10299_v11, %v8730_v5  ;;  %v8660_v62 = vld [vmem:[#allocation9 + $0x30] sm:$0xf0]  ;;  %v8682_v11 = vld [vmem:[#allocation9 + $0x48] sm:$0xf] }
 0x59d   :  { %v8495_v20 = vmul.f32 -1.442695, %v2829_v12  ;;  %v8690_v12 = vld [vmem:[#allocation9 + $0x60] sm:$0xf] }
 0x59e   :  { %v10723_v23 = vpop.eup %10722  ;;  %v8691_v30 = vor.u32 %v10290_v16, %v8690_v12  ;;  %3498 = vmatpush.bf16.msra.mxu2 %v8731_v17  ;;  %3512 = vmatpush.bf16.msra.mxu3 %v8719_v29  ;;  %v10287_v12 = vld [vmem:[#allocation9 + $0x54] sm:$0xf0] }
 0x59f   :  { %v10725_v26 = vpop.eup %10724  ;;  %v11453_v18 = vadd.f32 1.0, %v10723_v23  ;;  %10726 = vpow2.f32 %v8495_v20  ;;  %v8692_v20 = vld [vmem:[#allocation9 + $0x70] sm:$0xf0] }
 0x5a0   :  { %v11455_v38 = vadd.f32 1.0, %v10725_v26  ;;  %3474 = vmatpush.bf16.msra.mxu0 %v8691_v30  ;;  %v8683_v30 = vor.u32 %v10287_v12, %v8682_v11 }
 0x5a1   :  { %10728 = vrcp.f32 %v11453_v18  ;;  %v2843_v2 = vand.u32 2147483647, %v11453_v18  ;;  %v2845_v52 = vand.u32 2147483648, %v11453_v18  ;;  %vm2839_vm7 = vweird.f32 %v11453_v18 }
 0x5a2   :  { %10730 = vrcp.f32 %v11455_v38  ;;  %v2804_v34 = vpop.f32.mrf.mxu2  ;;  %v2817_v35 = vpop.f32.mrf.mxu3  ;;  %v2864_v60 = vand.u32 2147483648, %v11455_v38  ;;  %v2862_v63 = vand.u32 2147483647, %v11455_v38  ;;  %vm2858_vm11 = vweird.f32 %v11455_v38  ;;  %3513 = vmatpush.bf16.msra.mxu3 %v8703_v36 }
 0x5a3   :  { %v11461_v40 = vpop.f32.mrf.mxu0  ;;  %v11463_v15 = vpop.f32.mrf.mxu1  ;;  %vm11481_vm8 = vcmp.eq.f32.partialorder %v2843_v2, 8.507059e+37  ;;  %v2846_v22 = vor.u32 1.1754944e-38, %v2845_v52  ;;  %v11507_v34 = vld [vmem:[%s12404_s6] sm:$0xf]  ;;  %v8695_v35 = vor.u32 %v10288_v6, %v8692_v20  ;;  %v10286_v2 = vld [vmem:[#allocation9 + $0x4c] sm:$0xf0] }
 0x5a4   :  { %v2865_v24 = vor.u32 1.1754944e-38, %v2864_v60  ;;  %v10285_v52 = vld [vmem:[#allocation9 + $0x4c] sm:$0xf]  ;;  %vm11520_vm13 = vcmp.eq.f32.partialorder %v2862_v63, 8.507059e+37  ;;  %v8675_v50 = vor.u32 %v10286_v2, %v8674_v1  ;;  %v11540_v63 = vperm.slane %v11507_v34, 1 }
 0x5a5   :  { %v10727_v9 = vpop.eup %10726  ;;  %3487 = vmatpush.bf16.msra.mxu1 %v8695_v35  ;;  %v10278_v1 = vld [vmem:[#allocation9 + $0xc] sm:$0xf0] }
 0x5a6   :  { %v11467_v56 = vadd.f32 1.0, %v10727_v9  ;;  %3475 = vmatpush.bf16.msra.mxu0 %v8675_v50 }
 0x5a7   :  { %v11469_v57 = vpop.eup %10728 }
 0x5a8   :  { %v11471_v7 = vpop.eup %10730  ;;  %v2835_v10 = vmul.f32 %v11469_v57, %v11453_v18  ;;  %vm2840_vm6 = vweird.f32 %v11469_v57  ;;  %10732 = vrcp.f32 %v11467_v56  ;;  %v10295_v18 = vld [vmem:[#allocation9 + $0x94] sm:$0xf0]  ;;  %v2884_v2 = vand.u32 2147483648, %v11467_v56 }
 0x5a9   :  { %v2854_v13 = vmul.f32 %v11471_v7, %v11455_v38  ;;  %10734 = vtanh.f32 %v2828_v53  ;;  %vm11493_vm9 = vmor %vm2839_vm7, %vm2840_vm6  ;;  %vm2859_vm10 = vweird.f32 %v11471_v7  ;;  %v8715_v58 = vor.u32 %v10295_v18, %v8714_v19  ;;  %3488 = vmatpush.bf16.msra.mxu1 %v8679_v8 }
 0x5aa   :  { %v2836_v39 = vsub.f32 1.0, %v2835_v10  ;;  %v11485_v14 = vpop.f32.mrf.mxu2  ;;  %v11487_v0 = vpop.f32.mrf.mxu3  ;;  %vm11515_vm12 = vmor %vm2858_vm11, %vm2859_vm10  ;;  %v8687_v10 = vor.u32 %v10285_v52, %v8684_v46  ;;  %vm2878_vm15 = vweird.f32 %v11467_v56  ;;  %v2882_v52 = vand.u32 2147483647, %v11467_v56 }
 0x5ab   :  { %v2855_v23 = vsub.f32 1.0, %v2854_v13  ;;  %v11497_v26 = vpop.f32.mrf.mxu0  ;;  %v11499_v27 = vpop.f32.mrf.mxu1  ;;  %3499 = vmatpush.bf16.msra.mxu2 %v8715_v58  ;;  %v11537_v13 = vperm.slane %v11507_v34, 0  ;;  %v8644_v58 = vld [vmem:[#allocation9 + $0x10] sm:$0xf0]  ;;  %v11564_v53 = vperm.slane %v11507_v34, 2 }
 0x5ac   :  { %v2837_v33 = vmul.f32 %v11469_v57, %v2836_v39  ;;  %3514 = vmatpush.bf16.msra.mxu3 %v8687_v10  ;;  %vm2883_vm1 = vcmp.eq.f32.partialorder %v2882_v52, 8.507059e+37 }
 0x5ad   :  { %v2856_v28 = vmul.f32 %v11471_v7, %v2855_v23  ;;  %v8659_v23 = vor.u32 %v10282_v43, %v8658_v37 }
 0x5ae   :  { %v11509_v45 = vpop.eup %10732  ;;  %v2838_v51 = vadd.f32 %v11469_v57, %v2837_v33  ;;  %v10283_v33 = vld [vmem:[#allocation9 + $0x34] sm:$0xf0] }
 0x5af   :  { %v10735_v9 = vpop.eup %10734  ;;  %v2857_v54 = vadd.f32 %v11471_v7, %v2856_v28  ;;  %v2874_v38 = vmul.f32 %v11509_v45, %v11467_v56  ;;  %3500 = vmatpush.bf16.msra.mxu2 %v8699_v61  ;;  %v10276_v28 = vld [vmem:[#allocation9 + $0x4] sm:$0xf]  ;;  %vm2879_vm14 = vweird.f32 %v11509_v45  ;;  %3476 = vmatpush.bf16.msra.mxu0 %v8659_v23  ;;  %v8667_v48 = vor.u32 %v10283_v33, %v8666_v31 }
 0x5b0   :  { %v2842_v60 = vsel %vm11493_vm9, %v11469_v57, %v2838_v51  ;;  %v8652_v51 = vld [vmem:[#allocation9 + $0x18] sm:$0xf0]  ;;  %v8647_v46 = vor.u32 %v10276_v28, %v8644_v58  ;;  %vm11559_vm0 = vmor %vm2878_vm15, %vm2879_vm14  ;;  %v3140_v28 = vadd.f32 %v11461_v40, %v11537_v13  ;;  %v10339_v40 = vld [vmem:[#allocation9 + $0xf4] sm:$0xf0] }
 0x5b1   :  { %v2847_v3 = vsel %vm11481_vm8, %v2846_v22, %v2842_v60  ;;  %v2861_v4 = vsel %vm11515_vm12, %v11471_v7, %v2857_v54  ;;  %v2875_v5 = vsub.f32 1.0, %v2874_v38  ;;  %v10281_v7 = vld [vmem:[#allocation9 + $0x2c] sm:$0xf]  ;;  %v11567_v54 = vperm.slane %v11507_v34, 3  ;;  %v10279_v38 = vld [vmem:[#allocation9 + $0x14] sm:$0xf0] }
 0x5b2   :  { %v2866_v57 = vsel %vm11520_vm13, %v2865_v24, %v2861_v4  ;;  %v2889_v16 = vmul.f32 %v10735_v9, %v2847_v3  ;;  %v11542_v6 = vpop.f32.mrf.mxu2  ;;  %v11544_v39 = vpop.f32.mrf.mxu3  ;;  %v8663_v24 = vor.u32 %v10280_v49, %v8660_v62  ;;  %v8671_v18 = vor.u32 %v10281_v7, %v8668_v47 }
 0x5b3   :  { %v2888_v29 = vmul.f32 %v2866_v57, %v11444_v41  ;;  %v2876_v17 = vmul.f32 %v11509_v45, %v2875_v5  ;;  %v3144_v20 = vpop.f32.mrf.mxu0  ;;  %v3173_v21 = vpop.f32.mrf.mxu1  ;;  %v8642_v41 = vld [vmem:[#allocation9] sm:$0xf]  ;;  %3501 = vmatpush.bf16.msra.mxu2 %v8683_v30  ;;  %v8655_v56 = vor.u32 %v10277_v44, %v8652_v51  ;;  %v2885_v60 = vor.u32 1.1754944e-38, %v2884_v2  ;;  %v10338_v44 = vld [vmem:[#allocation9 + $0xec] sm:$0xf0] }
 0x5b4   :  { %v3145_v25 = vadd.f32 %v3144_v20, %v11537_v13  ;;  %v3174_v22 = vadd.f32 %v3173_v21, %v11540_v63  ;;  %v8643_v42 = vor.u32 %v10278_v1, %v8642_v41  ;;  %3489 = vmatpush.bf16.msra.mxu1 %v8663_v24  ;;  %3515 = vmatpush.bf16.msra.mxu3 %v8671_v18  ;;  %v10336_v51 = vld [vmem:[#allocation9 + $0xe4] sm:$0xf] }
 0x5b5   :  { %v2890_v19 = vadd.f32 %v2889_v16, %v2888_v29  ;;  %v2877_v35 = vadd.f32 %v11509_v45, %v2876_v17  ;;  %v8651_v34 = vor.u32 %v10279_v38, %v8650_v32  ;;  %v8887_v38 = vld [vmem:[#allocation9 + $0xf0] sm:$0xf0] }
 0x5b6   :  { %v11552_v36 = vpack.c.bf16 %v3174_v22, %v3145_v25  ;;  %3477 = vmatpush.bf16.msra.mxu0 %v8643_v42  ;;  %v8885_v42 = vld [vmem:[#allocation9 + $0xe0] sm:$0xf] }
 0x5b7   :  { %10736 = vtanh.f32 %v2890_v19  ;;  %v2881_v50 = vsel %vm11559_vm0, %v11509_v45, %v2877_v35  ;;  %3502 = vmatpush.bf16.msra.mxu2 %v8667_v48  ;;  %v3169_v35 = vadd.f32 %v11463_v15, %v11540_v63  ;;  %v8886_v32 = vor.u32 %v10338_v44, %v8885_v42  ;;  %v10337_v15 = vld [vmem:[#allocation9 + $0xec] sm:$0xf]  ;;  %v8855_v44 = vld [vmem:[#allocation9 + $0xb0] sm:$0xf0] }
 0x5b8   :  { %3490 = vmatpush.bf16.msra.mxu1 %v8647_v46  ;;  %v2886_v3 = vsel %vm2883_vm1, %v2885_v60, %v2881_v50  ;;  %3516 = vmatpush.bf16.msra.mxu3 %v8655_v56  ;;  %v8893_v56 = vld [vmem:[#allocation9 + $0xe8] sm:$0xf]  ;;  %v8890_v50 = vor.u32 %v10336_v51, %v8887_v38 }
 0x5b9   :  { %v8861_v51 = vld [vmem:[#allocation9 + $0xa8] sm:$0xf] }
 0x5ba   :  { %v3202_v55 = vpop.f32.mrf.mxu2  ;;  %v3231_v37 = vpop.f32.mrf.mxu3  ;;  %3789 = vmatpush.bf16.msrb.mxu0 %v8886_v32 }
 0x5bb   :  { %v3203_v8 = vadd.f32 %v3202_v55, %v11564_v53  ;;  %v3232_v61 = vadd.f32 %v3231_v37, %v11567_v54  ;;  %v11574_v43 = vpop.f32.mrf.mxu0  ;;  %v11576_v49 = vpop.f32.mrf.mxu1  ;;  %3503 = vmatpush.bf16.msra.mxu2 %v8651_v34  ;;  %v8894_v55 = vor.u32 %v10339_v40, %v8893_v56  ;;  %v8895_v37 = vld [vmem:[#allocation9 + $0xf8] sm:$0xf0]  ;;  %v8869_v34 = vld [vmem:[#allocation9 + $0xc0] sm:$0xf]  ;;  %v10329_v56 = vld [vmem:[#allocation9 + $0xac] sm:$0xf] }
 0x5bc   :  { %3802 = vmatpush.bf16.msrb.mxu1 %v8890_v50  ;;  %v8863_v40 = vld [vmem:[#allocation9 + $0xb8] sm:$0xf0] }
 0x5bd   :  { %v10737_v62 = vpop.eup %10736  ;;  %v11578_v4 = vpack.c.bf16 %v3232_v61, %v3203_v8  ;;  %v8898_v8 = vor.u32 %v10337_v15, %v8895_v37  ;;  %v3246_v61 = vpack.c.bf16 %v3169_v35, %v3140_v28  ;;  %v8853_v28 = vld [vmem:[#allocation9 + $0xa0] sm:$0xf]  ;;  %v10330_v35 = vld [vmem:[#allocation9 + $0xac] sm:$0xf0] }
 0x5be   :  { %v2892_v45 = vmul.f32 %v10737_v62, %v2886_v3  ;;  %v10334_v62 = vld [vmem:[#allocation9 + $0xcc] sm:$0xf0]  ;;  %v10332_v3 = vld [vmem:[#allocation9 + $0xc4] sm:$0xf] }
 0x5bf   :  { %3815 = vmatpush.bf16.msrb.mxu2 %v8894_v55  ;;  %3828 = vmatpush.bf16.msrb.mxu3 %v8898_v8  ;;  %v8866_v55 = vor.u32 %v10329_v56, %v8863_v40  ;;  %v8837_v8 = vld [vmem:[#allocation9 + $0x80] sm:$0xf]  ;;  %v10318_v56 = vld [vmem:[#allocation9 + $0x4c] sm:$0xf0]  ;;  %v10316_v40 = vld [vmem:[#allocation9 + $0x44] sm:$0xf] }
 0x5c0   :  { %v2893_v5 = vpack.c.bf16 %v2892_v45, %v2892_v45  ;;  %v8870_v45 = vor.u32 %v10334_v62, %v8869_v34  ;;  %v10324_v34 = vld [vmem:[#allocation9 + $0x84] sm:$0xf]  ;;  %v8839_v62 = vld [vmem:[#allocation9 + $0x90] sm:$0xf0] }
 0x5c2   :  { %2895 = vst [vmem:[#allocation2 + $0x1c] sm:$0xf] %v2893_v5  ;;  %v11580_v10 = vpop.f32.mrf.mxu2  ;;  %v11582_v11 = vpop.f32.mrf.mxu3  ;;  %v8871_v5 = vld [vmem:[#allocation9 + $0xd0] sm:$0xf0]  ;;  %3790 = vmatpush.bf16.msrb.mxu0 %v8870_v45  ;;  %v8842_v45 = vor.u32 %v10324_v34, %v8839_v62  ;;  %v10319_v62 = vld [vmem:[#allocation9 + $0x54] sm:$0xf0] }
 0x5c3   :  { %v3149_v12 = vpop.f32.mrf.mxu0  ;;  %v3178_v57 = vpop.f32.mrf.mxu1 }
 0x5c4   :  { %v3150_v16 = vadd.f32 %v3149_v12, %v11537_v13  ;;  %v3179_v7 = vadd.f32 %v3178_v57, %v11540_v63  ;;  %v8877_v12 = vld [vmem:[#allocation9 + $0xc8] sm:$0xf]  ;;  %v10335_v57 = vld [vmem:[#allocation9 + $0xd4] sm:$0xf0] }
 0x5c6   :  { %v11586_v47 = vpack.c.bf16 %v3179_v7, %v3150_v16  ;;  %v8874_v16 = vor.u32 %v10332_v3, %v8871_v5  ;;  %v8878_v7 = vor.u32 %v10335_v57, %v8877_v12  ;;  %v8845_v5 = vld [vmem:[#allocation9 + $0x88] sm:$0xf]  ;;  %v10327_v12 = vld [vmem:[#allocation9 + $0x94] sm:$0xf0]  ;;  %v10325_v57 = vld [vmem:[#allocation9 + $0x8c] sm:$0xf] }
 0x5c8   :  { %3803 = vmatpush.bf16.msrb.mxu1 %v8874_v16  ;;  %3816 = vmatpush.bf16.msrb.mxu2 %v8878_v7  ;;  %v8846_v7 = vor.u32 %v10327_v12, %v8845_v5 }
 0x5c9   :  { %v10243_v29 = vld [vmem:[#allocation2 + $0x18] sm:$0xff] }
 0x5ca   :  { %v3207_v17 = vpop.f32.mrf.mxu2  ;;  %v3236_v20 = vpop.f32.mrf.mxu3  ;;  %3153 = vmatmul.bf16.gmra.mxu0 %v10243_v29  ;;  %3182 = vmatmul.bf16.gmra.mxu1 %v10243_v29 }
 0x5cb   :  { %v3208_v21 = vadd.f32 %v3207_v17, %v11564_v53  ;;  %v3237_v23 = vadd.f32 %v3236_v20, %v11567_v54  ;;  %3211 = vmatmul.bf16.gmra.mxu2 %v10243_v29  ;;  %3240 = vmatmul.bf16.gmra.mxu3 %v10243_v29  ;;  %v11596_v25 = vpop.f32.mrf.mxu0  ;;  %v11598_v22 = vpop.f32.mrf.mxu1  ;;  %v10333_v29 = vld [vmem:[#allocation9 + $0xcc] sm:$0xf]  ;;  %v8879_v17 = vld [vmem:[#allocation9 + $0xd8] sm:$0xf0]  ;;  %v3198_v20 = vadd.f32 %v11485_v14, %v11564_v53 }
 0x5cc   :  { %v8854_v14 = vor.u32 %v10330_v35, %v8853_v28  ;;  %v10320_v28 = vld [vmem:[#allocation9 + $0x64] sm:$0xf]  ;;  %v8823_v35 = vld [vmem:[#allocation9 + $0x70] sm:$0xf0] }
 0x5cd   :  { %v11590_v24 = vpack.c.bf16 %v3237_v23, %v3208_v21  ;;  %v3227_v21 = vadd.f32 %v11487_v0, %v11567_v54  ;;  %v8882_v23 = vor.u32 %v10333_v29, %v8879_v17  ;;  %v10331_v0 = vld [vmem:[#allocation9 + $0xb4] sm:$0xf0]  ;;  %v8847_v29 = vld [vmem:[#allocation9 + $0x98] sm:$0xf0]  ;;  %v8821_v17 = vld [vmem:[#allocation9 + $0x60] sm:$0xf] }
 0x5ce   :  { %v8862_v38 = vor.u32 %v10331_v0, %v8861_v51  ;;  %3791 = vmatpush.bf16.msrb.mxu0 %v8854_v14  ;;  %v10323_v51 = vld [vmem:[#allocation9 + $0x74] sm:$0xf0]  ;;  %v10321_v0 = vld [vmem:[#allocation9 + $0x6c] sm:$0xf] }
 0x5cf   :  { %3829 = vmatpush.bf16.msrb.mxu3 %v8882_v23  ;;  %v11628_v50 = vpack.c.bf16 %v3227_v21, %v3198_v20  ;;  %v10322_v20 = vld [vmem:[#allocation9 + $0x6c] sm:$0xf0] }
 0x5d0   :  { %3817 = vmatpush.bf16.msrb.mxu2 %v8862_v38  ;;  %v8805_v38 = vld [vmem:[#allocation9 + $0x40] sm:$0xf] }
 0x5d1   :  { %v3527_v16 = vunpack.c.h.bf16 %v11628_v50 }
 0x5d2   :  { %v11600_v30 = vpop.f32.mrf.mxu2  ;;  %v11602_v31 = vpop.f32.mrf.mxu3 }
 0x5d3   :  { %3830 = vmatpush.bf16.msrb.mxu3 %v8866_v55 }
 0x5d4   :  { %3818 = vmatpush.bf16.msrb.mxu2 %v8846_v7  ;;  %v10314_v7 = vld [vmem:[#allocation9 + $0x2c] sm:$0xf0] }
 0x5da   :  { %3478 = vmatmul.bf16.vlgmr.msra.gmra.mxu0 %v11127_v59  ;;  %3491 = vmatmul.bf16.vlgmr.msra.gmra.mxu1 %v11127_v59 }
 0x5db   :  { %3504 = vmatmul.bf16.vlgmr.msra.gmra.mxu2 %v11127_v59  ;;  %3517 = vmatmul.bf16.vlgmr.msra.gmra.mxu3 %v11127_v59 }
 0x647   :  { %v3154_v33 = vpop.f32.mrf.mxu0  ;;  %v3183_v19 = vpop.f32.mrf.mxu1 }
 0x648   :  { %v3155_v18 = vadd.f32 %v3154_v33, %v11537_v13  ;;  %v3184_v41 = vadd.f32 %v3183_v19, %v11540_v63 }
 0x64a   :  { %v11606_v1 = vpack.c.bf16 %v3184_v41, %v3155_v18  ;;  %v3524_v18 = vunpack.c.l.bf16 %v3246_v61  ;;  %v3525_v41 = vunpack.c.h.bf16 %v3246_v61  ;;  %v10326_v61 = vld [vmem:[#allocation9 + $0x8c] sm:$0xf0] }
 0x64b   :  { %v8838_v3 = vor.u32 %v10326_v61, %v8837_v8  ;;  %v8806_v61 = vor.u32 %v10318_v56, %v8805_v38  ;;  %v10308_v38 = vld [vmem:[#allocation9 + $0x4] sm:$0xf]  ;;  %v8775_v56 = vld [vmem:[#allocation9 + $0x10] sm:$0xf0] }
 0x64d   :  { %3792 = vmatpush.bf16.msrb.mxu0 %v8838_v3  ;;  %v10317_v3 = vld [vmem:[#allocation9 + $0x4c] sm:$0xf] }
 0x64e   :  { %v3212_v58 = vpop.f32.mrf.mxu2  ;;  %v3241_v2 = vpop.f32.mrf.mxu3 }
 0x64f   :  { %v3213_v52 = vadd.f32 %v3212_v58, %v11564_v53  ;;  %v3242_v46 = vadd.f32 %v3241_v2, %v11567_v54  ;;  %v11614_v48 = vpop.f32.mrf.mxu0  ;;  %v11616_v9 = vpop.f32.mrf.mxu1  ;;  %v10328_v58 = vld [vmem:[#allocation9 + $0xa4] sm:$0xf] }
 0x650   :  { %v8858_v32 = vor.u32 %v10328_v58, %v8855_v44  ;;  %v8829_v58 = vld [vmem:[#allocation9 + $0x68] sm:$0xf]  ;;  %v8826_v44 = vor.u32 %v10320_v28, %v8823_v35 }
 0x651   :  { %v11618_v60 = vpack.c.bf16 %v3242_v46, %v3213_v52 }
 0x652   :  { %3804 = vmatpush.bf16.msrb.mxu1 %v8858_v32 }
 0x656   :  { %v11624_v33 = vpop.f32.mrf.mxu2  ;;  %v11626_v19 = vpop.f32.mrf.mxu3  ;;  %3805 = vmatpush.bf16.msrb.mxu1 %v8842_v45  ;;  %v8815_v45 = vld [vmem:[#allocation9 + $0x58] sm:$0xf0] }
 0x657   :  { %v3479_v2 = vpop.f32.mrf.mxu0  ;;  %v3492_v42 = vpop.f32.mrf.mxu1 }
 0x658   :  { %v3528_v52 = vadd.f32 %v3524_v18, %v3479_v2  ;;  %v3529_v46 = vadd.f32 %v3525_v41, %v3492_v42  ;;  %v8850_v18 = vor.u32 %v10325_v57, %v8847_v29  ;;  %v8822_v41 = vor.u32 %v10322_v20, %v8821_v17  ;;  %v10312_v20 = vld [vmem:[#allocation9 + $0x24] sm:$0xf] }
 0x659   :  { %v8818_v17 = vor.u32 %v10317_v3, %v8815_v45  ;;  %v10309_v3 = vld [vmem:[#allocation9 + $0xc] sm:$0xf]  ;;  %v8783_v45 = vld [vmem:[#allocation9 + $0x18] sm:$0xf0] }
 0x65a   :  { %v8768_v15 = vmul.f32 -1.442695, %v3528_v52  ;;  %v8769_v37 = vmul.f32 -1.442695, %v3529_v46  ;;  %v8831_v52 = vld [vmem:[#allocation9 + $0x78] sm:$0xf0]  ;;  %3831 = vmatpush.bf16.msrb.mxu3 %v8850_v18  ;;  %v8830_v46 = vor.u32 %v10323_v51, %v8829_v58  ;;  %3793 = vmatpush.bf16.msrb.mxu0 %v8822_v41 }
 0x65b   :  { %v8834_v32 = vor.u32 %v10321_v0, %v8831_v52  ;;  %3806 = vmatpush.bf16.msrb.mxu1 %v8826_v44  ;;  %v8797_v18 = vld [vmem:[#allocation9 + $0x28] sm:$0xf]  ;;  %v10315_v58 = vld [vmem:[#allocation9 + $0x34] sm:$0xf0]  ;;  %v8799_v44 = vld [vmem:[#allocation9 + $0x38] sm:$0xf0] }
 0x65c   :  { %10738 = vpow2.f32 %v8768_v15  ;;  %v8807_v15 = vld [vmem:[#allocation9 + $0x50] sm:$0xf0]  ;;  %3819 = vmatpush.bf16.msrb.mxu2 %v8830_v46  ;;  %v8773_v0 = vld [vmem:[#allocation9] sm:$0xf]  ;;  %v10310_v52 = vld [vmem:[#allocation9 + $0xc] sm:$0xf0] }
 0x65d   :  { %10740 = vpow2.f32 %v8769_v37  ;;  %v8813_v37 = vld [vmem:[#allocation9 + $0x48] sm:$0xf]  ;;  %v8810_v34 = vor.u32 %v10316_v40, %v8807_v15  ;;  %v8774_v15 = vor.u32 %v10310_v52, %v8773_v0 }
 0x65e   :  { %v11631_v21 = vpop.f32.mrf.mxu2  ;;  %v3518_v23 = vpop.f32.mrf.mxu3  ;;  %v8814_v57 = vor.u32 %v10319_v62, %v8813_v37  ;;  %3832 = vmatpush.bf16.msrb.mxu3 %v8834_v32  ;;  %3794 = vmatpush.bf16.msrb.mxu0 %v8806_v61  ;;  %v3526_v32 = vunpack.c.l.bf16 %v11628_v50  ;;  %v8781_v40 = vld [vmem:[#allocation9 + $0x8] sm:$0xf]  ;;  %v8778_v37 = vor.u32 %v10308_v38, %v8775_v56 }
 0x65f   :  { %v3531_v2 = vadd.f32 %v3527_v16, %v3518_v23  ;;  %v3481_v42 = vpop.f32.mrf.mxu0  ;;  %v3494_v14 = vpop.f32.mrf.mxu1  ;;  %v8789_v16 = vld [vmem:[#allocation9 + $0x20] sm:$0xf]  ;;  %v8791_v23 = vld [vmem:[#allocation9 + $0x30] sm:$0xf0]  ;;  %3807 = vmatpush.bf16.msrb.mxu1 %v8810_v34 }
 0x660   :  { %v8790_v35 = vor.u32 %v10314_v7, %v8789_v16  ;;  %3820 = vmatpush.bf16.msrb.mxu2 %v8814_v57  ;;  %v8798_v42 = vor.u32 %v10315_v58, %v8797_v18  ;;  %v10313_v14 = vld [vmem:[#allocation9 + $0x2c] sm:$0xf]  ;;  %v3530_v34 = vadd.f32 %v3526_v32, %v11631_v21  ;;  %v8786_v7 = vor.u32 %v10309_v3, %v8783_v45 }
 0x661   :  { %v8770_v55 = vmul.f32 -1.442695, %v3531_v2  ;;  %v8794_v2 = vor.u32 %v10312_v20, %v8791_v23  ;;  %v8802_v51 = vor.u32 %v10313_v14, %v8799_v44 }
 0x662   :  { %v10739_v8 = vpop.eup %10738  ;;  %3833 = vmatpush.bf16.msrb.mxu3 %v8818_v17  ;;  %3795 = vmatpush.bf16.msrb.mxu0 %v8790_v35 }
 0x663   :  { %v10741_v5 = vpop.eup %10740  ;;  %v11633_v12 = vadd.f32 1.0, %v10739_v8  ;;  %10742 = vpow2.f32 %v8770_v55  ;;  %3808 = vmatpush.bf16.msrb.mxu1 %v8794_v2  ;;  %v10311_v8 = vld [vmem:[#allocation9 + $0x14] sm:$0xf0] }
 0x664   :  { %v11635_v29 = vadd.f32 1.0, %v10741_v5  ;;  %3821 = vmatpush.bf16.msrb.mxu2 %v8798_v42  ;;  %v8782_v62 = vor.u32 %v10311_v8, %v8781_v40 }
 0x665   :  { %10744 = vrcp.f32 %v11633_v12  ;;  %v3547_v20 = vand.u32 2147483648, %v11633_v12  ;;  %v3545_v18 = vand.u32 2147483647, %v11633_v12  ;;  %vm3541_vm4 = vweird.f32 %v11633_v12 }
 0x666   :  { %10746 = vrcp.f32 %v11635_v29  ;;  %v3520_v41 = vpop.f32.mrf.mxu3  ;;  %v3507_v28 = vpop.f32.mrf.mxu2  ;;  %3834 = vmatpush.bf16.msrb.mxu3 %v8802_v51  ;;  %3796 = vmatpush.bf16.msrb.mxu0 %v8774_v15  ;;  %v3566_v21 = vand.u32 2147483648, %v11635_v29  ;;  %vm3560_vm5 = vweird.f32 %v11635_v29 }
 0x667   :  { %3809 = vmatpush.bf16.msrb.mxu1 %v8778_v37  ;;  %v3564_v28 = vand.u32 2147483647, %v11635_v29  ;;  %v3548_v2 = vor.u32 1.1754944e-38, %v3547_v20  ;;  %vm3546_vm7 = vcmp.eq.f32.partialorder %v3545_v18, 8.507059e+37  ;;  %v9018_v20 = vld [vmem:[#allocation9 + $0xf0] sm:$0xf0] }
 0x668   :  { %3822 = vmatpush.bf16.msrb.mxu2 %v8782_v62  ;;  %v3567_v44 = vor.u32 1.1754944e-38, %v3566_v21  ;;  %v9024_v21 = vld [vmem:[#allocation9 + $0xe8] sm:$0xf] }
 0x669   :  { %v10743_v46 = vpop.eup %10742  ;;  %vm3565_vm9 = vcmp.eq.f32.partialorder %v3564_v28, 8.507059e+37  ;;  %v10369_v28 = vld [vmem:[#allocation9 + $0xec] sm:$0xf] }
 0x66a   :  { %v11640_v55 = vadd.f32 1.0, %v10743_v46  ;;  %3835 = vmatpush.bf16.msrb.mxu3 %v8786_v7  ;;  %v3142_v7 = vadd.f32 %v11497_v26, %v11537_v13 }
 0x66b   :  { %v10745_v61 = vpop.eup %10744 }
 0x66c   :  { %v10747_v5 = vpop.eup %10746  ;;  %v3537_v50 = vmul.f32 %v10745_v61, %v11633_v12  ;;  %10748 = vrcp.f32 %v11640_v55  ;;  %vm3542_vm2 = vweird.f32 %v10745_v61  ;;  %v3586_v37 = vand.u32 2147483648, %v11640_v55 }
 0x66d   :  { %v3556_v57 = vmul.f32 %v10747_v5, %v11635_v29  ;;  %10750 = vtanh.f32 %v3530_v34  ;;  %vm3561_vm3 = vweird.f32 %v10747_v5  ;;  %vm3543_vm6 = vmor %vm3541_vm4, %vm3542_vm2  ;;  %vm3580_vm11 = vweird.f32 %v11640_v55 }
 0x66e   :  { %v3538_v16 = vsub.f32 1.0, %v3537_v50  ;;  %vm3562_vm8 = vmor %vm3560_vm5, %vm3561_vm3  ;;  %v3584_v8 = vand.u32 2147483647, %v11640_v55  ;;  %v3587_v34 = vor.u32 1.1754944e-38, %v3586_v37  ;;  %v9016_v50 = vld [vmem:[#allocation9 + $0xe0] sm:$0xf] }
 0x66f   :  { %v3557_v17 = vsub.f32 1.0, %v3556_v57  ;;  %v10370_v57 = vld [vmem:[#allocation9 + $0xec] sm:$0xf0] }
 0x670   :  { %v3539_v23 = vmul.f32 %v10745_v61, %v3538_v16  ;;  %vm3585_vm13 = vcmp.eq.f32.partialorder %v3584_v8, 8.507059e+37  ;;  %v10368_v16 = vld [vmem:[#allocation9 + $0xe4] sm:$0xf]  ;;  %v10362_v37 = vld [vmem:[#allocation9 + $0xac] sm:$0xf0] }
 0x671   :  { %v3558_v41 = vmul.f32 %v10747_v5, %v3557_v17  ;;  %v9017_v17 = vor.u32 %v10370_v57, %v9016_v50  ;;  %v9021_v18 = vor.u32 %v10368_v16, %v9018_v20  ;;  %v10360_v8 = vld [vmem:[#allocation9 + $0xa4] sm:$0xf] }
 0x672   :  { %v10749_v35 = vpop.eup %10748  ;;  %v3540_v58 = vadd.f32 %v10745_v61, %v3539_v23  ;;  %v10371_v23 = vld [vmem:[#allocation9 + $0xf4] sm:$0xf0] }
 0x673   :  { %v3559_v42 = vadd.f32 %v10747_v5, %v3558_v41  ;;  %v3576_v14 = vmul.f32 %v10749_v35, %v11640_v55  ;;  %v10751_v0 = vpop.eup %10750  ;;  %vm3581_vm10 = vweird.f32 %v10749_v35  ;;  %v3171_v55 = vadd.f32 %v11499_v27, %v11540_v63  ;;  %4108 = vmatpush.bf16.msra.mxu0 %v9017_v17  ;;  %4121 = vmatpush.bf16.msra.mxu1 %v9021_v18  ;;  %v9008_v27 = vld [vmem:[#allocation9 + $0xc8] sm:$0xf]  ;;  %v10358_v18 = vld [vmem:[#allocation9 + $0x8c] sm:$0xf0] }
 0x674   :  { %v3544_v51 = vsel %vm3543_vm6, %v10745_v61, %v3540_v58  ;;  %vm3582_vm12 = vmor %vm3580_vm11, %vm3581_vm10  ;;  %v9025_v41 = vor.u32 %v10371_v23, %v9024_v21  ;;  %v8968_v23 = vld [vmem:[#allocation9 + $0x80] sm:$0xf] }
 0x675   :  { %v3549_v52 = vsel %vm3546_vm7, %v3548_v2, %v3544_v51  ;;  %v3563_v46 = vsel %vm3562_vm8, %v10747_v5, %v3559_v42  ;;  %v3577_v32 = vsub.f32 1.0, %v3576_v14  ;;  %v9000_v2 = vld [vmem:[#allocation9 + $0xc0] sm:$0xf]  ;;  %v10366_v42 = vld [vmem:[#allocation9 + $0xcc] sm:$0xf0] }
 0x676   :  { %v3568_v38 = vsel %vm3565_vm9, %v3567_v44, %v3563_v46  ;;  %v3591_v56 = vmul.f32 %v10751_v0, %v3549_v52  ;;  %4134 = vmatpush.bf16.msra.mxu2 %v9025_v41  ;;  %v10364_v14 = vld [vmem:[#allocation9 + $0xc4] sm:$0xf]  ;;  %v3248_v44 = vpack.c.bf16 %v3171_v55, %v3142_v7  ;;  %v9001_v26 = vor.u32 %v10366_v42, %v9000_v2  ;;  %v9002_v51 = vld [vmem:[#allocation9 + $0xd0] sm:$0xf0]  ;;  %v10367_v0 = vld [vmem:[#allocation9 + $0xd4] sm:$0xf0] }
 0x677   :  { %v3590_v40 = vmul.f32 0.0, %v3568_v38  ;;  %v3578_v12 = vmul.f32 %v10749_v35, %v3577_v32  ;;  %v9005_v52 = vor.u32 %v10364_v14, %v9002_v51  ;;  %v9009_v46 = vor.u32 %v10367_v0, %v9008_v27  ;;  %v10365_v32 = vld [vmem:[#allocation9 + $0xcc] sm:$0xf]  ;;  %v9010_v38 = vld [vmem:[#allocation9 + $0xd8] sm:$0xf0] }
 0x678   :  { %4109 = vmatpush.bf16.msra.mxu0 %v9001_v26  ;;  %v8994_v55 = vld [vmem:[#allocation9 + $0xb8] sm:$0xf0]  ;;  %v10356_v41 = vld [vmem:[#allocation9 + $0x84] sm:$0xf]  ;;  %v8970_v2 = vld [vmem:[#allocation9 + $0x90] sm:$0xf0] }
 0x679   :  { %v11653_v15 = vadd.f32 %v3591_v56, %v3590_v40  ;;  %v3579_v29 = vadd.f32 %v10749_v35, %v3578_v12  ;;  %v9013_v56 = vor.u32 %v10365_v32, %v9010_v38  ;;  %v3200_v40 = vadd.f32 %v11542_v6, %v11564_v53  ;;  %4122 = vmatpush.bf16.msra.mxu1 %v9005_v52  ;;  %v10361_v6 = vld [vmem:[#allocation9 + $0xac] sm:$0xf]  ;;  %v8976_v14 = vld [vmem:[#allocation9 + $0x88] sm:$0xf]  ;;  %v8978_v27 = vld [vmem:[#allocation9 + $0x98] sm:$0xf0] }
 0x67a   :  { %v3229_v12 = vadd.f32 %v11544_v39, %v11567_v54  ;;  %4135 = vmatpush.bf16.msra.mxu2 %v9009_v46  ;;  %v8997_v20 = vor.u32 %v10361_v6, %v8994_v55  ;;  %v8973_v42 = vor.u32 %v10356_v41, %v8970_v2  ;;  %v10357_v26 = vld [vmem:[#allocation9 + $0x8c] sm:$0xf]  ;;  %v8952_v0 = vld [vmem:[#allocation9 + $0x60] sm:$0xf]  ;;  %v10354_v52 = vld [vmem:[#allocation9 + $0x6c] sm:$0xf0] }
 0x67b   :  { %10752 = vtanh.f32 %v11653_v15  ;;  %v3583_v61 = vsel %vm3582_vm12, %v10749_v35, %v3579_v29  ;;  %v9026_v35 = vld [vmem:[#allocation9 + $0xf8] sm:$0xf0]  ;;  %v8984_v29 = vld [vmem:[#allocation9 + $0xa0] sm:$0xf]  ;;  %v8981_v32 = vor.u32 %v10357_v26, %v8978_v27  ;;  %v8953_v38 = vor.u32 %v10354_v52, %v8952_v0  ;;  %v10348_v6 = vld [vmem:[#allocation9 + $0x44] sm:$0xf] }
 0x67c   :  { %v3588_v3 = vsel %vm3585_vm13, %v3587_v34, %v3583_v61  ;;  %v9029_v58 = vor.u32 %v10369_v28, %v9026_v35  ;;  %v3843_v61 = vunpack.c.l.bf16 %v3248_v44  ;;  %v3844_v34 = vunpack.c.h.bf16 %v3248_v44  ;;  %v10359_v44 = vld [vmem:[#allocation9 + $0x94] sm:$0xf0]  ;;  %v10349_v41 = vld [vmem:[#allocation9 + $0x4c] sm:$0xf]  ;;  %v8920_v2 = vld [vmem:[#allocation9 + $0x20] sm:$0xf] }
 0x67d   :  { %v11667_v21 = vpack.c.bf16 %v3229_v12, %v3200_v40  ;;  %v8977_v51 = vor.u32 %v10359_v44, %v8976_v14  ;;  %v8954_v40 = vld [vmem:[#allocation9 + $0x70] sm:$0xf0]  ;;  %v8960_v12 = vld [vmem:[#allocation9 + $0x68] sm:$0xf]  ;;  %v10344_v14 = vld [vmem:[#allocation9 + $0x24] sm:$0xf] }
 0x67e   :  { %4147 = vmatpush.bf16.msra.mxu3 %v9029_v58  ;;  %v8969_v58 = vor.u32 %v10358_v18, %v8968_v23  ;;  %v8922_v27 = vld [vmem:[#allocation9 + $0x30] sm:$0xf0]  ;;  %v8928_v0 = vld [vmem:[#allocation9 + $0x28] sm:$0xf] }
 0x67f   :  { %v3846_v46 = vunpack.c.h.bf16 %v11667_v21 }
 0x681   :  { %v10753_v62 = vpop.eup %10752 }
 0x682   :  { %v3594_v45 = vmul.f32 %v10753_v62, %v3588_v3  ;;  %4148 = vmatpush.bf16.msra.mxu3 %v9013_v56  ;;  %v8985_v62 = vor.u32 %v10362_v37, %v8984_v29  ;;  %v8986_v3 = vld [vmem:[#allocation9 + $0xb0] sm:$0xf0]  ;;  %v10352_v56 = vld [vmem:[#allocation9 + $0x64] sm:$0xf] }
 0x683   :  { %v8989_v16 = vor.u32 %v10360_v8, %v8986_v3  ;;  %v8957_v8 = vor.u32 %v10352_v56, %v8954_v40  ;;  %v8925_v56 = vor.u32 %v10344_v14, %v8922_v27  ;;  %v8930_v40 = vld [vmem:[#allocation9 + $0x38] sm:$0xf0] }
 0x684   :  { %v3595_v5 = vpack.c.bf16 %v3594_v45, %v3594_v45  ;;  %v8992_v45 = vld [vmem:[#allocation9 + $0xa8] sm:$0xf]  ;;  %4110 = vmatpush.bf16.msra.mxu0 %v8985_v62  ;;  %v8962_v62 = vld [vmem:[#allocation9 + $0x78] sm:$0xf0] }
 0x685   :  { %4123 = vmatpush.bf16.msra.mxu1 %v8989_v16  ;;  %v8936_v16 = vld [vmem:[#allocation9 + $0x40] sm:$0xf] }
 0x686   :  { %3596 = vst [vmem:[#allocation2] sm:$0xf] %v3595_v5  ;;  %3797 = vmatmul.bf16.vlgmr.msrb.gmra.mxu0 %v3595_v5  ;;  %3810 = vmatmul.bf16.vlgmr.msrb.gmra.mxu1 %v3595_v5 }
 0x687   :  { %3823 = vmatmul.bf16.vlgmr.msrb.gmra.mxu2 %v3595_v5  ;;  %3836 = vmatmul.bf16.vlgmr.msrb.gmra.mxu3 %v3595_v5  ;;  %v10363_v5 = vld [vmem:[#allocation9 + $0xb4] sm:$0xf0] }
 0x688   :  { %v8993_v7 = vor.u32 %v10363_v5, %v8992_v45  ;;  %4149 = vmatpush.bf16.msra.mxu3 %v8997_v20  ;;  %4111 = vmatpush.bf16.msra.mxu0 %v8969_v58  ;;  %v10351_v20 = vld [vmem:[#allocation9 + $0x54] sm:$0xf0] }
 0x689   :  { %4124 = vmatpush.bf16.msra.mxu1 %v8973_v42  ;;  %v10346_v42 = vld [vmem:[#allocation9 + $0x2c] sm:$0xf0] }
 0x68a   :  { %4136 = vmatpush.bf16.msra.mxu2 %v8993_v7  ;;  %v10350_v7 = vld [vmem:[#allocation9 + $0x4c] sm:$0xf0] }
 0x68b   :  { %v8937_v55 = vor.u32 %v10350_v7, %v8936_v16  ;;  %v3845_v16 = vunpack.c.l.bf16 %v11667_v21 }
 0x68c   :  { %4150 = vmatpush.bf16.msra.mxu3 %v8981_v32  ;;  %4112 = vmatpush.bf16.msra.mxu0 %v8953_v38  ;;  %v10347_v32 = vld [vmem:[#allocation9 + $0x34] sm:$0xf0]  ;;  %v10345_v38 = vld [vmem:[#allocation9 + $0x2c] sm:$0xf] }
 0x68d   :  { %4125 = vmatpush.bf16.msra.mxu1 %v8957_v8  ;;  %v8904_v8 = vld [vmem:[#allocation9] sm:$0xf] }
 0x68e   :  { %4137 = vmatpush.bf16.msra.mxu2 %v8977_v51 }
 0x690   :  { %4113 = vmatpush.bf16.msra.mxu0 %v8937_v55  ;;  %v10341_v55 = vld [vmem:[#allocation9 + $0xc] sm:$0xf] }
 0x703   :  { %v3798_v50 = vpop.f32.mrf.mxu0  ;;  %v3811_v57 = vpop.f32.mrf.mxu1 }
 0x704   :  { %v3847_v17 = vadd.f32 %v3843_v61, %v3798_v50  ;;  %v3848_v39 = vadd.f32 %v3844_v34, %v3811_v57  ;;  %v10355_v61 = vld [vmem:[#allocation9 + $0x74] sm:$0xf0]  ;;  %v10353_v34 = vld [vmem:[#allocation9 + $0x6c] sm:$0xf] }
 0x705   :  { %v8961_v50 = vor.u32 %v10355_v61, %v8960_v12  ;;  %v8965_v57 = vor.u32 %v10353_v34, %v8962_v62  ;;  %v8929_v61 = vor.u32 %v10347_v32, %v8928_v0  ;;  %v8933_v34 = vor.u32 %v10345_v38, %v8930_v40  ;;  %v10342_v62 = vld [vmem:[#allocation9 + $0xc] sm:$0xf0] }
 0x706   :  { %v8899_v28 = vmul.f32 -1.442695, %v3847_v17  ;;  %v8900_v35 = vmul.f32 -1.442695, %v3848_v39  ;;  %v8938_v17 = vld [vmem:[#allocation9 + $0x50] sm:$0xf0] }
 0x707   :  { %v8944_v39 = vld [vmem:[#allocation9 + $0x48] sm:$0xf]  ;;  %v8941_v18 = vor.u32 %v10348_v6, %v8938_v17  ;;  %4138 = vmatpush.bf16.msra.mxu2 %v8961_v50  ;;  %4151 = vmatpush.bf16.msra.mxu3 %v8965_v57  ;;  %v10343_v6 = vld [vmem:[#allocation9 + $0x14] sm:$0xf0]  ;;  %v8914_v17 = vld [vmem:[#allocation9 + $0x18] sm:$0xf0] }
 0x708   :  { %10754 = vpow2.f32 %v8899_v28  ;;  %v8946_v28 = vld [vmem:[#allocation9 + $0x58] sm:$0xf0]  ;;  %v8945_v58 = vor.u32 %v10351_v20, %v8944_v39  ;;  %v8912_v50 = vld [vmem:[#allocation9 + $0x8] sm:$0xf] }
 0x709   :  { %10756 = vpow2.f32 %v8900_v35  ;;  %v8949_v51 = vor.u32 %v10349_v41, %v8946_v28  ;;  %4126 = vmatpush.bf16.msra.mxu1 %v8941_v18  ;;  %v8913_v20 = vor.u32 %v10343_v6, %v8912_v50  ;;  %v8917_v41 = vor.u32 %v10341_v55, %v8914_v17 }
 0x70a   :  { %v11670_v29 = vpop.f32.mrf.mxu2  ;;  %v3837_v37 = vpop.f32.mrf.mxu3 }
 0x70b   :  { %v3850_v3 = vadd.f32 %v3846_v46, %v3837_v37  ;;  %v3800_v45 = vpop.f32.mrf.mxu0  ;;  %v3813_v5 = vpop.f32.mrf.mxu1  ;;  %v8921_v46 = vor.u32 %v10346_v42, %v8920_v2  ;;  %4139 = vmatpush.bf16.msra.mxu2 %v8945_v58  ;;  %4152 = vmatpush.bf16.msra.mxu3 %v8949_v51  ;;  %v3849_v18 = vadd.f32 %v3845_v16, %v11670_v29 }
 0x70c   :  { %v8905_v45 = vor.u32 %v10342_v62, %v8904_v8  ;;  %v8906_v5 = vld [vmem:[#allocation9 + $0x10] sm:$0xf0] }
 0x70d   :  { %v8901_v23 = vmul.f32 -1.442695, %v3850_v3  ;;  %v10340_v3 = vld [vmem:[#allocation9 + $0x4] sm:$0xf]  ;;  %4114 = vmatpush.bf16.msra.mxu0 %v8921_v46  ;;  %4127 = vmatpush.bf16.msra.mxu1 %v8925_v56 }
 0x70e   :  { %v10755_v35 = vpop.eup %10754  ;;  %v8909_v7 = vor.u32 %v10340_v3, %v8906_v5 }
 0x70f   :  { %v10757_v44 = vpop.eup %10756  ;;  %v11672_v26 = vadd.f32 1.0, %v10755_v35  ;;  %10758 = vpow2.f32 %v8901_v23  ;;  %4140 = vmatpush.bf16.msra.mxu2 %v8929_v61  ;;  %4153 = vmatpush.bf16.msra.mxu3 %v8933_v34 }
 0x710   :  { %v11674_v52 = vadd.f32 1.0, %v10757_v44 }
 0x711   :  { %10760 = vrcp.f32 %v11672_v26  ;;  %4115 = vmatpush.bf16.msra.mxu0 %v8905_v45  ;;  %4128 = vmatpush.bf16.msra.mxu1 %v8909_v7  ;;  %v3866_v42 = vand.u32 2147483648, %v11672_v26  ;;  %v3864_v44 = vand.u32 2147483647, %v11672_v26  ;;  %vm3860_vm0 = vweird.f32 %v11672_v26 }
 0x712   :  { %10762 = vrcp.f32 %v11674_v52  ;;  %v3826_v12 = vpop.f32.mrf.mxu2  ;;  %v3839_v37 = vpop.f32.mrf.mxu3  ;;  %v3885_v14 = vand.u32 2147483648, %v11674_v52  ;;  %v3883_v27 = vand.u32 2147483647, %v11674_v52  ;;  %vm3879_vm1 = vweird.f32 %v11674_v52 }
 0x713   :  { %4141 = vmatpush.bf16.msra.mxu2 %v8913_v20  ;;  %4154 = vmatpush.bf16.msra.mxu3 %v8917_v41  ;;  %v3867_v32 = vor.u32 1.1754944e-38, %v3866_v42  ;;  %vm3865_vm4 = vcmp.eq.f32.partialorder %v3864_v44, 8.507059e+37  ;;  %v9157_v42 = vld [vmem:[#allocation9 + $0xf8] sm:$0xf0]  ;;  %v10398_v44 = vld [vmem:[#allocation9 + $0xcc] sm:$0xf0] }
 0x714   :  { %v3886_v40 = vor.u32 1.1754944e-38, %v3885_v14  ;;  %vm3884_vm5 = vcmp.eq.f32.partialorder %v3883_v27, 8.507059e+37 }
 0x715   :  { %v10759_v57 = vpop.eup %10758 }
 0x716   :  { %v3893_v39 = vadd.f32 1.0, %v10759_v57 }
 0x717   :  { %v10761_v23 = vpop.eup %10760 }
 0x718   :  { %v10763_v28 = vpop.eup %10762  ;;  %v3856_v35 = vmul.f32 %v10761_v23, %v11672_v26  ;;  %10764 = vrcp.f32 %v3893_v39  ;;  %vm3861_vm14 = vweird.f32 %v10761_v23  ;;  %v3905_v50 = vand.u32 2147483648, %v3893_v39 }
 0x719   :  { %v3875_v21 = vmul.f32 %v10763_v28, %v11674_v52  ;;  %10766 = vtanh.f32 %v3849_v18  ;;  %vm3880_vm15 = vweird.f32 %v10763_v28  ;;  %vm3862_vm2 = vmor %vm3860_vm0, %vm3861_vm14  ;;  %vm3899_vm7 = vweird.f32 %v3893_v39  ;;  %v10400_v18 = vld [vmem:[#allocation9 + $0xe4] sm:$0xf] }
 0x71a   :  { %v3857_v58 = vsub.f32 1.0, %v3856_v35  ;;  %vm3881_vm3 = vmor %vm3879_vm1, %vm3880_vm15  ;;  %v3903_v57 = vand.u32 2147483647, %v3893_v39  ;;  %v3906_v7 = vor.u32 1.1754944e-38, %v3905_v50  ;;  %v9155_v35 = vld [vmem:[#allocation9 + $0xe8] sm:$0xf]  ;;  %v4163_v50 = vunpack.c.h.bf16 %v11552_v36 }
 0x71b   :  { %v3876_v2 = vsub.f32 1.0, %v3875_v21 }
 0x71c   :  { %v3858_v29 = vmul.f32 %v10761_v23, %v3857_v58  ;;  %vm3904_vm9 = vcmp.eq.f32.partialorder %v3903_v57, 8.507059e+37 }
 0x71d   :  { %v3877_v51 = vmul.f32 %v10763_v28, %v3876_v2  ;;  %v10401_v2 = vld [vmem:[#allocation9 + $0xec] sm:$0xf] }
 0x71e   :  { %v10765_v0 = vpop.eup %10764  ;;  %v3859_v46 = vadd.f32 %v10761_v23, %v3858_v29  ;;  %v9160_v14 = vor.u32 %v10401_v2, %v9157_v42  ;;  %v9131_v29 = vld [vmem:[#allocation9 + $0xc0] sm:$0xf] }
 0x71f   :  { %v3878_v38 = vadd.f32 %v10763_v28, %v3877_v51  ;;  %v3895_v56 = vmul.f32 %v10765_v0, %v3893_v39  ;;  %v10767_v37 = vpop.eup %10766  ;;  %vm3900_vm6 = vweird.f32 %v10765_v0  ;;  %v10403_v39 = vld [vmem:[#allocation9 + $0xf4] sm:$0xf0]  ;;  %v10396_v51 = vld [vmem:[#allocation9 + $0xc4] sm:$0xf]  ;;  %v9132_v27 = vor.u32 %v10398_v44, %v9131_v29  ;;  %v10389_v29 = vld [vmem:[#allocation9 + $0x8c] sm:$0xf] }
 0x720   :  { %v3863_v12 = vsel %vm3862_vm2, %v10761_v23, %v3859_v46  ;;  %vm3901_vm8 = vmor %vm3899_vm7, %vm3900_vm6  ;;  %v10402_v23 = vld [vmem:[#allocation9 + $0xec] sm:$0xf0]  ;;  %v9156_v58 = vor.u32 %v10403_v39, %v9155_v35  ;;  %4466 = vmatpush.bf16.msrb.mxu3 %v9160_v14  ;;  %v9139_v46 = vld [vmem:[#allocation9 + $0xc8] sm:$0xf] }
 0x721   :  { %v3868_v8 = vsel %vm3865_vm4, %v3867_v32, %v3863_v12  ;;  %v3882_v61 = vsel %vm3881_vm3, %v10763_v28, %v3878_v38  ;;  %v3896_v34 = vsub.f32 1.0, %v3895_v56  ;;  %v9149_v28 = vld [vmem:[#allocation9 + $0xf0] sm:$0xf0]  ;;  %v10399_v32 = vld [vmem:[#allocation9 + $0xd4] sm:$0xf0] }
 0x722   :  { %v3887_v62 = vsel %vm3884_vm5, %v3886_v40, %v3882_v61  ;;  %v3910_v3 = vmul.f32 %v10767_v37, %v3868_v8  ;;  %v9152_v21 = vor.u32 %v10400_v18, %v9149_v28  ;;  %4453 = vmatpush.bf16.msrb.mxu2 %v9156_v58  ;;  %v9140_v56 = vor.u32 %v10399_v32, %v9139_v46  ;;  %v10397_v40 = vld [vmem:[#allocation9 + $0xcc] sm:$0xf]  ;;  %v9141_v12 = vld [vmem:[#allocation9 + $0xd8] sm:$0xf0]  ;;  %v9115_v8 = vld [vmem:[#allocation9 + $0xa0] sm:$0xf] }
 0x723   :  { %v3909_v45 = vmul.f32 %v3887_v62, %v11653_v15  ;;  %v3897_v26 = vmul.f32 %v10765_v0, %v3896_v34  ;;  %v9147_v15 = vld [vmem:[#allocation9 + $0xe0] sm:$0xf]  ;;  %v9144_v37 = vor.u32 %v10397_v40, %v9141_v12  ;;  %v10394_v61 = vld [vmem:[#allocation9 + $0xac] sm:$0xf0]  ;;  %v10392_v34 = vld [vmem:[#allocation9 + $0xa4] sm:$0xf]  ;;  %v4165_v40 = vunpack.c.h.bf16 %v11578_v4 }
 0x724   :  { %v9148_v41 = vor.u32 %v10402_v23, %v9147_v15  ;;  %4440 = vmatpush.bf16.msrb.mxu1 %v9152_v21  ;;  %v9116_v62 = vor.u32 %v10394_v61, %v9115_v8  ;;  %v9099_v18 = vld [vmem:[#allocation9 + $0x80] sm:$0xf]  ;;  %v10388_v28 = vld [vmem:[#allocation9 + $0x84] sm:$0xf]  ;;  %v9101_v39 = vld [vmem:[#allocation9 + $0x90] sm:$0xf0] }
 0x725   :  { %v11689_v5 = vadd.f32 %v3910_v3, %v3909_v45  ;;  %v3898_v52 = vadd.f32 %v10765_v0, %v3897_v26  ;;  %4467 = vmatpush.bf16.msrb.mxu3 %v9144_v37  ;;  %v9117_v3 = vld [vmem:[#allocation9 + $0xb0] sm:$0xf0]  ;;  %v9123_v45 = vld [vmem:[#allocation9 + $0xa8] sm:$0xf]  ;;  %v10395_v26 = vld [vmem:[#allocation9 + $0xb4] sm:$0xf0]  ;;  %v9104_v42 = vor.u32 %v10388_v28, %v9101_v39 }
 0x726   :  { %4427 = vmatpush.bf16.msrb.mxu0 %v9148_v41  ;;  %4454 = vmatpush.bf16.msrb.mxu2 %v9140_v56  ;;  %v9120_v57 = vor.u32 %v10392_v34, %v9117_v3  ;;  %v10390_v41 = vld [vmem:[#allocation9 + $0x8c] sm:$0xf0]  ;;  %v9107_v21 = vld [vmem:[#allocation9 + $0x88] sm:$0xf]  ;;  %v9109_v44 = vld [vmem:[#allocation9 + $0x98] sm:$0xf0] }
 0x727   :  { %10768 = vtanh.f32 %v11689_v5  ;;  %v3902_v16 = vsel %vm3901_vm8, %v10765_v0, %v3898_v52  ;;  %v9133_v0 = vld [vmem:[#allocation9 + $0xd0] sm:$0xf0]  ;;  %v4162_v52 = vunpack.c.l.bf16 %v11552_v36  ;;  %v9100_v35 = vor.u32 %v10390_v41, %v9099_v18  ;;  %v10391_v36 = vld [vmem:[#allocation9 + $0x94] sm:$0xf0]  ;;  %v10384_v32 = vld [vmem:[#allocation9 + $0x64] sm:$0xf] }
 0x728   :  { %v3907_v55 = vsel %vm3904_vm9, %v3906_v7, %v3902_v16  ;;  %v9136_v38 = vor.u32 %v10396_v51, %v9133_v0  ;;  %v9124_v16 = vor.u32 %v10395_v26, %v9123_v45  ;;  %v10393_v7 = vld [vmem:[#allocation9 + $0xac] sm:$0xf]  ;;  %v9108_v14 = vor.u32 %v10391_v36, %v9107_v21  ;;  %v9083_v51 = vld [vmem:[#allocation9 + $0x60] sm:$0xf]  ;;  %v9091_v56 = vld [vmem:[#allocation9 + $0x68] sm:$0xf] }
 0x729   :  { %v9112_v0 = vor.u32 %v10389_v29, %v9109_v44  ;;  %v10387_v37 = vld [vmem:[#allocation9 + $0x74] sm:$0xf0]  ;;  %v10385_v8 = vld [vmem:[#allocation9 + $0x6c] sm:$0xf]  ;;  %v9093_v61 = vld [vmem:[#allocation9 + $0x78] sm:$0xf0] }
 0x72a   :  { %4428 = vmatpush.bf16.msrb.mxu0 %v9132_v27  ;;  %4441 = vmatpush.bf16.msrb.mxu1 %v9136_v38  ;;  %v10386_v27 = vld [vmem:[#allocation9 + $0x6c] sm:$0xf0]  ;;  %v9085_v38 = vld [vmem:[#allocation9 + $0x70] sm:$0xf0]  ;;  %v9092_v3 = vor.u32 %v10387_v37, %v9091_v56  ;;  %v9096_v45 = vor.u32 %v10385_v8, %v9093_v61  ;;  %v9067_v26 = vld [vmem:[#allocation9 + $0x40] sm:$0xf] }
 0x72b   :  { %4455 = vmatpush.bf16.msrb.mxu2 %v9124_v16  ;;  %v9084_v46 = vor.u32 %v10386_v27, %v9083_v51  ;;  %v9088_v12 = vor.u32 %v10384_v32, %v9085_v38  ;;  %v10381_v18 = vld [vmem:[#allocation9 + $0x4c] sm:$0xf]  ;;  %v9077_v41 = vld [vmem:[#allocation9 + $0x58] sm:$0xf0]  ;;  %v9051_v28 = vld [vmem:[#allocation9 + $0x20] sm:$0xf] }
 0x72c   :  { %v10378_v39 = vld [vmem:[#allocation9 + $0x2c] sm:$0xf0]  ;;  %v10376_v21 = vld [vmem:[#allocation9 + $0x24] sm:$0xf]  ;;  %v10377_v27 = vld [vmem:[#allocation9 + $0x2c] sm:$0xf] }
 0x72d   :  { %v10769_v6 = vpop.eup %10768  ;;  %v9052_v51 = vor.u32 %v10378_v39, %v9051_v28  ;;  %v9035_v56 = vld [vmem:[#allocation9] sm:$0xf] }
 0x72e   :  { %v3913_v17 = vmul.f32 %v10769_v6, %v3907_v55  ;;  %v9125_v6 = vld [vmem:[#allocation9 + $0xb8] sm:$0xf0]  ;;  %4429 = vmatpush.bf16.msrb.mxu0 %v9116_v62  ;;  %4442 = vmatpush.bf16.msrb.mxu1 %v9120_v57 }
 0x72f   :  { %4456 = vmatpush.bf16.msrb.mxu2 %v9108_v14  ;;  %v10379_v14 = vld [vmem:[#allocation9 + $0x34] sm:$0xf0] }
 0x730   :  { %v3914_v20 = vpack.c.bf16 %v3913_v17, %v3913_v17 }
 0x732   :  { %3915 = vst [vmem:[#allocation2 + $0x4] sm:$0xf] %v3914_v20  ;;  %4116 = vmatmul.bf16.vlgmr.msra.gmra.mxu0 %v3914_v20  ;;  %4129 = vmatmul.bf16.vlgmr.msra.gmra.mxu1 %v3914_v20 }
 0x733   :  { %4142 = vmatmul.bf16.vlgmr.msra.gmra.mxu2 %v3914_v20  ;;  %4155 = vmatmul.bf16.vlgmr.msra.gmra.mxu3 %v3914_v20  ;;  %v9128_v20 = vor.u32 %v10393_v7, %v9125_v6 }
 0x734   :  { %4430 = vmatpush.bf16.msrb.mxu0 %v9100_v35  ;;  %4443 = vmatpush.bf16.msrb.mxu1 %v9104_v42  ;;  %v9059_v42 = vld [vmem:[#allocation9 + $0x28] sm:$0xf] }
 0x735   :  { %4468 = vmatpush.bf16.msrb.mxu3 %v9128_v20  ;;  %v10383_v20 = vld [vmem:[#allocation9 + $0x54] sm:$0xf0]  ;;  %4457 = vmatpush.bf16.msrb.mxu2 %v9092_v3  ;;  %v9060_v38 = vor.u32 %v10379_v14, %v9059_v42 }
 0x738   :  { %4431 = vmatpush.bf16.msrb.mxu0 %v9084_v46  ;;  %4444 = vmatpush.bf16.msrb.mxu1 %v9088_v12  ;;  %v10372_v12 = vld [vmem:[#allocation9 + $0x4] sm:$0xf] }
 0x739   :  { %4469 = vmatpush.bf16.msrb.mxu3 %v9112_v0  ;;  %v9061_v0 = vld [vmem:[#allocation9 + $0x38] sm:$0xf0] }
 0x73a   :  { %v9064_v61 = vor.u32 %v10377_v27, %v9061_v0 }
 0x73d   :  { %4470 = vmatpush.bf16.msrb.mxu3 %v9096_v45  ;;  %v9043_v45 = vld [vmem:[#allocation9 + $0x8] sm:$0xf] }
 0x7af   :  { %v4117_v55 = vpop.f32.mrf.mxu0  ;;  %v4130_v17 = vpop.f32.mrf.mxu1 }
 0x7b0   :  { %v4166_v15 = vadd.f32 %v4162_v52, %v4117_v55  ;;  %v4167_v23 = vadd.f32 %v4163_v50, %v4130_v17  ;;  %v10382_v52 = vld [vmem:[#allocation9 + $0x4c] sm:$0xf0]  ;;  %v10380_v50 = vld [vmem:[#allocation9 + $0x44] sm:$0xf]  ;;  %v9069_v55 = vld [vmem:[#allocation9 + $0x50] sm:$0xf0] }
 0x7b1   :  { %v9068_v6 = vor.u32 %v10382_v52, %v9067_v26  ;;  %v9075_v17 = vld [vmem:[#allocation9 + $0x48] sm:$0xf]  ;;  %v10375_v26 = vld [vmem:[#allocation9 + $0x14] sm:$0xf0] }
 0x7b2   :  { %v9030_v58 = vmul.f32 -1.442695, %v4166_v15  ;;  %v9031_v2 = vmul.f32 -1.442695, %v4167_v23  ;;  %v9072_v15 = vor.u32 %v10380_v50, %v9069_v55  ;;  %v9076_v23 = vor.u32 %v10383_v20, %v9075_v17 }
 0x7b3   :  { %4432 = vmatpush.bf16.msrb.mxu0 %v9068_v6  ;;  %v9044_v50 = vor.u32 %v10375_v26, %v9043_v45  ;;  %v4164_v6 = vunpack.c.l.bf16 %v11578_v4 }
 0x7b4   :  { %10770 = vpow2.f32 %v9030_v58  ;;  %v9080_v58 = vor.u32 %v10381_v18, %v9077_v41  ;;  %4445 = vmatpush.bf16.msrb.mxu1 %v9072_v15  ;;  %4458 = vmatpush.bf16.msrb.mxu2 %v9076_v23 }
 0x7b5   :  { %10772 = vpow2.f32 %v9031_v2  ;;  %v9053_v2 = vld [vmem:[#allocation9 + $0x30] sm:$0xf0] }
 0x7b6   :  { %v11695_v34 = vpop.f32.mrf.mxu2  ;;  %v4156_v62 = vpop.f32.mrf.mxu3  ;;  %v9056_v32 = vor.u32 %v10376_v21, %v9053_v2  ;;  %4471 = vmatpush.bf16.msrb.mxu3 %v9080_v58 }
 0x7b7   :  { %v4169_v57 = vadd.f32 %v4165_v40, %v4156_v62  ;;  %v4119_v16 = vpop.f32.mrf.mxu0  ;;  %v4132_v7 = vpop.f32.mrf.mxu1  ;;  %v10374_v40 = vld [vmem:[#allocation9 + $0xc] sm:$0xf0]  ;;  %v9037_v62 = vld [vmem:[#allocation9 + $0x10] sm:$0xf0]  ;;  %4433 = vmatpush.bf16.msrb.mxu0 %v9052_v51  ;;  %v4168_v15 = vadd.f32 %v4164_v6, %v11695_v34  ;;  %v10432_v6 = vld [vmem:[#allocation9 + $0xe4] sm:$0xf] }
 0x7b8   :  { %v9036_v3 = vor.u32 %v10374_v40, %v9035_v56  ;;  %4446 = vmatpush.bf16.msrb.mxu1 %v9056_v32  ;;  %4459 = vmatpush.bf16.msrb.mxu2 %v9060_v38  ;;  %v9040_v52 = vor.u32 %v10372_v12, %v9037_v62  ;;  %v9045_v16 = vld [vmem:[#allocation9 + $0x18] sm:$0xf0] }
 0x7b9   :  { %v9032_v35 = vmul.f32 -1.442695, %v4169_v57  ;;  %v10373_v57 = vld [vmem:[#allocation9 + $0xc] sm:$0xf] }
 0x7ba   :  { %v10771_v36 = vpop.eup %10770  ;;  %4472 = vmatpush.bf16.msrb.mxu3 %v9064_v61  ;;  %v9048_v17 = vor.u32 %v10373_v57, %v9045_v16 }
 0x7bb   :  { %v10773_v29 = vpop.eup %10772  ;;  %v11697_v44 = vadd.f32 1.0, %v10771_v36  ;;  %10774 = vpow2.f32 %v9032_v35  ;;  %4434 = vmatpush.bf16.msrb.mxu0 %v9036_v3 }
 0x7bc   :  { %v11699_v46 = vadd.f32 1.0, %v10773_v29  ;;  %4447 = vmatpush.bf16.msrb.mxu1 %v9040_v52  ;;  %4460 = vmatpush.bf16.msrb.mxu2 %v9044_v50 }
 0x7bd   :  { %10776 = vrcp.f32 %v11697_v44  ;;  %v4185_v4 = vand.u32 2147483648, %v11697_v44  ;;  %v4183_v34 = vand.u32 2147483647, %v11697_v44  ;;  %vm4179_vm12 = vweird.f32 %v11697_v44 }
 0x7be   :  { %10778 = vrcp.f32 %v11699_v46  ;;  %v4145_v37 = vpop.f32.mrf.mxu2  ;;  %v4158_v8 = vpop.f32.mrf.mxu3  ;;  %4473 = vmatpush.bf16.msrb.mxu3 %v9048_v17  ;;  %v4204_v39 = vand.u32 2147483648, %v11699_v46  ;;  %v4202_v58 = vand.u32 2147483647, %v11699_v46  ;;  %vm4198_vm13 = vweird.f32 %v11699_v46 }
 0x7bf   :  { %v4186_v14 = vor.u32 1.1754944e-38, %v4185_v4  ;;  %vm4184_vm0 = vcmp.eq.f32.partialorder %v4183_v34, 8.507059e+37  ;;  %v3176_v4 = vadd.f32 %v11576_v49, %v11540_v63  ;;  %v10430_v34 = vld [vmem:[#allocation9 + $0xcc] sm:$0xf0]  ;;  %v9246_v49 = vld [vmem:[#allocation9 + $0xa0] sm:$0xf] }
 0x7c0   :  { %v4205_v27 = vor.u32 1.1754944e-38, %v4204_v39  ;;  %vm4203_vm1 = vcmp.eq.f32.partialorder %v4202_v58, 8.507059e+37 }
 0x7c1   :  { %v10775_v7 = vpop.eup %10774 }
 0x7c2   :  { %v4212_v55 = vadd.f32 1.0, %v10775_v7  ;;  %v10434_v7 = vld [vmem:[#allocation9 + $0xec] sm:$0xf0] }
 0x7c3   :  { %v10777_v20 = vpop.eup %10776 }
 0x7c4   :  { %v10779_v23 = vpop.eup %10778  ;;  %v4175_v18 = vmul.f32 %v10777_v20, %v11697_v44  ;;  %10780 = vrcp.f32 %v4212_v55  ;;  %vm4180_vm10 = vweird.f32 %v10777_v20  ;;  %v4224_v62 = vand.u32 2147483648, %v4212_v55 }
 0x7c5   :  { %v4194_v41 = vmul.f32 %v10779_v23, %v11699_v46  ;;  %10782 = vtanh.f32 %v4168_v15  ;;  %vm4199_vm11 = vweird.f32 %v10779_v23  ;;  %vm4181_vm14 = vmor %vm4179_vm12, %vm4180_vm10  ;;  %vm4218_vm3 = vweird.f32 %v4212_v55  ;;  %v9286_v15 = vld [vmem:[#allocation9 + $0xe8] sm:$0xf] }
 0x7c6   :  { %v4176_v28 = vsub.f32 1.0, %v4175_v18  ;;  %vm4200_vm15 = vmor %vm4198_vm13, %vm4199_vm11  ;;  %v4222_v3 = vand.u32 2147483647, %v4212_v55  ;;  %v4225_v26 = vor.u32 1.1754944e-38, %v4224_v62 }
 0x7c7   :  { %v4195_v35 = vsub.f32 1.0, %v4194_v41  ;;  %v10433_v41 = vld [vmem:[#allocation9 + $0xec] sm:$0xf] }
 0x7c8   :  { %v4177_v21 = vmul.f32 %v10777_v20, %v4176_v28  ;;  %vm4223_vm5 = vcmp.eq.f32.partialorder %v4222_v3, 8.507059e+37  ;;  %v9288_v28 = vld [vmem:[#allocation9 + $0xf8] sm:$0xf0] }
 0x7c9   :  { %v4196_v36 = vmul.f32 %v10779_v23, %v4195_v35  ;;  %v3147_v35 = vadd.f32 %v11574_v43, %v11537_v13  ;;  %v9291_v39 = vor.u32 %v10433_v41, %v9288_v28 }
 0x7ca   :  { %v10781_v2 = vpop.eup %10780  ;;  %v4178_v42 = vadd.f32 %v10777_v20, %v4177_v21  ;;  %v9262_v21 = vld [vmem:[#allocation9 + $0xc0] sm:$0xf] }
 0x7cb   :  { %v4197_v29 = vadd.f32 %v10779_v23, %v4196_v36  ;;  %v4214_v51 = vmul.f32 %v10781_v2, %v4212_v55  ;;  %v10783_v32 = vpop.eup %10782  ;;  %vm4219_vm2 = vweird.f32 %v10781_v2  ;;  %v10435_v55 = vld [vmem:[#allocation9 + $0xf4] sm:$0xf0]  ;;  %v10428_v36 = vld [vmem:[#allocation9 + $0xc4] sm:$0xf]  ;;  %4785 = vmatpush.bf16.msra.mxu3 %v9291_v39  ;;  %v9263_v58 = vor.u32 %v10430_v34, %v9262_v21 }
 0x7cc   :  { %v4182_v0 = vsel %vm4181_vm14, %v10777_v20, %v4178_v42  ;;  %vm4220_vm4 = vmor %vm4218_vm3, %vm4219_vm2  ;;  %v9280_v20 = vld [vmem:[#allocation9 + $0xf0] sm:$0xf0]  ;;  %v9287_v18 = vor.u32 %v10435_v55, %v9286_v15  ;;  %v9270_v42 = vld [vmem:[#allocation9 + $0xc8] sm:$0xf]  ;;  %v3252_v43 = vpack.c.bf16 %v3176_v4, %v3147_v35 }
 0x7cd   :  { %v4187_v38 = vsel %vm4184_vm0, %v4186_v14, %v4182_v0  ;;  %v4201_v56 = vsel %vm4200_vm15, %v10779_v23, %v4197_v29  ;;  %v4215_v40 = vsub.f32 1.0, %v4214_v51  ;;  %v9283_v23 = vor.u32 %v10432_v6, %v9280_v20  ;;  %v10431_v14 = vld [vmem:[#allocation9 + $0xd4] sm:$0xf0]  ;;  %v9272_v0 = vld [vmem:[#allocation9 + $0xd8] sm:$0xf0] }
 0x7ce   :  { %v4206_v12 = vsel %vm4203_vm1, %v4205_v27, %v4201_v56  ;;  %v4229_v37 = vmul.f32 %v10783_v32, %v4187_v38  ;;  %4772 = vmatpush.bf16.msra.mxu2 %v9287_v18  ;;  %v9271_v51 = vor.u32 %v10431_v14, %v9270_v42  ;;  %v10429_v27 = vld [vmem:[#allocation9 + $0xcc] sm:$0xf]  ;;  %v10426_v38 = vld [vmem:[#allocation9 + $0xac] sm:$0xf0]  ;;  %v10424_v56 = vld [vmem:[#allocation9 + $0xa4] sm:$0xf] }
 0x7cf   :  { %v4228_v8 = vmul.f32 %v4206_v12, %v11689_v5  ;;  %v4216_v44 = vmul.f32 %v10781_v2, %v4215_v40  ;;  %v9278_v5 = vld [vmem:[#allocation9 + $0xe0] sm:$0xf]  ;;  %4759 = vmatpush.bf16.msra.mxu1 %v9283_v23  ;;  %v9275_v32 = vor.u32 %v10429_v27, %v9272_v0  ;;  %v9247_v40 = vor.u32 %v10426_v38, %v9246_v49  ;;  %v9248_v12 = vld [vmem:[#allocation9 + $0xb0] sm:$0xf0]  ;;  %v10422_v6 = vld [vmem:[#allocation9 + $0x8c] sm:$0xf0] }
 0x7d0   :  { %v9279_v17 = vor.u32 %v10434_v7, %v9278_v5  ;;  %v9251_v62 = vor.u32 %v10424_v56, %v9248_v12  ;;  %v9230_v7 = vld [vmem:[#allocation9 + $0x80] sm:$0xf]  ;;  %v9238_v55 = vld [vmem:[#allocation9 + $0x88] sm:$0xf]  ;;  %v10423_v23 = vld [vmem:[#allocation9 + $0x94] sm:$0xf0] }
 0x7d1   :  { %v11714_v61 = vadd.f32 %v4229_v37, %v4228_v8  ;;  %v4217_v46 = vadd.f32 %v10781_v2, %v4216_v44  ;;  %4786 = vmatpush.bf16.msra.mxu3 %v9275_v32  ;;  %v9254_v37 = vld [vmem:[#allocation9 + $0xa8] sm:$0xf]  ;;  %v10427_v8 = vld [vmem:[#allocation9 + $0xb4] sm:$0xf0]  ;;  %v3205_v44 = vadd.f32 %v11580_v10, %v11564_v53  ;;  %v9231_v15 = vor.u32 %v10422_v6, %v9230_v7  ;;  %v10421_v35 = vld [vmem:[#allocation9 + $0x8c] sm:$0xf] }
 0x7d2   :  { %4746 = vmatpush.bf16.msra.mxu0 %v9279_v17  ;;  %4773 = vmatpush.bf16.msra.mxu2 %v9271_v51  ;;  %v9255_v3 = vor.u32 %v10427_v8, %v9254_v37  ;;  %v10420_v17 = vld [vmem:[#allocation9 + $0x84] sm:$0xf]  ;;  %v9239_v28 = vor.u32 %v10423_v23, %v9238_v55  ;;  %v9240_v4 = vld [vmem:[#allocation9 + $0x98] sm:$0xf0]  ;;  %v9216_v14 = vld [vmem:[#allocation9 + $0x70] sm:$0xf0] }
 0x7d3   :  { %10784 = vtanh.f32 %v11714_v61  ;;  %v4221_v45 = vsel %vm4220_vm4, %v10781_v2, %v4217_v46  ;;  %v9264_v2 = vld [vmem:[#allocation9 + $0xd0] sm:$0xf0]  ;;  %v3234_v46 = vadd.f32 %v11582_v11, %v11567_v54  ;;  %v9243_v34 = vor.u32 %v10421_v35, %v9240_v4  ;;  %v10419_v51 = vld [vmem:[#allocation9 + $0x74] sm:$0xf0]  ;;  %v10417_v32 = vld [vmem:[#allocation9 + $0x6c] sm:$0xf] }
 0x7d4   :  { %v4226_v50 = vsel %vm4223_vm5, %v4225_v26, %v4221_v45  ;;  %v9267_v29 = vor.u32 %v10428_v36, %v9264_v2  ;;  %v10425_v45 = vld [vmem:[#allocation9 + $0xac] sm:$0xf]  ;;  %v9256_v26 = vld [vmem:[#allocation9 + $0xb8] sm:$0xf0]  ;;  %v9232_v11 = vld [vmem:[#allocation9 + $0x90] sm:$0xf0] }
 0x7d5   :  { %v11725_v18 = vpack.c.bf16 %v3234_v46, %v3205_v44  ;;  %v9235_v41 = vor.u32 %v10420_v17, %v9232_v11  ;;  %v9214_v36 = vld [vmem:[#allocation9 + $0x60] sm:$0xf]  ;;  %v10416_v2 = vld [vmem:[#allocation9 + $0x64] sm:$0xf]  ;;  %v9224_v49 = vld [vmem:[#allocation9 + $0x78] sm:$0xf0] }
 0x7d6   :  { %4747 = vmatpush.bf16.msra.mxu0 %v9263_v58  ;;  %4760 = vmatpush.bf16.msra.mxu1 %v9267_v29  ;;  %v10418_v58 = vld [vmem:[#allocation9 + $0x6c] sm:$0xf0]  ;;  %v9222_v29 = vld [vmem:[#allocation9 + $0x68] sm:$0xf]  ;;  %v9219_v0 = vor.u32 %v10416_v2, %v9216_v14  ;;  %v9198_v38 = vld [vmem:[#allocation9 + $0x40] sm:$0xf]  ;;  %v9227_v12 = vor.u32 %v10417_v32, %v9224_v49 }
 0x7d7   :  { %4774 = vmatpush.bf16.msra.mxu2 %v9255_v3  ;;  %v9215_v42 = vor.u32 %v10418_v58, %v9214_v36  ;;  %v4484_v27 = vunpack.c.h.bf16 %v11725_v18  ;;  %v10414_v37 = vld [vmem:[#allocation9 + $0x4c] sm:$0xf0]  ;;  %v10412_v8 = vld [vmem:[#allocation9 + $0x44] sm:$0xf]  ;;  %v9200_v44 = vld [vmem:[#allocation9 + $0x50] sm:$0xf0] }
 0x7d8   :  { %v9182_v7 = vld [vmem:[#allocation9 + $0x20] sm:$0xf]  ;;  %v10410_v6 = vld [vmem:[#allocation9 + $0x2c] sm:$0xf0]  ;;  %v9190_v23 = vld [vmem:[#allocation9 + $0x28] sm:$0xf] }
 0x7d9   :  { %v10785_v52 = vpop.eup %10784  ;;  %v9183_v55 = vor.u32 %v10410_v6, %v9182_v7  ;;  %v9166_v36 = vld [vmem:[#allocation9] sm:$0xf]  ;;  %v10404_v14 = vld [vmem:[#allocation9 + $0x4] sm:$0xf]  ;;  %v10407_v49 = vld [vmem:[#allocation9 + $0x14] sm:$0xf0] }
 0x7da   :  { %v4232_v57 = vmul.f32 %v10785_v52, %v4226_v50  ;;  %v4481_v52 = vunpack.c.l.bf16 %v3252_v43  ;;  %v4482_v50 = vunpack.c.h.bf16 %v3252_v43  ;;  %4748 = vmatpush.bf16.msra.mxu0 %v9247_v40  ;;  %4761 = vmatpush.bf16.msra.mxu1 %v9251_v62  ;;  %v9223_v43 = vor.u32 %v10419_v51, %v9222_v29  ;;  %v9168_v29 = vld [vmem:[#allocation9 + $0x10] sm:$0xf0] }
 0x7db   :  { %4775 = vmatpush.bf16.msra.mxu2 %v9239_v28  ;;  %v10409_v28 = vld [vmem:[#allocation9 + $0x2c] sm:$0xf]  ;;  %v9171_v32 = vor.u32 %v10404_v14, %v9168_v29 }
 0x7dc   :  { %v4233_v16 = vpack.c.bf16 %v4232_v57, %v4232_v57  ;;  %v9259_v57 = vor.u32 %v10425_v45, %v9256_v26  ;;  %v9199_v45 = vor.u32 %v10414_v37, %v9198_v38  ;;  %v9206_v26 = vld [vmem:[#allocation9 + $0x48] sm:$0xf]  ;;  %v10405_v38 = vld [vmem:[#allocation9 + $0xc] sm:$0xf] }
 0x7de   :  { %4234 = vst [vmem:[#allocation2 + $0x8] sm:$0xf] %v4233_v16  ;;  %4435 = vmatmul.bf16.vlgmr.msrb.gmra.mxu0 %v4233_v16  ;;  %4448 = vmatmul.bf16.vlgmr.msrb.gmra.mxu1 %v4233_v16 }
 0x7df   :  { %4461 = vmatmul.bf16.vlgmr.msrb.gmra.mxu2 %v4233_v16  ;;  %4474 = vmatmul.bf16.vlgmr.msrb.gmra.mxu3 %v4233_v16 }
 0x7e0   :  { %4787 = vmatpush.bf16.msra.mxu3 %v9259_v57  ;;  %4749 = vmatpush.bf16.msra.mxu0 %v9231_v15  ;;  %v9203_v57 = vor.u32 %v10412_v8, %v9200_v44  ;;  %v9184_v15 = vld [vmem:[#allocation9 + $0x30] sm:$0xf0]  ;;  %v4483_v8 = vunpack.c.l.bf16 %v11725_v18 }
 0x7e1   :  { %4762 = vmatpush.bf16.msra.mxu1 %v9235_v41  ;;  %4776 = vmatpush.bf16.msra.mxu2 %v9223_v43  ;;  %v10411_v41 = vld [vmem:[#allocation9 + $0x34] sm:$0xf0] }
 0x7e4   :  { %4788 = vmatpush.bf16.msra.mxu3 %v9243_v34  ;;  %4750 = vmatpush.bf16.msra.mxu0 %v9215_v42  ;;  %v9192_v34 = vld [vmem:[#allocation9 + $0x38] sm:$0xf0]  ;;  %v10406_v42 = vld [vmem:[#allocation9 + $0xc] sm:$0xf0] }
 0x7e5   :  { %4763 = vmatpush.bf16.msra.mxu1 %v9219_v0  ;;  %v9195_v2 = vor.u32 %v10409_v28, %v9192_v34  ;;  %v9174_v0 = vld [vmem:[#allocation9 + $0x8] sm:$0xf]  ;;  %v9167_v43 = vor.u32 %v10406_v42, %v9166_v36 }
 0x7e8   :  { %4789 = vmatpush.bf16.msra.mxu3 %v9227_v12  ;;  %4751 = vmatpush.bf16.msra.mxu0 %v9199_v45  ;;  %v9176_v12 = vld [vmem:[#allocation9 + $0x18] sm:$0xf0] }
 0x7e9   :  { %4764 = vmatpush.bf16.msra.mxu1 %v9203_v57  ;;  %v9179_v44 = vor.u32 %v10405_v38, %v9176_v12  ;;  %v10464_v38 = vld [vmem:[#allocation9 + $0xe4] sm:$0xf]  ;;  %v9411_v12 = vld [vmem:[#allocation9 + $0xf0] sm:$0xf0] }
 0x7ec   :  { %4752 = vmatpush.bf16.msra.mxu0 %v9183_v55 }
 0x7f0   :  { %4753 = vmatpush.bf16.msra.mxu0 %v9167_v43 }
 0x85b   :  { %v4436_v16 = vpop.f32.mrf.mxu0  ;;  %v4449_v5 = vpop.f32.mrf.mxu1 }
 0x85c   :  { %v4485_v20 = vadd.f32 %v4481_v52, %v4436_v16  ;;  %v4486_v10 = vadd.f32 %v4482_v50, %v4449_v5  ;;  %v10415_v52 = vld [vmem:[#allocation9 + $0x54] sm:$0xf0]  ;;  %v10413_v50 = vld [vmem:[#allocation9 + $0x4c] sm:$0xf]  ;;  %v9208_v5 = vld [vmem:[#allocation9 + $0x58] sm:$0xf0] }
 0x85d   :  { %v9207_v16 = vor.u32 %v10415_v52, %v9206_v26 }
 0x85e   :  { %v9161_v39 = vmul.f32 -1.442695, %v4485_v20  ;;  %v9162_v21 = vmul.f32 -1.442695, %v4486_v10  ;;  %v9211_v20 = vor.u32 %v10413_v50, %v9208_v5  ;;  %v10408_v10 = vld [vmem:[#allocation9 + $0x24] sm:$0xf] }
 0x85f   :  { %4777 = vmatpush.bf16.msra.mxu2 %v9207_v16 }
 0x860   :  { %10786 = vpow2.f32 %v9161_v39  ;;  %v9187_v39 = vor.u32 %v10408_v10, %v9184_v15  ;;  %4790 = vmatpush.bf16.msra.mxu3 %v9211_v20 }
 0x861   :  { %10788 = vpow2.f32 %v9162_v21  ;;  %v9191_v21 = vor.u32 %v10411_v41, %v9190_v23 }
 0x862   :  { %v11728_v56 = vpop.f32.mrf.mxu2  ;;  %v4475_v40 = vpop.f32.mrf.mxu3  ;;  %4765 = vmatpush.bf16.msra.mxu1 %v9187_v39 }
 0x863   :  { %v4488_v46 = vadd.f32 %v4484_v27, %v4475_v40  ;;  %v4438_v62 = vpop.f32.mrf.mxu0  ;;  %v4451_v3 = vpop.f32.mrf.mxu1  ;;  %4778 = vmatpush.bf16.msra.mxu2 %v9191_v21  ;;  %v9175_v40 = vor.u32 %v10407_v49, %v9174_v0  ;;  %v10466_v49 = vld [vmem:[#allocation9 + $0xec] sm:$0xf0] }
 0x864   :  { %4791 = vmatpush.bf16.msra.mxu3 %v9195_v2  ;;  %v4487_v3 = vadd.f32 %v4483_v8, %v11728_v56  ;;  %v10467_v8 = vld [vmem:[#allocation9 + $0xf4] sm:$0xf0] }
 0x865   :  { %v9163_v17 = vmul.f32 -1.442695, %v4488_v46 }
 0x866   :  { %v10787_v11 = vpop.eup %10786  ;;  %4766 = vmatpush.bf16.msra.mxu1 %v9171_v32 }
 0x867   :  { %v10789_v35 = vpop.eup %10788  ;;  %v11730_v4 = vadd.f32 1.0, %v10787_v11  ;;  %10790 = vpow2.f32 %v9163_v17  ;;  %4779 = vmatpush.bf16.msra.mxu2 %v9175_v40 }
 0x868   :  { %v4511_v58 = vadd.f32 1.0, %v10789_v35  ;;  %4792 = vmatpush.bf16.msra.mxu3 %v9179_v44  ;;  %v9414_v44 = vor.u32 %v10464_v38, %v9411_v12 }
 0x869   :  { %10792 = vrcp.f32 %v11730_v4  ;;  %v4504_v16 = vand.u32 2147483648, %v11730_v4  ;;  %v4502_v7 = vand.u32 2147483647, %v11730_v4  ;;  %vm4498_vm8 = vweird.f32 %v11730_v4 }
 0x86a   :  { %10794 = vrcp.f32 %v4511_v58  ;;  %v4464_v51 = vpop.f32.mrf.mxu2  ;;  %v4477_v27 = vpop.f32.mrf.mxu3  ;;  %v4523_v18 = vand.u32 2147483648, %v4511_v58  ;;  %v4521_v56 = vand.u32 2147483647, %v4511_v58  ;;  %vm4517_vm9 = vweird.f32 %v4511_v58  ;;  %5078 = vmatpush.bf16.msrb.mxu1 %v9414_v44 }
 0x86b   :  { %v4505_v10 = vor.u32 1.1754944e-38, %v4504_v16  ;;  %vm4503_vm12 = vcmp.eq.f32.partialorder %v4502_v7, 8.507059e+37  ;;  %v9395_v16 = vld [vmem:[#allocation9 + $0xd0] sm:$0xf0] }
 0x86c   :  { %v4524_v55 = vor.u32 1.1754944e-38, %v4523_v18  ;;  %vm4522_vm13 = vcmp.eq.f32.partialorder %v4521_v56, 8.507059e+37  ;;  %v9401_v18 = vld [vmem:[#allocation9 + $0xc8] sm:$0xf]  ;;  %v10461_v56 = vld [vmem:[#allocation9 + $0xcc] sm:$0xf] }
 0x86d   :  { %v10791_v37 = vpop.eup %10790 }
 0x86e   :  { %v4531_v46 = vadd.f32 1.0, %v10791_v37  ;;  %v9417_v37 = vld [vmem:[#allocation9 + $0xe8] sm:$0xf] }
 0x86f   :  { %v10793_v62 = vpop.eup %10792 }
 0x870   :  { %v10795_v45 = vpop.eup %10794  ;;  %v4494_v26 = vmul.f32 %v10793_v62, %v11730_v4  ;;  %10796 = vrcp.f32 %v4531_v46  ;;  %vm4499_vm6 = vweird.f32 %v10793_v62  ;;  %v4543_v42 = vand.u32 2147483648, %v4531_v46 }
 0x871   :  { %v4513_v52 = vmul.f32 %v10795_v45, %v4511_v58  ;;  %10798 = vtanh.f32 %v4487_v3  ;;  %vm4518_vm7 = vweird.f32 %v10795_v45  ;;  %vm4500_vm10 = vmor %vm4498_vm8, %vm4499_vm6  ;;  %vm4537_vm15 = vweird.f32 %v4531_v46  ;;  %v9419_v3 = vld [vmem:[#allocation9 + $0xf8] sm:$0xf0] }
 0x872   :  { %v4495_v50 = vsub.f32 1.0, %v4494_v26  ;;  %vm4519_vm11 = vmor %vm4517_vm9, %vm4518_vm7  ;;  %v4541_v14 = vand.u32 2147483647, %v4531_v46  ;;  %v4544_v51 = vor.u32 1.1754944e-38, %v4543_v42  ;;  %v9393_v26 = vld [vmem:[#allocation9 + $0xc0] sm:$0xf] }
 0x873   :  { %v4514_v57 = vsub.f32 1.0, %v4513_v52  ;;  %v10462_v52 = vld [vmem:[#allocation9 + $0xcc] sm:$0xf0]  ;;  %v9361_v42 = vld [vmem:[#allocation9 + $0x80] sm:$0xf] }
 0x874   :  { %v4496_v5 = vmul.f32 %v10793_v62, %v4495_v50  ;;  %vm4542_vm1 = vcmp.eq.f32.partialorder %v4541_v14, 8.507059e+37  ;;  %v10460_v50 = vld [vmem:[#allocation9 + $0xc4] sm:$0xf]  ;;  %v10454_v14 = vld [vmem:[#allocation9 + $0x8c] sm:$0xf0] }
 0x875   :  { %v4515_v6 = vmul.f32 %v10795_v45, %v4514_v57  ;;  %v9394_v57 = vor.u32 %v10462_v52, %v9393_v26  ;;  %v9398_v7 = vor.u32 %v10460_v50, %v9395_v16  ;;  %v9347_v26 = vld [vmem:[#allocation9 + $0x70] sm:$0xf0]  ;;  %v10451_v16 = vld [vmem:[#allocation9 + $0x74] sm:$0xf0] }
 0x876   :  { %v10797_v17 = vpop.eup %10796  ;;  %v4497_v20 = vadd.f32 %v10793_v62, %v4496_v5  ;;  %v10463_v5 = vld [vmem:[#allocation9 + $0xd4] sm:$0xf0] }
 0x877   :  { %v4516_v15 = vadd.f32 %v10795_v45, %v4515_v6  ;;  %v4533_v11 = vmul.f32 %v10797_v17, %v4531_v46  ;;  %v10799_v41 = vpop.eup %10798  ;;  %vm4538_vm14 = vweird.f32 %v10797_v17  ;;  %v9418_v46 = vor.u32 %v10467_v8, %v9417_v37  ;;  %5079 = vmatpush.bf16.msrb.mxu1 %v9398_v7  ;;  %v10453_v37 = vld [vmem:[#allocation9 + $0x8c] sm:$0xf]  ;;  %v9371_v8 = vld [vmem:[#allocation9 + $0x98] sm:$0xf0] }
 0x878   :  { %v4501_v23 = vsel %vm4500_vm10, %v10793_v62, %v4497_v20  ;;  %vm4539_vm0 = vmor %vm4537_vm15, %vm4538_vm14  ;;  %v10465_v62 = vld [vmem:[#allocation9 + $0xec] sm:$0xf]  ;;  %v9402_v6 = vor.u32 %v10463_v5, %v9401_v18  ;;  %v4803_v5 = vunpack.c.h.bf16 %v11590_v24 }
 0x879   :  { %v4506_v28 = vsel %vm4503_vm12, %v4505_v10, %v4501_v23  ;;  %v4520_v35 = vsel %vm4519_vm11, %v10795_v45, %v4516_v15  ;;  %v4534_v39 = vsub.f32 1.0, %v4533_v11  ;;  %v9422_v45 = vor.u32 %v10465_v62, %v9419_v3  ;;  %5091 = vmatpush.bf16.msrb.mxu2 %v9418_v46  ;;  %v9377_v10 = vld [vmem:[#allocation9 + $0xa0] sm:$0xf]  ;;  %v10458_v15 = vld [vmem:[#allocation9 + $0xac] sm:$0xf0] }
 0x87a   :  { %v4525_v21 = vsel %vm4522_vm13, %v4524_v55, %v4520_v35  ;;  %v4548_v34 = vmul.f32 %v10799_v41, %v4506_v28  ;;  %v10456_v11 = vld [vmem:[#allocation9 + $0xa4] sm:$0xf]  ;;  %v9378_v55 = vor.u32 %v10458_v15, %v9377_v10  ;;  %v9379_v23 = vld [vmem:[#allocation9 + $0xb0] sm:$0xf0]  ;;  %v9385_v41 = vld [vmem:[#allocation9 + $0xa8] sm:$0xf] }
 0x87b   :  { %v4547_v36 = vmul.f32 %v4525_v21, %v11714_v61  ;;  %v4535_v2 = vmul.f32 %v10797_v17, %v4534_v39  ;;  %v9409_v61 = vld [vmem:[#allocation9 + $0xe0] sm:$0xf]  ;;  %5104 = vmatpush.bf16.msrb.mxu3 %v9422_v45  ;;  %v10459_v28 = vld [vmem:[#allocation9 + $0xb4] sm:$0xf0]  ;;  %v9382_v35 = vor.u32 %v10456_v11, %v9379_v23  ;;  %v10457_v21 = vld [vmem:[#allocation9 + $0xac] sm:$0xf] }
 0x87c   :  { %v9410_v40 = vor.u32 %v10466_v49, %v9409_v61  ;;  %v9386_v39 = vor.u32 %v10459_v28, %v9385_v41  ;;  %v10455_v61 = vld [vmem:[#allocation9 + $0x94] sm:$0xf0]  ;;  %v9345_v62 = vld [vmem:[#allocation9 + $0x60] sm:$0xf]  ;;  %v10450_v3 = vld [vmem:[#allocation9 + $0x6c] sm:$0xf0] }
 0x87d   :  { %v11740_v4 = vadd.f32 %v4548_v34, %v4547_v36  ;;  %v4536_v58 = vadd.f32 %v10797_v17, %v4535_v2  ;;  %5092 = vmatpush.bf16.msrb.mxu2 %v9402_v6  ;;  %v9387_v34 = vld [vmem:[#allocation9 + $0xb8] sm:$0xf0]  ;;  %v4800_v2 = vunpack.c.l.bf16 %v11586_v47  ;;  %5080 = vmatpush.bf16.msrb.mxu1 %v9382_v35  ;;  %v10448_v45 = vld [vmem:[#allocation9 + $0x64] sm:$0xf]  ;;  %v9346_v52 = vor.u32 %v10450_v3, %v9345_v62  ;;  %v10449_v18 = vld [vmem:[#allocation9 + $0x6c] sm:$0xf] }
 0x87e   :  { %5065 = vmatpush.bf16.msrb.mxu0 %v9410_v40  ;;  %v9390_v36 = vor.u32 %v10457_v21, %v9387_v34  ;;  %v9350_v50 = vor.u32 %v10448_v45, %v9347_v26  ;;  %v9355_v6 = vld [vmem:[#allocation9 + $0x78] sm:$0xf0]  ;;  %v9331_v23 = vld [vmem:[#allocation9 + $0x50] sm:$0xf0]  ;;  %v9337_v41 = vld [vmem:[#allocation9 + $0x48] sm:$0xf] }
 0x87f   :  { %10800 = vtanh.f32 %v11740_v4  ;;  %v4540_v29 = vsel %vm4539_vm0, %v10797_v17, %v4536_v58  ;;  %v9403_v17 = vld [vmem:[#allocation9 + $0xd8] sm:$0xf0]  ;;  %v4801_v58 = vunpack.c.h.bf16 %v11586_v47  ;;  %v9374_v47 = vor.u32 %v10453_v37, %v9371_v8  ;;  %v10447_v34 = vld [vmem:[#allocation9 + $0x54] sm:$0xf0]  ;;  %v10436_v45 = vld [vmem:[#allocation9 + $0x4] sm:$0xf] }
 0x880   :  { %v4545_v0 = vsel %vm4542_vm1, %v4544_v51, %v4540_v29  ;;  %v9406_v20 = vor.u32 %v10461_v56, %v9403_v17  ;;  %v10452_v29 = vld [vmem:[#allocation9 + $0x84] sm:$0xf]  ;;  %v9329_v56 = vld [vmem:[#allocation9 + $0x40] sm:$0xf]  ;;  %v10446_v17 = vld [vmem:[#allocation9 + $0x4c] sm:$0xf0]  ;;  %v9358_v15 = vor.u32 %v10449_v18, %v9355_v6 }
 0x881   :  { %5093 = vmatpush.bf16.msrb.mxu2 %v9386_v39  ;;  %v9330_v11 = vor.u32 %v10446_v17, %v9329_v56  ;;  %v9299_v26 = vld [vmem:[#allocation9 + $0x10] sm:$0xf0]  ;;  %v10439_v18 = vld [vmem:[#allocation9 + $0x14] sm:$0xf0]  ;;  %v10437_v6 = vld [vmem:[#allocation9 + $0xc] sm:$0xf] }
 0x882   :  { %5066 = vmatpush.bf16.msrb.mxu0 %v9394_v57  ;;  %5105 = vmatpush.bf16.msrb.mxu3 %v9406_v20  ;;  %v9353_v57 = vld [vmem:[#allocation9 + $0x68] sm:$0xf]  ;;  %v9307_v56 = vld [vmem:[#allocation9 + $0x18] sm:$0xf0] }
 0x883   :  { %v9354_v7 = vor.u32 %v10451_v16, %v9353_v57  ;;  %v9310_v17 = vor.u32 %v10437_v6, %v9307_v56  ;;  %v9548_v6 = vld [vmem:[#allocation9 + $0xe8] sm:$0xf]  ;;  %v10499_v56 = vld [vmem:[#allocation9 + $0xf4] sm:$0xf0] }
 0x885   :  { %v10801_v27 = vpop.eup %10800 }
 0x886   :  { %v4551_v43 = vmul.f32 %v10801_v27, %v4545_v0  ;;  %5067 = vmatpush.bf16.msrb.mxu0 %v9378_v55  ;;  %5106 = vmatpush.bf16.msrb.mxu3 %v9390_v36  ;;  %v9362_v0 = vor.u32 %v10454_v14, %v9361_v42  ;;  %v10444_v55 = vld [vmem:[#allocation9 + $0x44] sm:$0xf]  ;;  %v10445_v36 = vld [vmem:[#allocation9 + $0x4c] sm:$0xf]  ;;  %v9313_v14 = vld [vmem:[#allocation9 + $0x20] sm:$0xf] }
 0x887   :  { %v9334_v21 = vor.u32 %v10444_v55, %v9331_v23 }
 0x888   :  { %v4552_v32 = vpack.c.bf16 %v4551_v43, %v4551_v43  ;;  %v9363_v43 = vld [vmem:[#allocation9 + $0x90] sm:$0xf0] }
 0x889   :  { %v9366_v40 = vor.u32 %v10452_v29, %v9363_v43  ;;  %v10442_v29 = vld [vmem:[#allocation9 + $0x2c] sm:$0xf0]  ;;  %v9321_v43 = vld [vmem:[#allocation9 + $0x28] sm:$0xf] }
 0x88a   :  { %4553 = vst [vmem:[#allocation2 + $0xc] sm:$0xf] %v4552_v32  ;;  %4754 = vmatmul.bf16.vlgmr.msra.gmra.mxu0 %v4552_v32  ;;  %4767 = vmatmul.bf16.vlgmr.msra.gmra.mxu1 %v4552_v32 }
 0x88b   :  { %4780 = vmatmul.bf16.vlgmr.msra.gmra.mxu2 %v4552_v32  ;;  %4793 = vmatmul.bf16.vlgmr.msra.gmra.mxu3 %v4552_v32  ;;  %v9369_v32 = vld [vmem:[#allocation9 + $0x88] sm:$0xf] }
 0x88c   :  { %v9370_v12 = vor.u32 %v10455_v61, %v9369_v32  ;;  %5068 = vmatpush.bf16.msrb.mxu0 %v9362_v0  ;;  %5081 = vmatpush.bf16.msrb.mxu1 %v9366_v40  ;;  %v9315_v0 = vld [vmem:[#allocation9 + $0x30] sm:$0xf0]  ;;  %v9314_v61 = vor.u32 %v10442_v29, %v9313_v14  ;;  %v10441_v40 = vld [vmem:[#allocation9 + $0x2c] sm:$0xf] }
 0x88d   :  { %5107 = vmatpush.bf16.msrb.mxu3 %v9374_v47 }
 0x88e   :  { %5094 = vmatpush.bf16.msrb.mxu2 %v9370_v12  ;;  %v9323_v12 = vld [vmem:[#allocation9 + $0x38] sm:$0xf0] }
 0x88f   :  { %v9326_v3 = vor.u32 %v10441_v40, %v9323_v12 }
 0x890   :  { %5069 = vmatpush.bf16.msrb.mxu0 %v9346_v52  ;;  %5082 = vmatpush.bf16.msrb.mxu1 %v9350_v50  ;;  %v9305_v52 = vld [vmem:[#allocation9 + $0x8] sm:$0xf] }
 0x891   :  { %5108 = vmatpush.bf16.msrb.mxu3 %v9358_v15  ;;  %v4802_v15 = vunpack.c.l.bf16 %v11590_v24 }
 0x892   :  { %5095 = vmatpush.bf16.msrb.mxu2 %v9354_v7  ;;  %v9306_v7 = vor.u32 %v10439_v18, %v9305_v52  ;;  %v10496_v18 = vld [vmem:[#allocation9 + $0xe4] sm:$0xf] }
 0x894   :  { %5070 = vmatpush.bf16.msrb.mxu0 %v9330_v11  ;;  %5083 = vmatpush.bf16.msrb.mxu1 %v9334_v21 }
 0x898   :  { %5071 = vmatpush.bf16.msrb.mxu0 %v9314_v61 }
 0x907   :  { %v4755_v51 = vpop.f32.mrf.mxu0  ;;  %v4768_v27 = vpop.f32.mrf.mxu1 }
 0x908   :  { %v4804_v49 = vadd.f32 %v4800_v2, %v4755_v51  ;;  %v4805_v38 = vadd.f32 %v4801_v58, %v4768_v27  ;;  %v9339_v2 = vld [vmem:[#allocation9 + $0x58] sm:$0xf0]  ;;  %v9338_v58 = vor.u32 %v10447_v34, %v9337_v41  ;;  %v10440_v51 = vld [vmem:[#allocation9 + $0x24] sm:$0xf] }
 0x909   :  { %v9342_v42 = vor.u32 %v10445_v36, %v9339_v2 }
 0x90a   :  { %v9292_v44 = vmul.f32 -1.442695, %v4804_v49  ;;  %v9293_v46 = vmul.f32 -1.442695, %v4805_v38  ;;  %v9318_v49 = vor.u32 %v10440_v51, %v9315_v0  ;;  %v10443_v38 = vld [vmem:[#allocation9 + $0x34] sm:$0xf0]  ;;  %5096 = vmatpush.bf16.msrb.mxu2 %v9338_v58 }
 0x90b   :  { %v9322_v47 = vor.u32 %v10443_v38, %v9321_v43  ;;  %5109 = vmatpush.bf16.msrb.mxu3 %v9342_v42 }
 0x90c   :  { %10802 = vpow2.f32 %v9292_v44  ;;  %v9297_v44 = vld [vmem:[#allocation9] sm:$0xf]  ;;  %5084 = vmatpush.bf16.msrb.mxu1 %v9318_v49 }
 0x90d   :  { %10804 = vpow2.f32 %v9293_v46  ;;  %v10438_v46 = vld [vmem:[#allocation9 + $0xc] sm:$0xf0] }
 0x90e   :  { %v11746_v20 = vpop.f32.mrf.mxu2  ;;  %v4794_v10 = vpop.f32.mrf.mxu3  ;;  %v9298_v16 = vor.u32 %v10438_v46, %v9297_v44  ;;  %5097 = vmatpush.bf16.msrb.mxu2 %v9322_v47 }
 0x90f   :  { %v4807_v28 = vadd.f32 %v4803_v5, %v4794_v10  ;;  %v4757_v35 = vpop.f32.mrf.mxu0  ;;  %v4770_v39 = vpop.f32.mrf.mxu1  ;;  %v9302_v5 = vor.u32 %v10436_v45, %v9299_v26  ;;  %5110 = vmatpush.bf16.msrb.mxu3 %v9326_v3  ;;  %v4806_v23 = vadd.f32 %v4802_v15, %v11746_v20  ;;  %v10497_v15 = vld [vmem:[#allocation9 + $0xec] sm:$0xf] }
 0x910   :  { %5072 = vmatpush.bf16.msrb.mxu0 %v9298_v16  ;;  %v10498_v16 = vld [vmem:[#allocation9 + $0xec] sm:$0xf0] }
 0x911   :  { %v9294_v27 = vmul.f32 -1.442695, %v4807_v28  ;;  %5085 = vmatpush.bf16.msrb.mxu1 %v9302_v5 }
 0x912   :  { %v10803_v32 = vpop.eup %10802  ;;  %5098 = vmatpush.bf16.msrb.mxu2 %v9306_v7  ;;  %v9542_v7 = vld [vmem:[#allocation9 + $0xf0] sm:$0xf0] }
 0x913   :  { %v10805_v37 = vpop.eup %10804  ;;  %v11748_v8 = vadd.f32 1.0, %v10803_v32  ;;  %10806 = vpow2.f32 %v9294_v27  ;;  %5111 = vmatpush.bf16.msrb.mxu3 %v9310_v17  ;;  %v9545_v17 = vor.u32 %v10496_v18, %v9542_v7  ;;  %v9502_v7 = vld [vmem:[#allocation9 + $0x98] sm:$0xf0] }
 0x914   :  { %v4830_v62 = vadd.f32 1.0, %v10805_v37 }
 0x915   :  { %10808 = vrcp.f32 %v11748_v8  ;;  %v4823_v34 = vand.u32 2147483648, %v11748_v8  ;;  %v4821_v2 = vand.u32 2147483647, %v11748_v8  ;;  %vm4817_vm4 = vweird.f32 %v11748_v8  ;;  %5397 = vmatpush.bf16.msra.mxu1 %v9545_v17 }
 0x916   :  { %10810 = vrcp.f32 %v4830_v62  ;;  %v4783_v50 = vpop.f32.mrf.mxu2  ;;  %v4796_v57 = vpop.f32.mrf.mxu3  ;;  %v4842_v36 = vand.u32 2147483648, %v4830_v62  ;;  %v4840_v20 = vand.u32 2147483647, %v4830_v62  ;;  %vm4836_vm5 = vweird.f32 %v4830_v62 }
 0x917   :  { %v4824_v29 = vor.u32 1.1754944e-38, %v4823_v34  ;;  %vm4822_vm8 = vcmp.eq.f32.partialorder %v4821_v2, 8.507059e+37  ;;  %v9526_v34 = vld [vmem:[#allocation9 + $0xd0] sm:$0xf0] }
 0x918   :  { %v4843_v0 = vor.u32 1.1754944e-38, %v4842_v36  ;;  %vm4841_vm9 = vcmp.eq.f32.partialorder %v4840_v20, 8.507059e+37  ;;  %v9532_v36 = vld [vmem:[#allocation9 + $0xc8] sm:$0xf]  ;;  %v10493_v20 = vld [vmem:[#allocation9 + $0xcc] sm:$0xf] }
 0x919   :  { %v10807_v10 = vpop.eup %10806 }
 0x91a   :  { %v4850_v11 = vadd.f32 1.0, %v10807_v10  ;;  %v9549_v10 = vor.u32 %v10499_v56, %v9548_v6 }
 0x91b   :  { %v10809_v55 = vpop.eup %10808 }
 0x91c   :  { %v10811_v41 = vpop.eup %10810  ;;  %v4813_v28 = vmul.f32 %v10809_v55, %v11748_v8  ;;  %10812 = vrcp.f32 %v4850_v11  ;;  %vm4818_vm2 = vweird.f32 %v10809_v55  ;;  %v4862_v46 = vand.u32 2147483648, %v4850_v11  ;;  %5410 = vmatpush.bf16.msra.mxu2 %v9549_v10  ;;  %v9476_v10 = vld [vmem:[#allocation9 + $0x60] sm:$0xf] }
 0x91d   :  { %v4832_v35 = vmul.f32 %v10811_v41, %v4830_v62  ;;  %10814 = vtanh.f32 %v4806_v23  ;;  %vm4837_vm3 = vweird.f32 %v10811_v41  ;;  %vm4819_vm6 = vmor %vm4817_vm4, %vm4818_vm2  ;;  %vm4856_vm11 = vweird.f32 %v4850_v11  ;;  %v9524_v23 = vld [vmem:[#allocation9 + $0xc0] sm:$0xf] }
 0x91e   :  { %v4814_v39 = vsub.f32 1.0, %v4813_v28  ;;  %vm4838_vm7 = vmor %vm4836_vm5, %vm4837_vm3  ;;  %v4860_v62 = vand.u32 2147483647, %v4850_v11  ;;  %v4863_v45 = vor.u32 1.1754944e-38, %v4862_v46  ;;  %v10492_v28 = vld [vmem:[#allocation9 + $0xc4] sm:$0xf] }
 0x91f   :  { %v4833_v21 = vsub.f32 1.0, %v4832_v35  ;;  %v3152_v35 = vadd.f32 %v11596_v25, %v11537_v13  ;;  %v9529_v2 = vor.u32 %v10492_v28, %v9526_v34  ;;  %v10486_v46 = vld [vmem:[#allocation9 + $0x8c] sm:$0xf0]  ;;  %v9478_v28 = vld [vmem:[#allocation9 + $0x70] sm:$0xf0] }
 0x920   :  { %v4815_v24 = vmul.f32 %v10809_v55, %v4814_v39  ;;  %vm4861_vm13 = vcmp.eq.f32.partialorder %v4860_v62, 8.507059e+37  ;;  %v3181_v39 = vadd.f32 %v11598_v22, %v11540_v63  ;;  %v9510_v22 = vld [vmem:[#allocation9 + $0xb0] sm:$0xf0]  ;;  %v10484_v62 = vld [vmem:[#allocation9 + $0x84] sm:$0xf] }
 0x921   :  { %v4834_v58 = vmul.f32 %v10811_v41, %v4833_v21  ;;  %5398 = vmatpush.bf16.msra.mxu1 %v9529_v2  ;;  %v10481_v34 = vld [vmem:[#allocation9 + $0x6c] sm:$0xf]  ;;  %v9460_v2 = vld [vmem:[#allocation9 + $0x40] sm:$0xf] }
 0x922   :  { %v10813_v42 = vpop.eup %10812  ;;  %v4816_v14 = vadd.f32 %v10809_v55, %v4815_v24  ;;  %v10495_v24 = vld [vmem:[#allocation9 + $0xd4] sm:$0xf0]  ;;  %v3256_v25 = vpack.c.bf16 %v3181_v39, %v3152_v35  ;;  %v9484_v39 = vld [vmem:[#allocation9 + $0x68] sm:$0xf] }
 0x923   :  { %v4835_v51 = vadd.f32 %v10811_v41, %v4834_v58  ;;  %v4852_v27 = vmul.f32 %v10813_v42, %v4850_v11  ;;  %v10815_v32 = vpop.eup %10814  ;;  %vm4857_vm10 = vweird.f32 %v10813_v42  ;;  %v9550_v11 = vld [vmem:[#allocation9 + $0xf8] sm:$0xf0]  ;;  %v9533_v58 = vor.u32 %v10495_v24, %v9532_v36 }
 0x924   :  { %v4820_v43 = vsel %vm4819_vm6, %v10809_v55, %v4816_v14  ;;  %vm4858_vm12 = vmor %vm4856_vm11, %vm4857_vm10  ;;  %v9553_v55 = vor.u32 %v10497_v15, %v9550_v11  ;;  %v10482_v15 = vld [vmem:[#allocation9 + $0x6c] sm:$0xf0]  ;;  %v10480_v11 = vld [vmem:[#allocation9 + $0x64] sm:$0xf] }
 0x925   :  { %v4825_v61 = vsel %vm4822_vm8, %v4824_v29, %v4820_v43  ;;  %v4839_v49 = vsel %vm4838_vm7, %v10811_v41, %v4835_v51  ;;  %v4853_v38 = vsub.f32 1.0, %v4852_v27  ;;  %v10494_v41 = vld [vmem:[#allocation9 + $0xcc] sm:$0xf0]  ;;  %5411 = vmatpush.bf16.msra.mxu2 %v9533_v58  ;;  %v9508_v29 = vld [vmem:[#allocation9 + $0xa0] sm:$0xf]  ;;  %v9481_v35 = vor.u32 %v10480_v11, %v9478_v28 }
 0x926   :  { %v4844_v40 = vsel %vm4841_vm9, %v4843_v0, %v4839_v49  ;;  %v4867_v12 = vmul.f32 %v10815_v32, %v4825_v61  ;;  %5423 = vmatpush.bf16.msra.mxu3 %v9553_v55  ;;  %v9525_v21 = vor.u32 %v10494_v41, %v9524_v23  ;;  %v10490_v51 = vld [vmem:[#allocation9 + $0xac] sm:$0xf0]  ;;  %v10488_v27 = vld [vmem:[#allocation9 + $0xa4] sm:$0xf]  ;;  %v9516_v43 = vld [vmem:[#allocation9 + $0xa8] sm:$0xf]  ;;  %v9477_v41 = vor.u32 %v10482_v15, %v9476_v10 }
 0x927   :  { %v4866_v37 = vmul.f32 %v4844_v40, %v11740_v4  ;;  %v4854_v47 = vmul.f32 %v10813_v42, %v4853_v38  ;;  %v9540_v4 = vld [vmem:[#allocation9 + $0xe0] sm:$0xf]  ;;  %v9509_v0 = vor.u32 %v10490_v51, %v9508_v29  ;;  %v10491_v32 = vld [vmem:[#allocation9 + $0xb4] sm:$0xf0]  ;;  %v9513_v61 = vor.u32 %v10488_v27, %v9510_v22  ;;  %v10489_v38 = vld [vmem:[#allocation9 + $0xac] sm:$0xf] }
 0x928   :  { %v9541_v5 = vor.u32 %v10498_v16, %v9540_v4  ;;  %v9517_v49 = vor.u32 %v10491_v32, %v9516_v43  ;;  %v9518_v40 = vld [vmem:[#allocation9 + $0xb8] sm:$0xf0]  ;;  %v10478_v58 = vld [vmem:[#allocation9 + $0x4c] sm:$0xf0]  ;;  %v10476_v29 = vld [vmem:[#allocation9 + $0x44] sm:$0xf] }
 0x929   :  { %v11758_v8 = vadd.f32 %v4867_v12, %v4866_v37  ;;  %v4855_v44 = vadd.f32 %v10813_v42, %v4854_v47  ;;  %v9521_v12 = vor.u32 %v10489_v38, %v9518_v40  ;;  %v3210_v37 = vadd.f32 %v11600_v30, %v11564_v53  ;;  %5399 = vmatpush.bf16.msra.mxu1 %v9513_v61  ;;  %v10485_v30 = vld [vmem:[#allocation9 + $0x8c] sm:$0xf]  ;;  %v9486_v24 = vld [vmem:[#allocation9 + $0x78] sm:$0xf0]  ;;  %v9462_v51 = vld [vmem:[#allocation9 + $0x50] sm:$0xf0] }
 0x92a   :  { %5384 = vmatpush.bf16.msra.mxu0 %v9541_v5  ;;  %v3239_v47 = vadd.f32 %v11602_v31, %v11567_v54  ;;  %5412 = vmatpush.bf16.msra.mxu2 %v9517_v49  ;;  %v9505_v56 = vor.u32 %v10485_v30, %v9502_v7  ;;  %v9468_v27 = vld [vmem:[#allocation9 + $0x48] sm:$0xf]  ;;  %v9465_v22 = vor.u32 %v10476_v29, %v9462_v51  ;;  %v10479_v43 = vld [vmem:[#allocation9 + $0x54] sm:$0xf0]  ;;  %v10477_v32 = vld [vmem:[#allocation9 + $0x4c] sm:$0xf] }
 0x92b   :  { %10816 = vtanh.f32 %v11758_v8  ;;  %v4859_v3 = vsel %vm4858_vm12, %v10813_v42, %v4855_v44  ;;  %v9534_v42 = vld [vmem:[#allocation9 + $0xd8] sm:$0xf0]  ;;  %v9492_v44 = vld [vmem:[#allocation9 + $0x80] sm:$0xf]  ;;  %v10470_v30 = vld [vmem:[#allocation9 + $0xc] sm:$0xf0] }
 0x92c   :  { %v4864_v52 = vsel %vm4861_vm13, %v4863_v45, %v4859_v3  ;;  %v9537_v14 = vor.u32 %v10493_v20, %v9534_v42  ;;  %v5119_v3 = vunpack.c.l.bf16 %v3256_v25  ;;  %v5120_v45 = vunpack.c.h.bf16 %v3256_v25  ;;  %v9470_v61 = vld [vmem:[#allocation9 + $0x58] sm:$0xf0]  ;;  %v10468_v7 = vld [vmem:[#allocation9 + $0x4] sm:$0xf]  ;;  %v9430_v10 = vld [vmem:[#allocation9 + $0x10] sm:$0xf0] }
 0x92d   :  { %v11769_v17 = vpack.c.bf16 %v3239_v47, %v3210_v37  ;;  %v9489_v42 = vor.u32 %v10481_v34, %v9486_v24  ;;  %v9473_v37 = vor.u32 %v10477_v32, %v9470_v61  ;;  %v9444_v47 = vld [vmem:[#allocation9 + $0x20] sm:$0xf]  ;;  %v9436_v15 = vld [vmem:[#allocation9 + $0x8] sm:$0xf]  ;;  %v9433_v28 = vor.u32 %v10468_v7, %v9430_v10 }
 0x92e   :  { %5385 = vmatpush.bf16.msra.mxu0 %v9525_v21  ;;  %5424 = vmatpush.bf16.msra.mxu3 %v9537_v14  ;;  %v10483_v21 = vld [vmem:[#allocation9 + $0x74] sm:$0xf0]  ;;  %v9461_v14 = vor.u32 %v10478_v58, %v9460_v2 }
 0x92f   :  { %v9485_v36 = vor.u32 %v10483_v21, %v9484_v39  ;;  %v5122_v20 = vunpack.c.h.bf16 %v11769_v17  ;;  %v5121_v2 = vunpack.c.l.bf16 %v11769_v17 }
 0x931   :  { %v10817_v26 = vpop.eup %10816 }
 0x932   :  { %v4870_v50 = vmul.f32 %v10817_v26, %v4864_v52  ;;  %5386 = vmatpush.bf16.msra.mxu0 %v9509_v0  ;;  %5425 = vmatpush.bf16.msra.mxu3 %v9521_v12  ;;  %v9493_v26 = vor.u32 %v10486_v46, %v9492_v44  ;;  %v9494_v52 = vld [vmem:[#allocation9 + $0x90] sm:$0xf0]  ;;  %v9469_v12 = vor.u32 %v10479_v43, %v9468_v27  ;;  %v10474_v44 = vld [vmem:[#allocation9 + $0x2c] sm:$0xf0]  ;;  %v10472_v46 = vld [vmem:[#allocation9 + $0x24] sm:$0xf] }
 0x933   :  { %v9497_v18 = vor.u32 %v10484_v62, %v9494_v52  ;;  %v9445_v62 = vor.u32 %v10474_v44, %v9444_v47 }
 0x934   :  { %v4871_v57 = vpack.c.bf16 %v4870_v50, %v4870_v50  ;;  %v9500_v50 = vld [vmem:[#allocation9 + $0x88] sm:$0xf] }
 0x935   :  { %5400 = vmatpush.bf16.msra.mxu1 %v9497_v18 }
 0x936   :  { %4872 = vst [vmem:[#allocation2 + $0x10] sm:$0xf] %v4871_v57  ;;  %5073 = vmatmul.bf16.vlgmr.msrb.gmra.mxu0 %v4871_v57  ;;  %5086 = vmatmul.bf16.vlgmr.msrb.gmra.mxu1 %v4871_v57 }
 0x937   :  { %5099 = vmatmul.bf16.vlgmr.msrb.gmra.mxu2 %v4871_v57  ;;  %5112 = vmatmul.bf16.vlgmr.msrb.gmra.mxu3 %v4871_v57  ;;  %v10487_v57 = vld [vmem:[#allocation9 + $0x94] sm:$0xf0] }
 0x938   :  { %v9501_v5 = vor.u32 %v10487_v57, %v9500_v50  ;;  %5387 = vmatpush.bf16.msra.mxu0 %v9493_v26  ;;  %5426 = vmatpush.bf16.msra.mxu3 %v9505_v56  ;;  %v10475_v26 = vld [vmem:[#allocation9 + $0x34] sm:$0xf0]  ;;  %v10473_v57 = vld [vmem:[#allocation9 + $0x2c] sm:$0xf] }
 0x939   :  { %5401 = vmatpush.bf16.msra.mxu1 %v9481_v35  ;;  %v9438_v35 = vld [vmem:[#allocation9 + $0x18] sm:$0xf0] }
 0x93a   :  { %5413 = vmatpush.bf16.msra.mxu2 %v9501_v5  ;;  %v9428_v5 = vld [vmem:[#allocation9] sm:$0xf] }
 0x93c   :  { %5388 = vmatpush.bf16.msra.mxu0 %v9477_v41  ;;  %5427 = vmatpush.bf16.msra.mxu3 %v9489_v42  ;;  %v10469_v41 = vld [vmem:[#allocation9 + $0xc] sm:$0xf] }
 0x93d   :  { %5402 = vmatpush.bf16.msra.mxu1 %v9465_v22 }
 0x93e   :  { %5414 = vmatpush.bf16.msra.mxu2 %v9485_v36  ;;  %v9441_v36 = vor.u32 %v10469_v41, %v9438_v35  ;;  %v9679_v41 = vld [vmem:[#allocation9 + $0xe8] sm:$0xf] }
 0x940   :  { %5389 = vmatpush.bf16.msra.mxu0 %v9461_v14  ;;  %5428 = vmatpush.bf16.msra.mxu3 %v9473_v37 }
 0x942   :  { %5415 = vmatpush.bf16.msra.mxu2 %v9469_v12 }
 0x944   :  { %5390 = vmatpush.bf16.msra.mxu0 %v9445_v62 }
 0x9b3   :  { %v5074_v4 = vpop.f32.mrf.mxu0  ;;  %v5087_v16 = vpop.f32.mrf.mxu1 }
 0x9b4   :  { %v5123_v6 = vadd.f32 %v5119_v3, %v5074_v4  ;;  %v5124_v31 = vadd.f32 %v5120_v45, %v5087_v16  ;;  %v9446_v3 = vld [vmem:[#allocation9 + $0x30] sm:$0xf0]  ;;  %v9452_v45 = vld [vmem:[#allocation9 + $0x28] sm:$0xf]  ;;  %v9454_v4 = vld [vmem:[#allocation9 + $0x38] sm:$0xf0] }
 0x9b5   :  { %v9449_v50 = vor.u32 %v10472_v46, %v9446_v3  ;;  %v9453_v18 = vor.u32 %v10475_v26, %v9452_v45  ;;  %v9457_v56 = vor.u32 %v10473_v57, %v9454_v4 }
 0x9b6   :  { %v9423_v55 = vmul.f32 -1.442695, %v5123_v6  ;;  %v9424_v23 = vmul.f32 -1.442695, %v5124_v31 }
 0x9b7   :  { %5403 = vmatpush.bf16.msra.mxu1 %v9449_v50  ;;  %5416 = vmatpush.bf16.msra.mxu2 %v9453_v18 }
 0x9b8   :  { %10818 = vpow2.f32 %v9423_v55  ;;  %v9429_v55 = vor.u32 %v10470_v30, %v9428_v5  ;;  %5429 = vmatpush.bf16.msra.mxu3 %v9457_v56 }
 0x9b9   :  { %10820 = vpow2.f32 %v9424_v23  ;;  %v10471_v23 = vld [vmem:[#allocation9 + $0x14] sm:$0xf0] }
 0x9ba   :  { %v5100_v25 = vpop.f32.mrf.mxu2  ;;  %v5113_v0 = vpop.f32.mrf.mxu3  ;;  %v9437_v34 = vor.u32 %v10471_v23, %v9436_v15  ;;  %5391 = vmatpush.bf16.msra.mxu0 %v9429_v55  ;;  %v10530_v15 = vld [vmem:[#allocation9 + $0xec] sm:$0xf0]  ;;  %v9673_v23 = vld [vmem:[#allocation9 + $0xf0] sm:$0xf0] }
 0x9bb   :  { %v5126_v49 = vadd.f32 %v5122_v20, %v5113_v0  ;;  %v5076_v38 = vpop.f32.mrf.mxu0  ;;  %v5089_v40 = vpop.f32.mrf.mxu1  ;;  %5404 = vmatpush.bf16.msra.mxu1 %v9433_v28  ;;  %v5125_v42 = vadd.f32 %v5121_v2, %v5100_v25  ;;  %v10531_v28 = vld [vmem:[#allocation9 + $0xf4] sm:$0xf0]  ;;  %v10526_v2 = vld [vmem:[#allocation9 + $0xcc] sm:$0xf0] }
 0x9bc   :  { %5417 = vmatpush.bf16.msra.mxu2 %v9437_v34  ;;  %5430 = vmatpush.bf16.msra.mxu3 %v9441_v36  ;;  %v9681_v34 = vld [vmem:[#allocation9 + $0xf8] sm:$0xf0] }
 0x9bd   :  { %v9425_v52 = vmul.f32 -1.442695, %v5126_v49 }
 0x9be   :  { %v10819_v16 = vpop.eup %10818 }
 0x9bf   :  { %v10821_v6 = vpop.eup %10820  ;;  %v5130_v31 = vadd.f32 1.0, %v10819_v16  ;;  %10822 = vpow2.f32 %v9425_v52 }
 0x9c0   :  { %v5149_v11 = vadd.f32 1.0, %v10821_v6 }
 0x9c1   :  { %10824 = vrcp.f32 %v5130_v31  ;;  %v5142_v22 = vand.u32 2147483648, %v5130_v31  ;;  %v5140_v61 = vand.u32 2147483647, %v5130_v31  ;;  %vm5136_vm0 = vweird.f32 %v5130_v31 }
 0x9c2   :  { %10826 = vrcp.f32 %v5149_v11  ;;  %v5102_v39 = vpop.f32.mrf.mxu2  ;;  %v5115_v21 = vpop.f32.mrf.mxu3  ;;  %v5161_v43 = vand.u32 2147483648, %v5149_v11  ;;  %v5159_v17 = vand.u32 2147483647, %v5149_v11  ;;  %vm5155_vm1 = vweird.f32 %v5149_v11 }
 0x9c3   :  { %v5143_v25 = vor.u32 1.1754944e-38, %v5142_v22  ;;  %vm5141_vm4 = vcmp.eq.f32.partialorder %v5140_v61, 8.507059e+37  ;;  %v9680_v39 = vor.u32 %v10531_v28, %v9679_v41  ;;  %v10529_v21 = vld [vmem:[#allocation9 + $0xec] sm:$0xf]  ;;  %v9665_v22 = vld [vmem:[#allocation9 + $0xd8] sm:$0xf0] }
 0x9c4   :  { %v5162_v47 = vor.u32 1.1754944e-38, %v5161_v43  ;;  %vm5160_vm5 = vcmp.eq.f32.partialorder %v5159_v17, 8.507059e+37  ;;  %v9684_v36 = vor.u32 %v10529_v21, %v9681_v34  ;;  %v10522_v61 = vld [vmem:[#allocation9 + $0xac] sm:$0xf0]  ;;  %v10513_v41 = vld [vmem:[#allocation9 + $0x6c] sm:$0xf] }
 0x9c5   :  { %v10823_v24 = vpop.eup %10822  ;;  %5729 = vmatpush.bf16.msrb.mxu2 %v9680_v39  ;;  %v9617_v28 = vld [vmem:[#allocation9 + $0x78] sm:$0xf0]  ;;  %v9591_v39 = vld [vmem:[#allocation9 + $0x40] sm:$0xf]  ;;  %v10510_v21 = vld [vmem:[#allocation9 + $0x4c] sm:$0xf0] }
 0x9c6   :  { %v5169_v58 = vadd.f32 1.0, %v10823_v24  ;;  %v9655_v24 = vld [vmem:[#allocation9 + $0xc0] sm:$0xf]  ;;  %5742 = vmatpush.bf16.msrb.mxu3 %v9684_v36  ;;  %v10508_v34 = vld [vmem:[#allocation9 + $0x44] sm:$0xf]  ;;  %v9592_v36 = vor.u32 %v10510_v21, %v9591_v39  ;;  %v5441_v21 = vunpack.c.h.bf16 %v11618_v60 }
 0x9c7   :  { %v10825_v20 = vpop.eup %10824  ;;  %v9828_v39 = vld [vmem:[#allocation10 + $0xf8] sm:$0xf0] }
 0x9c8   :  { %v10827_v14 = vpop.eup %10826  ;;  %v5132_v29 = vmul.f32 %v10825_v20, %v5130_v31  ;;  %10828 = vrcp.f32 %v5169_v58  ;;  %vm5137_vm14 = vweird.f32 %v10825_v20  ;;  %v5181_v18 = vand.u32 2147483648, %v5169_v58 }
 0x9c9   :  { %v5151_v51 = vmul.f32 %v10827_v14, %v5149_v11  ;;  %10830 = vtanh.f32 %v5125_v42  ;;  %vm5156_vm15 = vweird.f32 %v10827_v14  ;;  %vm5138_vm2 = vmor %vm5136_vm0, %vm5137_vm14  ;;  %vm5175_vm7 = vweird.f32 %v5169_v58  ;;  %v10528_v11 = vld [vmem:[#allocation9 + $0xe4] sm:$0xf]  ;;  %v9657_v42 = vld [vmem:[#allocation9 + $0xd0] sm:$0xf0] }
 0x9ca   :  { %v5133_v27 = vsub.f32 1.0, %v5132_v29  ;;  %vm5157_vm3 = vmor %vm5155_vm1, %vm5156_vm15  ;;  %v5179_v5 = vand.u32 2147483647, %v5169_v58  ;;  %v5182_v7 = vor.u32 1.1754944e-38, %v5181_v18  ;;  %v9676_v35 = vor.u32 %v10528_v11, %v9673_v23  ;;  %v10527_v29 = vld [vmem:[#allocation9 + $0xd4] sm:$0xf0] }
 0x9cb   :  { %v5152_v0 = vsub.f32 1.0, %v5151_v51  ;;  %v10515_v11 = vld [vmem:[#allocation9 + $0x74] sm:$0xf0] }
 0x9cc   :  { %v5134_v32 = vmul.f32 %v10825_v20, %v5133_v27  ;;  %vm5180_vm9 = vcmp.eq.f32.partialorder %v5179_v5, 8.507059e+37  ;;  %5716 = vmatpush.bf16.msrb.mxu1 %v9676_v35  ;;  %v10517_v5 = vld [vmem:[#allocation9 + $0x8c] sm:$0xf]  ;;  %v9620_v35 = vor.u32 %v10513_v41, %v9617_v28  ;;  %v10567_v28 = vld [vmem:[#allocation10 + $0xf4] sm:$0xf0] }
 0x9cd   :  { %v5153_v49 = vmul.f32 %v10827_v14, %v5152_v0  ;;  %v10525_v0 = vld [vmem:[#allocation9 + $0xcc] sm:$0xf] }
 0x9ce   :  { %v10829_v38 = vpop.eup %10828  ;;  %v5135_v40 = vadd.f32 %v10825_v20, %v5134_v32  ;;  %v9668_v43 = vor.u32 %v10525_v0, %v9665_v22  ;;  %v9639_v32 = vld [vmem:[#allocation9 + $0xa0] sm:$0xf]  ;;  %v10506_v0 = vld [vmem:[#allocation9 + $0x2c] sm:$0xf0]  ;;  %v10504_v22 = vld [vmem:[#allocation9 + $0x24] sm:$0xf] }
 0x9cf   :  { %v5154_v12 = vadd.f32 %v10827_v14, %v5153_v49  ;;  %v5171_v37 = vmul.f32 %v10829_v38, %v5169_v58  ;;  %v10831_v46 = vpop.eup %10830  ;;  %vm5176_vm6 = vweird.f32 %v10829_v38  ;;  %v10524_v58 = vld [vmem:[#allocation9 + $0xc4] sm:$0xf]  ;;  %v9640_v17 = vor.u32 %v10522_v61, %v9639_v32  ;;  %v9577_v32 = vld [vmem:[#allocation9 + $0x30] sm:$0xf0]  ;;  %v9583_v61 = vld [vmem:[#allocation9 + $0x28] sm:$0xf] }
 0x9d0   :  { %v5139_v44 = vsel %vm5138_vm2, %v10825_v20, %v5135_v40  ;;  %vm5177_vm8 = vmor %vm5175_vm7, %vm5176_vm6  ;;  %v9656_v20 = vor.u32 %v10526_v2, %v9655_v24  ;;  %v9660_v51 = vor.u32 %v10524_v58, %v9657_v42  ;;  %v10520_v49 = vld [vmem:[#allocation9 + $0xa4] sm:$0xf]  ;;  %5743 = vmatpush.bf16.msrb.mxu3 %v9668_v43  ;;  %v9647_v40 = vld [vmem:[#allocation9 + $0xa8] sm:$0xf] }
 0x9d1   :  { %v5144_v62 = vsel %vm5141_vm4, %v5143_v25, %v5139_v44  ;;  %v5158_v3 = vsel %vm5157_vm3, %v10827_v14, %v5154_v12  ;;  %v5172_v45 = vsub.f32 1.0, %v5171_v37  ;;  %v9663_v14 = vld [vmem:[#allocation9 + $0xc8] sm:$0xf]  ;;  %v10523_v25 = vld [vmem:[#allocation9 + $0xb4] sm:$0xf0] }
 0x9d2   :  { %v5163_v26 = vsel %vm5160_vm5, %v5162_v47, %v5158_v3  ;;  %v5186_v52 = vmul.f32 %v10831_v46, %v5144_v62  ;;  %v9664_v27 = vor.u32 %v10527_v29, %v9663_v14  ;;  %5717 = vmatpush.bf16.msrb.mxu1 %v9660_v51  ;;  %v9648_v37 = vor.u32 %v10523_v25, %v9647_v40  ;;  %v10521_v47 = vld [vmem:[#allocation9 + $0xac] sm:$0xf]  ;;  %v9649_v44 = vld [vmem:[#allocation9 + $0xb8] sm:$0xf0]  ;;  %v9623_v62 = vld [vmem:[#allocation9 + $0x80] sm:$0xf] }
 0x9d3   :  { %v5185_v50 = vmul.f32 %v5163_v26, %v11758_v8  ;;  %v5173_v57 = vmul.f32 %v10829_v38, %v5172_v45  ;;  %v9671_v8 = vld [vmem:[#allocation9 + $0xe0] sm:$0xf]  ;;  %v9652_v46 = vor.u32 %v10521_v47, %v9649_v44  ;;  %v10518_v3 = vld [vmem:[#allocation9 + $0x8c] sm:$0xf0]  ;;  %v10516_v45 = vld [vmem:[#allocation9 + $0x84] sm:$0xf] }
 0x9d4   :  { %v9672_v55 = vor.u32 %v10530_v15, %v9671_v8  ;;  %5730 = vmatpush.bf16.msrb.mxu2 %v9664_v27  ;;  %v9624_v26 = vor.u32 %v10518_v3, %v9623_v62  ;;  %v9609_v8 = vld [vmem:[#allocation9 + $0x70] sm:$0xf0]  ;;  %v9615_v15 = vld [vmem:[#allocation9 + $0x68] sm:$0xf]  ;;  %v10511_v58 = vld [vmem:[#allocation9 + $0x54] sm:$0xf0] }
 0x9d5   :  { %v11774_v4 = vadd.f32 %v5186_v52, %v5185_v50  ;;  %v5174_v16 = vadd.f32 %v10829_v38, %v5173_v57  ;;  %5744 = vmatpush.bf16.msrb.mxu3 %v9652_v46  ;;  %v9625_v52 = vld [vmem:[#allocation9 + $0x90] sm:$0xf0]  ;;  %v9631_v50 = vld [vmem:[#allocation9 + $0x88] sm:$0xf]  ;;  %v10519_v57 = vld [vmem:[#allocation9 + $0x94] sm:$0xf0]  ;;  %v9616_v23 = vor.u32 %v10515_v11, %v9615_v15 }
 0x9d6   :  { %5703 = vmatpush.bf16.msrb.mxu0 %v9672_v55  ;;  %v9632_v18 = vor.u32 %v10519_v57, %v9631_v50  ;;  %v9593_v24 = vld [vmem:[#allocation9 + $0x50] sm:$0xf0]  ;;  %v9599_v2 = vld [vmem:[#allocation9 + $0x48] sm:$0xf]  ;;  %v10509_v14 = vld [vmem:[#allocation9 + $0x4c] sm:$0xf] }
 0x9d7   :  { %10832 = vtanh.f32 %v11774_v4  ;;  %v5178_v30 = vsel %vm5177_vm8, %v10829_v38, %v5174_v16  ;;  %v9641_v38 = vld [vmem:[#allocation9 + $0xb0] sm:$0xf0]  ;;  %v9628_v16 = vor.u32 %v10516_v45, %v9625_v52  ;;  %v9600_v42 = vor.u32 %v10511_v58, %v9599_v2  ;;  %v9601_v29 = vld [vmem:[#allocation9 + $0x58] sm:$0xf0]  ;;  %v9575_v27 = vld [vmem:[#allocation9 + $0x20] sm:$0xf] }
 0x9d8   :  { %v5183_v31 = vsel %vm5180_vm9, %v5182_v7, %v5178_v30  ;;  %v9644_v12 = vor.u32 %v10520_v49, %v9641_v38  ;;  %5731 = vmatpush.bf16.msrb.mxu2 %v9648_v37  ;;  %v9633_v30 = vld [vmem:[#allocation9 + $0x98] sm:$0xf0]  ;;  %v9604_v51 = vor.u32 %v10509_v14, %v9601_v29  ;;  %v9576_v43 = vor.u32 %v10506_v0, %v9575_v27  ;;  %v10507_v49 = vld [vmem:[#allocation9 + $0x34] sm:$0xf0]  ;;  %v10505_v40 = vld [vmem:[#allocation9 + $0x2c] sm:$0xf] }
 0x9d9   :  { %v9636_v7 = vor.u32 %v10517_v5, %v9633_v30  ;;  %v9584_v38 = vor.u32 %v10507_v49, %v9583_v61  ;;  %v9585_v25 = vld [vmem:[#allocation9 + $0x38] sm:$0xf0]  ;;  %v5439_v37 = vunpack.c.h.bf16 %v11606_v1  ;;  %v9559_v62 = vld [vmem:[#allocation9] sm:$0xf]  ;;  %v10502_v3 = vld [vmem:[#allocation9 + $0xc] sm:$0xf0] }
 0x9da   :  { %5704 = vmatpush.bf16.msrb.mxu0 %v9656_v20  ;;  %5718 = vmatpush.bf16.msrb.mxu1 %v9644_v12  ;;  %v9596_v20 = vor.u32 %v10508_v34, %v9593_v24  ;;  %v5438_v12 = vunpack.c.l.bf16 %v11606_v1  ;;  %v9588_v47 = vor.u32 %v10505_v40, %v9585_v25  ;;  %v10500_v45 = vld [vmem:[#allocation9 + $0x4] sm:$0xf]  ;;  %v9560_v50 = vor.u32 %v10502_v3, %v9559_v62  ;;  %v9561_v57 = vld [vmem:[#allocation9 + $0x10] sm:$0xf0]  ;;  %v9569_v1 = vld [vmem:[#allocation9 + $0x18] sm:$0xf0] }
 0x9db   :  { %5745 = vmatpush.bf16.msrb.mxu3 %v9636_v7  ;;  %v9564_v5 = vor.u32 %v10500_v45, %v9561_v57  ;;  %v10501_v7 = vld [vmem:[#allocation9 + $0xc] sm:$0xf]  ;;  %v10564_v11 = vld [vmem:[#allocation10 + $0xe4] sm:$0xf]  ;;  %v9802_v24 = vld [vmem:[#allocation10 + $0xc0] sm:$0xf] }
 0x9dc   :  { %5732 = vmatpush.bf16.msrb.mxu2 %v9632_v18  ;;  %v10503_v18 = vld [vmem:[#allocation9 + $0x14] sm:$0xf0]  ;;  %v10562_v2 = vld [vmem:[#allocation10 + $0xcc] sm:$0xf0]  ;;  %v10560_v58 = vld [vmem:[#allocation10 + $0xc4] sm:$0xf] }
 0x9dd   :  { %v10833_v6 = vpop.eup %10832  ;;  %v9803_v14 = vor.u32 %v10562_v2, %v9802_v24  ;;  %v9804_v29 = vld [vmem:[#allocation10 + $0xd0] sm:$0xf0]  ;;  %v10563_v27 = vld [vmem:[#allocation10 + $0xd4] sm:$0xf0]  ;;  %v10561_v61 = vld [vmem:[#allocation10 + $0xcc] sm:$0xf] }
 0x9de   :  { %v5189_v56 = vmul.f32 %v10833_v6, %v5183_v31  ;;  %5705 = vmatpush.bf16.msrb.mxu0 %v9640_v17  ;;  %5719 = vmatpush.bf16.msrb.mxu1 %v9628_v16  ;;  %v9607_v6 = vld [vmem:[#allocation9 + $0x60] sm:$0xf]  ;;  %v10514_v31 = vld [vmem:[#allocation9 + $0x6c] sm:$0xf0]  ;;  %v9580_v17 = vor.u32 %v10504_v22, %v9577_v32  ;;  %v9567_v16 = vld [vmem:[#allocation9 + $0x8] sm:$0xf]  ;;  %v9807_v32 = vor.u32 %v10560_v58, %v9804_v29 }
 0x9df   :  { %5746 = vmatpush.bf16.msrb.mxu3 %v9620_v35  ;;  %v9568_v30 = vor.u32 %v10503_v18, %v9567_v16  ;;  %v10565_v35 = vld [vmem:[#allocation10 + $0xec] sm:$0xf]  ;;  %v9812_v49 = vld [vmem:[#allocation10 + $0xd8] sm:$0xf0]  ;;  %v10558_v25 = vld [vmem:[#allocation10 + $0xac] sm:$0xf0] }
 0x9e0   :  { %v5190_v10 = vpack.c.bf16 %v5189_v56, %v5189_v56  ;;  %v10512_v56 = vld [vmem:[#allocation9 + $0x64] sm:$0xf]  ;;  %5733 = vmatpush.bf16.msrb.mxu2 %v9616_v23  ;;  %v9826_v23 = vld [vmem:[#allocation10 + $0xe8] sm:$0xf]  ;;  %v9815_v40 = vor.u32 %v10561_v61, %v9812_v49  ;;  %v10559_v62 = vld [vmem:[#allocation10 + $0xb4] sm:$0xf0] }
 0x9e1   :  { %v9612_v55 = vor.u32 %v10512_v56, %v9609_v8  ;;  %v10566_v8 = vld [vmem:[#allocation10 + $0xec] sm:$0xf0]  ;;  %v9827_v34 = vor.u32 %v10567_v28, %v9826_v23  ;;  %v9756_v58 = vld [vmem:[#allocation10 + $0x70] sm:$0xf0]  ;;  %v9738_v61 = vld [vmem:[#allocation10 + $0x40] sm:$0xf] }
 0x9e2   :  { %5191 = vst [vmem:[#allocation2 + $0x14] sm:$0xf] %v5190_v10  ;;  %5392 = vmatmul.bf16.vlgmr.msra.gmra.mxu0 %v5190_v10  ;;  %5405 = vmatmul.bf16.vlgmr.msra.gmra.mxu1 %v5190_v10  ;;  %v10546_v49 = vld [vmem:[#allocation10 + $0x4c] sm:$0xf0] }
 0x9e3   :  { %5418 = vmatmul.bf16.vlgmr.msra.gmra.mxu2 %v5190_v10  ;;  %5431 = vmatmul.bf16.vlgmr.msra.gmra.mxu3 %v5190_v10  ;;  %v9608_v10 = vor.u32 %v10514_v31, %v9607_v6  ;;  %v9818_v6 = vld [vmem:[#allocation10 + $0xe0] sm:$0xf] }
 0x9e4   :  { %5706 = vmatpush.bf16.msrb.mxu0 %v9624_v26  ;;  %5720 = vmatpush.bf16.msrb.mxu1 %v9612_v55  ;;  %v9819_v15 = vor.u32 %v10566_v8, %v9818_v6  ;;  %v9820_v55 = vld [vmem:[#allocation10 + $0xf0] sm:$0xf0]  ;;  %v10555_v8 = vld [vmem:[#allocation10 + $0x94] sm:$0xf0] }
 0x9e5   :  { %5734 = vmatpush.bf16.msrb.mxu2 %v9600_v42  ;;  %5747 = vmatpush.bf16.msrb.mxu3 %v9604_v51  ;;  %v9823_v41 = vor.u32 %v10564_v11, %v9820_v55  ;;  %v9810_v51 = vld [vmem:[#allocation10 + $0xc8] sm:$0xf]  ;;  %v9772_v6 = vld [vmem:[#allocation10 + $0x90] sm:$0xf0]  ;;  %v10553_v55 = vld [vmem:[#allocation10 + $0x8c] sm:$0xf] }
 0x9e8   :  { %5707 = vmatpush.bf16.msrb.mxu0 %v9608_v10  ;;  %5721 = vmatpush.bf16.msrb.mxu1 %v9596_v20  ;;  %v9572_v10 = vor.u32 %v10501_v7, %v9569_v1  ;;  %v10552_v7 = vld [vmem:[#allocation10 + $0x84] sm:$0xf] }
 0x9e9   :  { %5735 = vmatpush.bf16.msrb.mxu2 %v9584_v38  ;;  %5748 = vmatpush.bf16.msrb.mxu3 %v9588_v47  ;;  %v9811_v38 = vor.u32 %v10563_v27, %v9810_v51  ;;  %v10549_v27 = vld [vmem:[#allocation10 + $0x6c] sm:$0xf] }
 0x9ec   :  { %5708 = vmatpush.bf16.msrb.mxu0 %v9592_v36  ;;  %5722 = vmatpush.bf16.msrb.mxu1 %v9580_v17  ;;  %v9831_v36 = vor.u32 %v10565_v35, %v9828_v39  ;;  %v9786_v17 = vld [vmem:[#allocation10 + $0xa0] sm:$0xf]  ;;  %v9780_v35 = vld [vmem:[#allocation10 + $0x98] sm:$0xf0] }
 0x9ed   :  { %5736 = vmatpush.bf16.msrb.mxu2 %v9568_v30  ;;  %5749 = vmatpush.bf16.msrb.mxu3 %v9572_v10  ;;  %v10554_v30 = vld [vmem:[#allocation10 + $0x8c] sm:$0xf0]  ;;  %v9754_v39 = vld [vmem:[#allocation10 + $0x60] sm:$0xf] }
 0x9f0   :  { %5709 = vmatpush.bf16.msrb.mxu0 %v9576_v43  ;;  %5723 = vmatpush.bf16.msrb.mxu1 %v9564_v5 }
 0x9f1   :  { %6122 = vmatpush.bf16.msra.mxu2 %v9827_v34  ;;  %6151 = vmatpush.bf16.msra.mxu3 %v9831_v36  ;;  %v9783_v34 = vor.u32 %v10553_v55, %v9780_v35  ;;  %v10548_v36 = vld [vmem:[#allocation10 + $0x64] sm:$0xf] }
 0x9f2   :  { %v9759_v51 = vor.u32 %v10548_v36, %v9756_v58  ;;  %v10538_v36 = vld [vmem:[#allocation10 + $0xc] sm:$0xf0] }
 0x9f4   :  { %5710 = vmatpush.bf16.msrb.mxu0 %v9560_v50  ;;  %6093 = vmatpush.bf16.msra.mxu1 %v9823_v41  ;;  %v9770_v50 = vld [vmem:[#allocation10 + $0x80] sm:$0xf]  ;;  %v9775_v41 = vor.u32 %v10552_v7, %v9772_v6  ;;  %v10542_v6 = vld [vmem:[#allocation10 + $0x2c] sm:$0xf0] }
 0x9f5   :  { %6123 = vmatpush.bf16.msra.mxu2 %v9811_v38  ;;  %6152 = vmatpush.bf16.msra.mxu3 %v9815_v40  ;;  %v9771_v10 = vor.u32 %v10554_v30, %v9770_v50  ;;  %v9748_v50 = vld [vmem:[#allocation10 + $0x58] sm:$0xf0] }
 0x9f8   :  { %6064 = vmatpush.bf16.msra.mxu0 %v9819_v15  ;;  %6094 = vmatpush.bf16.msra.mxu1 %v9807_v32 }
 0x9fc   :  { %6065 = vmatpush.bf16.msra.mxu0 %v9803_v14  ;;  %v10551_v14 = vld [vmem:[#allocation10 + $0x74] sm:$0xf0] }
 0xa5f   :  { %v5393_v44 = vpop.f32.mrf.mxu0  ;;  %v5406_v46 = vpop.f32.mrf.mxu1 }
 0xa60   :  { %v5442_v26 = vadd.f32 %v5438_v12, %v5393_v44  ;;  %v5443_v52 = vadd.f32 %v5439_v37, %v5406_v46  ;;  %v10556_v12 = vld [vmem:[#allocation10 + $0xa4] sm:$0xf]  ;;  %v9788_v37 = vld [vmem:[#allocation10 + $0xb0] sm:$0xf0]  ;;  %v9787_v44 = vor.u32 %v10558_v25, %v9786_v17  ;;  %v9794_v46 = vld [vmem:[#allocation10 + $0xa8] sm:$0xf] }
 0xa61   :  { %v9791_v45 = vor.u32 %v10556_v12, %v9788_v37  ;;  %v9795_v18 = vor.u32 %v10559_v62, %v9794_v46  ;;  %v10544_v17 = vld [vmem:[#allocation10 + $0x44] sm:$0xf]  ;;  %v9740_v25 = vld [vmem:[#allocation10 + $0x50] sm:$0xf0]  ;;  %v9746_v12 = vld [vmem:[#allocation10 + $0x48] sm:$0xf] }
 0xa62   :  { %v9554_v31 = vmul.f32 -1.442695, %v5442_v26  ;;  %v9555_v56 = vmul.f32 -1.442695, %v5443_v52  ;;  %v10557_v26 = vld [vmem:[#allocation10 + $0xac] sm:$0xf]  ;;  %6066 = vmatpush.bf16.msra.mxu0 %v9787_v44 }
 0xa63   :  { %v9796_v52 = vld [vmem:[#allocation10 + $0xb8] sm:$0xf0]  ;;  %6095 = vmatpush.bf16.msra.mxu1 %v9791_v45  ;;  %6124 = vmatpush.bf16.msra.mxu2 %v9795_v18  ;;  %v10547_v37 = vld [vmem:[#allocation10 + $0x54] sm:$0xf0]  ;;  %v10545_v62 = vld [vmem:[#allocation10 + $0x4c] sm:$0xf] }
 0xa64   :  { %10834 = vpow2.f32 %v9554_v31  ;;  %v9799_v5 = vor.u32 %v10557_v26, %v9796_v52  ;;  %v9778_v31 = vld [vmem:[#allocation10 + $0x88] sm:$0xf]  ;;  %v9739_v26 = vor.u32 %v10546_v49, %v9738_v61  ;;  %v9743_v52 = vor.u32 %v10544_v17, %v9740_v25 }
 0xa65   :  { %10836 = vpow2.f32 %v9555_v56  ;;  %v5440_v56 = vunpack.c.l.bf16 %v11618_v60  ;;  %v9779_v28 = vor.u32 %v10555_v8, %v9778_v31  ;;  %v10550_v60 = vld [vmem:[#allocation10 + $0x6c] sm:$0xf0]  ;;  %v9747_v30 = vor.u32 %v10547_v37, %v9746_v12  ;;  %v9730_v8 = vld [vmem:[#allocation10 + $0x28] sm:$0xf] }
 0xa66   :  { %v5419_v20 = vpop.f32.mrf.mxu2  ;;  %v5432_v42 = vpop.f32.mrf.mxu3  ;;  %6153 = vmatpush.bf16.msra.mxu3 %v9799_v5  ;;  %6067 = vmatpush.bf16.msra.mxu0 %v9771_v10  ;;  %v9755_v2 = vor.u32 %v10550_v60, %v9754_v39  ;;  %v9751_v7 = vor.u32 %v10545_v62, %v9748_v50  ;;  %v9724_v10 = vld [vmem:[#allocation10 + $0x30] sm:$0xf0]  ;;  %v9706_v60 = vld [vmem:[#allocation10] sm:$0xf]  ;;  %v10533_v5 = vld [vmem:[#allocation2 + $0x8] sm:$0xff] }
 0xa67   :  { %v5445_v0 = vadd.f32 %v5441_v21, %v5432_v42  ;;  %v5395_v22 = vpop.f32.mrf.mxu0  ;;  %v5408_v43 = vpop.f32.mrf.mxu1  ;;  %v5444_v23 = vadd.f32 %v5440_v56, %v5419_v20  ;;  %v9762_v42 = vld [vmem:[#allocation10 + $0x68] sm:$0xf]  ;;  %6096 = vmatpush.bf16.msra.mxu1 %v9775_v41  ;;  %6125 = vmatpush.bf16.msra.mxu2 %v9779_v28  ;;  %v10540_v56 = vld [vmem:[#allocation10 + $0x24] sm:$0xf]  ;;  %v10541_v41 = vld [vmem:[#allocation10 + $0x2c] sm:$0xf]  ;;  %v9707_v17 = vor.u32 %v10538_v36, %v9706_v60 }
 0xa68   :  { %v9763_v43 = vor.u32 %v10551_v14, %v9762_v42  ;;  %v9732_v28 = vld [vmem:[#allocation10 + $0x38] sm:$0xf0]  ;;  %v9708_v14 = vld [vmem:[#allocation10 + $0x10] sm:$0xf0]  ;;  %v10597_v60 = vld [vmem:[#allocation12 + $0xec] sm:$0xf] }
 0xa69   :  { %v9556_v47 = vmul.f32 -1.442695, %v5445_v0  ;;  %v9764_v0 = vld [vmem:[#allocation10 + $0x78] sm:$0xf0]  ;;  %v9735_v42 = vor.u32 %v10541_v41, %v9732_v28 }
 0xa6a   :  { %v10835_v3 = vpop.eup %10834  ;;  %6154 = vmatpush.bf16.msra.mxu3 %v9783_v34  ;;  %v9767_v32 = vor.u32 %v10549_v27, %v9764_v0  ;;  %6068 = vmatpush.bf16.msra.mxu0 %v9755_v2 }
 0xa6b   :  { %v10837_v57 = vpop.eup %10836  ;;  %v11780_v16 = vadd.f32 1.0, %v10835_v3  ;;  %10838 = vpow2.f32 %v9556_v47  ;;  %6097 = vmatpush.bf16.msra.mxu1 %v9759_v51  ;;  %6126 = vmatpush.bf16.msra.mxu2 %v9763_v43  ;;  %v10539_v51 = vld [vmem:[#allocation10 + $0x14] sm:$0xf0]  ;;  %v9716_v43 = vld [vmem:[#allocation10 + $0x18] sm:$0xf0] }
 0xa6c   :  { %v11782_v1 = vadd.f32 1.0, %v10837_v57  ;;  %v9722_v57 = vld [vmem:[#allocation10 + $0x20] sm:$0xf] }
 0xa6d   :  { %10840 = vrcp.f32 %v11780_v16  ;;  %v5459_v21 = vand.u32 2147483647, %v11780_v16  ;;  %v5461_v29 = vand.u32 2147483648, %v11780_v16  ;;  %vm5455_vm11 = vweird.f32 %v11780_v16 }
 0xa6e   :  { %10842 = vrcp.f32 %v11782_v1  ;;  %v5421_v15 = vpop.f32.mrf.mxu2  ;;  %v5434_v11 = vpop.f32.mrf.mxu3  ;;  %v5480_v44 = vand.u32 2147483648, %v11782_v1  ;;  %v5478_v46 = vand.u32 2147483647, %v11782_v1  ;;  %6155 = vmatpush.bf16.msra.mxu3 %v9767_v32  ;;  %6069 = vmatpush.bf16.msra.mxu0 %v9739_v26  ;;  %v9723_v55 = vor.u32 %v10542_v6, %v9722_v57 }
 0xa6f   :  { %10844 = vtanh.f32 %v5444_v23  ;;  %vm11804_vm12 = vcmp.eq.f32.partialorder %v5459_v21, 8.507059e+37  ;;  %v10543_v23 = vld [vmem:[#allocation10 + $0x34] sm:$0xf0]  ;;  %6098 = vmatpush.bf16.msra.mxu1 %v9743_v52  ;;  %v9727_v21 = vor.u32 %v10540_v56, %v9724_v10  ;;  %vm5474_vm15 = vweird.f32 %v11782_v1  ;;  %6127 = vmatpush.bf16.msra.mxu2 %v9747_v30 }
 0xa70   :  { %v9731_v34 = vor.u32 %v10543_v23, %v9730_v8  ;;  %v5481_v27 = vor.u32 1.1754944e-38, %v5480_v44  ;;  %vm5479_vm1 = vcmp.eq.f32.partialorder %v5478_v46, 8.507059e+37  ;;  %v3186_v30 = vadd.f32 %v11616_v9, %v11540_v63 }
 0xa71   :  { %v10839_v24 = vpop.eup %10838  ;;  %v3215_v6 = vadd.f32 %v11624_v33, %v11564_v53  ;;  %v9946_v33 = vld [vmem:[#allocation12 + $0xe0] sm:$0xf] }
 0xa72   :  { %v11789_v20 = vadd.f32 1.0, %v10839_v24  ;;  %v10536_v24 = vld [vmem:[#allocation10 + $0x4] sm:$0xf]  ;;  %6156 = vmatpush.bf16.msra.mxu3 %v9751_v7  ;;  %6070 = vmatpush.bf16.msra.mxu0 %v9723_v55 }
 0xa73   :  { %v11791_v22 = vpop.eup %10840  ;;  %6099 = vmatpush.bf16.msra.mxu1 %v9727_v21  ;;  %v9711_v12 = vor.u32 %v10536_v24, %v9708_v14  ;;  %6128 = vmatpush.bf16.msra.mxu2 %v9731_v34  ;;  %v9948_v34 = vld [vmem:[#allocation12 + $0xf0] sm:$0xf0] }
 0xa74   :  { %v11793_v38 = vpop.eup %10842  ;;  %v5451_v40 = vmul.f32 %v11791_v22, %v11780_v16  ;;  %vm5456_vm10 = vweird.f32 %v11791_v22  ;;  %10846 = vrcp.f32 %v11789_v20  ;;  %v5462_v16 = vor.u32 1.1754944e-38, %v5461_v29  ;;  %v9714_v29 = vld [vmem:[#allocation10 + $0x8] sm:$0xf] }
 0xa75   :  { %v5470_v47 = vmul.f32 %v11793_v38, %v11782_v1  ;;  %vm11810_vm13 = vmor %vm5455_vm11, %vm5456_vm10  ;;  %v10845_v15 = vpop.eup %10844  ;;  %vm5475_vm14 = vweird.f32 %v11793_v38  ;;  %v10537_v1 = vld [vmem:[#allocation10 + $0xc] sm:$0xf]  ;;  %v9715_v37 = vor.u32 %v10539_v51, %v9714_v29  ;;  %vm5494_vm3 = vweird.f32 %v11789_v20 }
 0xa76   :  { %v5452_v3 = vsub.f32 1.0, %v5451_v40  ;;  %vm5476_vm0 = vmor %vm5474_vm15, %vm5475_vm14  ;;  %6157 = vmatpush.bf16.msra.mxu3 %v9735_v42  ;;  %6071 = vmatpush.bf16.msra.mxu0 %v9707_v17  ;;  %v10599_v42 = vld [vmem:[#allocation12 + $0xf4] sm:$0xf0] }
 0xa77   :  { %v5471_v18 = vsub.f32 1.0, %v5470_v47  ;;  %6100 = vmatpush.bf16.msra.mxu1 %v9711_v12  ;;  %6129 = vmatpush.bf16.msra.mxu2 %v9715_v37 }
 0xa78   :  { %v5453_v31 = vmul.f32 %v11791_v22, %v5452_v3 }
 0xa79   :  { %v5472_v11 = vmul.f32 %v11793_v38, %v5471_v18  ;;  %v10532_v18 = vld [vmem:[#allocation2] sm:$0xff] }
 0xa7a   :  { %v10847_v35 = vpop.eup %10846  ;;  %v5454_v39 = vadd.f32 %v11791_v22, %v5453_v31  ;;  %v3244_v31 = vadd.f32 %v11626_v19, %v11567_v54  ;;  %v10596_v54 = vld [vmem:[#allocation12 + $0xe4] sm:$0xf] }
 0xa7b   :  { %v5473_v2 = vadd.f32 %v11793_v38, %v5472_v11  ;;  %v5490_v58 = vmul.f32 %v10847_v35, %v11789_v20  ;;  %vm5495_vm2 = vweird.f32 %v10847_v35  ;;  %v11846_v24 = vor.u32 %v10596_v54, %v9948_v34  ;;  %v9908_v54 = vld [vmem:[#allocation12 + $0x98] sm:$0xf0] }
 0xa7c   :  { %v5458_v0 = vsel %vm11810_vm13, %v11791_v22, %v5454_v39  ;;  %v9719_v22 = vor.u32 %v10537_v1, %v9716_v43  ;;  %vm5496_vm4 = vmor %vm5494_vm3, %vm5495_vm2  ;;  %v3261_v23 = vpack.c.bf16 %v3244_v31, %v3215_v6  ;;  %v10598_v39 = vld [vmem:[#allocation12 + $0xec] sm:$0xf0]  ;;  %v9930_v43 = vld [vmem:[#allocation12 + $0xc0] sm:$0xf] }
 0xa7d   :  { %v5463_v32 = vsel %vm11804_vm12, %v5462_v16, %v5458_v0  ;;  %v5477_v61 = vsel %vm5476_vm0, %v11793_v38, %v5473_v2  ;;  %v5491_v49 = vsub.f32 1.0, %v5490_v58  ;;  %v5500_v38 = vand.u32 2147483648, %v11789_v20  ;;  %v9956_v2 = vld [vmem:[#allocation12 + $0xf8] sm:$0xf0]  ;;  %v9954_v58 = vld [vmem:[#allocation12 + $0xe8] sm:$0xf] }
 0xa7e   :  { %v5482_v40 = vsel %vm5479_vm1, %v5481_v27, %v5477_v61  ;;  %v5505_v25 = vmul.f32 %v10845_v15, %v5463_v32  ;;  %6158 = vmatpush.bf16.msra.mxu3 %v9719_v22  ;;  %v3157_v16 = vadd.f32 %v11614_v48, %v11537_v13  ;;  %v5760_v13 = vunpack.c.h.bf16 %v3261_v23  ;;  %v5870_v27 = vld [vmem:[%s12407_s9] sm:$0xf]  ;;  %v10594_v32 = vld [vmem:[#allocation12 + $0xcc] sm:$0xf0]  ;;  %v10589_v6 = vld [vmem:[#allocation12 + $0xac] sm:$0xf] }
 0xa7f   :  { %v5504_v47 = vmul.f32 %v5482_v40, %v11774_v4  ;;  %v5492_v44 = vmul.f32 %v10847_v35, %v5491_v49  ;;  %v5498_v4 = vand.u32 2147483647, %v11789_v20  ;;  %v5501_v45 = vor.u32 1.1754944e-38, %v5500_v38  ;;  %v10534_v20 = vld [vmem:[#allocation2 + $0x10] sm:$0xff]  ;;  %v10592_v49 = vld [vmem:[#allocation12 + $0xc4] sm:$0xf] }
 0xa80   :  { %v3260_v7 = vpack.c.bf16 %v3186_v30, %v3157_v16  ;;  %v11844_v21 = vor.u32 %v10598_v39, %v9946_v33  ;;  %v11851_v51 = vor.u32 %v10597_v60, %v9956_v2  ;;  %v11856_v0 = vor.u32 %v10599_v42, %v9954_v58  ;;  %v10588_v30 = vld [vmem:[#allocation12 + $0xa4] sm:$0xf]  ;;  %v10585_v39 = vld [vmem:[#allocation12 + $0x8c] sm:$0xf]  ;;  %v9922_v42 = vld [vmem:[#allocation12 + $0xa8] sm:$0xf] }
 0xa81   :  { %v11830_v46 = vadd.f32 %v5505_v25, %v5504_v47  ;;  %v5493_v62 = vadd.f32 %v10847_v35, %v5492_v44  ;;  %vm5499_vm5 = vcmp.eq.f32.partialorder %v5498_v4, 8.507059e+37  ;;  %v5759_v61 = vunpack.c.l.bf16 %v3261_v23  ;;  %v9932_v47 = vld [vmem:[#allocation12 + $0xd0] sm:$0xf0]  ;;  %v10595_v23 = vld [vmem:[#allocation12 + $0xd4] sm:$0xf0] }
 0xa82   :  { %v5757_v56 = vunpack.c.l.bf16 %v3260_v7  ;;  %v5758_v10 = vunpack.c.h.bf16 %v3260_v7  ;;  %v11866_v12 = vperm.slane %v5870_v27, 0  ;;  %v11868_v37 = vperm.slane %v5870_v27, 1  ;;  %v9916_v7 = vld [vmem:[#allocation12 + $0xb0] sm:$0xf0] }
 0xa83   :  { %10848 = vtanh.f32 %v11830_v46  ;;  %v5497_v3 = vsel %vm5496_vm4, %v10847_v35, %v5493_v62  ;;  %v11875_v38 = vor.u32 %v10594_v32, %v9930_v43  ;;  %v11877_v4 = vor.u32 %v10592_v49, %v9932_v47  ;;  %v10583_v32 = vld [vmem:[#allocation12 + $0x74] sm:$0xf0] }
 0xa84   :  { %v5502_v52 = vsel %vm5499_vm5, %v5501_v45, %v5497_v3  ;;  %12437 = vst [vmem:[#allocation16_spill] sm:$0xff] %v11866_v12  ;;  %v10593_v3 = vld [vmem:[#allocation12 + $0xcc] sm:$0xf]  ;;  %v9940_v45 = vld [vmem:[#allocation12 + $0xd8] sm:$0xf0] }
 0xa85   :  { %12438 = vst [vmem:[#allocation17_spill] sm:$0xff] %v11868_v37 }
 0xa89   :  { %v10849_v26 = vpop.eup %10848 }
 0xa8a   :  { %v5508_v50 = vmul.f32 %v10849_v26, %v5502_v52  ;;  %v11879_v26 = vperm.slane %v5870_v27, 2 }
 0xa8c   :  { %v5509_v57 = vpack.c.bf16 %v5508_v50, %v5508_v50  ;;  %12439 = vst [vmem:[#allocation18_spill] sm:$0xff] %v11879_v26  ;;  %v9914_v50 = vld [vmem:[#allocation12 + $0xa0] sm:$0xf] }
 0xa8e   :  { %5510 = vst [vmem:[#allocation2 + $0x18] sm:$0xf] %v5509_v57  ;;  %5711 = vmatmul.bf16.vlgmr.msrb.gmra.mxu0 %v5509_v57  ;;  %5724 = vmatmul.bf16.vlgmr.msrb.gmra.mxu1 %v5509_v57 }
 0xa8f   :  { %5737 = vmatmul.bf16.vlgmr.msrb.gmra.mxu2 %v5509_v57  ;;  %5750 = vmatmul.bf16.vlgmr.msrb.gmra.mxu3 %v5509_v57  ;;  %v10590_v57 = vld [vmem:[#allocation12 + $0xac] sm:$0xf0] }
 0xa90   :  { %6404 = vmatpush.bf16.msrb.mxu0 %v11844_v21  ;;  %6417 = vmatpush.bf16.msrb.mxu1 %v11846_v24  ;;  %v11886_v16 = vor.u32 %v10590_v57, %v9914_v50  ;;  %v10580_v50 = vld [vmem:[#allocation12 + $0x64] sm:$0xf]  ;;  %v11946_v57 = vor.u32 %v10585_v39, %v9908_v54  ;;  %v9868_v54 = vld [vmem:[#allocation12 + $0x50] sm:$0xf0] }
 0xa91   :  { %6443 = vmatpush.bf16.msrb.mxu3 %v11851_v51  ;;  %6430 = vmatpush.bf16.msrb.mxu2 %v11856_v0  ;;  %v10576_v39 = vld [vmem:[#allocation12 + $0x44] sm:$0xf] }
 0xa94   :  { %6405 = vmatpush.bf16.msrb.mxu0 %v11875_v38  ;;  %6418 = vmatpush.bf16.msrb.mxu1 %v11877_v4 }
 0xa98   :  { %6406 = vmatpush.bf16.msrb.mxu0 %v11886_v16 }
 0xa9e   :  { %6072 = vmatmul.bf16.vlgmr.msra.gmra.mxu0 %v10532_v18  ;;  %6101 = vmatmul.bf16.vlgmr.msra.gmra.mxu1 %v10532_v18 }
 0xa9f   :  { %6130 = vmatmul.bf16.vlgmr.msra.gmra.mxu2 %v10532_v18  ;;  %6159 = vmatmul.bf16.vlgmr.msra.gmra.mxu3 %v10532_v18 }
 0xaae   :  { %6077 = vmatmul.bf16.gmra.mxu0 %v10533_v5  ;;  %6106 = vmatmul.bf16.gmra.mxu1 %v10533_v5 }
 0xaaf   :  { %6135 = vmatmul.bf16.gmra.mxu2 %v10533_v5  ;;  %6164 = vmatmul.bf16.gmra.mxu3 %v10533_v5 }
 0xabe   :  { %6082 = vmatmul.bf16.gmra.mxu0 %v10534_v20  ;;  %6111 = vmatmul.bf16.gmra.mxu1 %v10534_v20 }
 0xabf   :  { %6140 = vmatmul.bf16.gmra.mxu2 %v10534_v20  ;;  %6169 = vmatmul.bf16.gmra.mxu3 %v10534_v20  ;;  %v11884_v20 = vor.u32 %v10593_v3, %v9940_v45  ;;  %v10582_v45 = vld [vmem:[#allocation12 + $0x6c] sm:$0xf0] }
 0xac1   :  { %6444 = vmatpush.bf16.msrb.mxu3 %v11884_v20 }
 0xb0b   :  { %v5712_v8 = vpop.f32.mrf.mxu0  ;;  %v5725_v15 = vpop.f32.mrf.mxu1 }
 0xb0c   :  { %v5761_v11 = vadd.f32 %v5757_v56, %v5712_v8  ;;  %v5762_v55 = vadd.f32 %v5758_v10, %v5725_v15  ;;  %v11891_v10 = vor.u32 %v10588_v30, %v9916_v7  ;;  %v9924_v8 = vld [vmem:[#allocation12 + $0xb8] sm:$0xf0]  ;;  %v9938_v15 = vld [vmem:[#allocation12 + $0xc8] sm:$0xf] }
 0xb0d   :  { %v9892_v30 = vld [vmem:[#allocation12 + $0x78] sm:$0xf0]  ;;  %v9906_v7 = vld [vmem:[#allocation12 + $0x88] sm:$0xf] }
 0xb0e   :  { %v9685_v41 = vmul.f32 -1.442695, %v5761_v11  ;;  %v9686_v28 = vmul.f32 -1.442695, %v5762_v55  ;;  %v11896_v55 = vor.u32 %v10589_v6, %v9924_v8  ;;  %6419 = vmatpush.bf16.msrb.mxu1 %v11891_v10 }
 0xb10   :  { %10850 = vpow2.f32 %v9685_v41  ;;  %v9898_v41 = vld [vmem:[#allocation12 + $0x80] sm:$0xf]  ;;  %6445 = vmatpush.bf16.msrb.mxu3 %v11896_v55 }
 0xb11   :  { %10852 = vpow2.f32 %v9686_v28  ;;  %v10586_v28 = vld [vmem:[#allocation12 + $0x8c] sm:$0xf0] }
 0xb12   :  { %v5738_v63 = vpop.f32.mrf.mxu2  ;;  %v5751_v48 = vpop.f32.mrf.mxu3  ;;  %v11921_v2 = vor.u32 %v10586_v28, %v9898_v41  ;;  %v9866_v41 = vld [vmem:[#allocation12 + $0x40] sm:$0xf]  ;;  %v10578_v28 = vld [vmem:[#allocation12 + $0x4c] sm:$0xf0] }
 0xb13   :  { %v5764_v9 = vadd.f32 %v5760_v13, %v5751_v48  ;;  %v5714_v35 = vpop.f32.mrf.mxu0  ;;  %v5727_v53 = vpop.f32.mrf.mxu1  ;;  %v5763_v5 = vadd.f32 %v5759_v61, %v5738_v63  ;;  %v11904_v48 = vperm.slane %v5870_v27, 3 }
 0xb14   :  { %v9900_v35 = vld [vmem:[#allocation12 + $0x90] sm:$0xf0]  ;;  %6407 = vmatpush.bf16.msrb.mxu0 %v11921_v2  ;;  %6446 = vmatpush.bf16.msrb.mxu3 %v11946_v57 }
 0xb15   :  { %v9687_v19 = vmul.f32 -1.442695, %v5764_v9  ;;  %12440 = vst [vmem:[#allocation19_spill] sm:$0xff] %v11904_v48  ;;  %v10584_v9 = vld [vmem:[#allocation12 + $0x84] sm:$0xf] }
 0xb16   :  { %v10851_v36 = vpop.eup %10850  ;;  %v11923_v58 = vor.u32 %v10584_v9, %v9900_v35 }
 0xb17   :  { %v10853_v14 = vpop.eup %10852  ;;  %v11848_v29 = vadd.f32 1.0, %v10851_v36  ;;  %10854 = vpow2.f32 %v9687_v19  ;;  %v11919_v36 = vor.u32 %v10595_v23, %v9938_v15  ;;  %v10587_v23 = vld [vmem:[#allocation12 + $0x94] sm:$0xf0] }
 0xb18   :  { %v11858_v1 = vadd.f32 1.0, %v10853_v14  ;;  %v10591_v14 = vld [vmem:[#allocation12 + $0xb4] sm:$0xf0]  ;;  %6420 = vmatpush.bf16.msrb.mxu1 %v11923_v58 }
 0xb19   :  { %10856 = vrcp.f32 %v11848_v29  ;;  %v5778_v17 = vand.u32 2147483647, %v11848_v29  ;;  %v5780_v44 = vand.u32 2147483648, %v11848_v29  ;;  %vm5774_vm7 = vweird.f32 %v11848_v29  ;;  %6431 = vmatpush.bf16.msrb.mxu2 %v11919_v36 }
 0xb1a   :  { %10858 = vrcp.f32 %v11858_v1  ;;  %v5740_v40 = vpop.f32.mrf.mxu2  ;;  %v5753_v25 = vpop.f32.mrf.mxu3  ;;  %v5797_v52 = vand.u32 2147483647, %v11858_v1  ;;  %v5799_v31 = vand.u32 2147483648, %v11858_v1  ;;  %vm5793_vm12 = vweird.f32 %v11858_v1 }
 0xb1b   :  { %v11871_v22 = vpop.f32.mrf.mxu0  ;;  %v11873_v62 = vpop.f32.mrf.mxu1  ;;  %vm11909_vm8 = vcmp.eq.f32.partialorder %v5778_v17, 8.507059e+37  ;;  %v5781_v61 = vor.u32 1.1754944e-38, %v5780_v44  ;;  %v9882_v25 = vld [vmem:[#allocation12 + $0x60] sm:$0xf]  ;;  %v9884_v44 = vld [vmem:[#allocation12 + $0x70] sm:$0xf0] }
 0xb1c   :  { %v5800_v43 = vor.u32 1.1754944e-38, %v5799_v31  ;;  %vm11933_vm10 = vcmp.eq.f32.partialorder %v5797_v52, 8.507059e+37  ;;  %v11955_v15 = vor.u32 %v10582_v45, %v9882_v25  ;;  %v9890_v25 = vld [vmem:[#allocation12 + $0x68] sm:$0xf]  ;;  %v9850_v45 = vld [vmem:[#allocation12 + $0x20] sm:$0xf] }
 0xb1d   :  { %v10855_v18 = vpop.eup %10854 }
 0xb1e   :  { %v11889_v56 = vadd.f32 1.0, %v10855_v18  ;;  %v11948_v18 = vor.u32 %v10591_v14, %v9922_v42  ;;  %6408 = vmatpush.bf16.msrb.mxu0 %v11955_v15 }
 0xb1f   :  { %v11893_v11 = vpop.eup %10856 }
 0xb20   :  { %v11898_v13 = vpop.eup %10858  ;;  %v5770_v63 = vmul.f32 %v11893_v11, %v11848_v29  ;;  %vm5775_vm6 = vweird.f32 %v11893_v11  ;;  %10860 = vrcp.f32 %v11889_v56  ;;  %6432 = vmatpush.bf16.msrb.mxu2 %v11948_v18  ;;  %vm5813_vm15 = vweird.f32 %v11889_v56 }
 0xb21   :  { %v5789_v53 = vmul.f32 %v11898_v13, %v11858_v1  ;;  %10862 = vtanh.f32 %v5763_v5  ;;  %vm11929_vm9 = vmor %vm5774_vm7, %vm5775_vm6  ;;  %vm5794_vm11 = vweird.f32 %v11898_v13  ;;  %v10581_v5 = vld [vmem:[#allocation12 + $0x6c] sm:$0xf] }
 0xb22   :  { %v5771_v19 = vsub.f32 1.0, %v5770_v63  ;;  %v11915_v34 = vpop.f32.mrf.mxu2  ;;  %v11917_v60 = vpop.f32.mrf.mxu3  ;;  %vm11966_vm13 = vmor %vm5793_vm12, %vm5794_vm11  ;;  %v11974_v14 = vor.u32 %v10581_v5, %v9892_v30  ;;  %v10574_v5 = vld [vmem:[#allocation12 + $0x2c] sm:$0xf0]  ;;  %v10572_v30 = vld [vmem:[#allocation12 + $0x24] sm:$0xf] }
 0xb23   :  { %v5790_v27 = vsub.f32 1.0, %v5789_v53  ;;  %v6075_v17 = vpop.f32.mrf.mxu0  ;;  %v6104_v40 = vpop.f32.mrf.mxu1  ;;  %v11962_v53 = vor.u32 %v10580_v50, %v9884_v44 }
 0xb24   :  { %v5772_v47 = vmul.f32 %v11893_v11, %v5771_v19  ;;  %v6076_v3 = vadd.f32 %v6075_v17, %v11866_v12  ;;  %v6105_v29 = vadd.f32 %v6104_v40, %v11868_v37  ;;  %v10577_v19 = vld [vmem:[#allocation12 + $0x4c] sm:$0xf]  ;;  %v11978_v17 = vor.u32 %v10578_v28, %v9866_v41  ;;  %v9876_v40 = vld [vmem:[#allocation12 + $0x58] sm:$0xf0]  ;;  %6447 = vmatpush.bf16.msrb.mxu3 %v11974_v14 }
 0xb25   :  { %v5791_v52 = vmul.f32 %v11898_v13, %v5790_v27  ;;  %v11976_v27 = vor.u32 %v10587_v23, %v9906_v7  ;;  %6421 = vmatpush.bf16.msrb.mxu1 %v11962_v53 }
 0xb26   :  { %v11950_v6 = vpop.eup %10860  ;;  %v5773_v31 = vadd.f32 %v11893_v11, %v5772_v47  ;;  %v11953_v8 = vpack.c.bf16 %v6105_v29, %v6076_v3  ;;  %6409 = vmatpush.bf16.msrb.mxu0 %v11978_v17 }
 0xb27   :  { %v10863_v63 = vpop.eup %10862  ;;  %v5792_v9 = vadd.f32 %v11898_v13, %v5791_v52  ;;  %v5809_v35 = vmul.f32 %v11950_v6, %v11889_v56  ;;  %6433 = vmatpush.bf16.msrb.mxu2 %v11976_v27  ;;  %vm5814_vm14 = vweird.f32 %v11950_v6 }
 0xb28   :  { %v5777_v1 = vsel %vm11929_vm9, %v11893_v11, %v5773_v31  ;;  %v11987_v11 = vor.u32 %v10576_v39, %v9868_v54  ;;  %v9860_v39 = vld [vmem:[#allocation12 + $0x38] sm:$0xf0]  ;;  %vm12026_vm0 = vmor %vm5813_vm15, %vm5814_vm14 }
 0xb29   :  { %v5782_v47 = vsel %vm11909_vm8, %v5781_v61, %v5777_v1  ;;  %v5796_v3 = vsel %vm11966_vm13, %v11898_v13, %v5792_v9  ;;  %v5810_v29 = vsub.f32 1.0, %v5809_v35  ;;  %v11991_v61 = vor.u32 %v10577_v19, %v9876_v40  ;;  %v9852_v13 = vld [vmem:[#allocation12 + $0x30] sm:$0xf0]  ;;  %v9874_v1 = vld [vmem:[#allocation12 + $0x48] sm:$0xf] }
 0xb2a   :  { %v5801_v50 = vsel %vm11933_vm10, %v5800_v43, %v5796_v3  ;;  %v5824_v44 = vmul.f32 %v10863_v63, %v5782_v47  ;;  %v6133_v52 = vpop.f32.mrf.mxu2  ;;  %v6162_v33 = vpop.f32.mrf.mxu3  ;;  %v12001_v63 = vor.u32 %v10583_v32, %v9890_v25  ;;  %v12003_v35 = vor.u32 %v10574_v5, %v9850_v45  ;;  %6422 = vmatpush.bf16.msrb.mxu1 %v11987_v11  ;;  %v10579_v40 = vld [vmem:[#allocation12 + $0x54] sm:$0xf0]  ;;  %v9834_v47 = vld [vmem:[#allocation12] sm:$0xf]  ;;  %v10568_v32 = vld [vmem:[#allocation12 + $0x4] sm:$0xf] }
 0xb2b   :  { %v5823_v7 = vmul.f32 %v5801_v50, %v11830_v46  ;;  %v5811_v31 = vmul.f32 %v11950_v6, %v5810_v29  ;;  %v6134_v23 = vadd.f32 %v6133_v52, %v11879_v26  ;;  %v6163_v41 = vadd.f32 %v6162_v33, %v11904_v48  ;;  %v6078_v28 = vpop.f32.mrf.mxu0  ;;  %v6107_v9 = vpop.f32.mrf.mxu1  ;;  %v10573_v46 = vld [vmem:[#allocation12 + $0x2c] sm:$0xf]  ;;  %v10570_v29 = vld [vmem:[#allocation12 + $0xc] sm:$0xf0]  ;;  %v9836_v45 = vld [vmem:[#allocation12 + $0x10] sm:$0xf0]  ;;  %6448 = vmatpush.bf16.msrb.mxu3 %v11991_v61 }
 0xb2c   :  { %v6079_v43 = vadd.f32 %v6078_v28, %v11866_v12  ;;  %v6108_v49 = vadd.f32 %v6107_v9, %v11868_v37  ;;  %v12009_v42 = vor.u32 %v10572_v30, %v9852_v13  ;;  %v5819_v50 = vand.u32 2147483648, %v11889_v56  ;;  %6434 = vmatpush.bf16.msrb.mxu2 %v12001_v63  ;;  %v10569_v5 = vld [vmem:[#allocation12 + $0xc] sm:$0xf]  ;;  %v9844_v30 = vld [vmem:[#allocation12 + $0x18] sm:$0xf0]  ;;  %6410 = vmatpush.bf16.msrb.mxu0 %v12003_v35 }
 0xb2d   :  { %v5825_v54 = vadd.f32 %v5824_v44, %v5823_v7  ;;  %v12005_v19 = vpack.c.bf16 %v6163_v41, %v6134_v23  ;;  %v5812_v3 = vadd.f32 %v11950_v6, %v5811_v31  ;;  %v12017_v44 = vor.u32 %v10573_v46, %v9860_v39  ;;  %v10575_v23 = vld [vmem:[#allocation12 + $0x34] sm:$0xf0] }
 0xb2e   :  { %v12013_v25 = vpack.c.bf16 %v6108_v49, %v6079_v43  ;;  %v5817_v52 = vand.u32 2147483647, %v11889_v56  ;;  %v12022_v33 = vor.u32 %v10579_v40, %v9874_v1  ;;  %6423 = vmatpush.bf16.msrb.mxu1 %v12009_v42  ;;  %v12032_v7 = vor.u32 %v10570_v29, %v9834_v47  ;;  %v9858_v56 = vld [vmem:[#allocation12 + $0x28] sm:$0xf] }
 0xb2f   :  { %10864 = vtanh.f32 %v5825_v54  ;;  %v12034_v31 = vor.u32 %v10568_v32, %v9836_v45  ;;  %v5816_v41 = vsel %vm12026_vm0, %v11950_v6, %v5812_v3  ;;  %v5820_v43 = vor.u32 1.1754944e-38, %v5819_v50  ;;  %6449 = vmatpush.bf16.msrb.mxu3 %v12017_v44  ;;  %v9842_v45 = vld [vmem:[#allocation12 + $0x8] sm:$0xf]  ;;  %v10571_v50 = vld [vmem:[#allocation12 + $0x14] sm:$0xf0] }
 0xb30   :  { %v12042_v1 = vor.u32 %v10569_v5, %v9844_v30  ;;  %vm5818_vm1 = vcmp.eq.f32.partialorder %v5817_v52, 8.507059e+37  ;;  %6435 = vmatpush.bf16.msrb.mxu2 %v12022_v33  ;;  %v12047_v6 = vor.u32 %v10575_v23, %v9858_v56  ;;  %6411 = vmatpush.bf16.msrb.mxu0 %v12032_v7  ;;  %v12059_v13 = vor.u32 %v10571_v50, %v9842_v45 }
 0xb31   :  { %v5821_v29 = vsel %vm5818_vm1, %v5820_v43, %v5816_v41 }
 0xb32   :  { %v6136_v28 = vpop.f32.mrf.mxu2  ;;  %v6165_v9 = vpop.f32.mrf.mxu3  ;;  %6424 = vmatpush.bf16.msrb.mxu1 %v12034_v31 }
 0xb33   :  { %v6137_v49 = vadd.f32 %v6136_v28, %v11879_v26  ;;  %v6166_v46 = vadd.f32 %v6165_v9, %v11904_v48  ;;  %v6080_v39 = vpop.f32.mrf.mxu0  ;;  %v6109_v54 = vpop.f32.mrf.mxu1  ;;  %6450 = vmatpush.bf16.msrb.mxu3 %v12042_v1 }
 0xb34   :  { %v6081_v40 = vadd.f32 %v6080_v39, %v11866_v12  ;;  %v6110_v47 = vadd.f32 %v6109_v54, %v11868_v37  ;;  %6530 = vmatpush.bf16.msra.mxu0 %v11844_v21  ;;  %6436 = vmatpush.bf16.msrb.mxu2 %v12047_v6 }
 0xb35   :  { %v10865_v3 = vpop.eup %10864  ;;  %v12049_v32 = vpack.c.bf16 %v6166_v46, %v6137_v49 }
 0xb36   :  { %v5827_v5 = vmul.f32 %v10865_v3, %v5821_v29  ;;  %v12053_v52 = vpack.c.bf16 %v6110_v47, %v6081_v40  ;;  %6543 = vmatpush.bf16.msra.mxu1 %v11846_v24 }
 0xb37   :  { %6569 = vmatpush.bf16.msra.mxu3 %v11851_v51 }
 0xb38   :  { %v5828_v30 = vpack.c.bf16 %v5827_v5, %v5827_v5  ;;  %6531 = vmatpush.bf16.msra.mxu0 %v11875_v38  ;;  %6437 = vmatpush.bf16.msrb.mxu2 %v12059_v13 }
 0xb3a   :  { %5829 = vst [vmem:[#allocation2 + $0x1c] sm:$0xf] %v5828_v30  ;;  %v6138_v56 = vpop.f32.mrf.mxu2  ;;  %v6167_v23 = vpop.f32.mrf.mxu3  ;;  %6544 = vmatpush.bf16.msra.mxu1 %v11877_v4 }
 0xb3b   :  { %v6139_v41 = vadd.f32 %v6138_v56, %v11879_v26  ;;  %v6168_v28 = vadd.f32 %v6167_v23, %v11904_v48  ;;  %v6083_v9 = vpop.f32.mrf.mxu0  ;;  %v6112_v43 = vpop.f32.mrf.mxu1  ;;  %6570 = vmatpush.bf16.msra.mxu3 %v11884_v20 }
 0xb3c   :  { %v6084_v49 = vadd.f32 %v6083_v9, %v11866_v12  ;;  %v6113_v46 = vadd.f32 %v6112_v43, %v11868_v37  ;;  %6556 = vmatpush.bf16.msra.mxu2 %v11856_v0  ;;  %6532 = vmatpush.bf16.msra.mxu0 %v11886_v16 }
 0xb3d   :  { %v12070_v39 = vpack.c.bf16 %v6168_v28, %v6139_v41 }
 0xb3e   :  { %v12073_v54 = vpack.c.bf16 %v6113_v46, %v6084_v49  ;;  %6545 = vmatpush.bf16.msra.mxu1 %v11891_v10  ;;  %v6074_v49 = vadd.f32 %v11871_v22, %v11866_v12  ;;  %v6103_v46 = vadd.f32 %v11873_v62, %v11868_v37  ;;  %v6132_v22 = vadd.f32 %v11915_v34, %v11879_v26 }
 0xb3f   :  { %6571 = vmatpush.bf16.msra.mxu3 %v11896_v55  ;;  %v6161_v62 = vadd.f32 %v11917_v60, %v11904_v48 }
 0xb40   :  { %12451 = vst [vmem:[#allocation20_spill] sm:$0xff] %v12073_v54  ;;  %6557 = vmatpush.bf16.msra.mxu2 %v11919_v36  ;;  %6533 = vmatpush.bf16.msra.mxu0 %v11921_v2 }
 0xb41   :  { %v10535_v40 = vld [vmem:[#allocation2 + $0x18] sm:$0xff] }
 0xb42   :  { %v6141_v47 = vpop.f32.mrf.mxu2  ;;  %v6170_v3 = vpop.f32.mrf.mxu3  ;;  %6546 = vmatpush.bf16.msra.mxu1 %v11923_v58  ;;  %6087 = vmatmul.bf16.gmra.mxu0 %v10535_v40 }
 0xb43   :  { %v6142_v29 = vadd.f32 %v6141_v47, %v11879_v26  ;;  %v6171_v45 = vadd.f32 %v6170_v3, %v11904_v48  ;;  %6116 = vmatmul.bf16.gmra.mxu1 %v10535_v40  ;;  %6145 = vmatmul.bf16.gmra.mxu2 %v10535_v40  ;;  %v12142_v5 = vpop.f32.mrf.mxu1 }
 0xb44   :  { %6174 = vmatmul.bf16.gmra.mxu3 %v10535_v40  ;;  %6558 = vmatpush.bf16.msra.mxu2 %v11948_v18  ;;  %12454 = vst [vmem:[#allocation23_spill] sm:$0xff] %v12142_v5 }
 0xb45   :  { %v12083_v50 = vpack.c.bf16 %v6171_v45, %v6142_v29  ;;  %6572 = vmatpush.bf16.msra.mxu3 %v11946_v57  ;;  %6534 = vmatpush.bf16.msra.mxu0 %v11955_v15 }
 0xb46   :  { %6547 = vmatpush.bf16.msra.mxu1 %v11962_v53 }
 0xb47   :  { %12452 = vst [vmem:[#allocation21_spill] sm:$0xff] %v12083_v50 }
 0xb48   :  { %6559 = vmatpush.bf16.msra.mxu2 %v11976_v27 }
 0xb49   :  { %6573 = vmatpush.bf16.msra.mxu3 %v11974_v14  ;;  %6535 = vmatpush.bf16.msra.mxu0 %v11978_v17 }
 0xb4a   :  { %6548 = vmatpush.bf16.msra.mxu1 %v11987_v11  ;;  %v12144_v30 = vpop.f32.mrf.mxu2  ;;  %v12146_v56 = vpop.f32.mrf.mxu3 }
 0xb4b   :  { %12455 = vst [vmem:[#allocation24_spill] sm:$0xff] %v12144_v30 }
 0xb4c   :  { %6560 = vmatpush.bf16.msra.mxu2 %v12001_v63  ;;  %12456 = vst [vmem:[#allocation25_spill] sm:$0xff] %v12146_v56 }
 0xb4d   :  { %6574 = vmatpush.bf16.msra.mxu3 %v11991_v61  ;;  %6536 = vmatpush.bf16.msra.mxu0 %v12003_v35 }
 0xb4e   :  { %6549 = vmatpush.bf16.msra.mxu1 %v12009_v42 }
 0xb50   :  { %6561 = vmatpush.bf16.msra.mxu2 %v12022_v33 }
 0xb51   :  { %6575 = vmatpush.bf16.msra.mxu3 %v12017_v44  ;;  %6537 = vmatpush.bf16.msra.mxu0 %v12032_v7 }
 0xb52   :  { %6550 = vmatpush.bf16.msra.mxu1 %v12034_v31  ;;  %6412 = vmatmul.bf16.vlgmr.msrb.gmra.mxu0 %v11127_v59 }
 0xb53   :  { %6425 = vmatmul.bf16.vlgmr.msrb.gmra.mxu1 %v11127_v59  ;;  %6438 = vmatmul.bf16.vlgmr.msrb.gmra.mxu2 %v11127_v59 }
 0xb54   :  { %6451 = vmatmul.bf16.vlgmr.msrb.gmra.mxu3 %v11127_v59  ;;  %6562 = vmatpush.bf16.msra.mxu2 %v12047_v6  ;;  %v12140_v59 = vpop.f32.mrf.mxu0 }
 0xb55   :  { %6576 = vmatpush.bf16.msra.mxu3 %v12042_v1  ;;  %6656 = vmatpush.bf16.msrb.mxu0 %v11844_v21  ;;  %12453 = vst [vmem:[#allocation22_spill] sm:$0xff] %v12140_v59 }
 0xb56   :  { %6669 = vmatpush.bf16.msrb.mxu1 %v11846_v24 }
 0xb58   :  { %6563 = vmatpush.bf16.msra.mxu2 %v12059_v13 }
 0xb59   :  { %6695 = vmatpush.bf16.msrb.mxu3 %v11851_v51  ;;  %6657 = vmatpush.bf16.msrb.mxu0 %v11875_v38 }
 0xb5a   :  { %6670 = vmatpush.bf16.msrb.mxu1 %v11877_v4 }
 0xb5c   :  { %6682 = vmatpush.bf16.msrb.mxu2 %v11856_v0 }
 0xb5d   :  { %6696 = vmatpush.bf16.msrb.mxu3 %v11884_v20  ;;  %6658 = vmatpush.bf16.msrb.mxu0 %v11886_v16 }
 0xb5e   :  { %6671 = vmatpush.bf16.msrb.mxu1 %v11891_v10 }
 0xb60   :  { %6683 = vmatpush.bf16.msrb.mxu2 %v11919_v36 }
 0xb61   :  { %6697 = vmatpush.bf16.msrb.mxu3 %v11896_v55  ;;  %6659 = vmatpush.bf16.msrb.mxu0 %v11921_v2 }
 0xb62   :  { %6672 = vmatpush.bf16.msrb.mxu1 %v11923_v58 }
 0xb64   :  { %6684 = vmatpush.bf16.msrb.mxu2 %v11948_v18 }
 0xb65   :  { %6698 = vmatpush.bf16.msrb.mxu3 %v11946_v57  ;;  %6660 = vmatpush.bf16.msrb.mxu0 %v11955_v15 }
 0xb66   :  { %6673 = vmatpush.bf16.msrb.mxu1 %v11962_v53 }
 0xb68   :  { %6685 = vmatpush.bf16.msrb.mxu2 %v11976_v27 }
 0xb69   :  { %6699 = vmatpush.bf16.msrb.mxu3 %v11974_v14  ;;  %6661 = vmatpush.bf16.msrb.mxu0 %v11978_v17 }
 0xb6a   :  { %6674 = vmatpush.bf16.msrb.mxu1 %v11987_v11 }
 0xb6c   :  { %6686 = vmatpush.bf16.msrb.mxu2 %v12001_v63 }
 0xb6d   :  { %6700 = vmatpush.bf16.msrb.mxu3 %v11991_v61  ;;  %6662 = vmatpush.bf16.msrb.mxu0 %v12003_v35 }
 0xb6e   :  { %6675 = vmatpush.bf16.msrb.mxu1 %v12009_v42 }
 0xb70   :  { %6687 = vmatpush.bf16.msrb.mxu2 %v12022_v33 }
 0xb71   :  { %6701 = vmatpush.bf16.msrb.mxu3 %v12017_v44  ;;  %6663 = vmatpush.bf16.msrb.mxu0 %v12032_v7 }
 0xb72   :  { %6676 = vmatpush.bf16.msrb.mxu1 %v12034_v31 }
 0xb74   :  { %6688 = vmatpush.bf16.msrb.mxu2 %v12047_v6 }
 0xb75   :  { %6702 = vmatpush.bf16.msrb.mxu3 %v12042_v1 }
 0xb78   :  { %6689 = vmatpush.bf16.msrb.mxu2 %v12059_v13 }
 0xbbf   :  { %v6088_v23 = vpop.f32.mrf.mxu0 }
 0xbc0   :  { %v6117_v41 = vpop.f32.mrf.mxu1  ;;  %v6089_v28 = vadd.f32 %v6088_v23, %v11866_v12 }
 0xbc1   :  { %v6118_v9 = vadd.f32 %v6117_v41, %v11868_v37 }
 0xbc3   :  { %v12150_v43 = vpack.c.bf16 %v6118_v9, %v6089_v28  ;;  %v6180_v9 = vpack.c.bf16 %v6103_v46, %v6074_v49  ;;  %v6181_v46 = vpack.c.bf16 %v6161_v62, %v6132_v22 }
 0xbc5   :  { %12457 = vst [vmem:[#allocation26_spill] sm:$0xff] %v12150_v43  ;;  %v6459_v5 = vunpack.c.h.bf16 %v6180_v9  ;;  %v6461_v60 = vunpack.c.h.bf16 %v6181_v46  ;;  %v6460_v62 = vunpack.c.l.bf16 %v6181_v46 }
 0xbc6   :  { %v6146_v40 = vpop.f32.mrf.mxu2 }
 0xbc7   :  { %v6175_v47 = vpop.f32.mrf.mxu3  ;;  %v6147_v3 = vadd.f32 %v6146_v40, %v11879_v26  ;;  %v6090_v45 = vpop.f32.mrf.mxu0 }
 0xbc8   :  { %v6176_v29 = vadd.f32 %v6175_v47, %v11904_v48  ;;  %v6119_v56 = vpop.f32.mrf.mxu1  ;;  %v6091_v23 = vadd.f32 %v6090_v45, %v11866_v12  ;;  %v6458_v47 = vunpack.c.l.bf16 %v6180_v9 }
 0xbc9   :  { %v6120_v41 = vadd.f32 %v6119_v56, %v11868_v37 }
 0xbca   :  { %v12160_v28 = vpack.c.bf16 %v6176_v29, %v6147_v3 }
 0xbcb   :  { %v12162_v43 = vpack.c.bf16 %v6120_v41, %v6091_v23 }
 0xbcc   :  { %12458 = vst [vmem:[#allocation27_spill] sm:$0xff] %v12160_v28 }
 0xbcd   :  { %12459 = vst [vmem:[#allocation28_spill] sm:$0xff] %v12162_v43 }
 0xbce   :  { %v6148_v40 = vpop.f32.mrf.mxu2 }
 0xbcf   :  { %v6177_v30 = vpop.f32.mrf.mxu3  ;;  %v6149_v59 = vadd.f32 %v6148_v40, %v11879_v26  ;;  %v6413_v56 = vpop.f32.mrf.mxu0 }
 0xbd0   :  { %v6178_v45 = vadd.f32 %v6177_v30, %v11904_v48  ;;  %v6426_v3 = vpop.f32.mrf.mxu1  ;;  %v6462_v29 = vadd.f32 %v6458_v47, %v6413_v56 }
 0xbd1   :  { %v6463_v49 = vadd.f32 %v6459_v5, %v6426_v3 }
 0xbd2   :  { %v12170_v23 = vpack.c.bf16 %v6178_v45, %v6149_v59  ;;  %v9960_v41 = vmul.f32 -1.442695, %v6462_v29 }
 0xbd3   :  { %v9961_v34 = vmul.f32 -1.442695, %v6463_v49 }
 0xbd4   :  { %12460 = vst [vmem:[#allocation29_spill] sm:$0xff] %v12170_v23  ;;  %10866 = vpow2.f32 %v9960_v41 }
 0xbd5   :  { %10868 = vpow2.f32 %v9961_v34 }
 0xbd6   :  { %v6439_v43 = vpop.f32.mrf.mxu2 }
 0xbd7   :  { %v6452_v28 = vpop.f32.mrf.mxu3  ;;  %v6415_v9 = vpop.f32.mrf.mxu0  ;;  %v6464_v3 = vadd.f32 %v6460_v62, %v6439_v43 }
 0xbd8   :  { %v6465_v37 = vadd.f32 %v6461_v60, %v6452_v28  ;;  %v6428_v12 = vpop.f32.mrf.mxu1 }
 0xbda   :  { %v9962_v40 = vmul.f32 -1.442695, %v6465_v37  ;;  %v10867_v26 = vpop.eup %10866 }
 0xbdb   :  { %v10869_v30 = vpop.eup %10868  ;;  %v6469_v48 = vadd.f32 1.0, %v10867_v26 }
 0xbdc   :  { %10870 = vpow2.f32 %v9962_v40  ;;  %v6488_v47 = vadd.f32 1.0, %v10869_v30 }
 0xbdd   :  { %10872 = vrcp.f32 %v6469_v48  ;;  %v6481_v41 = vand.u32 2147483648, %v6469_v48  ;;  %v6479_v60 = vand.u32 2147483647, %v6469_v48  ;;  %vm6475_vm4 = vweird.f32 %v6469_v48 }
 0xbde   :  { %10874 = vrcp.f32 %v6488_v47  ;;  %v6441_v5 = vpop.f32.mrf.mxu2  ;;  %v6500_v26 = vand.u32 2147483648, %v6488_v47  ;;  %v6498_v40 = vand.u32 2147483647, %v6488_v47  ;;  %vm6494_vm5 = vweird.f32 %v6488_v47 }
 0xbdf   :  { %v6454_v59 = vpop.f32.mrf.mxu3  ;;  %v6482_v43 = vor.u32 1.1754944e-38, %v6481_v41  ;;  %vm6480_vm7 = vcmp.eq.f32.partialorder %v6479_v60, 8.507059e+37 }
 0xbe0   :  { %vm6499_vm9 = vcmp.eq.f32.partialorder %v6498_v40, 8.507059e+37 }
 0xbe2   :  { %v10871_v22 = vpop.eup %10870 }
 0xbe3   :  { %v6508_v45 = vadd.f32 1.0, %v10871_v22  ;;  %v10873_v56 = vpop.eup %10872  ;;  %v6501_v22 = vor.u32 1.1754944e-38, %v6500_v26 }
 0xbe4   :  { %v10875_v29 = vpop.eup %10874  ;;  %v6471_v49 = vmul.f32 %v10873_v56, %v6469_v48  ;;  %vm6476_vm2 = vweird.f32 %v10873_v56 }
 0xbe5   :  { %10876 = vrcp.f32 %v6508_v45  ;;  %v6490_v28 = vmul.f32 %v10875_v29, %v6488_v47  ;;  %vm6495_vm3 = vweird.f32 %v10875_v29  ;;  %vm6477_vm6 = vmor %vm6475_vm4, %vm6476_vm2  ;;  %v6520_v47 = vand.u32 2147483648, %v6508_v45 }
 0xbe6   :  { %v6472_v12 = vsub.f32 1.0, %v6471_v49  ;;  %10878 = vtanh.f32 %v6464_v3  ;;  %vm6496_vm8 = vmor %vm6494_vm5, %vm6495_vm3  ;;  %vm6514_vm11 = vweird.f32 %v6508_v45 }
 0xbe7   :  { %v6491_v37 = vsub.f32 1.0, %v6490_v28  ;;  %v6521_v26 = vor.u32 1.1754944e-38, %v6520_v47 }
 0xbe8   :  { %v6473_v34 = vmul.f32 %v10873_v56, %v6472_v12 }
 0xbe9   :  { %v6492_v9 = vmul.f32 %v10875_v29, %v6491_v37 }
 0xbea   :  { %v6474_v46 = vadd.f32 %v10873_v56, %v6473_v34 }
 0xbeb   :  { %v10877_v30 = vpop.eup %10876  ;;  %v6493_v59 = vadd.f32 %v10875_v29, %v6492_v9 }
 0xbec   :  { %v6510_v5 = vmul.f32 %v10877_v30, %v6508_v45  ;;  %v6478_v62 = vsel %vm6477_vm6, %v10873_v56, %v6474_v46  ;;  %v10879_v3 = vpop.eup %10878  ;;  %vm6515_vm10 = vweird.f32 %v10877_v30  ;;  %v6518_v56 = vand.u32 2147483647, %v6508_v45 }
 0xbed   :  { %v6483_v49 = vsel %vm6480_vm7, %v6482_v43, %v6478_v62  ;;  %v6497_v28 = vsel %vm6496_vm8, %v10875_v29, %v6493_v59  ;;  %vm6516_vm12 = vmor %vm6514_vm11, %vm6515_vm10 }
 0xbee   :  { %v6511_v12 = vsub.f32 1.0, %v6510_v5  ;;  %v6502_v37 = vsel %vm6499_vm9, %v6501_v22, %v6497_v28  ;;  %v6525_v23 = vmul.f32 %v10879_v3, %v6483_v49  ;;  %vm6519_vm13 = vcmp.eq.f32.partialorder %v6518_v56, 8.507059e+37 }
 0xbef   :  { %v6524_v50 = vmul.f32 0.0, %v6502_v37  ;;  %v6587_v5 = vunpack.c.h.bf16 %v12005_v19 }
 0xbf0   :  { %v6512_v54 = vmul.f32 %v10877_v30, %v6511_v12 }
 0xbf1   :  { %v12172_v34 = vadd.f32 %v6525_v23, %v6524_v50  ;;  %v6585_v50 = vunpack.c.h.bf16 %v11953_v8 }
 0xbf2   :  { %v6513_v48 = vadd.f32 %v10877_v30, %v6512_v54  ;;  %v6584_v54 = vunpack.c.l.bf16 %v11953_v8 }
 0xbf3   :  { %10880 = vtanh.f32 %v12172_v34 }
 0xbf4   :  { %v6517_v41 = vsel %vm6516_vm12, %v10877_v30, %v6513_v48 }
 0xbf5   :  { %v6522_v60 = vsel %vm6519_vm13, %v6521_v26, %v6517_v41 }
 0xbf9   :  { %v10881_v29 = vpop.eup %10880 }
 0xbfa   :  { %v6528_v9 = vmul.f32 %v10881_v29, %v6522_v60  ;;  %v6586_v29 = vunpack.c.l.bf16 %v12005_v19 }
 0xbfc   :  { %v6529_v40 = vpack.c.bf16 %v6528_v9, %v6528_v9 }
 0xbfe   :  { %6538 = vmatmul.bf16.vlgmr.msra.gmra.mxu0 %v6529_v40  ;;  %6551 = vmatmul.bf16.vlgmr.msra.gmra.mxu1 %v6529_v40 }
 0xbff   :  { %6564 = vmatmul.bf16.vlgmr.msra.gmra.mxu2 %v6529_v40  ;;  %6577 = vmatmul.bf16.vlgmr.msra.gmra.mxu3 %v6529_v40 }
 0xc00   :  { %6782 = vmatpush.bf16.msra.mxu0 %v11844_v21  ;;  %6795 = vmatpush.bf16.msra.mxu1 %v11846_v24 }
 0xc01   :  { %6808 = vmatpush.bf16.msra.mxu2 %v11856_v0  ;;  %6821 = vmatpush.bf16.msra.mxu3 %v11851_v51 }
 0xc04   :  { %6783 = vmatpush.bf16.msra.mxu0 %v11875_v38  ;;  %6796 = vmatpush.bf16.msra.mxu1 %v11877_v4 }
 0xc05   :  { %6809 = vmatpush.bf16.msra.mxu2 %v11919_v36  ;;  %6822 = vmatpush.bf16.msra.mxu3 %v11884_v20 }
 0xc08   :  { %6784 = vmatpush.bf16.msra.mxu0 %v11886_v16  ;;  %6797 = vmatpush.bf16.msra.mxu1 %v11891_v10 }
 0xc09   :  { %6810 = vmatpush.bf16.msra.mxu2 %v11948_v18  ;;  %6823 = vmatpush.bf16.msra.mxu3 %v11896_v55 }
 0xc0c   :  { %6785 = vmatpush.bf16.msra.mxu0 %v11921_v2  ;;  %6798 = vmatpush.bf16.msra.mxu1 %v11923_v58 }
 0xc0d   :  { %6811 = vmatpush.bf16.msra.mxu2 %v11976_v27  ;;  %6824 = vmatpush.bf16.msra.mxu3 %v11946_v57 }
 0xc10   :  { %6786 = vmatpush.bf16.msra.mxu0 %v11955_v15  ;;  %6799 = vmatpush.bf16.msra.mxu1 %v11962_v53 }
 0xc11   :  { %6812 = vmatpush.bf16.msra.mxu2 %v12001_v63  ;;  %6825 = vmatpush.bf16.msra.mxu3 %v11974_v14 }
 0xc14   :  { %6787 = vmatpush.bf16.msra.mxu0 %v11978_v17  ;;  %6800 = vmatpush.bf16.msra.mxu1 %v11987_v11 }
 0xc15   :  { %6813 = vmatpush.bf16.msra.mxu2 %v12022_v33  ;;  %6826 = vmatpush.bf16.msra.mxu3 %v11991_v61 }
 0xc18   :  { %6788 = vmatpush.bf16.msra.mxu0 %v12003_v35  ;;  %6801 = vmatpush.bf16.msra.mxu1 %v12009_v42 }
 0xc19   :  { %6814 = vmatpush.bf16.msra.mxu2 %v12047_v6  ;;  %6827 = vmatpush.bf16.msra.mxu3 %v12017_v44 }
 0xc1c   :  { %6789 = vmatpush.bf16.msra.mxu0 %v12032_v7  ;;  %6802 = vmatpush.bf16.msra.mxu1 %v12034_v31 }
 0xc1d   :  { %6815 = vmatpush.bf16.msra.mxu2 %v12059_v13  ;;  %6828 = vmatpush.bf16.msra.mxu3 %v12042_v1 }
 0xc7b   :  { %v6539_v23 = vpop.f32.mrf.mxu0  ;;  %v6552_v45 = vpop.f32.mrf.mxu1 }
 0xc7c   :  { %v6588_v30 = vadd.f32 %v6584_v54, %v6539_v23  ;;  %v6589_v46 = vadd.f32 %v6585_v50, %v6552_v45 }
 0xc7e   :  { %v9963_v43 = vmul.f32 -1.442695, %v6588_v30  ;;  %v9964_v59 = vmul.f32 -1.442695, %v6589_v46 }
 0xc80   :  { %10882 = vpow2.f32 %v9963_v43 }
 0xc81   :  { %10884 = vpow2.f32 %v9964_v59 }
 0xc82   :  { %v6565_v22 = vpop.f32.mrf.mxu2  ;;  %v6578_v62 = vpop.f32.mrf.mxu3 }
 0xc83   :  { %v6591_v3 = vadd.f32 %v6587_v5, %v6578_v62  ;;  %v6541_v49 = vpop.f32.mrf.mxu0  ;;  %v6554_v28 = vpop.f32.mrf.mxu1  ;;  %v6590_v40 = vadd.f32 %v6586_v29, %v6565_v22 }
 0xc85   :  { %v9965_v12 = vmul.f32 -1.442695, %v6591_v3 }
 0xc86   :  { %v10883_v37 = vpop.eup %10882 }
 0xc87   :  { %v10885_v48 = vpop.eup %10884  ;;  %v6595_v47 = vadd.f32 1.0, %v10883_v37  ;;  %10886 = vpow2.f32 %v9965_v12 }
 0xc88   :  { %v6614_v8 = vadd.f32 1.0, %v10885_v48 }
 0xc89   :  { %10888 = vrcp.f32 %v6595_v47  ;;  %v6607_v46 = vand.u32 2147483648, %v6595_v47  ;;  %v6605_v5 = vand.u32 2147483647, %v6595_v47  ;;  %vm6601_vm0 = vweird.f32 %v6595_v47 }
 0xc8a   :  { %10890 = vrcp.f32 %v6614_v8  ;;  %v6567_v56 = vpop.f32.mrf.mxu2  ;;  %v6580_v41 = vpop.f32.mrf.mxu3  ;;  %v6626_v43 = vand.u32 2147483648, %v6614_v8  ;;  %v6624_v3 = vand.u32 2147483647, %v6614_v8  ;;  %vm6620_vm1 = vweird.f32 %v6614_v8 }
 0xc8b   :  { %v6608_v22 = vor.u32 1.1754944e-38, %v6607_v46  ;;  %vm6606_vm4 = vcmp.eq.f32.partialorder %v6605_v5, 8.507059e+37 }
 0xc8c   :  { %v6627_v37 = vor.u32 1.1754944e-38, %v6626_v43  ;;  %vm6625_vm5 = vcmp.eq.f32.partialorder %v6624_v3, 8.507059e+37 }
 0xc8d   :  { %v10887_v26 = vpop.eup %10886 }
 0xc8e   :  { %v6634_v60 = vadd.f32 1.0, %v10887_v26 }
 0xc8f   :  { %v10889_v9 = vpop.eup %10888 }
 0xc90   :  { %v10891_v54 = vpop.eup %10890  ;;  %v6597_v50 = vmul.f32 %v10889_v9, %v6595_v47  ;;  %10892 = vrcp.f32 %v6634_v60  ;;  %vm6602_vm14 = vweird.f32 %v10889_v9  ;;  %vm6640_vm7 = vweird.f32 %v6634_v60 }
 0xc91   :  { %v6616_v23 = vmul.f32 %v10891_v54, %v6614_v8  ;;  %10894 = vtanh.f32 %v6590_v40  ;;  %vm6621_vm15 = vweird.f32 %v10891_v54  ;;  %vm6603_vm2 = vmor %vm6601_vm0, %vm6602_vm14 }
 0xc92   :  { %v6598_v45 = vsub.f32 1.0, %v6597_v50  ;;  %vm6622_vm3 = vmor %vm6620_vm1, %vm6621_vm15 }
 0xc93   :  { %v6617_v30 = vsub.f32 1.0, %v6616_v23 }
 0xc94   :  { %v6599_v59 = vmul.f32 %v10889_v9, %v6598_v45 }
 0xc95   :  { %v6618_v62 = vmul.f32 %v10891_v54, %v6617_v30  ;;  %v6646_v30 = vand.u32 2147483648, %v6634_v60 }
 0xc96   :  { %v10893_v49 = vpop.eup %10892  ;;  %v6600_v19 = vadd.f32 %v10889_v9, %v6599_v59 }
 0xc97   :  { %v6619_v28 = vadd.f32 %v10891_v54, %v6618_v62  ;;  %v6636_v12 = vmul.f32 %v10893_v49, %v6634_v60  ;;  %v10895_v56 = vpop.eup %10894  ;;  %vm6641_vm6 = vweird.f32 %v10893_v49  ;;  %v6647_v43 = vor.u32 1.1754944e-38, %v6646_v30 }
 0xc98   :  { %v6604_v48 = vsel %vm6603_vm2, %v10889_v9, %v6600_v19  ;;  %v6644_v9 = vand.u32 2147483647, %v6634_v60  ;;  %vm6642_vm8 = vmor %vm6640_vm7, %vm6641_vm6  ;;  %v6711_v60 = vunpack.c.h.bf16 %v12013_v25 }
 0xc99   :  { %v6609_v41 = vsel %vm6606_vm4, %v6608_v22, %v6604_v48  ;;  %v6623_v26 = vsel %vm6622_vm3, %v10891_v54, %v6619_v28  ;;  %v6637_v29 = vsub.f32 1.0, %v6636_v12 }
 0xc9a   :  { %v6628_v40 = vsel %vm6625_vm5, %v6627_v37, %v6623_v26  ;;  %v6651_v50 = vmul.f32 %v10895_v56, %v6609_v41  ;;  %vm6645_vm9 = vcmp.eq.f32.partialorder %v6644_v9, 8.507059e+37  ;;  %v6713_v37 = vunpack.c.h.bf16 %v12049_v32 }
 0xc9b   :  { %v6650_v23 = vmul.f32 %v6628_v40, %v12172_v34  ;;  %v6638_v45 = vmul.f32 %v10893_v49, %v6637_v29  ;;  %v6710_v34 = vunpack.c.l.bf16 %v12013_v25 }
 0xc9d   :  { %v12212_v47 = vadd.f32 %v6651_v50, %v6650_v23  ;;  %v6639_v8 = vadd.f32 %v10893_v49, %v6638_v45 }
 0xc9f   :  { %10896 = vtanh.f32 %v12212_v47  ;;  %v6643_v46 = vsel %vm6642_vm8, %v10893_v49, %v6639_v8 }
 0xca0   :  { %v6648_v59 = vsel %vm6645_vm9, %v6647_v43, %v6643_v46  ;;  %v6712_v46 = vunpack.c.l.bf16 %v12049_v32 }
 0xca5   :  { %v10897_v54 = vpop.eup %10896 }
 0xca6   :  { %v6654_v5 = vmul.f32 %v10897_v54, %v6648_v59 }
 0xca8   :  { %v6655_v62 = vpack.c.bf16 %v6654_v5, %v6654_v5 }
 0xcaa   :  { %6664 = vmatmul.bf16.vlgmr.msrb.gmra.mxu0 %v6655_v62  ;;  %6677 = vmatmul.bf16.vlgmr.msrb.gmra.mxu1 %v6655_v62 }
 0xcab   :  { %6690 = vmatmul.bf16.vlgmr.msrb.gmra.mxu2 %v6655_v62  ;;  %6703 = vmatmul.bf16.vlgmr.msrb.gmra.mxu3 %v6655_v62 }
 0xcac   :  { %6908 = vmatpush.bf16.msrb.mxu0 %v11844_v21  ;;  %6921 = vmatpush.bf16.msrb.mxu1 %v11846_v24 }
 0xcad   :  { %6934 = vmatpush.bf16.msrb.mxu2 %v11856_v0  ;;  %6947 = vmatpush.bf16.msrb.mxu3 %v11851_v51 }
 0xcb0   :  { %6909 = vmatpush.bf16.msrb.mxu0 %v11875_v38  ;;  %6922 = vmatpush.bf16.msrb.mxu1 %v11877_v4 }
 0xcb1   :  { %6935 = vmatpush.bf16.msrb.mxu2 %v11919_v36  ;;  %6948 = vmatpush.bf16.msrb.mxu3 %v11884_v20 }
 0xcb4   :  { %6910 = vmatpush.bf16.msrb.mxu0 %v11886_v16  ;;  %6923 = vmatpush.bf16.msrb.mxu1 %v11891_v10 }
 0xcb5   :  { %6936 = vmatpush.bf16.msrb.mxu2 %v11948_v18  ;;  %6949 = vmatpush.bf16.msrb.mxu3 %v11896_v55 }
 0xcb8   :  { %6911 = vmatpush.bf16.msrb.mxu0 %v11921_v2  ;;  %6924 = vmatpush.bf16.msrb.mxu1 %v11923_v58 }
 0xcb9   :  { %6937 = vmatpush.bf16.msrb.mxu2 %v11976_v27  ;;  %6950 = vmatpush.bf16.msrb.mxu3 %v11946_v57 }
 0xcbc   :  { %6912 = vmatpush.bf16.msrb.mxu0 %v11955_v15  ;;  %6925 = vmatpush.bf16.msrb.mxu1 %v11962_v53 }
 0xcbd   :  { %6938 = vmatpush.bf16.msrb.mxu2 %v12001_v63  ;;  %6951 = vmatpush.bf16.msrb.mxu3 %v11974_v14 }
 0xcc0   :  { %6913 = vmatpush.bf16.msrb.mxu0 %v11978_v17  ;;  %6926 = vmatpush.bf16.msrb.mxu1 %v11987_v11 }
 0xcc1   :  { %6939 = vmatpush.bf16.msrb.mxu2 %v12022_v33  ;;  %6952 = vmatpush.bf16.msrb.mxu3 %v11991_v61 }
 0xcc4   :  { %6914 = vmatpush.bf16.msrb.mxu0 %v12003_v35  ;;  %6927 = vmatpush.bf16.msrb.mxu1 %v12009_v42 }
 0xcc5   :  { %6940 = vmatpush.bf16.msrb.mxu2 %v12047_v6  ;;  %6953 = vmatpush.bf16.msrb.mxu3 %v12017_v44 }
 0xcc8   :  { %6915 = vmatpush.bf16.msrb.mxu0 %v12032_v7  ;;  %6928 = vmatpush.bf16.msrb.mxu1 %v12034_v31 }
 0xcc9   :  { %6941 = vmatpush.bf16.msrb.mxu2 %v12059_v13  ;;  %6954 = vmatpush.bf16.msrb.mxu3 %v12042_v1 }
 0xd27   :  { %v6665_v3 = vpop.f32.mrf.mxu0  ;;  %v6678_v49 = vpop.f32.mrf.mxu1 }
 0xd28   :  { %v6714_v19 = vadd.f32 %v6710_v34, %v6665_v3  ;;  %v6715_v22 = vadd.f32 %v6711_v60, %v6678_v49 }
 0xd2a   :  { %v9966_v28 = vmul.f32 -1.442695, %v6714_v19  ;;  %v9967_v12 = vmul.f32 -1.442695, %v6715_v22 }
 0xd2c   :  { %10898 = vpow2.f32 %v9966_v28 }
 0xd2d   :  { %10900 = vpow2.f32 %v9967_v12 }
 0xd2e   :  { %v6691_v48 = vpop.f32.mrf.mxu2  ;;  %v6704_v56 = vpop.f32.mrf.mxu3 }
 0xd2f   :  { %v6717_v41 = vadd.f32 %v6713_v37, %v6704_v56  ;;  %v6667_v26 = vpop.f32.mrf.mxu0  ;;  %v6680_v29 = vpop.f32.mrf.mxu1  ;;  %v6716_v59 = vadd.f32 %v6712_v46, %v6691_v48 }
 0xd31   :  { %v9968_v40 = vmul.f32 -1.442695, %v6717_v41 }
 0xd32   :  { %v10899_v50 = vpop.eup %10898 }
 0xd33   :  { %v10901_v23 = vpop.eup %10900  ;;  %v6721_v45 = vadd.f32 1.0, %v10899_v50  ;;  %10902 = vpow2.f32 %v9968_v40 }
 0xd34   :  { %v6740_v25 = vadd.f32 1.0, %v10901_v23 }
 0xd35   :  { %10904 = vrcp.f32 %v6721_v45  ;;  %v6733_v49 = vand.u32 2147483648, %v6721_v45  ;;  %v6731_v28 = vand.u32 2147483647, %v6721_v45  ;;  %vm6727_vm12 = vweird.f32 %v6721_v45 }
 0xd36   :  { %10906 = vrcp.f32 %v6740_v25  ;;  %v6693_v8 = vpop.f32.mrf.mxu2  ;;  %v6706_v30 = vpop.f32.mrf.mxu3  ;;  %v6752_v19 = vand.u32 2147483648, %v6740_v25  ;;  %v6750_v37 = vand.u32 2147483647, %v6740_v25  ;;  %vm6746_vm13 = vweird.f32 %v6740_v25 }
 0xd37   :  { %v6734_v48 = vor.u32 1.1754944e-38, %v6733_v49  ;;  %vm6732_vm0 = vcmp.eq.f32.partialorder %v6731_v28, 8.507059e+37 }
 0xd38   :  { %v6753_v29 = vor.u32 1.1754944e-38, %v6752_v19  ;;  %vm6751_vm1 = vcmp.eq.f32.partialorder %v6750_v37, 8.507059e+37 }
 0xd39   :  { %v10903_v9 = vpop.eup %10902 }
 0xd3a   :  { %v6760_v43 = vadd.f32 1.0, %v10903_v9 }
 0xd3b   :  { %v10905_v54 = vpop.eup %10904 }
 0xd3c   :  { %v10907_v5 = vpop.eup %10906  ;;  %v6723_v62 = vmul.f32 %v10905_v54, %v6721_v45  ;;  %10908 = vrcp.f32 %v6760_v43  ;;  %vm6728_vm10 = vweird.f32 %v10905_v54  ;;  %vm6766_vm3 = vweird.f32 %v6760_v43 }
 0xd3d   :  { %v6742_v34 = vmul.f32 %v10907_v5, %v6740_v25  ;;  %10910 = vtanh.f32 %v6716_v59  ;;  %vm6747_vm11 = vweird.f32 %v10907_v5  ;;  %vm6729_vm14 = vmor %vm6727_vm12, %vm6728_vm10 }
 0xd3e   :  { %v6724_v60 = vsub.f32 1.0, %v6723_v62  ;;  %vm6748_vm15 = vmor %vm6746_vm13, %vm6747_vm11 }
 0xd3f   :  { %v6743_v3 = vsub.f32 1.0, %v6742_v34  ;;  %v6772_v34 = vand.u32 2147483648, %v6760_v43 }
 0xd40   :  { %v6725_v22 = vmul.f32 %v10905_v54, %v6724_v60 }
 0xd41   :  { %v6744_v12 = vmul.f32 %v10907_v5, %v6743_v3  ;;  %v6773_v3 = vor.u32 1.1754944e-38, %v6772_v34  ;;  %v6838_v34 = vunpack.c.l.bf16 %v12070_v39 }
 0xd42   :  { %v10909_v56 = vpop.eup %10908  ;;  %v6726_v32 = vadd.f32 %v10905_v54, %v6725_v22 }
 0xd43   :  { %v6745_v41 = vadd.f32 %v10907_v5, %v6744_v12  ;;  %v6762_v26 = vmul.f32 %v10909_v56, %v6760_v43  ;;  %v10911_v50 = vpop.eup %10910  ;;  %vm6767_vm2 = vweird.f32 %v10909_v56 }
 0xd44   :  { %v6730_v40 = vsel %vm6729_vm14, %v10905_v54, %v6726_v32  ;;  %v6770_v54 = vand.u32 2147483647, %v6760_v43  ;;  %vm6768_vm4 = vmor %vm6766_vm3, %vm6767_vm2  ;;  %v6837_v43 = vunpack.c.h.bf16 %v12053_v52 }
 0xd45   :  { %v6735_v23 = vsel %vm6732_vm0, %v6734_v48, %v6730_v40  ;;  %v6749_v8 = vsel %vm6748_vm15, %v10907_v5, %v6745_v41  ;;  %v6763_v30 = vsub.f32 1.0, %v6762_v26  ;;  %v6839_v41 = vunpack.c.h.bf16 %v12070_v39 }
 0xd46   :  { %v6754_v9 = vsel %vm6751_vm1, %v6753_v29, %v6749_v8  ;;  %v6777_v46 = vmul.f32 %v10911_v50, %v6735_v23  ;;  %vm6771_vm5 = vcmp.eq.f32.partialorder %v6770_v54, 8.507059e+37 }
 0xd47   :  { %v6776_v59 = vmul.f32 %v6754_v9, %v12212_v47  ;;  %v6764_v62 = vmul.f32 %v10909_v56, %v6763_v30  ;;  %v6836_v47 = vunpack.c.l.bf16 %v12053_v52 }
 0xd49   :  { %v12252_v45 = vadd.f32 %v6777_v46, %v6776_v59  ;;  %v6765_v25 = vadd.f32 %v10909_v56, %v6764_v62 }
 0xd4b   :  { %10912 = vtanh.f32 %v12252_v45  ;;  %v6769_v60 = vsel %vm6768_vm4, %v10909_v56, %v6765_v25 }
 0xd4c   :  { %v6774_v49 = vsel %vm6771_vm5, %v6773_v3, %v6769_v60 }
 0xd51   :  { %v10913_v5 = vpop.eup %10912 }
 0xd52   :  { %v6780_v19 = vmul.f32 %v10913_v5, %v6774_v49 }
 0xd54   :  { %v6781_v22 = vpack.c.bf16 %v6780_v19, %v6780_v19 }
 0xd56   :  { %6790 = vmatmul.bf16.vlgmr.msra.gmra.mxu0 %v6781_v22  ;;  %6803 = vmatmul.bf16.vlgmr.msra.gmra.mxu1 %v6781_v22 }
 0xd57   :  { %6816 = vmatmul.bf16.vlgmr.msra.gmra.mxu2 %v6781_v22  ;;  %6829 = vmatmul.bf16.vlgmr.msra.gmra.mxu3 %v6781_v22 }
 0xd58   :  { %7034 = vmatpush.bf16.msra.mxu0 %v11844_v21  ;;  %7047 = vmatpush.bf16.msra.mxu1 %v11846_v24 }
 0xd59   :  { %7060 = vmatpush.bf16.msra.mxu2 %v11856_v0  ;;  %7073 = vmatpush.bf16.msra.mxu3 %v11851_v51 }
 0xd5c   :  { %7035 = vmatpush.bf16.msra.mxu0 %v11875_v38  ;;  %7048 = vmatpush.bf16.msra.mxu1 %v11877_v4 }
 0xd5d   :  { %7061 = vmatpush.bf16.msra.mxu2 %v11919_v36  ;;  %7074 = vmatpush.bf16.msra.mxu3 %v11884_v20 }
 0xd60   :  { %7036 = vmatpush.bf16.msra.mxu0 %v11886_v16  ;;  %7049 = vmatpush.bf16.msra.mxu1 %v11891_v10 }
 0xd61   :  { %7062 = vmatpush.bf16.msra.mxu2 %v11948_v18  ;;  %7075 = vmatpush.bf16.msra.mxu3 %v11896_v55 }
 0xd64   :  { %7037 = vmatpush.bf16.msra.mxu0 %v11921_v2  ;;  %7050 = vmatpush.bf16.msra.mxu1 %v11923_v58 }
 0xd65   :  { %7063 = vmatpush.bf16.msra.mxu2 %v11976_v27  ;;  %7076 = vmatpush.bf16.msra.mxu3 %v11946_v57 }
 0xd68   :  { %7038 = vmatpush.bf16.msra.mxu0 %v11955_v15  ;;  %7051 = vmatpush.bf16.msra.mxu1 %v11962_v53 }
 0xd69   :  { %7064 = vmatpush.bf16.msra.mxu2 %v12001_v63  ;;  %7077 = vmatpush.bf16.msra.mxu3 %v11974_v14 }
 0xd6c   :  { %7039 = vmatpush.bf16.msra.mxu0 %v11978_v17  ;;  %7052 = vmatpush.bf16.msra.mxu1 %v11987_v11 }
 0xd6d   :  { %7065 = vmatpush.bf16.msra.mxu2 %v12022_v33  ;;  %7078 = vmatpush.bf16.msra.mxu3 %v11991_v61 }
 0xd70   :  { %7040 = vmatpush.bf16.msra.mxu0 %v12003_v35  ;;  %7053 = vmatpush.bf16.msra.mxu1 %v12009_v42 }
 0xd71   :  { %7066 = vmatpush.bf16.msra.mxu2 %v12047_v6  ;;  %7079 = vmatpush.bf16.msra.mxu3 %v12017_v44 }
 0xd74   :  { %7041 = vmatpush.bf16.msra.mxu0 %v12032_v7  ;;  %7054 = vmatpush.bf16.msra.mxu1 %v12034_v31 }
 0xd75   :  { %7067 = vmatpush.bf16.msra.mxu2 %v12059_v13  ;;  %7080 = vmatpush.bf16.msra.mxu3 %v12042_v1 }
 0xdd3   :  { %v6791_v28 = vpop.f32.mrf.mxu0  ;;  %v6804_v12 = vpop.f32.mrf.mxu1 }
 0xdd4   :  { %v6840_v37 = vadd.f32 %v6836_v47, %v6791_v28  ;;  %v6841_v56 = vadd.f32 %v6837_v43, %v6804_v12 }
 0xdd6   :  { %v9969_v32 = vmul.f32 -1.442695, %v6840_v37  ;;  %v9970_v48 = vmul.f32 -1.442695, %v6841_v56 }
 0xdd8   :  { %10914 = vpow2.f32 %v9969_v32 }
 0xdd9   :  { %10916 = vpow2.f32 %v9970_v48 }
 0xdda   :  { %v6817_v26 = vpop.f32.mrf.mxu2  ;;  %v6830_v29 = vpop.f32.mrf.mxu3 }
 0xddb   :  { %v6843_v40 = vadd.f32 %v6839_v41, %v6830_v29  ;;  %v6793_v50 = vpop.f32.mrf.mxu0  ;;  %v6806_v23 = vpop.f32.mrf.mxu1  ;;  %v6842_v3 = vadd.f32 %v6838_v34, %v6817_v26 }
 0xddd   :  { %v9971_v8 = vmul.f32 -1.442695, %v6843_v40 }
 0xdde   :  { %v10915_v30 = vpop.eup %10914 }
 0xddf   :  { %v10917_v9 = vpop.eup %10916  ;;  %v6847_v46 = vadd.f32 1.0, %v10915_v30  ;;  %10918 = vpow2.f32 %v9971_v8 }
 0xde0   :  { %v6866_v52 = vadd.f32 1.0, %v10917_v9 }
 0xde1   :  { %10920 = vrcp.f32 %v6847_v46  ;;  %v6859_v43 = vand.u32 2147483648, %v6847_v46  ;;  %v6857_v37 = vand.u32 2147483647, %v6847_v46  ;;  %vm6853_vm8 = vweird.f32 %v6847_v46 }
 0xde2   :  { %10922 = vrcp.f32 %v6866_v52  ;;  %v6819_v59 = vpop.f32.mrf.mxu2  ;;  %v6832_v62 = vpop.f32.mrf.mxu3  ;;  %v6878_v28 = vand.u32 2147483648, %v6866_v52  ;;  %v6876_v32 = vand.u32 2147483647, %v6866_v52  ;;  %vm6872_vm9 = vweird.f32 %v6866_v52 }
 0xde3   :  { %v6860_v41 = vor.u32 1.1754944e-38, %v6859_v43  ;;  %vm6858_vm12 = vcmp.eq.f32.partialorder %v6857_v37, 8.507059e+37 }
 0xde4   :  { %v6879_v40 = vor.u32 1.1754944e-38, %v6878_v28  ;;  %vm6877_vm13 = vcmp.eq.f32.partialorder %v6876_v32, 8.507059e+37 }
 0xde5   :  { %v10919_v25 = vpop.eup %10918 }
 0xde6   :  { %v6886_v54 = vadd.f32 1.0, %v10919_v25 }
 0xde7   :  { %v10921_v60 = vpop.eup %10920 }
 0xde8   :  { %v10923_v5 = vpop.eup %10922  ;;  %v6849_v49 = vmul.f32 %v10921_v60, %v6847_v46  ;;  %10924 = vrcp.f32 %v6886_v54  ;;  %vm6854_vm6 = vweird.f32 %v10921_v60  ;;  %vm6892_vm15 = vweird.f32 %v6886_v54 }
 0xde9   :  { %v6868_v19 = vmul.f32 %v10923_v5, %v6866_v52  ;;  %10926 = vtanh.f32 %v6842_v3  ;;  %vm6873_vm7 = vweird.f32 %v10923_v5  ;;  %vm6855_vm10 = vmor %vm6853_vm8, %vm6854_vm6  ;;  %v6898_v3 = vand.u32 2147483648, %v6886_v54 }
 0xdea   :  { %v6850_v22 = vsub.f32 1.0, %v6849_v49  ;;  %vm6874_vm11 = vmor %vm6872_vm9, %vm6873_vm7 }
 0xdeb   :  { %v6869_v47 = vsub.f32 1.0, %v6868_v19  ;;  %v6899_v19 = vor.u32 1.1754944e-38, %v6898_v3 }
 0xdec   :  { %v6851_v12 = vmul.f32 %v10921_v60, %v6850_v22 }
 0xded   :  { %v6870_v56 = vmul.f32 %v10923_v5, %v6869_v47 }
 0xdee   :  { %v10925_v48 = vpop.eup %10924  ;;  %v6852_v39 = vadd.f32 %v10921_v60, %v6851_v12 }
 0xdef   :  { %v6871_v26 = vadd.f32 %v10923_v5, %v6870_v56  ;;  %v6888_v29 = vmul.f32 %v10925_v48, %v6886_v54  ;;  %v10927_v23 = vpop.eup %10926  ;;  %vm6893_vm14 = vweird.f32 %v10925_v48 }
 0xdf0   :  { %v6856_v50 = vsel %vm6855_vm10, %v10921_v60, %v6852_v39  ;;  %v6896_v60 = vand.u32 2147483647, %v6886_v54  ;;  %vm6894_vm0 = vmor %vm6892_vm15, %vm6893_vm14 }
 0xdf1   :  { %v6861_v8 = vsel %vm6858_vm12, %v6860_v41, %v6856_v50  ;;  %v6875_v30 = vsel %vm6874_vm11, %v10923_v5, %v6871_v26  ;;  %v6889_v9 = vsub.f32 1.0, %v6888_v29  ;;  %v12462_v41 = vld [vmem:[#allocation21_spill] sm:$0xff] }
 0xdf2   :  { %v6880_v59 = vsel %vm6877_vm13, %v6879_v40, %v6875_v30  ;;  %v6903_v62 = vmul.f32 %v10927_v23, %v6861_v8  ;;  %vm6897_vm1 = vcmp.eq.f32.partialorder %v6896_v60, 8.507059e+37  ;;  %v6965_v26 = vunpack.c.h.bf16 %v12462_v41 }
 0xdf3   :  { %v6902_v25 = vmul.f32 %v6880_v59, %v12252_v45  ;;  %v6890_v34 = vmul.f32 %v10925_v48, %v6889_v9  ;;  %v12461_v45 = vld [vmem:[#allocation20_spill] sm:$0xff]  ;;  %v6964_v60 = vunpack.c.l.bf16 %v12462_v41 }
 0xdf4   :  { %v6962_v54 = vunpack.c.l.bf16 %v12461_v45  ;;  %v6963_v28 = vunpack.c.h.bf16 %v12461_v45 }
 0xdf5   :  { %v12292_v46 = vadd.f32 %v6903_v62, %v6902_v25  ;;  %v6891_v52 = vadd.f32 %v10925_v48, %v6890_v34 }
 0xdf7   :  { %10928 = vtanh.f32 %v12292_v46  ;;  %v6895_v49 = vsel %vm6894_vm0, %v10925_v48, %v6891_v52 }
 0xdf8   :  { %v6900_v22 = vsel %vm6897_vm1, %v6899_v19, %v6895_v49 }
 0xdfd   :  { %v10929_v5 = vpop.eup %10928 }
 0xdfe   :  { %v6906_v47 = vmul.f32 %v10929_v5, %v6900_v22 }
 0xe00   :  { %v6907_v43 = vpack.c.bf16 %v6906_v47, %v6906_v47 }
 0xe02   :  { %6916 = vmatmul.bf16.vlgmr.msrb.gmra.mxu0 %v6907_v43  ;;  %6929 = vmatmul.bf16.vlgmr.msrb.gmra.mxu1 %v6907_v43 }
 0xe03   :  { %6942 = vmatmul.bf16.vlgmr.msrb.gmra.mxu2 %v6907_v43  ;;  %6955 = vmatmul.bf16.vlgmr.msrb.gmra.mxu3 %v6907_v43 }
 0xe04   :  { %7160 = vmatpush.bf16.msrb.mxu0 %v11844_v21  ;;  %7173 = vmatpush.bf16.msrb.mxu1 %v11846_v24 }
 0xe05   :  { %7186 = vmatpush.bf16.msrb.mxu2 %v11856_v0  ;;  %7199 = vmatpush.bf16.msrb.mxu3 %v11851_v51 }
 0xe08   :  { %7161 = vmatpush.bf16.msrb.mxu0 %v11875_v38  ;;  %7174 = vmatpush.bf16.msrb.mxu1 %v11877_v4 }
 0xe09   :  { %7187 = vmatpush.bf16.msrb.mxu2 %v11919_v36  ;;  %7200 = vmatpush.bf16.msrb.mxu3 %v11884_v20 }
 0xe0c   :  { %7162 = vmatpush.bf16.msrb.mxu0 %v11886_v16  ;;  %7175 = vmatpush.bf16.msrb.mxu1 %v11891_v10 }
 0xe0d   :  { %7188 = vmatpush.bf16.msrb.mxu2 %v11948_v18  ;;  %7201 = vmatpush.bf16.msrb.mxu3 %v11896_v55 }
 0xe10   :  { %7163 = vmatpush.bf16.msrb.mxu0 %v11921_v2  ;;  %7176 = vmatpush.bf16.msrb.mxu1 %v11923_v58 }
 0xe11   :  { %7189 = vmatpush.bf16.msrb.mxu2 %v11976_v27  ;;  %7202 = vmatpush.bf16.msrb.mxu3 %v11946_v57 }
 0xe14   :  { %7164 = vmatpush.bf16.msrb.mxu0 %v11955_v15  ;;  %7177 = vmatpush.bf16.msrb.mxu1 %v11962_v53 }
 0xe15   :  { %7190 = vmatpush.bf16.msrb.mxu2 %v12001_v63  ;;  %7203 = vmatpush.bf16.msrb.mxu3 %v11974_v14 }
 0xe18   :  { %7165 = vmatpush.bf16.msrb.mxu0 %v11978_v17  ;;  %7178 = vmatpush.bf16.msrb.mxu1 %v11987_v11 }
 0xe19   :  { %7191 = vmatpush.bf16.msrb.mxu2 %v12022_v33  ;;  %7204 = vmatpush.bf16.msrb.mxu3 %v11991_v61 }
 0xe1c   :  { %7166 = vmatpush.bf16.msrb.mxu0 %v12003_v35  ;;  %7179 = vmatpush.bf16.msrb.mxu1 %v12009_v42 }
 0xe1d   :  { %7192 = vmatpush.bf16.msrb.mxu2 %v12047_v6  ;;  %7205 = vmatpush.bf16.msrb.mxu3 %v12017_v44 }
 0xe20   :  { %7167 = vmatpush.bf16.msrb.mxu0 %v12032_v7  ;;  %7180 = vmatpush.bf16.msrb.mxu1 %v12034_v31 }
 0xe21   :  { %7193 = vmatpush.bf16.msrb.mxu2 %v12059_v13  ;;  %7206 = vmatpush.bf16.msrb.mxu3 %v12042_v1 }
 0xe7f   :  { %v6917_v12 = vpop.f32.mrf.mxu0  ;;  %v6930_v37 = vpop.f32.mrf.mxu1 }
 0xe80   :  { %v6966_v56 = vadd.f32 %v6962_v54, %v6917_v12  ;;  %v6967_v32 = vadd.f32 %v6963_v28, %v6930_v37 }
 0xe82   :  { %v9972_v48 = vmul.f32 -1.442695, %v6966_v56  ;;  %v9973_v39 = vmul.f32 -1.442695, %v6967_v32 }
 0xe84   :  { %10930 = vpow2.f32 %v9972_v48 }
 0xe85   :  { %10932 = vpow2.f32 %v9973_v39 }
 0xe86   :  { %v6943_v29 = vpop.f32.mrf.mxu2  ;;  %v6956_v40 = vpop.f32.mrf.mxu3 }
 0xe87   :  { %v6969_v50 = vadd.f32 %v6965_v26, %v6956_v40  ;;  %v6919_v23 = vpop.f32.mrf.mxu0  ;;  %v6932_v8 = vpop.f32.mrf.mxu1  ;;  %v6968_v5 = vadd.f32 %v6964_v60, %v6943_v29 }
 0xe89   :  { %v9974_v30 = vmul.f32 -1.442695, %v6969_v50 }
 0xe8a   :  { %v10931_v9 = vpop.eup %10930 }
 0xe8b   :  { %v10933_v59 = vpop.eup %10932  ;;  %v6973_v62 = vadd.f32 1.0, %v10931_v9  ;;  %10934 = vpow2.f32 %v9974_v30 }
 0xe8c   :  { %v6992_v25 = vadd.f32 1.0, %v10933_v59 }
 0xe8d   :  { %10936 = vrcp.f32 %v6973_v62  ;;  %v6985_v28 = vand.u32 2147483648, %v6973_v62  ;;  %v6983_v56 = vand.u32 2147483647, %v6973_v62  ;;  %vm6979_vm4 = vweird.f32 %v6973_v62 }
 0xe8e   :  { %10938 = vrcp.f32 %v6992_v25  ;;  %v6945_v34 = vpop.f32.mrf.mxu2  ;;  %v6958_v52 = vpop.f32.mrf.mxu3  ;;  %v7004_v12 = vand.u32 2147483648, %v6992_v25  ;;  %v7002_v48 = vand.u32 2147483647, %v6992_v25  ;;  %vm6998_vm5 = vweird.f32 %v6992_v25 }
 0xe8f   :  { %v6986_v26 = vor.u32 1.1754944e-38, %v6985_v28  ;;  %vm6984_vm8 = vcmp.eq.f32.partialorder %v6983_v56, 8.507059e+37 }
 0xe90   :  { %v7005_v50 = vor.u32 1.1754944e-38, %v7004_v12  ;;  %vm7003_vm9 = vcmp.eq.f32.partialorder %v7002_v48, 8.507059e+37 }
 0xe91   :  { %v10935_v3 = vpop.eup %10934 }
 0xe92   :  { %v7012_v49 = vadd.f32 1.0, %v10935_v3 }
 0xe93   :  { %v10937_v19 = vpop.eup %10936 }
 0xe94   :  { %v10939_v22 = vpop.eup %10938  ;;  %v6975_v47 = vmul.f32 %v10937_v19, %v6973_v62  ;;  %10940 = vrcp.f32 %v7012_v49  ;;  %vm6980_vm2 = vweird.f32 %v10937_v19  ;;  %vm7018_vm11 = vweird.f32 %v7012_v49 }
 0xe95   :  { %v6994_v43 = vmul.f32 %v10939_v22, %v6992_v25  ;;  %10942 = vtanh.f32 %v6968_v5  ;;  %vm6999_vm3 = vweird.f32 %v10939_v22  ;;  %vm6981_vm6 = vmor %vm6979_vm4, %vm6980_vm2  ;;  %v7024_v5 = vand.u32 2147483648, %v7012_v49 }
 0xe96   :  { %v6976_v45 = vsub.f32 1.0, %v6975_v47  ;;  %vm7000_vm7 = vmor %vm6998_vm5, %vm6999_vm3 }
 0xe97   :  { %v6995_v54 = vsub.f32 1.0, %v6994_v43  ;;  %v7025_v43 = vor.u32 1.1754944e-38, %v7024_v5 }
 0xe98   :  { %v6977_v37 = vmul.f32 %v10937_v19, %v6976_v45 }
 0xe99   :  { %v6996_v32 = vmul.f32 %v10939_v22, %v6995_v54 }
 0xe9a   :  { %v10941_v39 = vpop.eup %10940  ;;  %v6978_v41 = vadd.f32 %v10937_v19, %v6977_v37 }
 0xe9b   :  { %v6997_v29 = vadd.f32 %v10939_v22, %v6996_v32  ;;  %v7014_v40 = vmul.f32 %v10941_v39, %v7012_v49  ;;  %v10943_v8 = vpop.eup %10942  ;;  %vm7019_vm10 = vweird.f32 %v10941_v39 }
 0xe9c   :  { %v6982_v23 = vsel %vm6981_vm6, %v10937_v19, %v6978_v41  ;;  %v7022_v19 = vand.u32 2147483647, %v7012_v49  ;;  %vm7020_vm12 = vmor %vm7018_vm11, %vm7019_vm10 }
 0xe9d   :  { %v6987_v30 = vsel %vm6984_vm8, %v6986_v26, %v6982_v23  ;;  %v7001_v9 = vsel %vm7000_vm7, %v10939_v22, %v6997_v29  ;;  %v7015_v59 = vsub.f32 1.0, %v7014_v40 }
 0xe9e   :  { %v7006_v34 = vsel %vm7003_vm9, %v7005_v50, %v7001_v9  ;;  %v7029_v52 = vmul.f32 %v10943_v8, %v6987_v30  ;;  %vm7023_vm13 = vcmp.eq.f32.partialorder %v7022_v19, 8.507059e+37 }
 0xe9f   :  { %v7028_v3 = vmul.f32 %v7006_v34, %v12292_v46  ;;  %v7016_v60 = vmul.f32 %v10941_v39, %v7015_v59 }
 0xea1   :  { %v12332_v62 = vadd.f32 %v7029_v52, %v7028_v3  ;;  %v7017_v25 = vadd.f32 %v10941_v39, %v7016_v60 }
 0xea3   :  { %10944 = vtanh.f32 %v12332_v62  ;;  %v7021_v47 = vsel %vm7020_vm12, %v10941_v39, %v7017_v25 }
 0xea4   :  { %v7026_v45 = vsel %vm7023_vm13, %v7025_v43, %v7021_v47 }
 0xea9   :  { %v10945_v22 = vpop.eup %10944 }
 0xeaa   :  { %v7032_v54 = vmul.f32 %v10945_v22, %v7026_v45 }
 0xeac   :  { %v7033_v28 = vpack.c.bf16 %v7032_v54, %v7032_v54 }
 0xeae   :  { %7042 = vmatmul.bf16.vlgmr.msra.gmra.mxu0 %v7033_v28  ;;  %7055 = vmatmul.bf16.vlgmr.msra.gmra.mxu1 %v7033_v28 }
 0xeaf   :  { %7068 = vmatmul.bf16.vlgmr.msra.gmra.mxu2 %v7033_v28  ;;  %7081 = vmatmul.bf16.vlgmr.msra.gmra.mxu3 %v7033_v28 }
 0xeb0   :  { %7286 = vmatpush.bf16.msra.mxu0 %v11844_v21  ;;  %7299 = vmatpush.bf16.msra.mxu1 %v11846_v24  ;;  %v12463_v21 = vld [vmem:[#allocation16_spill] sm:$0xff]  ;;  %v12464_v24 = vld [vmem:[#allocation22_spill] sm:$0xff] }
 0xeb1   :  { %7312 = vmatpush.bf16.msra.mxu2 %v11856_v0  ;;  %7325 = vmatpush.bf16.msra.mxu3 %v11851_v51  ;;  %v6086_v51 = vadd.f32 %v12464_v24, %v12463_v21  ;;  %v12465_v0 = vld [vmem:[#allocation17_spill] sm:$0xff] }
 0xeb4   :  { %7287 = vmatpush.bf16.msra.mxu0 %v11875_v38  ;;  %7300 = vmatpush.bf16.msra.mxu1 %v11877_v4  ;;  %v12466_v38 = vld [vmem:[#allocation23_spill] sm:$0xff] }
 0xeb5   :  { %7313 = vmatpush.bf16.msra.mxu2 %v11919_v36  ;;  %7326 = vmatpush.bf16.msra.mxu3 %v11884_v20  ;;  %v6115_v4 = vadd.f32 %v12466_v38, %v12465_v0  ;;  %v12469_v36 = vld [vmem:[#allocation19_spill] sm:$0xff] }
 0xeb7   :  { %v6190_v20 = vpack.c.bf16 %v6115_v4, %v6086_v51 }
 0xeb8   :  { %7288 = vmatpush.bf16.msra.mxu0 %v11886_v16  ;;  %7301 = vmatpush.bf16.msra.mxu1 %v11891_v10  ;;  %v12467_v16 = vld [vmem:[#allocation18_spill] sm:$0xff]  ;;  %v12468_v10 = vld [vmem:[#allocation24_spill] sm:$0xff] }
 0xeb9   :  { %7314 = vmatpush.bf16.msra.mxu2 %v11948_v18  ;;  %7327 = vmatpush.bf16.msra.mxu3 %v11896_v55  ;;  %v6144_v55 = vadd.f32 %v12468_v10, %v12467_v16  ;;  %v7089_v18 = vunpack.c.h.bf16 %v6190_v20 }
 0xebc   :  { %7289 = vmatpush.bf16.msra.mxu0 %v11921_v2  ;;  %7302 = vmatpush.bf16.msra.mxu1 %v11923_v58  ;;  %v12470_v2 = vld [vmem:[#allocation25_spill] sm:$0xff] }
 0xebd   :  { %7315 = vmatpush.bf16.msra.mxu2 %v11976_v27  ;;  %7328 = vmatpush.bf16.msra.mxu3 %v11946_v57  ;;  %v6173_v58 = vadd.f32 %v12470_v2, %v12469_v36  ;;  %v7088_v57 = vunpack.c.l.bf16 %v6190_v20 }
 0xec0   :  { %7290 = vmatpush.bf16.msra.mxu0 %v11955_v15  ;;  %7303 = vmatpush.bf16.msra.mxu1 %v11962_v53 }
 0xec1   :  { %7316 = vmatpush.bf16.msra.mxu2 %v12001_v63  ;;  %7329 = vmatpush.bf16.msra.mxu3 %v11974_v14 }
 0xec4   :  { %7291 = vmatpush.bf16.msra.mxu0 %v11978_v17  ;;  %7304 = vmatpush.bf16.msra.mxu1 %v11987_v11  ;;  %v6191_v17 = vpack.c.bf16 %v6173_v58, %v6144_v55 }
 0xec5   :  { %7317 = vmatpush.bf16.msra.mxu2 %v12022_v33  ;;  %7330 = vmatpush.bf16.msra.mxu3 %v11991_v61 }
 0xec6   :  { %v7091_v63 = vunpack.c.h.bf16 %v6191_v17  ;;  %v7090_v56 = vunpack.c.l.bf16 %v6191_v17 }
 0xec8   :  { %7292 = vmatpush.bf16.msra.mxu0 %v12003_v35  ;;  %7305 = vmatpush.bf16.msra.mxu1 %v12009_v42 }
 0xec9   :  { %7318 = vmatpush.bf16.msra.mxu2 %v12047_v6  ;;  %7331 = vmatpush.bf16.msra.mxu3 %v12017_v44 }
 0xecc   :  { %7293 = vmatpush.bf16.msra.mxu0 %v12032_v7  ;;  %7306 = vmatpush.bf16.msra.mxu1 %v12034_v31 }
 0xecd   :  { %7319 = vmatpush.bf16.msra.mxu2 %v12059_v13  ;;  %7332 = vmatpush.bf16.msra.mxu3 %v12042_v1 }
 0xf2b   :  { %v7043_v15 = vpop.f32.mrf.mxu0  ;;  %v7056_v53 = vpop.f32.mrf.mxu1 }
 0xf2c   :  { %v7092_v14 = vadd.f32 %v7088_v57, %v7043_v15  ;;  %v7093_v27 = vadd.f32 %v7089_v18, %v7056_v53 }
 0xf2e   :  { %v9975_v11 = vmul.f32 -1.442695, %v7092_v14  ;;  %v9976_v61 = vmul.f32 -1.442695, %v7093_v27 }
 0xf30   :  { %10946 = vpow2.f32 %v9975_v11 }
 0xf31   :  { %10948 = vpow2.f32 %v9976_v61  ;;  %v12472_v61 = vld [vmem:[#allocation27_spill] sm:$0xff] }
 0xf32   :  { %v7069_v35 = vpop.f32.mrf.mxu2  ;;  %v7082_v42 = vpop.f32.mrf.mxu3 }
 0xf33   :  { %v7095_v44 = vadd.f32 %v7091_v63, %v7082_v42  ;;  %v7045_v33 = vpop.f32.mrf.mxu0  ;;  %v7058_v7 = vpop.f32.mrf.mxu1  ;;  %v7094_v39 = vadd.f32 %v7090_v56, %v7069_v35  ;;  %v7217_v63 = vunpack.c.h.bf16 %v12472_v61  ;;  %v7216_v56 = vunpack.c.l.bf16 %v12472_v61  ;;  %v12474_v61 = vld [vmem:[#allocation29_spill] sm:$0xff] }
 0xf35   :  { %v9977_v31 = vmul.f32 -1.442695, %v7095_v44 }
 0xf36   :  { %v10947_v1 = vpop.eup %10946 }
 0xf37   :  { %v10949_v6 = vpop.eup %10948  ;;  %v7099_v13 = vadd.f32 1.0, %v10947_v1  ;;  %10950 = vpow2.f32 %v9977_v31 }
 0xf38   :  { %v7118_v46 = vadd.f32 1.0, %v10949_v6 }
 0xf39   :  { %10952 = vrcp.f32 %v7099_v13  ;;  %v7111_v23 = vand.u32 2147483648, %v7099_v13  ;;  %v7109_v9 = vand.u32 2147483647, %v7099_v13  ;;  %vm7105_vm0 = vweird.f32 %v7099_v13 }
 0xf3a   :  { %10954 = vrcp.f32 %v7118_v46  ;;  %v7071_v49 = vpop.f32.mrf.mxu2  ;;  %v7084_v12 = vpop.f32.mrf.mxu3  ;;  %v7130_v8 = vand.u32 2147483648, %v7118_v46  ;;  %v7128_v34 = vand.u32 2147483647, %v7118_v46  ;;  %vm7124_vm1 = vweird.f32 %v7118_v46 }
 0xf3b   :  { %v7112_v60 = vor.u32 1.1754944e-38, %v7111_v23  ;;  %vm7110_vm4 = vcmp.eq.f32.partialorder %v7109_v9, 8.507059e+37 }
 0xf3c   :  { %v7131_v19 = vor.u32 1.1754944e-38, %v7130_v8  ;;  %vm7129_vm5 = vcmp.eq.f32.partialorder %v7128_v34, 8.507059e+37 }
 0xf3d   :  { %v10951_v37 = vpop.eup %10950 }
 0xf3e   :  { %v7138_v32 = vadd.f32 1.0, %v10951_v37 }
 0xf3f   :  { %v10953_v48 = vpop.eup %10952 }
 0xf40   :  { %v10955_v41 = vpop.eup %10954  ;;  %v7101_v26 = vmul.f32 %v10953_v48, %v7099_v13  ;;  %10956 = vrcp.f32 %v7138_v32  ;;  %vm7106_vm14 = vweird.f32 %v10953_v48  ;;  %v7150_v4 = vand.u32 2147483648, %v7138_v32 }
 0xf41   :  { %v7120_v29 = vmul.f32 %v10955_v41, %v7118_v46  ;;  %10958 = vtanh.f32 %v7094_v39  ;;  %vm7125_vm15 = vweird.f32 %v10955_v41  ;;  %vm7107_vm2 = vmor %vm7105_vm0, %vm7106_vm14  ;;  %vm7144_vm7 = vweird.f32 %v7138_v32 }
 0xf42   :  { %v7102_v40 = vsub.f32 1.0, %v7101_v26  ;;  %vm7126_vm3 = vmor %vm7124_vm1, %vm7125_vm15  ;;  %v7148_v20 = vand.u32 2147483647, %v7138_v32  ;;  %v7151_v10 = vor.u32 1.1754944e-38, %v7150_v4 }
 0xf43   :  { %v7121_v50 = vsub.f32 1.0, %v7120_v29 }
 0xf44   :  { %v7103_v30 = vmul.f32 %v10953_v48, %v7102_v40  ;;  %vm7149_vm9 = vcmp.eq.f32.partialorder %v7148_v20, 8.507059e+37 }
 0xf45   :  { %v7122_v59 = vmul.f32 %v10955_v41, %v7121_v50 }
 0xf46   :  { %v10957_v52 = vpop.eup %10956  ;;  %v7104_v3 = vadd.f32 %v10953_v48, %v7103_v30 }
 0xf47   :  { %v7123_v25 = vadd.f32 %v10955_v41, %v7122_v59  ;;  %v7140_v5 = vmul.f32 %v10957_v52, %v7138_v32  ;;  %v10959_v43 = vpop.eup %10958  ;;  %vm7145_vm6 = vweird.f32 %v10957_v52 }
 0xf48   :  { %v7108_v47 = vsel %vm7107_vm2, %v10953_v48, %v7104_v3  ;;  %vm7146_vm8 = vmor %vm7144_vm7, %vm7145_vm6 }
 0xf49   :  { %v7113_v22 = vsel %vm7110_vm4, %v7112_v60, %v7108_v47  ;;  %v7127_v45 = vsel %vm7126_vm3, %v10955_v41, %v7123_v25  ;;  %v7141_v54 = vsub.f32 1.0, %v7140_v5 }
 0xf4a   :  { %v7132_v28 = vsel %vm7129_vm5, %v7131_v19, %v7127_v45  ;;  %v7155_v21 = vmul.f32 %v10959_v43, %v7113_v22 }
 0xf4b   :  { %v7154_v24 = vmul.f32 %v7132_v28, %v12332_v62  ;;  %v7142_v51 = vmul.f32 %v10957_v52, %v7141_v54  ;;  %v12471_v62 = vld [vmem:[#allocation26_spill] sm:$0xff] }
 0xf4c   :  { %v7214_v57 = vunpack.c.l.bf16 %v12471_v62  ;;  %v7215_v18 = vunpack.c.h.bf16 %v12471_v62 }
 0xf4d   :  { %v12376_v0 = vadd.f32 %v7155_v21, %v7154_v24  ;;  %v7143_v38 = vadd.f32 %v10957_v52, %v7142_v51 }
 0xf4f   :  { %10960 = vtanh.f32 %v12376_v0  ;;  %v7147_v16 = vsel %vm7146_vm8, %v10957_v52, %v7143_v38 }
 0xf50   :  { %v7152_v36 = vsel %vm7149_vm9, %v7151_v10, %v7147_v16 }
 0xf55   :  { %v10961_v55 = vpop.eup %10960 }
 0xf56   :  { %v7158_v2 = vmul.f32 %v10961_v55, %v7152_v36 }
 0xf58   :  { %v7159_v58 = vpack.c.bf16 %v7158_v2, %v7158_v2 }
 0xf5a   :  { %7168 = vmatmul.bf16.vlgmr.msrb.gmra.mxu0 %v7159_v58  ;;  %7181 = vmatmul.bf16.vlgmr.msrb.gmra.mxu1 %v7159_v58 }
 0xf5b   :  { %7194 = vmatmul.bf16.vlgmr.msrb.gmra.mxu2 %v7159_v58  ;;  %7207 = vmatmul.bf16.vlgmr.msrb.gmra.mxu3 %v7159_v58 }
 0xfd7   :  { %v7169_v15 = vpop.f32.mrf.mxu0  ;;  %v7182_v53 = vpop.f32.mrf.mxu1 }
 0xfd8   :  { %v7218_v14 = vadd.f32 %v7214_v57, %v7169_v15  ;;  %v7219_v27 = vadd.f32 %v7215_v18, %v7182_v53 }
 0xfda   :  { %v9978_v17 = vmul.f32 -1.442695, %v7218_v14  ;;  %v9979_v11 = vmul.f32 -1.442695, %v7219_v27 }
 0xfdc   :  { %10962 = vpow2.f32 %v9978_v17 }
 0xfdd   :  { %10964 = vpow2.f32 %v9979_v11 }
 0xfde   :  { %v7195_v35 = vpop.f32.mrf.mxu2  ;;  %v7208_v42 = vpop.f32.mrf.mxu3 }
 0xfdf   :  { %v7221_v44 = vadd.f32 %v7217_v63, %v7208_v42  ;;  %v7171_v33 = vpop.f32.mrf.mxu0  ;;  %v7184_v7 = vpop.f32.mrf.mxu1  ;;  %v7220_v39 = vadd.f32 %v7216_v56, %v7195_v35  ;;  %v7343_v63 = vunpack.c.h.bf16 %v12474_v61  ;;  %v7342_v56 = vunpack.c.l.bf16 %v12474_v61 }
 0xfe1   :  { %v9980_v31 = vmul.f32 -1.442695, %v7221_v44 }
 0xfe2   :  { %v10963_v1 = vpop.eup %10962 }
 0xfe3   :  { %v10965_v6 = vpop.eup %10964  ;;  %v7225_v13 = vadd.f32 1.0, %v10963_v1  ;;  %10966 = vpow2.f32 %v9980_v31 }
 0xfe4   :  { %v7244_v46 = vadd.f32 1.0, %v10965_v6 }
 0xfe5   :  { %10968 = vrcp.f32 %v7225_v13  ;;  %v7237_v23 = vand.u32 2147483648, %v7225_v13  ;;  %v7235_v9 = vand.u32 2147483647, %v7225_v13  ;;  %vm7231_vm12 = vweird.f32 %v7225_v13 }
 0xfe6   :  { %10970 = vrcp.f32 %v7244_v46  ;;  %v7197_v49 = vpop.f32.mrf.mxu2  ;;  %v7210_v12 = vpop.f32.mrf.mxu3  ;;  %v7256_v8 = vand.u32 2147483648, %v7244_v46  ;;  %v7254_v34 = vand.u32 2147483647, %v7244_v46  ;;  %vm7250_vm13 = vweird.f32 %v7244_v46 }
 0xfe7   :  { %v7238_v60 = vor.u32 1.1754944e-38, %v7237_v23  ;;  %vm7236_vm0 = vcmp.eq.f32.partialorder %v7235_v9, 8.507059e+37 }
 0xfe8   :  { %v7257_v19 = vor.u32 1.1754944e-38, %v7256_v8  ;;  %vm7255_vm1 = vcmp.eq.f32.partialorder %v7254_v34, 8.507059e+37 }
 0xfe9   :  { %v10967_v37 = vpop.eup %10966 }
 0xfea   :  { %v7264_v32 = vadd.f32 1.0, %v10967_v37 }
 0xfeb   :  { %v10969_v48 = vpop.eup %10968 }
 0xfec   :  { %v10971_v41 = vpop.eup %10970  ;;  %v7227_v26 = vmul.f32 %v10969_v48, %v7225_v13  ;;  %10972 = vrcp.f32 %v7264_v32  ;;  %vm7232_vm10 = vweird.f32 %v10969_v48  ;;  %v7276_v20 = vand.u32 2147483648, %v7264_v32 }
 0xfed   :  { %v7246_v29 = vmul.f32 %v10971_v41, %v7244_v46  ;;  %10974 = vtanh.f32 %v7220_v39  ;;  %vm7251_vm11 = vweird.f32 %v10971_v41  ;;  %vm7233_vm14 = vmor %vm7231_vm12, %vm7232_vm10  ;;  %vm7270_vm3 = vweird.f32 %v7264_v32 }
 0xfee   :  { %v7228_v40 = vsub.f32 1.0, %v7227_v26  ;;  %vm7252_vm15 = vmor %vm7250_vm13, %vm7251_vm11  ;;  %v7274_v16 = vand.u32 2147483647, %v7264_v32  ;;  %v7277_v55 = vor.u32 1.1754944e-38, %v7276_v20 }
 0xfef   :  { %v7247_v50 = vsub.f32 1.0, %v7246_v29 }
 0xff0   :  { %v7229_v30 = vmul.f32 %v10969_v48, %v7228_v40  ;;  %vm7275_vm5 = vcmp.eq.f32.partialorder %v7274_v16, 8.507059e+37 }
 0xff1   :  { %v7248_v59 = vmul.f32 %v10971_v41, %v7247_v50 }
 0xff2   :  { %v10973_v52 = vpop.eup %10972  ;;  %v7230_v3 = vadd.f32 %v10969_v48, %v7229_v30 }
 0xff3   :  { %v7249_v25 = vadd.f32 %v10971_v41, %v7248_v59  ;;  %v7266_v5 = vmul.f32 %v10973_v52, %v7264_v32  ;;  %v10975_v43 = vpop.eup %10974  ;;  %vm7271_vm2 = vweird.f32 %v10973_v52 }
 0xff4   :  { %v7234_v47 = vsel %vm7233_vm14, %v10969_v48, %v7230_v3  ;;  %vm7272_vm4 = vmor %vm7270_vm3, %vm7271_vm2  ;;  %vm7423_vm2 = vcmask 7168  }
 0xff5   :  { %v7239_v22 = vsel %vm7236_vm0, %v7238_v60, %v7234_v47  ;;  %v7253_v45 = vsel %vm7252_vm15, %v10971_v41, %v7249_v25  ;;  %v7267_v54 = vsub.f32 1.0, %v7266_v5 }
 0xff6   :  { %v7258_v28 = vsel %vm7255_vm1, %v7257_v19, %v7253_v45  ;;  %v7281_v21 = vmul.f32 %v10975_v43, %v7239_v22 }
 0xff7   :  { %v7280_v24 = vmul.f32 %v7258_v28, %v12376_v0  ;;  %v7268_v51 = vmul.f32 %v10973_v52, %v7267_v54  ;;  %v12473_v0 = vld [vmem:[#allocation28_spill] sm:$0xff] }
 0xff8   :  { %v7340_v57 = vunpack.c.l.bf16 %v12473_v0  ;;  %v7341_v18 = vunpack.c.h.bf16 %v12473_v0 }
 0xff9   :  { %v12384_v38 = vadd.f32 %v7281_v21, %v7280_v24  ;;  %v7269_v4 = vadd.f32 %v10973_v52, %v7268_v51 }
 0xffb   :  { %10976 = vtanh.f32 %v12384_v38  ;;  %v7273_v10 = vsel %vm7272_vm4, %v10973_v52, %v7269_v4 }
 0xffc   :  { %v7278_v2 = vsel %vm7275_vm5, %v7277_v55, %v7273_v10 }
0x1001   :  { %v10977_v36 = vpop.eup %10976 }
0x1002   :  { %v7284_v58 = vmul.f32 %v10977_v36, %v7278_v2  ;;  %v10608_v2 = vld [vmem:[%s12408_s10] ss:$0 sm:$0xff] }
0x1004   :  { %v7285_v62 = vpack.c.bf16 %v7284_v58, %v7284_v58 }
0x1006   :  { %7294 = vmatmul.bf16.vlgmr.msra.gmra.mxu0 %v7285_v62  ;;  %7307 = vmatmul.bf16.vlgmr.msra.gmra.mxu1 %v7285_v62 }
0x1007   :  { %7320 = vmatmul.bf16.vlgmr.msra.gmra.mxu2 %v7285_v62  ;;  %7333 = vmatmul.bf16.vlgmr.msra.gmra.mxu3 %v7285_v62 }
0x1083   :  { %v7295_v15 = vpop.f32.mrf.mxu0  ;;  %v7308_v53 = vpop.f32.mrf.mxu1 }
0x1084   :  { %v7344_v14 = vadd.f32 %v7340_v57, %v7295_v15  ;;  %v7345_v27 = vadd.f32 %v7341_v18, %v7308_v53 }
0x1086   :  { %v9981_v17 = vmul.f32 -1.442695, %v7344_v14  ;;  %v9982_v11 = vmul.f32 -1.442695, %v7345_v27 }
0x1088   :  { %10978 = vpow2.f32 %v9981_v17 }
0x1089   :  { %10980 = vpow2.f32 %v9982_v11 }
0x108a   :  { %v7321_v35 = vpop.f32.mrf.mxu2  ;;  %v7334_v42 = vpop.f32.mrf.mxu3 }
0x108b   :  { %v7347_v44 = vadd.f32 %v7343_v63, %v7334_v42  ;;  %v7297_v33 = vpop.f32.mrf.mxu0  ;;  %v7310_v7 = vpop.f32.mrf.mxu1  ;;  %v7346_v39 = vadd.f32 %v7342_v56, %v7321_v35 }
0x108d   :  { %v9983_v31 = vmul.f32 -1.442695, %v7347_v44 }
0x108e   :  { %v10979_v1 = vpop.eup %10978 }
0x108f   :  { %v10981_v6 = vpop.eup %10980  ;;  %v7351_v13 = vadd.f32 1.0, %v10979_v1  ;;  %10982 = vpow2.f32 %v9983_v31 }
0x1090   :  { %v7370_v46 = vadd.f32 1.0, %v10981_v6 }
0x1091   :  { %10984 = vrcp.f32 %v7351_v13  ;;  %v7363_v23 = vand.u32 2147483648, %v7351_v13  ;;  %v7361_v9 = vand.u32 2147483647, %v7351_v13  ;;  %vm7357_vm8 = vweird.f32 %v7351_v13 }
0x1092   :  { %10986 = vrcp.f32 %v7370_v46  ;;  %v7323_v49 = vpop.f32.mrf.mxu2  ;;  %v7336_v12 = vpop.f32.mrf.mxu3  ;;  %v7382_v8 = vand.u32 2147483648, %v7370_v46  ;;  %v7380_v34 = vand.u32 2147483647, %v7370_v46  ;;  %vm7376_vm9 = vweird.f32 %v7370_v46 }
0x1093   :  { %v7364_v60 = vor.u32 1.1754944e-38, %v7363_v23  ;;  %vm7362_vm12 = vcmp.eq.f32.partialorder %v7361_v9, 8.507059e+37 }
0x1094   :  { %v7383_v19 = vor.u32 1.1754944e-38, %v7382_v8  ;;  %vm7381_vm13 = vcmp.eq.f32.partialorder %v7380_v34, 8.507059e+37 }
0x1095   :  { %v10983_v37 = vpop.eup %10982 }
0x1096   :  { %v7390_v32 = vadd.f32 1.0, %v10983_v37 }
0x1097   :  { %v10985_v48 = vpop.eup %10984 }
0x1098   :  { %v10987_v41 = vpop.eup %10986  ;;  %v7353_v26 = vmul.f32 %v10985_v48, %v7351_v13  ;;  %10988 = vrcp.f32 %v7390_v32  ;;  %vm7358_vm6 = vweird.f32 %v10985_v48  ;;  %v7402_v16 = vand.u32 2147483648, %v7390_v32 }
0x1099   :  { %v7372_v29 = vmul.f32 %v10987_v41, %v7370_v46  ;;  %10990 = vtanh.f32 %v7346_v39  ;;  %vm7377_vm7 = vweird.f32 %v10987_v41  ;;  %vm7359_vm10 = vmor %vm7357_vm8, %vm7358_vm6  ;;  %vm7396_vm15 = vweird.f32 %v7390_v32 }
0x109a   :  { %v7354_v40 = vsub.f32 1.0, %v7353_v26  ;;  %vm7378_vm11 = vmor %vm7376_vm9, %vm7377_vm7  ;;  %v7400_v10 = vand.u32 2147483647, %v7390_v32  ;;  %v7403_v36 = vor.u32 1.1754944e-38, %v7402_v16 }
0x109b   :  { %v7373_v50 = vsub.f32 1.0, %v7372_v29 }
0x109c   :  { %v7355_v30 = vmul.f32 %v10985_v48, %v7354_v40  ;;  %vm7401_vm1 = vcmp.eq.f32.partialorder %v7400_v10, 8.507059e+37 }
0x109d   :  { %v7374_v59 = vmul.f32 %v10987_v41, %v7373_v50 }
0x109e   :  { %v10989_v52 = vpop.eup %10988  ;;  %v7356_v3 = vadd.f32 %v10985_v48, %v7355_v30 }
0x109f   :  { %v7375_v25 = vadd.f32 %v10987_v41, %v7374_v59  ;;  %v7392_v5 = vmul.f32 %v10989_v52, %v7390_v32  ;;  %v10991_v43 = vpop.eup %10990  ;;  %vm7397_vm14 = vweird.f32 %v10989_v52 }
0x10a0   :  { %v7360_v47 = vsel %vm7359_vm10, %v10985_v48, %v7356_v3  ;;  %vm7398_vm0 = vmor %vm7396_vm15, %vm7397_vm14 }
0x10a1   :  { %v7365_v22 = vsel %vm7362_vm12, %v7364_v60, %v7360_v47  ;;  %v7379_v45 = vsel %vm7378_vm11, %v10987_v41, %v7375_v25  ;;  %v7393_v54 = vsub.f32 1.0, %v7392_v5 }
0x10a2   :  { %v7407_v28 = vmul.f32 %v10991_v43, %v7365_v22  ;;  %v7384_v21 = vsel %vm7381_vm13, %v7383_v19, %v7379_v45 }
0x10a3   :  { %v7394_v24 = vmul.f32 %v10989_v52, %v7393_v54  ;;  %v7406_v51 = vmul.f32 %v7384_v21, %v12384_v38  ;;  %v10609_v38 = vld [vmem:[#allocation4] ss:$0 sm:$0xff] }
0x10a5   :  { %v7408_v4 = vadd.f32 %v7407_v28, %v7406_v51  ;;  %v7395_v20 = vadd.f32 %v10989_v52, %v7394_v24 }
0x10a7   :  { %10992 = vtanh.f32 %v7408_v4  ;;  %v7399_v55 = vsel %vm7398_vm0, %v10989_v52, %v7395_v20 }
0x10a8   :  { %v7404_v62 = vsel %vm7401_vm1, %v7403_v36, %v7399_v55 }
0x10ad   :  { %v10993_v58 = vpop.eup %10992 }
0x10ae   :  { %v7410_v0 = vmul.f32 %v10993_v58, %v7404_v62 }
0x10b0   :  { %v7415_v57 = vmul.f32 %v10608_v2, %v7410_v0 }
0x10b2   :  { %7416 = vadd.xlane.f32.xlu0 %v7415_v57 }
0x1125   :  { %v7417_v18 = vpop.xlane.xlu0 %7416 }
0x1126   :  { %v7422_v15 = vadd.f32 %v10609_v38, %v7417_v18 }
0x1128   :  { %7424 = vst.msk [vmem:[%s12410_s12] sm:$0xff] %vm7423_vm2, %v7422_v15 }
0x1129   :  { %7429 = vsyncpa [#allocation6], 1 }
0x112a   :  { %7430 = vsyncpa [#allocation8], 1 }
0x112b   :  { %7431 = vsyncpa [#allocation11], 1 }

</bundles_post_ra>
